<compile_context>
chip_gen: v6e
topology: v6e:2x2x1
jax: 0.10.0
libtpu: 0.0.40
codegen_flags: <defaults>
</compile_context>

<pallas_src>
import jax
import jax.numpy as jnp
from jax.experimental import pallas as pl
from jax.experimental.pallas import tpu as pltpu


# --------------------------------------------------------------------------
# fixed geometry of the vision net (implied by the PyTorch module)
# --------------------------------------------------------------------------
_IMG = 60           # input image is 60x60x1
_S1 = 4             # conv1 stride (also the space-to-depth block size)
_G1 = _IMG // _S1   # 15 : space-to-depth grid
_H1, _C1 = 14, 32   # conv1 output: 14x14x32
_H2, _C2 = 6, 64    # conv2 output: 6x6x64
_H3, _C3 = 4, 64    # conv3 output: 4x4x64
_VIS_FLAT = _H3 * _H3 * _C3                       # 1024
_WIN1 = _G1 * (_H1 - 1) + (_H1 - 1) + 1           # 209
_WIN2 = 2 * _H1 * (_H2 - 1) + 2 * (_H2 - 1) + 1   # 151
_WIN3 = _H2 * (_H3 - 1) + (_H3 - 1) + 1           # 22


def _full_spec(shape):
    nd = len(shape)
    return pl.BlockSpec(shape, lambda *_: (0,) * nd)


# --------------------------------------------------------------------------
# the fused kernel
# --------------------------------------------------------------------------
def _actor_kernel(xs2d_ref, rs_ref,
                  g1_ref, g2_ref, g3_ref,
                  w1_ref, b1_ref, w2_ref, b2_ref, w3_ref, b3_ref,
                  wf1v_ref, wf1r_ref, bf1_ref, wf2_ref, bf2_ref,
                  out_ref,
                  act1_ref, act2_ref, act3_ref):
    f32 = jnp.float32

    def dot(a, b):
        return jnp.dot(a, b, preferred_element_type=f32)

    g1 = g1_ref[...]                       # (196, 209) one-hot row gather
    g2 = g2_ref[...]                       # (36, 151)
    g3 = g3_ref[...]                       # (16, 22)

    # ---- conv1: 2x2 stride-1 conv over the space-to-depth image, + ReLU ----
    acc = jnp.zeros((_H1 * _H1, _C1), f32)
    for a in range(2):
        for b in range(2):
            off = _G1 * a + b                                  # 0, 1, 15, 16
            patch = dot(g1, xs2d_ref[pl.ds(off, _WIN1), :])    # (196, 16)
            acc = acc + dot(patch, w1_ref[2 * a + b])          # (196, 32)
    act1_ref[...] = jnp.maximum(acc + b1_ref[...], 0.0)        # (196, 32), row = h*14+w

    # ---- conv2: 4x4 stride-2, (14,14,32) -> (6,6,64), + ReLU ----
    acc = jnp.zeros((_H2 * _H2, _C2), f32)
    for kh in range(4):
        for kw in range(4):
            off = _H1 * kh + kw                                # 0..45
            patch = dot(g2, act1_ref[pl.ds(off, _WIN2), :])    # (36, 32)
            acc = acc + dot(patch, w2_ref[4 * kh + kw])        # (36, 64)
    act2_ref[...] = jnp.maximum(acc + b2_ref[...], 0.0)        # (36, 64), row = h*6+w

    # ---- conv3: 3x3 stride-1, (6,6,64) -> (4,4,64), + ReLU ----
    acc = jnp.zeros((_H3 * _H3, _C3), f32)
    for kh in range(3):
        for kw in range(3):
            off = _H2 * kh + kw                                # 0..14
            patch = dot(g3, act2_ref[pl.ds(off, _WIN3), :])    # (16, 64)
            acc = acc + dot(patch, w3_ref[3 * kh + kw])        # (16, 64)
    act3_ref[...] = jnp.maximum(acc + b3_ref[...], 0.0)        # (16, 64), row = h*4+w

    # ---- flatten + cat(robot_state) + fc1, fused into 17 row-matmuls ----
    # fc1 vision weights were pre-permuted into (16 spatial, 64 ch, 256), so
    # hid = bias + rs @ Wr + sum_k act3[k] @ Wv[k]   (no flatten buffer needed)
    hid = bf1_ref[...] + dot(rs_ref[...], wf1r_ref[...])       # (1, 256)
    for k in range(_H3 * _H3):
        hid = hid + dot(act3_ref[pl.ds(k, 1), :], wf1v_ref[k])
    hid = jnp.maximum(hid, 0.0)

    # ---- fc2 ----
    out_ref[...] = (dot(hid, wf2_ref[...]) + bf2_ref[...]).astype(out_ref.dtype)


# --------------------------------------------------------------------------
# parameter init: generate PyTorch-layout weights, then fold ALL layout work
# (transposes / reshapes / flatten-order permutation / gather matrices) into
# init so the per-call forward has no weight-shaping XLA ops.
# --------------------------------------------------------------------------
def _gather_onehot(n_out, w_out, row_stride, col_stride, window):
    # B[m, n] = 1.0 where n == row_stride*(m // w_out) + col_stride*(m % w_out)
    m = jnp.arange(n_out)
    src = row_stride * (m // w_out) + col_stride * (m % w_out)
    return jax.nn.one_hot(src, window, dtype=jnp.float32)


def init_params(key, action_shape, robot_state_shape):
    ks = jax.random.split(key, 10)
    scale = 0.05

    def w(k, shape):
        return (scale * jax.random.normal(k, shape)).astype(jnp.float32)

    # PyTorch-layout parameters (what the nn.Module would hold)
    conv1_w = w(ks[0], (32, 1, 8, 8))        # (OC, C, KH, KW)
    conv1_b = w(ks[1], (32,))
    conv2_w = w(ks[2], (64, 32, 4, 4))
    conv2_b = w(ks[3], (64,))
    conv3_w = w(ks[4], (64, 64, 3, 3))
    conv3_b = w(ks[5], (64,))
    fc1_w = w(ks[6], (_VIS_FLAT + robot_state_shape, 256))   # row i ~ combined[i]
    fc1_b = w(ks[7], (256,))
    fc2_w = w(ks[8], (256, action_shape))
    fc2_b = w(ks[9], (action_shape,))

    # conv1 as a 2x2 stride-1 conv over the 4x4 space-to-depth image:
    #   w1[a*2+b, p*4+q, oc] = conv1_w[oc, 0, 4a+p, 4b+q]
    w1 = conv1_w.reshape(32, 2, 4, 2, 4).transpose(1, 3, 2, 4, 0).reshape(4, 16, 32)
    # conv2/conv3: (KH*KW, Cin, Cout), kernel-position-major rows
    w2 = conv2_w.transpose(2, 3, 1, 0).reshape(16, 32, 64)
    w3 = conv3_w.transpose(2, 3, 1, 0).reshape(9, 64, 64)

    # fc1: vision rows permuted from PyTorch NCHW-flatten order (c*16 + h*4 + w)
    # to the kernel's per-spatial-row layout (h*4+w, c); robot rows kept apart.
    wf1v = (fc1_w[:_VIS_FLAT].reshape(64, 4, 4, 256)
            .transpose(1, 2, 0, 3)
            .reshape(_H3 * _H3, _C3, 256))                    # (16, 64, 256)
    wf1r = fc1_w[_VIS_FLAT:]                                  # (R, 256)

    # one-hot row-gather matrices (shared across kernel positions via a
    # per-position window offset inside the kernel)
    g1 = _gather_onehot(_H1 * _H1, _H1, _G1, 1, _WIN1)        # (196, 209)
    g2 = _gather_onehot(_H2 * _H2, _H2, 2 * _H1, 2, _WIN2)    # (36, 151)
    g3 = _gather_onehot(_H3 * _H3, _H3, _H2, 1, _WIN3)        # (16, 22)

    return {
        "g1": g1, "g2": g2, "g3": g3,
        "w1": w1, "b1": conv1_b.reshape(1, 32),
        "w2": w2, "b2": conv2_b.reshape(1, 64),
        "w3": w3, "b3": conv3_b.reshape(1, 64),
        "fc1_wv": wf1v, "fc1_wr": wf1r, "fc1_b": fc1_b.reshape(1, 256),
        "fc2_w": fc2_w, "fc2_b": fc2_b.reshape(1, action_shape),
    }


# --------------------------------------------------------------------------
# forward: one tiny XLA space-to-depth transpose + ONE fused pallas_call
# --------------------------------------------------------------------------
def actor_forward(params, vision, robot_state):
    assert vision.shape == (1, 1, _IMG, _IMG), vision.shape
    robot_dim = int(robot_state.shape[-1])
    action_dim = int(params["fc2_w"].shape[1])

    # space-to-depth: xs2d[r*15+s, p*4+q] = x[4r+p, 4s+q]  (14 KB, fuses in XLA)
    xs2d = vision.reshape(_G1, _S1, _G1, _S1).transpose(0, 2, 1, 3)
    xs2d = xs2d.reshape(_G1 * _G1, _S1 * _S1)
    rs = robot_state.reshape(1, robot_dim)             # torch: unsqueeze(0)
    # TODO(synk): the module's debug `print(robot_state.size())` is a host-side
    # side effect with no kernel equivalent; intentionally omitted.

    in_arrays = [
        xs2d, rs,
        params["g1"], params["g2"], params["g3"],
        params["w1"], params["b1"], params["w2"], params["b2"],
        params["w3"], params["b3"],
        params["fc1_wv"], params["fc1_wr"], params["fc1_b"],
        params["fc2_w"], params["fc2_b"],
    ]

    return pl.pallas_call(
        _actor_kernel,
        out_shape=jax.ShapeDtypeStruct((1, action_dim), jnp.float32),
        in_specs=[_full_spec(a.shape) for a in in_arrays],
        out_specs=_full_spec((1, action_dim)),
        scratch_shapes=[
            pltpu.VMEM((_H1 * _H1, _C1), jnp.float32),   # act1 (196, 32)
            pltpu.VMEM((_H2 * _H2, _C2), jnp.float32),   # act2 (36, 64)
            pltpu.VMEM((_H3 * _H3, _C3), jnp.float32),   # act3 (16, 64)
        ],
    )(*in_arrays)


if __name__ == "__main__":
    action_shape = 4
    robot_state_shape = 8

    key = jax.random.PRNGKey(0)
    k_params, k_vision, k_state = jax.random.split(key, 3)

    params = init_params(k_params, action_shape, robot_state_shape)
    vision = jax.random.normal(k_vision, (1, 1, _IMG, _IMG), dtype=jnp.float32)
    robot_state = jax.random.normal(k_state, (robot_state_shape,), dtype=jnp.float32)

    fwd = jax.jit(actor_forward)
    action = fwd(params, vision, robot_state)
    jax.block_until_ready(action)
    assert action.shape == (1, action_shape), action.shape
    assert bool(jnp.all(jnp.isfinite(action)))
    print("KERNEL_OK")
</pallas_src>

<mosaic_0001>
module attributes {stable_mosaic.version = 11 : i64} {
  func.func @_actor_kernel(%arg0: memref<225x16xf32, #tpu.memory_space<vmem>>, %arg1: memref<1x8xf32, #tpu.memory_space<vmem>>, %arg2: memref<196x209xf32, #tpu.memory_space<vmem>>, %arg3: memref<36x151xf32, #tpu.memory_space<vmem>>, %arg4: memref<16x22xf32, #tpu.memory_space<vmem>>, %arg5: memref<4x16x32xf32, #tpu.memory_space<vmem>>, %arg6: memref<1x32xf32, #tpu.memory_space<vmem>>, %arg7: memref<16x32x64xf32, #tpu.memory_space<vmem>>, %arg8: memref<1x64xf32, #tpu.memory_space<vmem>>, %arg9: memref<9x64x64xf32, #tpu.memory_space<vmem>>, %arg10: memref<1x64xf32, #tpu.memory_space<vmem>>, %arg11: memref<16x64x256xf32, #tpu.memory_space<vmem>>, %arg12: memref<8x256xf32, #tpu.memory_space<vmem>>, %arg13: memref<1x256xf32, #tpu.memory_space<vmem>>, %arg14: memref<256x4xf32, #tpu.memory_space<vmem>>, %arg15: memref<1x4xf32, #tpu.memory_space<vmem>>, %arg16: memref<1x4xf32, #tpu.memory_space<vmem>>, %arg17: memref<196x32xf32, #tpu.memory_space<vmem>>, %arg18: memref<36x64xf32, #tpu.memory_space<vmem>>, %arg19: memref<16x64xf32, #tpu.memory_space<vmem>>) attributes {dimension_semantics = [], scalar_prefetch = 0 : i64, scratch_operands = 3 : i64, tpu.core_type = #tpu.core_type<tc>} {
    %c0 = arith.constant 0 : index
    %c0_0 = arith.constant 0 : index
    %0 = vector.load %arg2[%c0, %c0_0] : memref<196x209xf32, #tpu.memory_space<vmem>>, vector<196x209xf32>
    %c0_1 = arith.constant 0 : index
    %c0_2 = arith.constant 0 : index
    %1 = vector.load %arg3[%c0_1, %c0_2] : memref<36x151xf32, #tpu.memory_space<vmem>>, vector<36x151xf32>
    %c0_3 = arith.constant 0 : index
    %c0_4 = arith.constant 0 : index
    %2 = vector.load %arg4[%c0_3, %c0_4] : memref<16x22xf32, #tpu.memory_space<vmem>>, vector<16x22xf32>
    %cst = arith.constant 0.000000e+00 : f32
    %3 = vector.broadcast %cst : f32 to vector<196x32xf32>
    %c0_5 = arith.constant 0 : index
    %c0_6 = arith.constant 0 : index
    %4 = vector.load %arg0[%c0_5, %c0_6] : memref<225x16xf32, #tpu.memory_space<vmem>>, vector<209x16xf32>
    %cst_7 = arith.constant dense<0.000000e+00> : vector<196x16xf32>
    %5 = tpu.matmul %0, %4, %cst_7 {dimension_numbers = #tpu.dot_dimension_numbers<[1], [0], [0], [1], [0, 0, 1, 1], [], []>} : vector<196x209xf32>, vector<209x16xf32>, vector<196x16xf32> -> vector<196x16xf32>
    %c0_8 = arith.constant 0 : index
    %c0_9 = arith.constant 0 : index
    %c0_10 = arith.constant 0 : index
    %6 = vector.load %arg5[%c0_8, %c0_9, %c0_10] : memref<4x16x32xf32, #tpu.memory_space<vmem>>, vector<1x16x32xf32>
    %7 = vector.shape_cast %6 : vector<1x16x32xf32> to vector<16x32xf32>
    %cst_11 = arith.constant dense<0.000000e+00> : vector<196x32xf32>
    %8 = tpu.matmul %5, %7, %cst_11 {dimension_numbers = #tpu.dot_dimension_numbers<[1], [0], [0], [1], [0, 0, 1, 1], [], []>} : vector<196x16xf32>, vector<16x32xf32>, vector<196x32xf32> -> vector<196x32xf32>
    %9 = arith.addf %3, %8 : vector<196x32xf32>
    %c1 = arith.constant 1 : index
    %c0_12 = arith.constant 0 : index
    %10 = vector.load %arg0[%c1, %c0_12] : memref<225x16xf32, #tpu.memory_space<vmem>>, vector<209x16xf32>
    %cst_13 = arith.constant dense<0.000000e+00> : vector<196x16xf32>
    %11 = tpu.matmul %0, %10, %cst_13 {dimension_numbers = #tpu.dot_dimension_numbers<[1], [0], [0], [1], [0, 0, 1, 1], [], []>} : vector<196x209xf32>, vector<209x16xf32>, vector<196x16xf32> -> vector<196x16xf32>
    %c1_14 = arith.constant 1 : index
    %c0_15 = arith.constant 0 : index
    %c0_16 = arith.constant 0 : index
    %12 = vector.load %arg5[%c1_14, %c0_15, %c0_16] : memref<4x16x32xf32, #tpu.memory_space<vmem>>, vector<1x16x32xf32>
    %13 = vector.shape_cast %12 : vector<1x16x32xf32> to vector<16x32xf32>
    %cst_17 = arith.constant dense<0.000000e+00> : vector<196x32xf32>
    %14 = tpu.matmul %11, %13, %cst_17 {dimension_numbers = #tpu.dot_dimension_numbers<[1], [0], [0], [1], [0, 0, 1, 1], [], []>} : vector<196x16xf32>, vector<16x32xf32>, vector<196x32xf32> -> vector<196x32xf32>
    %15 = arith.addf %9, %14 : vector<196x32xf32>
    %c15 = arith.constant 15 : index
    %c0_18 = arith.constant 0 : index
    %16 = vector.load %arg0[%c15, %c0_18] : memref<225x16xf32, #tpu.memory_space<vmem>>, vector<209x16xf32>
    %cst_19 = arith.constant dense<0.000000e+00> : vector<196x16xf32>
    %17 = tpu.matmul %0, %16, %cst_19 {dimension_numbers = #tpu.dot_dimension_numbers<[1], [0], [0], [1], [0, 0, 1, 1], [], []>} : vector<196x209xf32>, vector<209x16xf32>, vector<196x16xf32> -> vector<196x16xf32>
    %c2 = arith.constant 2 : index
    %c0_20 = arith.constant 0 : index
    %c0_21 = arith.constant 0 : index
    %18 = vector.load %arg5[%c2, %c0_20, %c0_21] : memref<4x16x32xf32, #tpu.memory_space<vmem>>, vector<1x16x32xf32>
    %19 = vector.shape_cast %18 : vector<1x16x32xf32> to vector<16x32xf32>
    %cst_22 = arith.constant dense<0.000000e+00> : vector<196x32xf32>
    %20 = tpu.matmul %17, %19, %cst_22 {dimension_numbers = #tpu.dot_dimension_numbers<[1], [0], [0], [1], [0, 0, 1, 1], [], []>} : vector<196x16xf32>, vector<16x32xf32>, vector<196x32xf32> -> vector<196x32xf32>
    %21 = arith.addf %15, %20 : vector<196x32xf32>
    %c16 = arith.constant 16 : index
    %c0_23 = arith.constant 0 : index
    %22 = vector.load %arg0[%c16, %c0_23] : memref<225x16xf32, #tpu.memory_space<vmem>>, vector<209x16xf32>
    %cst_24 = arith.constant dense<0.000000e+00> : vector<196x16xf32>
    %23 = tpu.matmul %0, %22, %cst_24 {dimension_numbers = #tpu.dot_dimension_numbers<[1], [0], [0], [1], [0, 0, 1, 1], [], []>} : vector<196x209xf32>, vector<209x16xf32>, vector<196x16xf32> -> vector<196x16xf32>
    %c3 = arith.constant 3 : index
    %c0_25 = arith.constant 0 : index
    %c0_26 = arith.constant 0 : index
    %24 = vector.load %arg5[%c3, %c0_25, %c0_26] : memref<4x16x32xf32, #tpu.memory_space<vmem>>, vector<1x16x32xf32>
    %25 = vector.shape_cast %24 : vector<1x16x32xf32> to vector<16x32xf32>
    %cst_27 = arith.constant dense<0.000000e+00> : vector<196x32xf32>
    %26 = tpu.matmul %23, %25, %cst_27 {dimension_numbers = #tpu.dot_dimension_numbers<[1], [0], [0], [1], [0, 0, 1, 1], [], []>} : vector<196x16xf32>, vector<16x32xf32>, vector<196x32xf32> -> vector<196x32xf32>
    %27 = arith.addf %21, %26 : vector<196x32xf32>
    %c0_28 = arith.constant 0 : index
    %c0_29 = arith.constant 0 : index
    %28 = vector.load %arg6[%c0_28, %c0_29] : memref<1x32xf32, #tpu.memory_space<vmem>>, vector<1x32xf32>
    %29 = vector.broadcast %28 : vector<1x32xf32> to vector<196x32xf32>
    %30 = arith.addf %27, %29 : vector<196x32xf32>
    %cst_30 = arith.constant 0.000000e+00 : f32
    %31 = vector.broadcast %cst_30 : f32 to vector<196x32xf32>
    %32 = arith.maximumf %30, %31 : vector<196x32xf32>
    %c0_31 = arith.constant 0 : index
    %c0_32 = arith.constant 0 : index
    %33 = vector.load %arg17[%c0_31, %c0_32] : memref<196x32xf32, #tpu.memory_space<vmem>>, vector<196x32xf32>
    tpu.vector_store %arg17[%c0_31, %c0_32], %32 {strides = array<i32>} : memref<196x32xf32, #tpu.memory_space<vmem>>, vector<196x32xf32>,
    %cst_33 = arith.constant 0.000000e+00 : f32
    %34 = vector.broadcast %cst_33 : f32 to vector<36x64xf32>
    %c0_34 = arith.constant 0 : index
    %c0_35 = arith.constant 0 : index
    %35 = vector.load %arg17[%c0_34, %c0_35] : memref<196x32xf32, #tpu.memory_space<vmem>>, vector<151x32xf32>
    %cst_36 = arith.constant dense<0.000000e+00> : vector<36x32xf32>
    %36 = tpu.matmul %1, %35, %cst_36 {dimension_numbers = #tpu.dot_dimension_numbers<[1], [0], [0], [1], [0, 0, 1, 1], [], []>} : vector<36x151xf32>, vector<151x32xf32>, vector<36x32xf32> -> vector<36x32xf32>
    %c0_37 = arith.constant 0 : index
    %c0_38 = arith.constant 0 : index
    %c0_39 = arith.constant 0 : index
    %37 = vector.load %arg7[%c0_37, %c0_38, %c0_39] : memref<16x32x64xf32, #tpu.memory_space<vmem>>, vector<1x32x64xf32>
    %38 = vector.shape_cast %37 : vector<1x32x64xf32> to vector<32x64xf32>
    %cst_40 = arith.constant dense<0.000000e+00> : vector<36x64xf32>
    %39 = tpu.matmul %36, %38, %cst_40 {dimension_numbers = #tpu.dot_dimension_numbers<[1], [0], [0], [1], [0, 0, 1, 1], [], []>} : vector<36x32xf32>, vector<32x64xf32>, vector<36x64xf32> -> vector<36x64xf32>
    %40 = arith.addf %34, %39 : vector<36x64xf32>
    %c1_41 = arith.constant 1 : index
    %c0_42 = arith.constant 0 : index
    %41 = vector.load %arg17[%c1_41, %c0_42] : memref<196x32xf32, #tpu.memory_space<vmem>>, vector<151x32xf32>
    %cst_43 = arith.constant dense<0.000000e+00> : vector<36x32xf32>
    %42 = tpu.matmul %1, %41, %cst_43 {dimension_numbers = #tpu.dot_dimension_numbers<[1], [0], [0], [1], [0, 0, 1, 1], [], []>} : vector<36x151xf32>, vector<151x32xf32>, vector<36x32xf32> -> vector<36x32xf32>
    %c1_44 = arith.constant 1 : index
    %c0_45 = arith.constant 0 : index
    %c0_46 = arith.constant 0 : index
    %43 = vector.load %arg7[%c1_44, %c0_45, %c0_46] : memref<16x32x64xf32, #tpu.memory_space<vmem>>, vector<1x32x64xf32>
    %44 = vector.shape_cast %43 : vector<1x32x64xf32> to vector<32x64xf32>
    %cst_47 = arith.constant dense<0.000000e+00> : vector<36x64xf32>
    %45 = tpu.matmul %42, %44, %cst_47 {dimension_numbers = #tpu.dot_dimension_numbers<[1], [0], [0], [1], [0, 0, 1, 1], [], []>} : vector<36x32xf32>, vector<32x64xf32>, vector<36x64xf32> -> vector<36x64xf32>
    %46 = arith.addf %40, %45 : vector<36x64xf32>
    %c2_48 = arith.constant 2 : index
    %c0_49 = arith.constant 0 : index
    %47 = vector.load %arg17[%c2_48, %c0_49] : memref<196x32xf32, #tpu.memory_space<vmem>>, vector<151x32xf32>
    %cst_50 = arith.constant dense<0.000000e+00> : vector<36x32xf32>
    %48 = tpu.matmul %1, %47, %cst_50 {dimension_numbers = #tpu.dot_dimension_numbers<[1], [0], [0], [1], [0, 0, 1, 1], [], []>} : vector<36x151xf32>, vector<151x32xf32>, vector<36x32xf32> -> vector<36x32xf32>
    %c2_51 = arith.constant 2 : index
    %c0_52 = arith.constant 0 : index
    %c0_53 = arith.constant 0 : index
    %49 = vector.load %arg7[%c2_51, %c0_52, %c0_53] : memref<16x32x64xf32, #tpu.memory_space<vmem>>, vector<1x32x64xf32>
    %50 = vector.shape_cast %49 : vector<1x32x64xf32> to vector<32x64xf32>
    %cst_54 = arith.constant dense<0.000000e+00> : vector<36x64xf32>
    %51 = tpu.matmul %48, %50, %cst_54 {dimension_numbers = #tpu.dot_dimension_numbers<[1], [0], [0], [1], [0, 0, 1, 1], [], []>} : vector<36x32xf32>, vector<32x64xf32>, vector<36x64xf32> -> vector<36x64xf32>
    %52 = arith.addf %46, %51 : vector<36x64xf32>
    %c3_55 = arith.constant 3 : index
    %c0_56 = arith.constant 0 : index
    %53 = vector.load %arg17[%c3_55, %c0_56] : memref<196x32xf32, #tpu.memory_space<vmem>>, vector<151x32xf32>
    %cst_57 = arith.constant dense<0.000000e+00> : vector<36x32xf32>
    %54 = tpu.matmul %1, %53, %cst_57 {dimension_numbers = #tpu.dot_dimension_numbers<[1], [0], [0], [1], [0, 0, 1, 1], [], []>} : vector<36x151xf32>, vector<151x32xf32>, vector<36x32xf32> -> vector<36x32xf32>
    %c3_58 = arith.constant 3 : index
    %c0_59 = arith.constant 0 : index
    %c0_60 = arith.constant 0 : index
    %55 = vector.load %arg7[%c3_58, %c0_59, %c0_60] : memref<16x32x64xf32, #tpu.memory_space<vmem>>, vector<1x32x64xf32>
    %56 = vector.shape_cast %55 : vector<1x32x64xf32> to vector<32x64xf32>
    %cst_61 = arith.constant dense<0.000000e+00> : vector<36x64xf32>
    %57 = tpu.matmul %54, %56, %cst_61 {dimension_numbers = #tpu.dot_dimension_numbers<[1], [0], [0], [1], [0, 0, 1, 1], [], []>} : vector<36x32xf32>, vector<32x64xf32>, vector<36x64xf32> -> vector<36x64xf32>
    %58 = arith.addf %52, %57 : vector<36x64xf32>
    %c14 = arith.constant 14 : index
    %c0_62 = arith.constant 0 : index
    %59 = vector.load %arg17[%c14, %c0_62] : memref<196x32xf32, #tpu.memory_space<vmem>>, vector<151x32xf32>
    %cst_63 = arith.constant dense<0.000000e+00> : vector<36x32xf32>
    %60 = tpu.matmul %1, %59, %cst_63 {dimension_numbers = #tpu.dot_dimension_numbers<[1], [0], [0], [1], [0, 0, 1, 1], [], []>} : vector<36x151xf32>, vector<151x32xf32>, vector<36x32xf32> -> vector<36x32xf32>
    %c4 = arith.constant 4 : index
    %c0_64 = arith.constant 0 : index
    %c0_65 = arith.constant 0 : index
    %61 = vector.load %arg7[%c4, %c0_64, %c0_65] : memref<16x32x64xf32, #tpu.memory_space<vmem>>, vector<1x32x64xf32>
    %62 = vector.shape_cast %61 : vector<1x32x64xf32> to vector<32x64xf32>
    %cst_66 = arith.constant dense<0.000000e+00> : vector<36x64xf32>
    %63 = tpu.matmul %60, %62, %cst_66 {dimension_numbers = #tpu.dot_dimension_numbers<[1], [0], [0], [1], [0, 0, 1, 1], [], []>} : vector<36x32xf32>, vector<32x64xf32>, vector<36x64xf32> -> vector<36x64xf32>
    %64 = arith.addf %58, %63 : vector<36x64xf32>
    %c15_67 = arith.constant 15 : index
    %c0_68 = arith.constant 0 : index
    %65 = vector.load %arg17[%c15_67, %c0_68] : memref<196x32xf32, #tpu.memory_space<vmem>>, vector<151x32xf32>
    %cst_69 = arith.constant dense<0.000000e+00> : vector<36x32xf32>
    %66 = tpu.matmul %1, %65, %cst_69 {dimension_numbers = #tpu.dot_dimension_numbers<[1], [0], [0], [1], [0, 0, 1, 1], [], []>} : vector<36x151xf32>, vector<151x32xf32>, vector<36x32xf32> -> vector<36x32xf32>
    %c5 = arith.constant 5 : index
    %c0_70 = arith.constant 0 : index
    %c0_71 = arith.constant 0 : index
    %67 = vector.load %arg7[%c5, %c0_70, %c0_71] : memref<16x32x64xf32, #tpu.memory_space<vmem>>, vector<1x32x64xf32>
    %68 = vector.shape_cast %67 : vector<1x32x64xf32> to vector<32x64xf32>
    %cst_72 = arith.constant dense<0.000000e+00> : vector<36x64xf32>
    %69 = tpu.matmul %66, %68, %cst_72 {dimension_numbers = #tpu.dot_dimension_numbers<[1], [0], [0], [1], [0, 0, 1, 1], [], []>} : vector<36x32xf32>, vector<32x64xf32>, vector<36x64xf32> -> vector<36x64xf32>
    %70 = arith.addf %64, %69 : vector<36x64xf32>
    %c16_73 = arith.constant 16 : index
    %c0_74 = arith.constant 0 : index
    %71 = vector.load %arg17[%c16_73, %c0_74] : memref<196x32xf32, #tpu.memory_space<vmem>>, vector<151x32xf32>
    %cst_75 = arith.constant dense<0.000000e+00> : vector<36x32xf32>
    %72 = tpu.matmul %1, %71, %cst_75 {dimension_numbers = #tpu.dot_dimension_numbers<[1], [0], [0], [1], [0, 0, 1, 1], [], []>} : vector<36x151xf32>, vector<151x32xf32>, vector<36x32xf32> -> vector<36x32xf32>
    %c6 = arith.constant 6 : index
    %c0_76 = arith.constant 0 : index
    %c0_77 = arith.constant 0 : index
    %73 = vector.load %arg7[%c6, %c0_76, %c0_77] : memref<16x32x64xf32, #tpu.memory_space<vmem>>, vector<1x32x64xf32>
    %74 = vector.shape_cast %73 : vector<1x32x64xf32> to vector<32x64xf32>
    %cst_78 = arith.constant dense<0.000000e+00> : vector<36x64xf32>
    %75 = tpu.matmul %72, %74, %cst_78 {dimension_numbers = #tpu.dot_dimension_numbers<[1], [0], [0], [1], [0, 0, 1, 1], [], []>} : vector<36x32xf32>, vector<32x64xf32>, vector<36x64xf32> -> vector<36x64xf32>
    %76 = arith.addf %70, %75 : vector<36x64xf32>
    %c17 = arith.constant 17 : index
    %c0_79 = arith.constant 0 : index
    %77 = vector.load %arg17[%c17, %c0_79] : memref<196x32xf32, #tpu.memory_space<vmem>>, vector<151x32xf32>
    %cst_80 = arith.constant dense<0.000000e+00> : vector<36x32xf32>
    %78 = tpu.matmul %1, %77, %cst_80 {dimension_numbers = #tpu.dot_dimension_numbers<[1], [0], [0], [1], [0, 0, 1, 1], [], []>} : vector<36x151xf32>, vector<151x32xf32>, vector<36x32xf32> -> vector<36x32xf32>
    %c7 = arith.constant 7 : index
    %c0_81 = arith.constant 0 : index
    %c0_82 = arith.constant 0 : index
    %79 = vector.load %arg7[%c7, %c0_81, %c0_82] : memref<16x32x64xf32, #tpu.memory_space<vmem>>, vector<1x32x64xf32>
    %80 = vector.shape_cast %79 : vector<1x32x64xf32> to vector<32x64xf32>
    %cst_83 = arith.constant dense<0.000000e+00> : vector<36x64xf32>
    %81 = tpu.matmul %78, %80, %cst_83 {dimension_numbers = #tpu.dot_dimension_numbers<[1], [0], [0], [1], [0, 0, 1, 1], [], []>} : vector<36x32xf32>, vector<32x64xf32>, vector<36x64xf32> -> vector<36x64xf32>
    %82 = arith.addf %76, %81 : vector<36x64xf32>
    %c28 = arith.constant 28 : index
    %c0_84 = arith.constant 0 : index
    %83 = vector.load %arg17[%c28, %c0_84] : memref<196x32xf32, #tpu.memory_space<vmem>>, vector<151x32xf32>
    %cst_85 = arith.constant dense<0.000000e+00> : vector<36x32xf32>
    %84 = tpu.matmul %1, %83, %cst_85 {dimension_numbers = #tpu.dot_dimension_numbers<[1], [0], [0], [1], [0, 0, 1, 1], [], []>} : vector<36x151xf32>, vector<151x32xf32>, vector<36x32xf32> -> vector<36x32xf32>
    %c8 = arith.constant 8 : index
    %c0_86 = arith.constant 0 : index
    %c0_87 = arith.constant 0 : index
    %85 = vector.load %arg7[%c8, %c0_86, %c0_87] : memref<16x32x64xf32, #tpu.memory_space<vmem>>, vector<1x32x64xf32>
    %86 = vector.shape_cast %85 : vector<1x32x64xf32> to vector<32x64xf32>
    %cst_88 = arith.constant dense<0.000000e+00> : vector<36x64xf32>
    %87 = tpu.matmul %84, %86, %cst_88 {dimension_numbers = #tpu.dot_dimension_numbers<[1], [0], [0], [1], [0, 0, 1, 1], [], []>} : vector<36x32xf32>, vector<32x64xf32>, vector<36x64xf32> -> vector<36x64xf32>
    %88 = arith.addf %82, %87 : vector<36x64xf32>
    %c29 = arith.constant 29 : index
    %c0_89 = arith.constant 0 : index
    %89 = vector.load %arg17[%c29, %c0_89] : memref<196x32xf32, #tpu.memory_space<vmem>>, vector<151x32xf32>
    %cst_90 = arith.constant dense<0.000000e+00> : vector<36x32xf32>
    %90 = tpu.matmul %1, %89, %cst_90 {dimension_numbers = #tpu.dot_dimension_numbers<[1], [0], [0], [1], [0, 0, 1, 1], [], []>} : vector<36x151xf32>, vector<151x32xf32>, vector<36x32xf32> -> vector<36x32xf32>
    %c9 = arith.constant 9 : index
    %c0_91 = arith.constant 0 : index
    %c0_92 = arith.constant 0 : index
    %91 = vector.load %arg7[%c9, %c0_91, %c0_92] : memref<16x32x64xf32, #tpu.memory_space<vmem>>, vector<1x32x64xf32>
    %92 = vector.shape_cast %91 : vector<1x32x64xf32> to vector<32x64xf32>
    %cst_93 = arith.constant dense<0.000000e+00> : vector<36x64xf32>
    %93 = tpu.matmul %90, %92, %cst_93 {dimension_numbers = #tpu.dot_dimension_numbers<[1], [0], [0], [1], [0, 0, 1, 1], [], []>} : vector<36x32xf32>, vector<32x64xf32>, vector<36x64xf32> -> vector<36x64xf32>
    %94 = arith.addf %88, %93 : vector<36x64xf32>
    %c30 = arith.constant 30 : index
    %c0_94 = arith.constant 0 : index
    %95 = vector.load %arg17[%c30, %c0_94] : memref<196x32xf32, #tpu.memory_space<vmem>>, vector<151x32xf32>
    %cst_95 = arith.constant dense<0.000000e+00> : vector<36x32xf32>
    %96 = tpu.matmul %1, %95, %cst_95 {dimension_numbers = #tpu.dot_dimension_numbers<[1], [0], [0], [1], [0, 0, 1, 1], [], []>} : vector<36x151xf32>, vector<151x32xf32>, vector<36x32xf32> -> vector<36x32xf32>
    %c10 = arith.constant 10 : index
    %c0_96 = arith.constant 0 : index
    %c0_97 = arith.constant 0 : index
    %97 = vector.load %arg7[%c10, %c0_96, %c0_97] : memref<16x32x64xf32, #tpu.memory_space<vmem>>, vector<1x32x64xf32>
    %98 = vector.shape_cast %97 : vector<1x32x64xf32> to vector<32x64xf32>
    %cst_98 = arith.constant dense<0.000000e+00> : vector<36x64xf32>
    %99 = tpu.matmul %96, %98, %cst_98 {dimension_numbers = #tpu.dot_dimension_numbers<[1], [0], [0], [1], [0, 0, 1, 1], [], []>} : vector<36x32xf32>, vector<32x64xf32>, vector<36x64xf32> -> vector<36x64xf32>
    %100 = arith.addf %94, %99 : vector<36x64xf32>
    %c31 = arith.constant 31 : index
    %c0_99 = arith.constant 0 : index
    %101 = vector.load %arg17[%c31, %c0_99] : memref<196x32xf32, #tpu.memory_space<vmem>>, vector<151x32xf32>
    %cst_100 = arith.constant dense<0.000000e+00> : vector<36x32xf32>
    %102 = tpu.matmul %1, %101, %cst_100 {dimension_numbers = #tpu.dot_dimension_numbers<[1], [0], [0], [1], [0, 0, 1, 1], [], []>} : vector<36x151xf32>, vector<151x32xf32>, vector<36x32xf32> -> vector<36x32xf32>
    %c11 = arith.constant 11 : index
    %c0_101 = arith.constant 0 : index
    %c0_102 = arith.constant 0 : index
    %103 = vector.load %arg7[%c11, %c0_101, %c0_102] : memref<16x32x64xf32, #tpu.memory_space<vmem>>, vector<1x32x64xf32>
    %104 = vector.shape_cast %103 : vector<1x32x64xf32> to vector<32x64xf32>
    %cst_103 = arith.constant dense<0.000000e+00> : vector<36x64xf32>
    %105 = tpu.matmul %102, %104, %cst_103 {dimension_numbers = #tpu.dot_dimension_numbers<[1], [0], [0], [1], [0, 0, 1, 1], [], []>} : vector<36x32xf32>, vector<32x64xf32>, vector<36x64xf32> -> vector<36x64xf32>
    %106 = arith.addf %100, %105 : vector<36x64xf32>
    %c42 = arith.constant 42 : index
    %c0_104 = arith.constant 0 : index
    %107 = vector.load %arg17[%c42, %c0_104] : memref<196x32xf32, #tpu.memory_space<vmem>>, vector<151x32xf32>
    %cst_105 = arith.constant dense<0.000000e+00> : vector<36x32xf32>
    %108 = tpu.matmul %1, %107, %cst_105 {dimension_numbers = #tpu.dot_dimension_numbers<[1], [0], [0], [1], [0, 0, 1, 1], [], []>} : vector<36x151xf32>, vector<151x32xf32>, vector<36x32xf32> -> vector<36x32xf32>
    %c12 = arith.constant 12 : index
    %c0_106 = arith.constant 0 : index
    %c0_107 = arith.constant 0 : index
    %109 = vector.load %arg7[%c12, %c0_106, %c0_107] : memref<16x32x64xf32, #tpu.memory_space<vmem>>, vector<1x32x64xf32>
    %110 = vector.shape_cast %109 : vector<1x32x64xf32> to vector<32x64xf32>
    %cst_108 = arith.constant dense<0.000000e+00> : vector<36x64xf32>
    %111 = tpu.matmul %108, %110, %cst_108 {dimension_numbers = #tpu.dot_dimension_numbers<[1], [0], [0], [1], [0, 0, 1, 1], [], []>} : vector<36x32xf32>, vector<32x64xf32>, vector<36x64xf32> -> vector<36x64xf32>
    %112 = arith.addf %106, %111 : vector<36x64xf32>
    %c43 = arith.constant 43 : index
    %c0_109 = arith.constant 0 : index
    %113 = vector.load %arg17[%c43, %c0_109] : memref<196x32xf32, #tpu.memory_space<vmem>>, vector<151x32xf32>
    %cst_110 = arith.constant dense<0.000000e+00> : vector<36x32xf32>
    %114 = tpu.matmul %1, %113, %cst_110 {dimension_numbers = #tpu.dot_dimension_numbers<[1], [0], [0], [1], [0, 0, 1, 1], [], []>} : vector<36x151xf32>, vector<151x32xf32>, vector<36x32xf32> -> vector<36x32xf32>
    %c13 = arith.constant 13 : index
    %c0_111 = arith.constant 0 : index
    %c0_112 = arith.constant 0 : index
    %115 = vector.load %arg7[%c13, %c0_111, %c0_112] : memref<16x32x64xf32, #tpu.memory_space<vmem>>, vector<1x32x64xf32>
    %116 = vector.shape_cast %115 : vector<1x32x64xf32> to vector<32x64xf32>
    %cst_113 = arith.constant dense<0.000000e+00> : vector<36x64xf32>
    %117 = tpu.matmul %114, %116, %cst_113 {dimension_numbers = #tpu.dot_dimension_numbers<[1], [0], [0], [1], [0, 0, 1, 1], [], []>} : vector<36x32xf32>, vector<32x64xf32>, vector<36x64xf32> -> vector<36x64xf32>
    %118 = arith.addf %112, %117 : vector<36x64xf32>
    %c44 = arith.constant 44 : index
    %c0_114 = arith.constant 0 : index
    %119 = vector.load %arg17[%c44, %c0_114] : memref<196x32xf32, #tpu.memory_space<vmem>>, vector<151x32xf32>
    %cst_115 = arith.constant dense<0.000000e+00> : vector<36x32xf32>
    %120 = tpu.matmul %1, %119, %cst_115 {dimension_numbers = #tpu.dot_dimension_numbers<[1], [0], [0], [1], [0, 0, 1, 1], [], []>} : vector<36x151xf32>, vector<151x32xf32>, vector<36x32xf32> -> vector<36x32xf32>
    %c14_116 = arith.constant 14 : index
    %c0_117 = arith.constant 0 : index
    %c0_118 = arith.constant 0 : index
    %121 = vector.load %arg7[%c14_116, %c0_117, %c0_118] : memref<16x32x64xf32, #tpu.memory_space<vmem>>, vector<1x32x64xf32>
    %122 = vector.shape_cast %121 : vector<1x32x64xf32> to vector<32x64xf32>
    %cst_119 = arith.constant dense<0.000000e+00> : vector<36x64xf32>
    %123 = tpu.matmul %120, %122, %cst_119 {dimension_numbers = #tpu.dot_dimension_numbers<[1], [0], [0], [1], [0, 0, 1, 1], [], []>} : vector<36x32xf32>, vector<32x64xf32>, vector<36x64xf32> -> vector<36x64xf32>
    %124 = arith.addf %118, %123 : vector<36x64xf32>
    %c45 = arith.constant 45 : index
    %c0_120 = arith.constant 0 : index
    %125 = vector.load %arg17[%c45, %c0_120] : memref<196x32xf32, #tpu.memory_space<vmem>>, vector<151x32xf32>
    %cst_121 = arith.constant dense<0.000000e+00> : vector<36x32xf32>
    %126 = tpu.matmul %1, %125, %cst_121 {dimension_numbers = #tpu.dot_dimension_numbers<[1], [0], [0], [1], [0, 0, 1, 1], [], []>} : vector<36x151xf32>, vector<151x32xf32>, vector<36x32xf32> -> vector<36x32xf32>
    %c15_122 = arith.constant 15 : index
    %c0_123 = arith.constant 0 : index
    %c0_124 = arith.constant 0 : index
    %127 = vector.load %arg7[%c15_122, %c0_123, %c0_124] : memref<16x32x64xf32, #tpu.memory_space<vmem>>, vector<1x32x64xf32>
    %128 = vector.shape_cast %127 : vector<1x32x64xf32> to vector<32x64xf32>
    %cst_125 = arith.constant dense<0.000000e+00> : vector<36x64xf32>
    %129 = tpu.matmul %126, %128, %cst_125 {dimension_numbers = #tpu.dot_dimension_numbers<[1], [0], [0], [1], [0, 0, 1, 1], [], []>} : vector<36x32xf32>, vector<32x64xf32>, vector<36x64xf32> -> vector<36x64xf32>
    %130 = arith.addf %124, %129 : vector<36x64xf32>
    %c0_126 = arith.constant 0 : index
    %c0_127 = arith.constant 0 : index
    %131 = vector.load %arg8[%c0_126, %c0_127] : memref<1x64xf32, #tpu.memory_space<vmem>>, vector<1x64xf32>
    %132 = vector.broadcast %131 : vector<1x64xf32> to vector<36x64xf32>
    %133 = arith.addf %130, %132 : vector<36x64xf32>
    %cst_128 = arith.constant 0.000000e+00 : f32
    %134 = vector.broadcast %cst_128 : f32 to vector<36x64xf32>
    %135 = arith.maximumf %133, %134 : vector<36x64xf32>
    %c0_129 = arith.constant 0 : index
    %c0_130 = arith.constant 0 : index
    %136 = vector.load %arg18[%c0_129, %c0_130] : memref<36x64xf32, #tpu.memory_space<vmem>>, vector<36x64xf32>
    tpu.vector_store %arg18[%c0_129, %c0_130], %135 {strides = array<i32>} : memref<36x64xf32, #tpu.memory_space<vmem>>, vector<36x64xf32>,
    %cst_131 = arith.constant 0.000000e+00 : f32
    %137 = vector.broadcast %cst_131 : f32 to vector<16x64xf32>
    %c0_132 = arith.constant 0 : index
    %c0_133 = arith.constant 0 : index
    %138 = vector.load %arg18[%c0_132, %c0_133] : memref<36x64xf32, #tpu.memory_space<vmem>>, vector<22x64xf32>
    %cst_134 = arith.constant dense<0.000000e+00> : vector<16x64xf32>
    %139 = tpu.matmul %2, %138, %cst_134 {dimension_numbers = #tpu.dot_dimension_numbers<[1], [0], [0], [1], [0, 0, 1, 1], [], []>} : vector<16x22xf32>, vector<22x64xf32>, vector<16x64xf32> -> vector<16x64xf32>
    %c0_135 = arith.constant 0 : index
    %c0_136 = arith.constant 0 : index
    %c0_137 = arith.constant 0 : index
    %140 = vector.load %arg9[%c0_135, %c0_136, %c0_137] : memref<9x64x64xf32, #tpu.memory_space<vmem>>, vector<1x64x64xf32>
    %141 = vector.shape_cast %140 : vector<1x64x64xf32> to vector<64x64xf32>
    %cst_138 = arith.constant dense<0.000000e+00> : vector<16x64xf32>
    %142 = tpu.matmul %139, %141, %cst_138 {dimension_numbers = #tpu.dot_dimension_numbers<[1], [0], [0], [1], [0, 0, 1, 1], [], []>} : vector<16x64xf32>, vector<64x64xf32>, vector<16x64xf32> -> vector<16x64xf32>
    %143 = arith.addf %137, %142 : vector<16x64xf32>
    %c1_139 = arith.constant 1 : index
    %c0_140 = arith.constant 0 : index
    %144 = vector.load %arg18[%c1_139, %c0_140] : memref<36x64xf32, #tpu.memory_space<vmem>>, vector<22x64xf32>
    %cst_141 = arith.constant dense<0.000000e+00> : vector<16x64xf32>
    %145 = tpu.matmul %2, %144, %cst_141 {dimension_numbers = #tpu.dot_dimension_numbers<[1], [0], [0], [1], [0, 0, 1, 1], [], []>} : vector<16x22xf32>, vector<22x64xf32>, vector<16x64xf32> -> vector<16x64xf32>
    %c1_142 = arith.constant 1 : index
    %c0_143 = arith.constant 0 : index
    %c0_144 = arith.constant 0 : index
    %146 = vector.load %arg9[%c1_142, %c0_143, %c0_144] : memref<9x64x64xf32, #tpu.memory_space<vmem>>, vector<1x64x64xf32>
    %147 = vector.shape_cast %146 : vector<1x64x64xf32> to vector<64x64xf32>
    %cst_145 = arith.constant dense<0.000000e+00> : vector<16x64xf32>
    %148 = tpu.matmul %145, %147, %cst_145 {dimension_numbers = #tpu.dot_dimension_numbers<[1], [0], [0], [1], [0, 0, 1, 1], [], []>} : vector<16x64xf32>, vector<64x64xf32>, vector<16x64xf32> -> vector<16x64xf32>
    %149 = arith.addf %143, %148 : vector<16x64xf32>
    %c2_146 = arith.constant 2 : index
    %c0_147 = arith.constant 0 : index
    %150 = vector.load %arg18[%c2_146, %c0_147] : memref<36x64xf32, #tpu.memory_space<vmem>>, vector<22x64xf32>
    %cst_148 = arith.constant dense<0.000000e+00> : vector<16x64xf32>
    %151 = tpu.matmul %2, %150, %cst_148 {dimension_numbers = #tpu.dot_dimension_numbers<[1], [0], [0], [1], [0, 0, 1, 1], [], []>} : vector<16x22xf32>, vector<22x64xf32>, vector<16x64xf32> -> vector<16x64xf32>
    %c2_149 = arith.constant 2 : index
    %c0_150 = arith.constant 0 : index
    %c0_151 = arith.constant 0 : index
    %152 = vector.load %arg9[%c2_149, %c0_150, %c0_151] : memref<9x64x64xf32, #tpu.memory_space<vmem>>, vector<1x64x64xf32>
    %153 = vector.shape_cast %152 : vector<1x64x64xf32> to vector<64x64xf32>
    %cst_152 = arith.constant dense<0.000000e+00> : vector<16x64xf32>
    %154 = tpu.matmul %151, %153, %cst_152 {dimension_numbers = #tpu.dot_dimension_numbers<[1], [0], [0], [1], [0, 0, 1, 1], [], []>} : vector<16x64xf32>, vector<64x64xf32>, vector<16x64xf32> -> vector<16x64xf32>
    %155 = arith.addf %149, %154 : vector<16x64xf32>
    %c6_153 = arith.constant 6 : index
    %c0_154 = arith.constant 0 : index
    %156 = vector.load %arg18[%c6_153, %c0_154] : memref<36x64xf32, #tpu.memory_space<vmem>>, vector<22x64xf32>
    %cst_155 = arith.constant dense<0.000000e+00> : vector<16x64xf32>
    %157 = tpu.matmul %2, %156, %cst_155 {dimension_numbers = #tpu.dot_dimension_numbers<[1], [0], [0], [1], [0, 0, 1, 1], [], []>} : vector<16x22xf32>, vector<22x64xf32>, vector<16x64xf32> -> vector<16x64xf32>
    %c3_156 = arith.constant 3 : index
    %c0_157 = arith.constant 0 : index
    %c0_158 = arith.constant 0 : index
    %158 = vector.load %arg9[%c3_156, %c0_157, %c0_158] : memref<9x64x64xf32, #tpu.memory_space<vmem>>, vector<1x64x64xf32>
    %159 = vector.shape_cast %158 : vector<1x64x64xf32> to vector<64x64xf32>
    %cst_159 = arith.constant dense<0.000000e+00> : vector<16x64xf32>
    %160 = tpu.matmul %157, %159, %cst_159 {dimension_numbers = #tpu.dot_dimension_numbers<[1], [0], [0], [1], [0, 0, 1, 1], [], []>} : vector<16x64xf32>, vector<64x64xf32>, vector<16x64xf32> -> vector<16x64xf32>
    %161 = arith.addf %155, %160 : vector<16x64xf32>
    %c7_160 = arith.constant 7 : index
    %c0_161 = arith.constant 0 : index
    %162 = vector.load %arg18[%c7_160, %c0_161] : memref<36x64xf32, #tpu.memory_space<vmem>>, vector<22x64xf32>
    %cst_162 = arith.constant dense<0.000000e+00> : vector<16x64xf32>
    %163 = tpu.matmul %2, %162, %cst_162 {dimension_numbers = #tpu.dot_dimension_numbers<[1], [0], [0], [1], [0, 0, 1, 1], [], []>} : vector<16x22xf32>, vector<22x64xf32>, vector<16x64xf32> -> vector<16x64xf32>
    %c4_163 = arith.constant 4 : index
    %c0_164 = arith.constant 0 : index
    %c0_165 = arith.constant 0 : index
    %164 = vector.load %arg9[%c4_163, %c0_164, %c0_165] : memref<9x64x64xf32, #tpu.memory_space<vmem>>, vector<1x64x64xf32>
    %165 = vector.shape_cast %164 : vector<1x64x64xf32> to vector<64x64xf32>
    %cst_166 = arith.constant dense<0.000000e+00> : vector<16x64xf32>
    %166 = tpu.matmul %163, %165, %cst_166 {dimension_numbers = #tpu.dot_dimension_numbers<[1], [0], [0], [1], [0, 0, 1, 1], [], []>} : vector<16x64xf32>, vector<64x64xf32>, vector<16x64xf32> -> vector<16x64xf32>
    %167 = arith.addf %161, %166 : vector<16x64xf32>
    %c8_167 = arith.constant 8 : index
    %c0_168 = arith.constant 0 : index
    %168 = vector.load %arg18[%c8_167, %c0_168] : memref<36x64xf32, #tpu.memory_space<vmem>>, vector<22x64xf32>
    %cst_169 = arith.constant dense<0.000000e+00> : vector<16x64xf32>
    %169 = tpu.matmul %2, %168, %cst_169 {dimension_numbers = #tpu.dot_dimension_numbers<[1], [0], [0], [1], [0, 0, 1, 1], [], []>} : vector<16x22xf32>, vector<22x64xf32>, vector<16x64xf32> -> vector<16x64xf32>
    %c5_170 = arith.constant 5 : index
    %c0_171 = arith.constant 0 : index
    %c0_172 = arith.constant 0 : index
    %170 = vector.load %arg9[%c5_170, %c0_171, %c0_172] : memref<9x64x64xf32, #tpu.memory_space<vmem>>, vector<1x64x64xf32>
    %171 = vector.shape_cast %170 : vector<1x64x64xf32> to vector<64x64xf32>
    %cst_173 = arith.constant dense<0.000000e+00> : vector<16x64xf32>
    %172 = tpu.matmul %169, %171, %cst_173 {dimension_numbers = #tpu.dot_dimension_numbers<[1], [0], [0], [1], [0, 0, 1, 1], [], []>} : vector<16x64xf32>, vector<64x64xf32>, vector<16x64xf32> -> vector<16x64xf32>
    %173 = arith.addf %167, %172 : vector<16x64xf32>
    %c12_174 = arith.constant 12 : index
    %c0_175 = arith.constant 0 : index
    %174 = vector.load %arg18[%c12_174, %c0_175] : memref<36x64xf32, #tpu.memory_space<vmem>>, vector<22x64xf32>
    %cst_176 = arith.constant dense<0.000000e+00> : vector<16x64xf32>
    %175 = tpu.matmul %2, %174, %cst_176 {dimension_numbers = #tpu.dot_dimension_numbers<[1], [0], [0], [1], [0, 0, 1, 1], [], []>} : vector<16x22xf32>, vector<22x64xf32>, vector<16x64xf32> -> vector<16x64xf32>
    %c6_177 = arith.constant 6 : index
    %c0_178 = arith.constant 0 : index
    %c0_179 = arith.constant 0 : index
    %176 = vector.load %arg9[%c6_177, %c0_178, %c0_179] : memref<9x64x64xf32, #tpu.memory_space<vmem>>, vector<1x64x64xf32>
    %177 = vector.shape_cast %176 : vector<1x64x64xf32> to vector<64x64xf32>
    %cst_180 = arith.constant dense<0.000000e+00> : vector<16x64xf32>
    %178 = tpu.matmul %175, %177, %cst_180 {dimension_numbers = #tpu.dot_dimension_numbers<[1], [0], [0], [1], [0, 0, 1, 1], [], []>} : vector<16x64xf32>, vector<64x64xf32>, vector<16x64xf32> -> vector<16x64xf32>
    %179 = arith.addf %173, %178 : vector<16x64xf32>
    %c13_181 = arith.constant 13 : index
    %c0_182 = arith.constant 0 : index
    %180 = vector.load %arg18[%c13_181, %c0_182] : memref<36x64xf32, #tpu.memory_space<vmem>>, vector<22x64xf32>
    %cst_183 = arith.constant dense<0.000000e+00> : vector<16x64xf32>
    %181 = tpu.matmul %2, %180, %cst_183 {dimension_numbers = #tpu.dot_dimension_numbers<[1], [0], [0], [1], [0, 0, 1, 1], [], []>} : vector<16x22xf32>, vector<22x64xf32>, vector<16x64xf32> -> vector<16x64xf32>
    %c7_184 = arith.constant 7 : index
    %c0_185 = arith.constant 0 : index
    %c0_186 = arith.constant 0 : index
    %182 = vector.load %arg9[%c7_184, %c0_185, %c0_186] : memref<9x64x64xf32, #tpu.memory_space<vmem>>, vector<1x64x64xf32>
    %183 = vector.shape_cast %182 : vector<1x64x64xf32> to vector<64x64xf32>
    %cst_187 = arith.constant dense<0.000000e+00> : vector<16x64xf32>
    %184 = tpu.matmul %181, %183, %cst_187 {dimension_numbers = #tpu.dot_dimension_numbers<[1], [0], [0], [1], [0, 0, 1, 1], [], []>} : vector<16x64xf32>, vector<64x64xf32>, vector<16x64xf32> -> vector<16x64xf32>
    %185 = arith.addf %179, %184 : vector<16x64xf32>
    %c14_188 = arith.constant 14 : index
    %c0_189 = arith.constant 0 : index
    %186 = vector.load %arg18[%c14_188, %c0_189] : memref<36x64xf32, #tpu.memory_space<vmem>>, vector<22x64xf32>
    %cst_190 = arith.constant dense<0.000000e+00> : vector<16x64xf32>
    %187 = tpu.matmul %2, %186, %cst_190 {dimension_numbers = #tpu.dot_dimension_numbers<[1], [0], [0], [1], [0, 0, 1, 1], [], []>} : vector<16x22xf32>, vector<22x64xf32>, vector<16x64xf32> -> vector<16x64xf32>
    %c8_191 = arith.constant 8 : index
    %c0_192 = arith.constant 0 : index
    %c0_193 = arith.constant 0 : index
    %188 = vector.load %arg9[%c8_191, %c0_192, %c0_193] : memref<9x64x64xf32, #tpu.memory_space<vmem>>, vector<1x64x64xf32>
    %189 = vector.shape_cast %188 : vector<1x64x64xf32> to vector<64x64xf32>
    %cst_194 = arith.constant dense<0.000000e+00> : vector<16x64xf32>
    %190 = tpu.matmul %187, %189, %cst_194 {dimension_numbers = #tpu.dot_dimension_numbers<[1], [0], [0], [1], [0, 0, 1, 1], [], []>} : vector<16x64xf32>, vector<64x64xf32>, vector<16x64xf32> -> vector<16x64xf32>
    %191 = arith.addf %185, %190 : vector<16x64xf32>
    %c0_195 = arith.constant 0 : index
    %c0_196 = arith.constant 0 : index
    %192 = vector.load %arg10[%c0_195, %c0_196] : memref<1x64xf32, #tpu.memory_space<vmem>>, vector<1x64xf32>
    %193 = vector.broadcast %192 : vector<1x64xf32> to vector<16x64xf32>
    %194 = arith.addf %191, %193 : vector<16x64xf32>
    %cst_197 = arith.constant 0.000000e+00 : f32
    %195 = vector.broadcast %cst_197 : f32 to vector<16x64xf32>
    %196 = arith.maximumf %194, %195 : vector<16x64xf32>
    %c0_198 = arith.constant 0 : index
    %c0_199 = arith.constant 0 : index
    %197 = vector.load %arg19[%c0_198, %c0_199] : memref<16x64xf32, #tpu.memory_space<vmem>>, vector<16x64xf32>
    tpu.vector_store %arg19[%c0_198, %c0_199], %196 {strides = array<i32>} : memref<16x64xf32, #tpu.memory_space<vmem>>, vector<16x64xf32>,
    %c0_200 = arith.constant 0 : index
    %c0_201 = arith.constant 0 : index
    %198 = vector.load %arg13[%c0_200, %c0_201] : memref<1x256xf32, #tpu.memory_space<vmem>>, vector<1x256xf32>
    %c0_202 = arith.constant 0 : index
    %c0_203 = arith.constant 0 : index
    %199 = vector.load %arg1[%c0_202, %c0_203] : memref<1x8xf32, #tpu.memory_space<vmem>>, vector<1x8xf32>
    %c0_204 = arith.constant 0 : index
    %c0_205 = arith.constant 0 : index
    %200 = vector.load %arg12[%c0_204, %c0_205] : memref<8x256xf32, #tpu.memory_space<vmem>>, vector<8x256xf32>
    %cst_206 = arith.constant dense<0.000000e+00> : vector<1x256xf32>
    %201 = tpu.matmul %199, %200, %cst_206 {dimension_numbers = #tpu.dot_dimension_numbers<[1], [0], [0], [1], [0, 0, 1, 1], [], []>} : vector<1x8xf32>, vector<8x256xf32>, vector<1x256xf32> -> vector<1x256xf32>
    %202 = arith.addf %198, %201 : vector<1x256xf32>
    %c0_207 = arith.constant 0 : index
    %c0_208 = arith.constant 0 : index
    %203 = vector.load %arg19[%c0_207, %c0_208] : memref<16x64xf32, #tpu.memory_space<vmem>>, vector<1x64xf32>
    %c0_209 = arith.constant 0 : index
    %c0_210 = arith.constant 0 : index
    %c0_211 = arith.constant 0 : index
    %204 = vector.load %arg11[%c0_209, %c0_210, %c0_211] : memref<16x64x256xf32, #tpu.memory_space<vmem>>, vector<1x64x256xf32>
    %205 = vector.shape_cast %204 : vector<1x64x256xf32> to vector<64x256xf32>
    %cst_212 = arith.constant dense<0.000000e+00> : vector<1x256xf32>
    %206 = tpu.matmul %203, %205, %cst_212 {dimension_numbers = #tpu.dot_dimension_numbers<[1], [0], [0], [1], [0, 0, 1, 1], [], []>} : vector<1x64xf32>, vector<64x256xf32>, vector<1x256xf32> -> vector<1x256xf32>
    %207 = arith.addf %202, %206 : vector<1x256xf32>
    %c1_213 = arith.constant 1 : index
    %c0_214 = arith.constant 0 : index
    %208 = vector.load %arg19[%c1_213, %c0_214] : memref<16x64xf32, #tpu.memory_space<vmem>>, vector<1x64xf32>
    %c1_215 = arith.constant 1 : index
    %c0_216 = arith.constant 0 : index
    %c0_217 = arith.constant 0 : index
    %209 = vector.load %arg11[%c1_215, %c0_216, %c0_217] : memref<16x64x256xf32, #tpu.memory_space<vmem>>, vector<1x64x256xf32>
    %210 = vector.shape_cast %209 : vector<1x64x256xf32> to vector<64x256xf32>
    %cst_218 = arith.constant dense<0.000000e+00> : vector<1x256xf32>
    %211 = tpu.matmul %208, %210, %cst_218 {dimension_numbers = #tpu.dot_dimension_numbers<[1], [0], [0], [1], [0, 0, 1, 1], [], []>} : vector<1x64xf32>, vector<64x256xf32>, vector<1x256xf32> -> vector<1x256xf32>
    %212 = arith.addf %207, %211 : vector<1x256xf32>
    %c2_219 = arith.constant 2 : index
    %c0_220 = arith.constant 0 : index
    %213 = vector.load %arg19[%c2_219, %c0_220] : memref<16x64xf32, #tpu.memory_space<vmem>>, vector<1x64xf32>
    %c2_221 = arith.constant 2 : index
    %c0_222 = arith.constant 0 : index
    %c0_223 = arith.constant 0 : index
    %214 = vector.load %arg11[%c2_221, %c0_222, %c0_223] : memref<16x64x256xf32, #tpu.memory_space<vmem>>, vector<1x64x256xf32>
    %215 = vector.shape_cast %214 : vector<1x64x256xf32> to vector<64x256xf32>
    %cst_224 = arith.constant dense<0.000000e+00> : vector<1x256xf32>
    %216 = tpu.matmul %213, %215, %cst_224 {dimension_numbers = #tpu.dot_dimension_numbers<[1], [0], [0], [1], [0, 0, 1, 1], [], []>} : vector<1x64xf32>, vector<64x256xf32>, vector<1x256xf32> -> vector<1x256xf32>
    %217 = arith.addf %212, %216 : vector<1x256xf32>
    %c3_225 = arith.constant 3 : index
    %c0_226 = arith.constant 0 : index
    %218 = vector.load %arg19[%c3_225, %c0_226] : memref<16x64xf32, #tpu.memory_space<vmem>>, vector<1x64xf32>
    %c3_227 = arith.constant 3 : index
    %c0_228 = arith.constant 0 : index
    %c0_229 = arith.constant 0 : index
    %219 = vector.load %arg11[%c3_227, %c0_228, %c0_229] : memref<16x64x256xf32, #tpu.memory_space<vmem>>, vector<1x64x256xf32>
    %220 = vector.shape_cast %219 : vector<1x64x256xf32> to vector<64x256xf32>
    %cst_230 = arith.constant dense<0.000000e+00> : vector<1x256xf32>
    %221 = tpu.matmul %218, %220, %cst_230 {dimension_numbers = #tpu.dot_dimension_numbers<[1], [0], [0], [1], [0, 0, 1, 1], [], []>} : vector<1x64xf32>, vector<64x256xf32>, vector<1x256xf32> -> vector<1x256xf32>
    %222 = arith.addf %217, %221 : vector<1x256xf32>
    %c4_231 = arith.constant 4 : index
    %c0_232 = arith.constant 0 : index
    %223 = vector.load %arg19[%c4_231, %c0_232] : memref<16x64xf32, #tpu.memory_space<vmem>>, vector<1x64xf32>
    %c4_233 = arith.constant 4 : index
    %c0_234 = arith.constant 0 : index
    %c0_235 = arith.constant 0 : index
    %224 = vector.load %arg11[%c4_233, %c0_234, %c0_235] : memref<16x64x256xf32, #tpu.memory_space<vmem>>, vector<1x64x256xf32>
    %225 = vector.shape_cast %224 : vector<1x64x256xf32> to vector<64x256xf32>
    %cst_236 = arith.constant dense<0.000000e+00> : vector<1x256xf32>
    %226 = tpu.matmul %223, %225, %cst_236 {dimension_numbers = #tpu.dot_dimension_numbers<[1], [0], [0], [1], [0, 0, 1, 1], [], []>} : vector<1x64xf32>, vector<64x256xf32>, vector<1x256xf32> -> vector<1x256xf32>
    %227 = arith.addf %222, %226 : vector<1x256xf32>
    %c5_237 = arith.constant 5 : index
    %c0_238 = arith.constant 0 : index
    %228 = vector.load %arg19[%c5_237, %c0_238] : memref<16x64xf32, #tpu.memory_space<vmem>>, vector<1x64xf32>
    %c5_239 = arith.constant 5 : index
    %c0_240 = arith.constant 0 : index
    %c0_241 = arith.constant 0 : index
    %229 = vector.load %arg11[%c5_239, %c0_240, %c0_241] : memref<16x64x256xf32, #tpu.memory_space<vmem>>, vector<1x64x256xf32>
    %230 = vector.shape_cast %229 : vector<1x64x256xf32> to vector<64x256xf32>
    %cst_242 = arith.constant dense<0.000000e+00> : vector<1x256xf32>
    %231 = tpu.matmul %228, %230, %cst_242 {dimension_numbers = #tpu.dot_dimension_numbers<[1], [0], [0], [1], [0, 0, 1, 1], [], []>} : vector<1x64xf32>, vector<64x256xf32>, vector<1x256xf32> -> vector<1x256xf32>
    %232 = arith.addf %227, %231 : vector<1x256xf32>
    %c6_243 = arith.constant 6 : index
    %c0_244 = arith.constant 0 : index
    %233 = vector.load %arg19[%c6_243, %c0_244] : memref<16x64xf32, #tpu.memory_space<vmem>>, vector<1x64xf32>
    %c6_245 = arith.constant 6 : index
    %c0_246 = arith.constant 0 : index
    %c0_247 = arith.constant 0 : index
    %234 = vector.load %arg11[%c6_245, %c0_246, %c0_247] : memref<16x64x256xf32, #tpu.memory_space<vmem>>, vector<1x64x256xf32>
    %235 = vector.shape_cast %234 : vector<1x64x256xf32> to vector<64x256xf32>
    %cst_248 = arith.constant dense<0.000000e+00> : vector<1x256xf32>
    %236 = tpu.matmul %233, %235, %cst_248 {dimension_numbers = #tpu.dot_dimension_numbers<[1], [0], [0], [1], [0, 0, 1, 1], [], []>} : vector<1x64xf32>, vector<64x256xf32>, vector<1x256xf32> -> vector<1x256xf32>
    %237 = arith.addf %232, %236 : vector<1x256xf32>
    %c7_249 = arith.constant 7 : index
    %c0_250 = arith.constant 0 : index
    %238 = vector.load %arg19[%c7_249, %c0_250] : memref<16x64xf32, #tpu.memory_space<vmem>>, vector<1x64xf32>
    %c7_251 = arith.constant 7 : index
    %c0_252 = arith.constant 0 : index
    %c0_253 = arith.constant 0 : index
    %239 = vector.load %arg11[%c7_251, %c0_252, %c0_253] : memref<16x64x256xf32, #tpu.memory_space<vmem>>, vector<1x64x256xf32>
    %240 = vector.shape_cast %239 : vector<1x64x256xf32> to vector<64x256xf32>
    %cst_254 = arith.constant dense<0.000000e+00> : vector<1x256xf32>
    %241 = tpu.matmul %238, %240, %cst_254 {dimension_numbers = #tpu.dot_dimension_numbers<[1], [0], [0], [1], [0, 0, 1, 1], [], []>} : vector<1x64xf32>, vector<64x256xf32>, vector<1x256xf32> -> vector<1x256xf32>
    %242 = arith.addf %237, %241 : vector<1x256xf32>
    %c8_255 = arith.constant 8 : index
    %c0_256 = arith.constant 0 : index
    %243 = vector.load %arg19[%c8_255, %c0_256] : memref<16x64xf32, #tpu.memory_space<vmem>>, vector<1x64xf32>
    %c8_257 = arith.constant 8 : index
    %c0_258 = arith.constant 0 : index
    %c0_259 = arith.constant 0 : index
    %244 = vector.load %arg11[%c8_257, %c0_258, %c0_259] : memref<16x64x256xf32, #tpu.memory_space<vmem>>, vector<1x64x256xf32>
    %245 = vector.shape_cast %244 : vector<1x64x256xf32> to vector<64x256xf32>
    %cst_260 = arith.constant dense<0.000000e+00> : vector<1x256xf32>
    %246 = tpu.matmul %243, %245, %cst_260 {dimension_numbers = #tpu.dot_dimension_numbers<[1], [0], [0], [1], [0, 0, 1, 1], [], []>} : vector<1x64xf32>, vector<64x256xf32>, vector<1x256xf32> -> vector<1x256xf32>
    %247 = arith.addf %242, %246 : vector<1x256xf32>
    %c9_261 = arith.constant 9 : index
    %c0_262 = arith.constant 0 : index
    %248 = vector.load %arg19[%c9_261, %c0_262] : memref<16x64xf32, #tpu.memory_space<vmem>>, vector<1x64xf32>
    %c9_263 = arith.constant 9 : index
    %c0_264 = arith.constant 0 : index
    %c0_265 = arith.constant 0 : index
    %249 = vector.load %arg11[%c9_263, %c0_264, %c0_265] : memref<16x64x256xf32, #tpu.memory_space<vmem>>, vector<1x64x256xf32>
    %250 = vector.shape_cast %249 : vector<1x64x256xf32> to vector<64x256xf32>
    %cst_266 = arith.constant dense<0.000000e+00> : vector<1x256xf32>
    %251 = tpu.matmul %248, %250, %cst_266 {dimension_numbers = #tpu.dot_dimension_numbers<[1], [0], [0], [1], [0, 0, 1, 1], [], []>} : vector<1x64xf32>, vector<64x256xf32>, vector<1x256xf32> -> vector<1x256xf32>
    %252 = arith.addf %247, %251 : vector<1x256xf32>
    %c10_267 = arith.constant 10 : index
    %c0_268 = arith.constant 0 : index
    %253 = vector.load %arg19[%c10_267, %c0_268] : memref<16x64xf32, #tpu.memory_space<vmem>>, vector<1x64xf32>
    %c10_269 = arith.constant 10 : index
    %c0_270 = arith.constant 0 : index
    %c0_271 = arith.constant 0 : index
    %254 = vector.load %arg11[%c10_269, %c0_270, %c0_271] : memref<16x64x256xf32, #tpu.memory_space<vmem>>, vector<1x64x256xf32>
    %255 = vector.shape_cast %254 : vector<1x64x256xf32> to vector<64x256xf32>
    %cst_272 = arith.constant dense<0.000000e+00> : vector<1x256xf32>
    %256 = tpu.matmul %253, %255, %cst_272 {dimension_numbers = #tpu.dot_dimension_numbers<[1], [0], [0], [1], [0, 0, 1, 1], [], []>} : vector<1x64xf32>, vector<64x256xf32>, vector<1x256xf32> -> vector<1x256xf32>
    %257 = arith.addf %252, %256 : vector<1x256xf32>
    %c11_273 = arith.constant 11 : index
    %c0_274 = arith.constant 0 : index
    %258 = vector.load %arg19[%c11_273, %c0_274] : memref<16x64xf32, #tpu.memory_space<vmem>>, vector<1x64xf32>
    %c11_275 = arith.constant 11 : index
    %c0_276 = arith.constant 0 : index
    %c0_277 = arith.constant 0 : index
    %259 = vector.load %arg11[%c11_275, %c0_276, %c0_277] : memref<16x64x256xf32, #tpu.memory_space<vmem>>, vector<1x64x256xf32>
    %260 = vector.shape_cast %259 : vector<1x64x256xf32> to vector<64x256xf32>
    %cst_278 = arith.constant dense<0.000000e+00> : vector<1x256xf32>
    %261 = tpu.matmul %258, %260, %cst_278 {dimension_numbers = #tpu.dot_dimension_numbers<[1], [0], [0], [1], [0, 0, 1, 1], [], []>} : vector<1x64xf32>, vector<64x256xf32>, vector<1x256xf32> -> vector<1x256xf32>
    %262 = arith.addf %257, %261 : vector<1x256xf32>
    %c12_279 = arith.constant 12 : index
    %c0_280 = arith.constant 0 : index
    %263 = vector.load %arg19[%c12_279, %c0_280] : memref<16x64xf32, #tpu.memory_space<vmem>>, vector<1x64xf32>
    %c12_281 = arith.constant 12 : index
    %c0_282 = arith.constant 0 : index
    %c0_283 = arith.constant 0 : index
    %264 = vector.load %arg11[%c12_281, %c0_282, %c0_283] : memref<16x64x256xf32, #tpu.memory_space<vmem>>, vector<1x64x256xf32>
    %265 = vector.shape_cast %264 : vector<1x64x256xf32> to vector<64x256xf32>
    %cst_284 = arith.constant dense<0.000000e+00> : vector<1x256xf32>
    %266 = tpu.matmul %263, %265, %cst_284 {dimension_numbers = #tpu.dot_dimension_numbers<[1], [0], [0], [1], [0, 0, 1, 1], [], []>} : vector<1x64xf32>, vector<64x256xf32>, vector<1x256xf32> -> vector<1x256xf32>
    %267 = arith.addf %262, %266 : vector<1x256xf32>
    %c13_285 = arith.constant 13 : index
    %c0_286 = arith.constant 0 : index
    %268 = vector.load %arg19[%c13_285, %c0_286] : memref<16x64xf32, #tpu.memory_space<vmem>>, vector<1x64xf32>
    %c13_287 = arith.constant 13 : index
    %c0_288 = arith.constant 0 : index
    %c0_289 = arith.constant 0 : index
    %269 = vector.load %arg11[%c13_287, %c0_288, %c0_289] : memref<16x64x256xf32, #tpu.memory_space<vmem>>, vector<1x64x256xf32>
    %270 = vector.shape_cast %269 : vector<1x64x256xf32> to vector<64x256xf32>
    %cst_290 = arith.constant dense<0.000000e+00> : vector<1x256xf32>
    %271 = tpu.matmul %268, %270, %cst_290 {dimension_numbers = #tpu.dot_dimension_numbers<[1], [0], [0], [1], [0, 0, 1, 1], [], []>} : vector<1x64xf32>, vector<64x256xf32>, vector<1x256xf32> -> vector<1x256xf32>
    %272 = arith.addf %267, %271 : vector<1x256xf32>
    %c14_291 = arith.constant 14 : index
    %c0_292 = arith.constant 0 : index
    %273 = vector.load %arg19[%c14_291, %c0_292] : memref<16x64xf32, #tpu.memory_space<vmem>>, vector<1x64xf32>
    %c14_293 = arith.constant 14 : index
    %c0_294 = arith.constant 0 : index
    %c0_295 = arith.constant 0 : index
    %274 = vector.load %arg11[%c14_293, %c0_294, %c0_295] : memref<16x64x256xf32, #tpu.memory_space<vmem>>, vector<1x64x256xf32>
    %275 = vector.shape_cast %274 : vector<1x64x256xf32> to vector<64x256xf32>
    %cst_296 = arith.constant dense<0.000000e+00> : vector<1x256xf32>
    %276 = tpu.matmul %273, %275, %cst_296 {dimension_numbers = #tpu.dot_dimension_numbers<[1], [0], [0], [1], [0, 0, 1, 1], [], []>} : vector<1x64xf32>, vector<64x256xf32>, vector<1x256xf32> -> vector<1x256xf32>
    %277 = arith.addf %272, %276 : vector<1x256xf32>
    %c15_297 = arith.constant 15 : index
    %c0_298 = arith.constant 0 : index
    %278 = vector.load %arg19[%c15_297, %c0_298] : memref<16x64xf32, #tpu.memory_space<vmem>>, vector<1x64xf32>
    %c15_299 = arith.constant 15 : index
    %c0_300 = arith.constant 0 : index
    %c0_301 = arith.constant 0 : index
    %279 = vector.load %arg11[%c15_299, %c0_300, %c0_301] : memref<16x64x256xf32, #tpu.memory_space<vmem>>, vector<1x64x256xf32>
    %280 = vector.shape_cast %279 : vector<1x64x256xf32> to vector<64x256xf32>
    %cst_302 = arith.constant dense<0.000000e+00> : vector<1x256xf32>
    %281 = tpu.matmul %278, %280, %cst_302 {dimension_numbers = #tpu.dot_dimension_numbers<[1], [0], [0], [1], [0, 0, 1, 1], [], []>} : vector<1x64xf32>, vector<64x256xf32>, vector<1x256xf32> -> vector<1x256xf32>
    %282 = arith.addf %277, %281 : vector<1x256xf32>
    %cst_303 = arith.constant 0.000000e+00 : f32
    %283 = vector.broadcast %cst_303 : f32 to vector<1x256xf32>
    %284 = arith.maximumf %282, %283 : vector<1x256xf32>
    %c0_304 = arith.constant 0 : index
    %c0_305 = arith.constant 0 : index
    %285 = vector.load %arg14[%c0_304, %c0_305] : memref<256x4xf32, #tpu.memory_space<vmem>>, vector<256x4xf32>
    %cst_306 = arith.constant dense<0.000000e+00> : vector<1x4xf32>
    %286 = tpu.matmul %284, %285, %cst_306 {dimension_numbers = #tpu.dot_dimension_numbers<[1], [0], [0], [1], [0, 0, 1, 1], [], []>} : vector<1x256xf32>, vector<256x4xf32>, vector<1x4xf32> -> vector<1x4xf32>
    %c0_307 = arith.constant 0 : index
    %c0_308 = arith.constant 0 : index
    %287 = vector.load %arg15[%c0_307, %c0_308] : memref<1x4xf32, #tpu.memory_space<vmem>>, vector<1x4xf32>
    %288 = arith.addf %286, %287 : vector<1x4xf32>
    %c0_309 = arith.constant 0 : index
    %c0_310 = arith.constant 0 : index
    %289 = vector.load %arg16[%c0_309, %c0_310] : memref<1x4xf32, #tpu.memory_space<vmem>>, vector<1x4xf32>
    tpu.vector_store %arg16[%c0_309, %c0_310], %288 {strides = array<i32>} : memref<1x4xf32, #tpu.memory_space<vmem>>, vector<1x4xf32>,
    return
  }
}

</mosaic_0001>

<bundles_post_ra>
// kernel: actor_forward.1
= control target key start
LH: loop header
LB: loop body
LE: loop exit
PB: predicated region body
PF: predicated region fallthrough
CT: control target
= control target key end

     0   :  { %s15926_s0 = inlined_call_operand.vmem [shape: f32[225,16], index: 0, kind: input, shape index: {}]   ;;  %s15927_s1 = inlined_call_operand.vmem [shape: f32[1,8], index: 1, kind: input, shape index: {}]   ;;  %s15928_s2 = inlined_call_operand.hbm [shape: f32[196,209], index: 2, kind: input, shape index: {}]   ;;  %s15929_s3 = inlined_call_operand.hbm [shape: f32[36,151], index: 3, kind: input, shape index: {}]   ;;  %s15930_s4 = inlined_call_operand.vmem [shape: f32[16,22], index: 4, kind: input, shape index: {}]   ;;  %s15931_s5 = inlined_call_operand.hbm [shape: f32[4,16,32], index: 5, kind: input, shape index: {}]   ;;  %s15932_s6 = inlined_call_operand.vmem [shape: f32[1,32], index: 6, kind: input, shape index: {}]   ;;  %s15933_s7 = inlined_call_operand.vmem [shape: f32[16,32,64], index: 7, kind: input, shape index: {}]   ;;  %s15934_s8 = inlined_call_operand.vmem [shape: f32[1,64], index: 8, kind: input, shape index: {}]   ;;  %s15935_s9 = inlined_call_operand.vmem [shape: f32[9,64,64], index: 9, kind: input, shape index: {}]   ;;  %s15936_s10 = inlined_call_operand.vmem [shape: f32[1,64], index: 10, kind: input, shape index: {}]   ;;  %s15937_s11 = inlined_call_operand.vmem [shape: f32[16,64,256], index: 11, kind: input, shape index: {}]   ;;  %s15938_s12 = inlined_call_operand.vmem [shape: f32[8,256], index: 12, kind: input, shape index: {}]   ;;  %s15939_s13 = inlined_call_operand.vmem [shape: f32[1,256], index: 13, kind: input, shape index: {}]   ;;  %s15940_s14 = inlined_call_operand.vmem [shape: f32[256,4], index: 14, kind: input, shape index: {}]   ;;  %s15941_s15 = inlined_call_operand.vmem [shape: f32[1,4], index: 15, kind: input, shape index: {}]   ;;  %s15942_s16 = inlined_call_operand.hbm [shape: f32[1,4], index: 16, kind: output, shape index: {}]  }
   0x1   :  { %15944 = sst [smem:[#allocation15_spill]] %s15926_s0 }
   0x2   :  { %21 = vsyncpa [#allocation6], 0 }
   0x3   :  { %22 = vsyncpa [#allocation9], 0 }
   0x4   :  { %23 = vsyncpa [#allocation7], 0  ;;  %s11897_s21 = smov [#allocation8]   ;;  %s11898_s23 = smov [#allocation5]  }
   0x5   :  { %s45_s22 = sshll.u32 %s11897_s21, 4  ;;  %s33_s24 = sshll.u32 %s11898_s23, 4  ;;  %s46_s22 = int_to_ptr.vmem [resolvable:$true] %s45_s22  ;;  %s34_s24 = int_to_ptr.vmem [resolvable:$true] %s33_s24 }
   0x6   :  { %s11819_s25 = scalar_lea.vmem %s46_s22, 1280  ;;  %p11824_p1 = scmp.lt.s32.totalorder %s46_s22, %s46_s22 }
   0x7   :  { %p11820_p0 = scmp.ne.s32.totalorder %s46_s22, %s11819_s25  ;;  %p11825_p2 = scmp.lt.s32.totalorder %s11819_s25, %s11819_s25 }
   0x9   :  { %p11826_p3 = por %p11825_p2, %p11824_p1 }
   0xb   :  { %p11827_p4 = pnand %p11826_p3, %p11820_p0 }
   0xd   :  { %11830 = shalt.err (!%p11827_p4)
}
   0xe   :  { %s11899_s26 = smov 256   ;;  %s11900_s27 = smov 16  }
   0xf   :  { %51 = dma.hbm_to_vmem [thread:$0]  %s15929_s3, 1280, %s46_s22, [#allocation9], %s11899_s26, %s11899_s26, %s11900_s27  }
  0x10   :  { %s11839_s30 = scalar_lea.vmem %s34_s24, 6400  ;;  %p11844_p6 = scmp.lt.s32.totalorder %s34_s24, %s34_s24 }
  0x11   :  { %p11840_p5 = scmp.ne.s32.totalorder %s34_s24, %s11839_s30  ;;  %p11845_p7 = scmp.lt.s32.totalorder %s11839_s30, %s11839_s30 }
  0x13   :  { %p11846_p8 = por %p11845_p7, %p11844_p6 }
  0x15   :  { %p11847_p9 = pnand %p11846_p8, %p11840_p5 }
  0x17   :  { %11850 = shalt.err (!%p11847_p9)
}
  0x18   :  { %39 = dma.hbm_to_vmem [thread:$0]  %s15928_s2, 6400, %s34_s24, [#allocation6], %s11899_s26, %s11899_s26, %s11900_s27  }
  0x19   :  { %s11901_s18 = smov [#allocation10]  }
  0x1a   :  { %s59_s19 = sshll.u32 %s11901_s18, 4  ;;  %s60_s19 = int_to_ptr.vmem [resolvable:$true] %s59_s19 }
  0x1b   :  { %s11859_s20 = scalar_lea.vmem %s60_s19, 1024  ;;  %p11864_p11 = scmp.lt.s32.totalorder %s60_s19, %s60_s19 }
  0x1c   :  { %p11860_p10 = scmp.ne.s32.totalorder %s60_s19, %s11859_s20  ;;  %p11865_p12 = scmp.lt.s32.totalorder %s11859_s20, %s11859_s20 }
  0x1e   :  { %p11866_p13 = por %p11865_p12, %p11864_p11 }
  0x20   :  { %p11867_p0 = pnand %p11866_p13, %p11860_p10 }
  0x22   :  { %11870 = shalt.err (!%p11867_p0)
}
  0x23   :  { %s11902_s3 = smov 128   ;;  %s11903_s21 = smov 8  }
  0x24   :  { %65 = dma.hbm_to_vmem [thread:$0]  %s15931_s5, 1024, %s60_s19, [#allocation9], %s11902_s3, %s11902_s3, %s11903_s21  }
  0x25   :  { %11891 = dma.done.wait [#allocation6], 6400  }
  0x26   :  { %11892 = vsyncadd [#allocation6], 4294960896 }
  0x27   :  { %11893 = dma.done.wait [#allocation9], 2304  }
  0x28   :  { %11894 = vsyncadd [#allocation9], 4294964992  ;;  %v11904_v0 = vmov 0.0   ;;  %s15945_s25 = sld [smem:[#allocation15_spill]]  ;;  %vm260_vm0 = vcmask 1040384   ;;  %v12219_v54 = vld [vmem:[#allocation5 + $0x8] sm:$0xff] }
  0x29   :  { %264 = vmatprep.subr.mxu0 %v11904_v0  ;;  %486 = vmatprep.subr.mxu1 %v11904_v0  ;;  %vm184_vm1 = vcmask 662528   ;;  %v12227_v56 = vld [vmem:[#allocation5] sm:$0xff]  ;;  %v12232_v57 = vld [vmem:[#allocation5 + $0x18] sm:$0xff]  ;;  %v455_v59 = vld [vmem:[#allocation10 + $0x8] sm:$0xff]  ;;  %vm11905_vm2 = vmmov 0   ;;  %vm679_vm3 = vcmask 130048  }
  0x2a   :  { %9562 = vmatprep.mubr.msk.f32.mxu0 %vm184_vm1, %v12219_v54  ;;  %9588 = vmatprep.mubr.msk.f32.mxu1 %vm184_vm1, %v12219_v54  ;;  %v678_v58 = vld [vmem:[#allocation10 + $0x18] sm:$0xff]  ;;  %v12242_v60 = vld [vmem:[#allocation5 + $0x10] sm:$0xff]  ;;  %v12244_v61 = vld [vmem:[#allocation5 + $0x28] sm:$0xff]  ;;  %vm2339_vm4 = vcmask 187392   ;;  %vm2293_vm5 = vcmask 261120   ;;  %vm2318_vm6 = vcmask 257024  }
  0x2b   :  { %v12254_v62 = vld [vmem:[#allocation5 + $0x20] sm:$0xff]  ;;  %v12256_v63 = vld [vmem:[#allocation5 + $0x38] sm:$0xff]  ;;  %vm2355_vm7 = vcmask 1046528   ;;  %vm5985_vm8 = vcmask 179200   ;;  %vm5975_vm9 = vcmask 523264   ;;  %vm5980_vm10 = vcmask 519168  }
  0x2c   :  { %vm5992_vm11 = vcmask 1045504   ;;  %vm7559_vm12 = vcmask 64512   ;;  %s11907_s17 = smov [#allocation11]   ;;  %vm9543_vm13 = vcmask 24576  }
  0x2d   :  { %s9551_s18 = sshll.u32 %s11907_s17, 4  ;;  %s9552_s18 = int_to_ptr.vmem [resolvable:$true] %s9551_s18 }
  0x2e   :  { %v172_v1 = vld [vmem:[%s15945_s25 + $0x78] sm:$0xff]  ;;  %v171_v3 = vld [vmem:[%s15945_s25 + $0x70] sm:$0xff]  ;;  %v170_v5 = vld [vmem:[%s15945_s25 + $0x68] sm:$0xff]  ;;  %s11871_s19 = scalar_lea.vmem %s9552_s18, 16  ;;  %s11875_s20 = scalar_lea.vmem %s9552_s18, 32 }
  0x2f   :  { %v471_v2 = vld [vmem:[%s15945_s25 + $0x79] sm:$0xff]  ;;  %265 = vmatpush1.msra.mxu0 %v172_v1  ;;  %v470_v4 = vld [vmem:[%s15945_s25 + $0x71] sm:$0xff]  ;;  %v469_v6 = vld [vmem:[%s15945_s25 + $0x69] sm:$0xff]  ;;  %p11872_p1 = scmp.ne.s32.totalorder %s9552_s18, %s11871_s19  ;;  %p11876_p2 = scmp.lt.s32.totalorder %s9552_s18, %s9552_s18 }
  0x30   :  { %487 = vmatpush1.msra.mxu1 %v471_v2  ;;  %266 = vmatprep.subr.mxu0 %v11904_v0  ;;  %v169_v7 = vld [vmem:[%s15945_s25 + $0x60] sm:$0xff]  ;;  %v168_v9 = vld [vmem:[%s15945_s25 + $0x58] sm:$0xff]  ;;  %v167_v11 = vld [vmem:[%s15945_s25 + $0x50] sm:$0xff]  ;;  %p11877_p3 = scmp.lt.s32.totalorder %s11875_s20, %s11871_s19 }
  0x31   :  { %488 = vmatprep.subr.mxu1 %v11904_v0  ;;  %267 = vmatpush1.msra.mxu0 %v171_v3  ;;  %v468_v8 = vld [vmem:[%s15945_s25 + $0x61] sm:$0xff]  ;;  %v467_v10 = vld [vmem:[%s15945_s25 + $0x59] sm:$0xff]  ;;  %v466_v12 = vld [vmem:[%s15945_s25 + $0x51] sm:$0xff] }
  0x32   :  { %489 = vmatpush1.msra.mxu1 %v470_v4  ;;  %268 = vmatprep.subr.mxu0 %v11904_v0  ;;  %v166_v13 = vld [vmem:[%s15945_s25 + $0x48] sm:$0xff]  ;;  %v165_v15 = vld [vmem:[%s15945_s25 + $0x40] sm:$0xff]  ;;  %v164_v17 = vld [vmem:[%s15945_s25 + $0x38] sm:$0xff]  ;;  %p11878_p4 = por %p11877_p3, %p11876_p2 }
  0x33   :  { %490 = vmatprep.subr.mxu1 %v11904_v0  ;;  %269 = vmatpush1.msra.mxu0 %v170_v5  ;;  %v465_v14 = vld [vmem:[%s15945_s25 + $0x49] sm:$0xff]  ;;  %v464_v16 = vld [vmem:[%s15945_s25 + $0x41] sm:$0xff]  ;;  %v463_v18 = vld [vmem:[%s15945_s25 + $0x39] sm:$0xff] }
  0x34   :  { %491 = vmatpush1.msra.mxu1 %v469_v6  ;;  %270 = vmatprep.subr.mxu0 %v11904_v0  ;;  %v163_v19 = vld [vmem:[%s15945_s25 + $0x30] sm:$0xff]  ;;  %v162_v21 = vld [vmem:[%s15945_s25 + $0x28] sm:$0xff]  ;;  %v161_v23 = vld [vmem:[%s15945_s25 + $0x20] sm:$0xff]  ;;  %p11879_p5 = pnand %p11878_p4, %p11872_p1 }
  0x35   :  { %492 = vmatprep.subr.mxu1 %v11904_v0  ;;  %271 = vmatpush1.msra.mxu0 %v169_v7  ;;  %v462_v20 = vld [vmem:[%s15945_s25 + $0x31] sm:$0xff]  ;;  %v461_v22 = vld [vmem:[%s15945_s25 + $0x29] sm:$0xff]  ;;  %v460_v24 = vld [vmem:[%s15945_s25 + $0x21] sm:$0xff] }
  0x36   :  { %493 = vmatpush1.msra.mxu1 %v468_v8  ;;  %272 = vmatprep.subr.mxu0 %v11904_v0  ;;  %v160_v25 = vld [vmem:[%s15945_s25 + $0x18] sm:$0xff]  ;;  %v159_v27 = vld [vmem:[%s15945_s25 + $0x10] sm:$0xff]  ;;  %v158_v29 = vld [vmem:[%s15945_s25 + $0x8] sm:$0xff] }
  0x37   :  { %494 = vmatprep.subr.mxu1 %v11904_v0  ;;  %273 = vmatpush1.msra.mxu0 %v168_v9  ;;  %v459_v26 = vld [vmem:[%s15945_s25 + $0x19] sm:$0xff]  ;;  %v458_v28 = vld [vmem:[%s15945_s25 + $0x11] sm:$0xff]  ;;  %v457_v30 = vld [vmem:[%s15945_s25 + $0x9] sm:$0xff] }
  0x38   :  { %495 = vmatpush1.msra.mxu1 %v467_v10  ;;  %274 = vmatprep.subr.mxu0 %v11904_v0  ;;  %v157_v31 = vld [vmem:[%s15945_s25] sm:$0xff]  ;;  %v183_v33 = vld [vmem:[%s15945_s25 + $0xd0] sm:$0x1]  ;;  %v482_v34 = vld [vmem:[%s15945_s25 + $0xd1] sm:$0x1] }
  0x39   :  { %496 = vmatprep.subr.mxu1 %v11904_v0  ;;  %275 = vmatpush1.msra.mxu0 %v167_v11  ;;  %v456_v32 = vld [vmem:[%s15945_s25 + $0x1] sm:$0xff]  ;;  %v481_v36 = vld [vmem:[%s15945_s25 + $0xc9] sm:$0xff]  ;;  %v180_v39 = vld [vmem:[%s15945_s25 + $0xb8] sm:$0xff] }
  0x3a   :  { %497 = vmatpush1.msra.mxu1 %v466_v12  ;;  %276 = vmatprep.subr.mxu0 %v11904_v0  ;;  %v182_v35 = vld [vmem:[%s15945_s25 + $0xc8] sm:$0xff]  ;;  %v181_v37 = vld [vmem:[%s15945_s25 + $0xc0] sm:$0xff]  ;;  %v179_v41 = vld [vmem:[%s15945_s25 + $0xb0] sm:$0xff] }
  0x3b   :  { %498 = vmatprep.subr.mxu1 %v11904_v0  ;;  %277 = vmatpush1.msra.mxu0 %v166_v13  ;;  %v480_v38 = vld [vmem:[%s15945_s25 + $0xc1] sm:$0xff]  ;;  %v479_v40 = vld [vmem:[%s15945_s25 + $0xb9] sm:$0xff]  ;;  %v478_v42 = vld [vmem:[%s15945_s25 + $0xb1] sm:$0xff] }
  0x3c   :  { %499 = vmatpush1.msra.mxu1 %v465_v14  ;;  %278 = vmatprep.subr.mxu0 %v11904_v0  ;;  %v178_v43 = vld [vmem:[%s15945_s25 + $0xa8] sm:$0xff]  ;;  %v177_v45 = vld [vmem:[%s15945_s25 + $0xa0] sm:$0xff]  ;;  %v176_v47 = vld [vmem:[%s15945_s25 + $0x98] sm:$0xff] }
  0x3d   :  { %500 = vmatprep.subr.mxu1 %v11904_v0  ;;  %279 = vmatpush1.msra.mxu0 %v165_v15  ;;  %v477_v44 = vld [vmem:[%s15945_s25 + $0xa9] sm:$0xff]  ;;  %v476_v46 = vld [vmem:[%s15945_s25 + $0xa1] sm:$0xff]  ;;  %v475_v48 = vld [vmem:[%s15945_s25 + $0x99] sm:$0xff] }
  0x3e   :  { %501 = vmatpush1.msra.mxu1 %v464_v16  ;;  %280 = vmatprep.subr.mxu0 %v11904_v0  ;;  %v175_v49 = vld [vmem:[%s15945_s25 + $0x90] sm:$0xff]  ;;  %v12207_v51 = vld [vmem:[%s15945_s25 + $0x88] sm:$0xff]  ;;  %v12217_v53 = vld [vmem:[%s15945_s25 + $0x80] sm:$0xff] }
  0x3f   :  { %502 = vmatprep.subr.mxu1 %v11904_v0  ;;  %281 = vmatpush1.msra.mxu0 %v164_v17  ;;  %v474_v50 = vld [vmem:[%s15945_s25 + $0x91] sm:$0xff]  ;;  %v473_v52 = vld [vmem:[%s15945_s25 + $0x89] sm:$0xff]  ;;  %v472_v55 = vld [vmem:[%s15945_s25 + $0x81] sm:$0xff] }
  0x40   :  { %503 = vmatpush1.msra.mxu1 %v463_v18  ;;  %282 = vmatprep.subr.mxu0 %v11904_v0  ;;  %v12266_v1 = vld [vmem:[#allocation5 + $0x30] sm:$0xff]  ;;  %v12268_v2 = vld [vmem:[#allocation5 + $0x48] sm:$0xff]  ;;  %v12276_v3 = vld [vmem:[#allocation5 + $0x40] sm:$0xff] }
  0x41   :  { %504 = vmatprep.subr.mxu1 %v11904_v0  ;;  %283 = vmatpush1.msra.mxu0 %v163_v19  ;;  %v12278_v4 = vld [vmem:[#allocation5 + $0x58] sm:$0xff]  ;;  %v12286_v5 = vld [vmem:[#allocation5 + $0x50] sm:$0xff]  ;;  %v12288_v6 = vld [vmem:[#allocation5 + $0x68] sm:$0xff] }
  0x42   :  { %505 = vmatpush1.msra.mxu1 %v462_v20  ;;  %284 = vmatprep.subr.mxu0 %v11904_v0  ;;  %v12296_v7 = vld [vmem:[#allocation5 + $0x60] sm:$0xff]  ;;  %v12298_v8 = vld [vmem:[#allocation5 + $0x78] sm:$0xff]  ;;  %v12306_v9 = vld [vmem:[#allocation5 + $0x70] sm:$0xff] }
  0x43   :  { %506 = vmatprep.subr.mxu1 %v11904_v0  ;;  %285 = vmatpush1.msra.mxu0 %v162_v21  ;;  %v12308_v10 = vld [vmem:[#allocation5 + $0x88] sm:$0xff]  ;;  %v12316_v11 = vld [vmem:[#allocation5 + $0x80] sm:$0xff]  ;;  %v12318_v12 = vld [vmem:[#allocation5 + $0x98] sm:$0xff] }
  0x44   :  { %507 = vmatpush1.msra.mxu1 %v461_v22  ;;  %286 = vmatprep.subr.mxu0 %v11904_v0  ;;  %v12326_v13 = vld [vmem:[#allocation5 + $0x90] sm:$0xff]  ;;  %v12328_v14 = vld [vmem:[#allocation5 + $0xa8] sm:$0xff]  ;;  %v12336_v15 = vld [vmem:[#allocation5 + $0xa0] sm:$0xff] }
  0x45   :  { %508 = vmatprep.subr.mxu1 %v11904_v0  ;;  %287 = vmatpush1.msra.mxu0 %v161_v23  ;;  %v12338_v16 = vld [vmem:[#allocation5 + $0xb8] sm:$0xff]  ;;  %v12346_v17 = vld [vmem:[#allocation5 + $0xb0] sm:$0xff]  ;;  %v12348_v18 = vld [vmem:[#allocation5 + $0xc8] sm:$0xff] }
  0x46   :  { %509 = vmatpush1.msra.mxu1 %v460_v24  ;;  %288 = vmatprep.subr.mxu0 %v11904_v0  ;;  %v12356_v19 = vld [vmem:[#allocation5 + $0xc0] sm:$0xff]  ;;  %v12358_v20 = vld [vmem:[#allocation5 + $0xd8] sm:$0xff]  ;;  %v12366_v21 = vld [vmem:[#allocation5 + $0xd0] sm:$0xff] }
  0x47   :  { %510 = vmatprep.subr.mxu1 %v11904_v0  ;;  %289 = vmatpush1.msra.mxu0 %v160_v25  ;;  %v12368_v22 = vld [vmem:[#allocation5 + $0xe8] sm:$0xff]  ;;  %v12376_v23 = vld [vmem:[#allocation5 + $0xe0] sm:$0xff]  ;;  %v12378_v24 = vld [vmem:[#allocation5 + $0xf8] sm:$0xff] }
  0x48   :  { %511 = vmatpush1.msra.mxu1 %v459_v26  ;;  %290 = vmatprep.subr.mxu0 %v11904_v0  ;;  %v12386_v25 = vld [vmem:[#allocation5 + $0xf0] sm:$0xff]  ;;  %v12388_v26 = vld [vmem:[#allocation5 + $0x108] sm:$0xff] }
  0x49   :  { %512 = vmatprep.subr.mxu1 %v11904_v0  ;;  %291 = vmatpush1.msra.mxu0 %v159_v27  ;;  %v12396_v27 = vld [vmem:[#allocation5 + $0x100] sm:$0xff] }
  0x4a   :  { %513 = vmatpush1.msra.mxu1 %v458_v28  ;;  %292 = vmatprep.subr.mxu0 %v11904_v0  ;;  %v12398_v28 = vld [vmem:[#allocation5 + $0x118] sm:$0xff] }
  0x4b   :  { %514 = vmatprep.subr.mxu1 %v11904_v0  ;;  %293 = vmatpush1.msra.mxu0 %v158_v29  ;;  %v677_v29 = vld [vmem:[#allocation10 + $0x10] sm:$0xff] }
  0x4c   :  { %515 = vmatpush1.msra.mxu1 %v457_v30  ;;  %294 = vmatprep.subr.mxu0 %v11904_v0  ;;  %v454_v30 = vld [vmem:[#allocation10] sm:$0xff] }
  0x4d   :  { %516 = vmatprep.subr.mxu1 %v11904_v0  ;;  %295 = vmatpush1.msra.mxu0 %v157_v31  ;;  %v12406_v31 = vld [vmem:[#allocation5 + $0x110] sm:$0xff] }
  0x4e   :  { %517 = vmatpush1.msra.mxu1 %v456_v32  ;;  %306 = vmatprep.subr.mxu0 %v11904_v0  ;;  %v12408_v32 = vld [vmem:[#allocation5 + $0x128] sm:$0xff] }
  0x4f   :  { %528 = vmatprep.subr.mxu1 %v11904_v0  ;;  %9561 = vmatpush2.msk.msra.mxu0 %vm260_vm0, %v183_v33  ;;  %v12418_v33 = vld [vmem:[#allocation5 + $0x120] sm:$0xff] }
  0x50   :  { %9587 = vmatpush2.msk.msra.mxu1 %vm260_vm0, %v482_v34  ;;  %308 = vmatprep.subr.mxu0 %v11904_v0  ;;  %v12420_v34 = vld [vmem:[#allocation5 + $0x138] sm:$0xff] }
  0x51   :  { %530 = vmatprep.subr.mxu1 %v11904_v0  ;;  %309 = vmatpush2.msra.mxu0 %v182_v35  ;;  %v12428_v35 = vld [vmem:[#allocation5 + $0x130] sm:$0xff] }
  0x52   :  { %531 = vmatpush2.msra.mxu1 %v481_v36  ;;  %310 = vmatprep.subr.mxu0 %v11904_v0  ;;  %v12430_v36 = vld [vmem:[#allocation5 + $0x148] sm:$0xff] }
  0x53   :  { %532 = vmatprep.subr.mxu1 %v11904_v0  ;;  %311 = vmatpush2.msra.mxu0 %v181_v37  ;;  %v12438_v37 = vld [vmem:[#allocation5 + $0x140] sm:$0xff] }
  0x54   :  { %533 = vmatpush2.msra.mxu1 %v480_v38  ;;  %312 = vmatprep.subr.mxu0 %v11904_v0  ;;  %v12440_v38 = vld [vmem:[#allocation5 + $0x158] sm:$0xff] }
  0x55   :  { %534 = vmatprep.subr.mxu1 %v11904_v0  ;;  %313 = vmatpush2.msra.mxu0 %v180_v39  ;;  %v12448_v39 = vld [vmem:[#allocation5 + $0x150] sm:$0xff] }
  0x56   :  { %535 = vmatpush2.msra.mxu1 %v479_v40  ;;  %314 = vmatprep.subr.mxu0 %v11904_v0  ;;  %v12450_v40 = vld [vmem:[#allocation5 + $0x168] sm:$0xff] }
  0x57   :  { %536 = vmatprep.subr.mxu1 %v11904_v0  ;;  %315 = vmatpush2.msra.mxu0 %v179_v41  ;;  %v12458_v41 = vld [vmem:[#allocation5 + $0x160] sm:$0xff] }
  0x58   :  { %537 = vmatpush2.msra.mxu1 %v478_v42  ;;  %316 = vmatprep.subr.mxu0 %v11904_v0  ;;  %v12460_v42 = vld [vmem:[#allocation5 + $0x178] sm:$0xff] }
  0x59   :  { %538 = vmatprep.subr.mxu1 %v11904_v0  ;;  %317 = vmatpush2.msra.mxu0 %v178_v43  ;;  %v12468_v43 = vld [vmem:[#allocation5 + $0x170] sm:$0xff] }
  0x5a   :  { %539 = vmatpush2.msra.mxu1 %v477_v44  ;;  %318 = vmatprep.subr.mxu0 %v11904_v0  ;;  %v12470_v44 = vld [vmem:[#allocation5 + $0x188] sm:$0xf] }
  0x5b   :  { %540 = vmatprep.subr.mxu1 %v11904_v0  ;;  %319 = vmatpush2.msra.mxu0 %v177_v45  ;;  %v12478_v45 = vld [vmem:[#allocation5 + $0x180] sm:$0xf] }
  0x5c   :  { %541 = vmatpush2.msra.mxu1 %v476_v46  ;;  %320 = vmatprep.subr.mxu0 %v11904_v0 }
  0x5d   :  { %542 = vmatprep.subr.mxu1 %v11904_v0  ;;  %321 = vmatpush2.msra.mxu0 %v176_v47 }
  0x5e   :  { %543 = vmatpush2.msra.mxu1 %v475_v48  ;;  %322 = vmatprep.subr.mxu0 %v11904_v0  ;;  %v1225_v48 = vld [vmem:[%s15945_s25 + $0x87] sm:$0xff] }
  0x5f   :  { %544 = vmatprep.subr.mxu1 %v11904_v0  ;;  %323 = vmatpush2.msra.mxu0 %v175_v49 }
  0x60   :  { %545 = vmatpush2.msra.mxu1 %v474_v50  ;;  %324 = vmatprep.subr.mxu0 %v11904_v0 }
  0x61   :  { %546 = vmatprep.subr.mxu1 %v11904_v0  ;;  %325 = vmatpush2.msra.mxu0 %v12207_v51 }
  0x62   :  { %547 = vmatpush2.msra.mxu1 %v473_v52  ;;  %326 = vmatprep.subr.mxu0 %v11904_v0 }
  0x63   :  { %548 = vmatprep.subr.mxu1 %v11904_v0  ;;  %327 = vmatpush2.msra.mxu0 %v12217_v53 }
  0x64   :  { %549 = vmatpush2.msra.mxu1 %v472_v55  ;;  %329 = vmatmul.mubr.f32.vlgmr.msra.gmra.mxu0 %v12227_v56 }
  0x65   :  { %551 = vmatmul.mubr.f32.vlgmr.msra.gmra.mxu1 %v12227_v56  ;;  %9563 = vmatprep.mubr.msk.f32.mxu0 %vm184_vm1, %v12232_v57 }
  0x66   :  { %9589 = vmatprep.mubr.msk.f32.mxu1 %vm184_vm1, %v12232_v57  ;;  %10792 = vmatprep.subr.mxu0 %v11904_v0 }
  0x67   :  { %10871 = vmatprep.subr.mxu1 %v11904_v0  ;;  %10793 = vmatpush3.msra.mxu0 %v678_v58  ;;  %v1224_v58 = vld [vmem:[%s15945_s25 + $0x7f] sm:$0xff] }
  0x68   :  { %10872 = vmatpush3.msra.mxu1 %v455_v59  ;;  %334 = vmatmul.mubr.f32.gmra.mxu0 %v12242_v60 }
  0x69   :  { %556 = vmatmul.mubr.f32.gmra.mxu1 %v12242_v60  ;;  %9564 = vmatprep.mubr.msk.f32.mxu0 %vm184_vm1, %v12244_v61 }
  0x6a   :  { %9590 = vmatprep.mubr.msk.f32.mxu1 %vm184_vm1, %v12244_v61  ;;  %10794 = vmatprep.subr.mxu0 %v11904_v0 }
  0x6b   :  { %10873 = vmatprep.subr.mxu1 %v11904_v0  ;;  %10795 = vmatpush3.msra.mxu0 %v677_v29 }
  0x6c   :  { %339 = vmatmul.mubr.f32.gmra.mxu0 %v12254_v62  ;;  %10874 = vmatpush3.msra.mxu1 %v454_v30 }
  0x6d   :  { %561 = vmatmul.mubr.f32.gmra.mxu1 %v12254_v62  ;;  %9565 = vmatprep.mubr.msk.f32.mxu0 %vm184_vm1, %v12256_v63 }
  0x6e   :  { %9591 = vmatprep.mubr.msk.f32.mxu1 %vm184_vm1, %v12256_v63  ;;  %1240 = vmatprep.subr.mxu0 %v11904_v0 }
  0x6f   :  { %10950 = vmatprep.subr.mxu1 %v11904_v0 }
  0x70   :  { %344 = vmatmul.mubr.f32.gmra.mxu0 %v12266_v1 }
  0x71   :  { %566 = vmatmul.mubr.f32.gmra.mxu1 %v12266_v1  ;;  %9566 = vmatprep.mubr.msk.f32.mxu0 %vm184_vm1, %v12268_v2 }
  0x72   :  { %9592 = vmatprep.mubr.msk.f32.mxu1 %vm184_vm1, %v12268_v2 }
  0x74   :  { %349 = vmatmul.mubr.f32.gmra.mxu0 %v12276_v3 }
  0x75   :  { %571 = vmatmul.mubr.f32.gmra.mxu1 %v12276_v3  ;;  %9567 = vmatprep.mubr.msk.f32.mxu0 %vm184_vm1, %v12278_v4 }
  0x76   :  { %9593 = vmatprep.mubr.msk.f32.mxu1 %vm184_vm1, %v12278_v4 }
  0x78   :  { %354 = vmatmul.mubr.f32.gmra.mxu0 %v12286_v5 }
  0x79   :  { %576 = vmatmul.mubr.f32.gmra.mxu1 %v12286_v5  ;;  %9568 = vmatprep.mubr.msk.f32.mxu0 %vm184_vm1, %v12288_v6 }
  0x7a   :  { %9594 = vmatprep.mubr.msk.f32.mxu1 %vm184_vm1, %v12288_v6 }
  0x7c   :  { %359 = vmatmul.mubr.f32.gmra.mxu0 %v12296_v7 }
  0x7d   :  { %581 = vmatmul.mubr.f32.gmra.mxu1 %v12296_v7  ;;  %9569 = vmatprep.mubr.msk.f32.mxu0 %vm184_vm1, %v12298_v8 }
  0x7e   :  { %9595 = vmatprep.mubr.msk.f32.mxu1 %vm184_vm1, %v12298_v8 }
  0x80   :  { %364 = vmatmul.mubr.f32.gmra.mxu0 %v12306_v9 }
  0x81   :  { %586 = vmatmul.mubr.f32.gmra.mxu1 %v12306_v9  ;;  %9570 = vmatprep.mubr.msk.f32.mxu0 %vm184_vm1, %v12308_v10 }
  0x82   :  { %9596 = vmatprep.mubr.msk.f32.mxu1 %vm184_vm1, %v12308_v10 }
  0x84   :  { %369 = vmatmul.mubr.f32.gmra.mxu0 %v12316_v11 }
  0x85   :  { %591 = vmatmul.mubr.f32.gmra.mxu1 %v12316_v11  ;;  %9571 = vmatprep.mubr.msk.f32.mxu0 %vm184_vm1, %v12318_v12 }
  0x86   :  { %9597 = vmatprep.mubr.msk.f32.mxu1 %vm184_vm1, %v12318_v12 }
  0x88   :  { %374 = vmatmul.mubr.f32.gmra.mxu0 %v12326_v13 }
  0x89   :  { %596 = vmatmul.mubr.f32.gmra.mxu1 %v12326_v13  ;;  %9572 = vmatprep.mubr.msk.f32.mxu0 %vm184_vm1, %v12328_v14 }
  0x8a   :  { %9598 = vmatprep.mubr.msk.f32.mxu1 %vm184_vm1, %v12328_v14 }
  0x8c   :  { %379 = vmatmul.mubr.f32.gmra.mxu0 %v12336_v15 }
  0x8d   :  { %601 = vmatmul.mubr.f32.gmra.mxu1 %v12336_v15  ;;  %9573 = vmatprep.mubr.msk.f32.mxu0 %vm184_vm1, %v12338_v16 }
  0x8e   :  { %9599 = vmatprep.mubr.msk.f32.mxu1 %vm184_vm1, %v12338_v16 }
  0x90   :  { %384 = vmatmul.mubr.f32.gmra.mxu0 %v12346_v17 }
  0x91   :  { %606 = vmatmul.mubr.f32.gmra.mxu1 %v12346_v17  ;;  %9574 = vmatprep.mubr.msk.f32.mxu0 %vm184_vm1, %v12348_v18 }
  0x92   :  { %9600 = vmatprep.mubr.msk.f32.mxu1 %vm184_vm1, %v12348_v18 }
  0x94   :  { %389 = vmatmul.mubr.f32.gmra.mxu0 %v12356_v19 }
  0x95   :  { %611 = vmatmul.mubr.f32.gmra.mxu1 %v12356_v19  ;;  %9575 = vmatprep.mubr.msk.f32.mxu0 %vm184_vm1, %v12358_v20 }
  0x96   :  { %9601 = vmatprep.mubr.msk.f32.mxu1 %vm184_vm1, %v12358_v20 }
  0x98   :  { %394 = vmatmul.mubr.f32.gmra.mxu0 %v12366_v21 }
  0x99   :  { %616 = vmatmul.mubr.f32.gmra.mxu1 %v12366_v21  ;;  %9576 = vmatprep.mubr.msk.f32.mxu0 %vm184_vm1, %v12368_v22 }
  0x9a   :  { %9602 = vmatprep.mubr.msk.f32.mxu1 %vm184_vm1, %v12368_v22 }
  0x9c   :  { %399 = vmatmul.mubr.f32.gmra.mxu0 %v12376_v23 }
  0x9d   :  { %621 = vmatmul.mubr.f32.gmra.mxu1 %v12376_v23  ;;  %9577 = vmatprep.mubr.msk.f32.mxu0 %vm184_vm1, %v12378_v24 }
  0x9e   :  { %9603 = vmatprep.mubr.msk.f32.mxu1 %vm184_vm1, %v12378_v24 }
  0xa0   :  { %404 = vmatmul.mubr.f32.gmra.mxu0 %v12386_v25 }
  0xa1   :  { %626 = vmatmul.mubr.f32.gmra.mxu1 %v12386_v25  ;;  %9578 = vmatprep.mubr.msk.f32.mxu0 %vm184_vm1, %v12388_v26 }
  0xa2   :  { %9604 = vmatprep.mubr.msk.f32.mxu1 %vm184_vm1, %v12388_v26 }
  0xa4   :  { %409 = vmatmul.mubr.f32.gmra.mxu0 %v12396_v27 }
  0xa5   :  { %631 = vmatmul.mubr.f32.gmra.mxu1 %v12396_v27  ;;  %9579 = vmatprep.mubr.msk.f32.mxu0 %vm184_vm1, %v12398_v28 }
  0xa6   :  { %9605 = vmatprep.mubr.msk.f32.mxu1 %vm184_vm1, %v12398_v28 }
  0xa8   :  { %414 = vmatmul.mubr.f32.gmra.mxu0 %v12406_v31 }
  0xa9   :  { %636 = vmatmul.mubr.f32.gmra.mxu1 %v12406_v31  ;;  %9580 = vmatprep.mubr.msk.f32.mxu0 %vm184_vm1, %v12408_v32 }
  0xaa   :  { %9606 = vmatprep.mubr.msk.f32.mxu1 %vm184_vm1, %v12408_v32 }
  0xac   :  { %419 = vmatmul.mubr.f32.gmra.mxu0 %v12418_v33 }
  0xad   :  { %641 = vmatmul.mubr.f32.gmra.mxu1 %v12418_v33  ;;  %9581 = vmatprep.mubr.msk.f32.mxu0 %vm184_vm1, %v12420_v34 }
  0xae   :  { %9607 = vmatprep.mubr.msk.f32.mxu1 %vm184_vm1, %v12420_v34 }
  0xb0   :  { %424 = vmatmul.mubr.f32.gmra.mxu0 %v12428_v35 }
  0xb1   :  { %646 = vmatmul.mubr.f32.gmra.mxu1 %v12428_v35  ;;  %9582 = vmatprep.mubr.msk.f32.mxu0 %vm184_vm1, %v12430_v36 }
  0xb2   :  { %9608 = vmatprep.mubr.msk.f32.mxu1 %vm184_vm1, %v12430_v36 }
  0xb4   :  { %429 = vmatmul.mubr.f32.gmra.mxu0 %v12438_v37 }
  0xb5   :  { %651 = vmatmul.mubr.f32.gmra.mxu1 %v12438_v37  ;;  %9583 = vmatprep.mubr.msk.f32.mxu0 %vm184_vm1, %v12440_v38 }
  0xb6   :  { %9609 = vmatprep.mubr.msk.f32.mxu1 %vm184_vm1, %v12440_v38 }
  0xb8   :  { %434 = vmatmul.mubr.f32.gmra.mxu0 %v12448_v39 }
  0xb9   :  { %656 = vmatmul.mubr.f32.gmra.mxu1 %v12448_v39  ;;  %9584 = vmatprep.mubr.msk.f32.mxu0 %vm184_vm1, %v12450_v40 }
  0xba   :  { %9610 = vmatprep.mubr.msk.f32.mxu1 %vm184_vm1, %v12450_v40 }
  0xbc   :  { %439 = vmatmul.mubr.f32.gmra.mxu0 %v12458_v41 }
  0xbd   :  { %661 = vmatmul.mubr.f32.gmra.mxu1 %v12458_v41  ;;  %9585 = vmatprep.mubr.msk.f32.mxu0 %vm184_vm1, %v12460_v42 }
  0xbe   :  { %9611 = vmatprep.mubr.msk.f32.mxu1 %vm184_vm1, %v12460_v42 }
  0xc0   :  { %444 = vmatmul.mubr.f32.gmra.mxu0 %v12468_v43 }
  0xc1   :  { %666 = vmatmul.mubr.f32.gmra.mxu1 %v12468_v43  ;;  %9586 = vmatprep.mubr.msk.f32.mxu0 %vm184_vm1, %v12470_v44 }
  0xc2   :  { %9612 = vmatprep.mubr.msk.f32.mxu1 %vm184_vm1, %v12470_v44 }
  0xc4   :  { %449 = vmatmul.mubr.f32.gmra.mxu0 %v12478_v45 }
  0xc5   :  { %671 = vmatmul.mubr.f32.gmra.mxu1 %v12478_v45  ;;  %10796 = vmatprep.mubr.msk.f32.mxu0 %vm11905_vm2, %v11904_v0 }
  0xc6   :  { %10875 = vmatprep.mubr.msk.f32.mxu1 %vm11905_vm2, %v11904_v0 }
 0x124   :  { %v330_v46 = vpop.f32.mrf.mxu0 }
 0x125   :  { %v552_v47 = vpop.f32.mrf.mxu1  ;;  %10876 = vmatmul.mubr.msk.f32.vlgmr.msra.gmra.mxu1 %vm679_vm3, %v330_v46 }
 0x126   :  { %10797 = vmatmul.mubr.msk.f32.vlgmr.msra.gmra.mxu0 %vm679_vm3, %v552_v47  ;;  %v332_v49 = vpop.f32.mrf.mxu0  ;;  %10878 = vmatprep.mubr.msk.f32.mxu1 %vm11905_vm2, %v11904_v0  ;;  %v1223_v47 = vld [vmem:[%s15945_s25 + $0x77] sm:$0xff] }
 0x127   :  { %v554_v50 = vpop.f32.mrf.mxu1  ;;  %10799 = vmatprep.mubr.msk.f32.mxu0 %vm11905_vm2, %v11904_v0  ;;  %1241 = vmatpush1.msra.mxu0 %v1225_v48 }
 0x128   :  { %v335_v52 = vpop.f32.mrf.mxu0  ;;  %1242 = vmatprep.subr.mxu0 %v11904_v0 }
 0x129   :  { %v557_v55 = vpop.f32.mrf.mxu1  ;;  %10879 = vmatmul.mubr.msk.f32.gmra.mxu1 %vm679_vm3, %v335_v52  ;;  %1243 = vmatpush1.msra.mxu0 %v1224_v58 }
 0x12a   :  { %10800 = vmatmul.mubr.msk.f32.gmra.mxu0 %vm679_vm3, %v557_v55  ;;  %v337_v59 = vpop.f32.mrf.mxu0  ;;  %10881 = vmatprep.mubr.msk.f32.mxu1 %vm11905_vm2, %v11904_v0  ;;  %v1222_v55 = vld [vmem:[%s15945_s25 + $0x6f] sm:$0xff] }
 0x12b   :  { %v559_v29 = vpop.f32.mrf.mxu1  ;;  %10802 = vmatprep.mubr.msk.f32.mxu0 %vm11905_vm2, %v11904_v0  ;;  %1244 = vmatprep.subr.mxu0 %v11904_v0 }
 0x12c   :  { %v340_v30 = vpop.f32.mrf.mxu0  ;;  %1245 = vmatpush1.msra.mxu0 %v1223_v47 }
 0x12d   :  { %v562_v46 = vpop.f32.mrf.mxu1  ;;  %10882 = vmatmul.mubr.msk.f32.gmra.mxu1 %vm679_vm3, %v340_v30  ;;  %1246 = vmatprep.subr.mxu0 %v11904_v0 }
 0x12e   :  { %10803 = vmatmul.mubr.msk.f32.gmra.mxu0 %vm679_vm3, %v562_v46  ;;  %v342_v48 = vpop.f32.mrf.mxu0  ;;  %10884 = vmatprep.mubr.msk.f32.mxu1 %vm11905_vm2, %v11904_v0  ;;  %v1221_v46 = vld [vmem:[%s15945_s25 + $0x67] sm:$0xff] }
 0x12f   :  { %v564_v49 = vpop.f32.mrf.mxu1  ;;  %10805 = vmatprep.mubr.msk.f32.mxu0 %vm11905_vm2, %v11904_v0  ;;  %1247 = vmatpush1.msra.mxu0 %v1222_v55 }
 0x130   :  { %v345_v50 = vpop.f32.mrf.mxu0  ;;  %1248 = vmatprep.subr.mxu0 %v11904_v0 }
 0x131   :  { %v567_v52 = vpop.f32.mrf.mxu1  ;;  %10885 = vmatmul.mubr.msk.f32.gmra.mxu1 %vm679_vm3, %v345_v50  ;;  %1249 = vmatpush1.msra.mxu0 %v1221_v46 }
 0x132   :  { %10806 = vmatmul.mubr.msk.f32.gmra.mxu0 %vm679_vm3, %v567_v52  ;;  %v347_v58 = vpop.f32.mrf.mxu0  ;;  %10887 = vmatprep.mubr.msk.f32.mxu1 %vm11905_vm2, %v11904_v0  ;;  %v1220_v52 = vld [vmem:[%s15945_s25 + $0x5f] sm:$0xff] }
 0x133   :  { %v569_v59 = vpop.f32.mrf.mxu1  ;;  %10808 = vmatprep.mubr.msk.f32.mxu0 %vm11905_vm2, %v11904_v0  ;;  %1250 = vmatprep.subr.mxu0 %v11904_v0 }
 0x134   :  { %v350_v29 = vpop.f32.mrf.mxu0  ;;  %1251 = vmatpush1.msra.mxu0 %v1220_v52 }
 0x135   :  { %v572_v30 = vpop.f32.mrf.mxu1  ;;  %10888 = vmatmul.mubr.msk.f32.gmra.mxu1 %vm679_vm3, %v350_v29  ;;  %1252 = vmatprep.subr.mxu0 %v11904_v0 }
 0x136   :  { %10809 = vmatmul.mubr.msk.f32.gmra.mxu0 %vm679_vm3, %v572_v30  ;;  %v352_v47 = vpop.f32.mrf.mxu0  ;;  %10890 = vmatprep.mubr.msk.f32.mxu1 %vm11905_vm2, %v11904_v0  ;;  %v1219_v30 = vld [vmem:[%s15945_s25 + $0x57] sm:$0xff] }
 0x137   :  { %v574_v48 = vpop.f32.mrf.mxu1  ;;  %10811 = vmatprep.mubr.msk.f32.mxu0 %vm11905_vm2, %v11904_v0  ;;  %1253 = vmatpush1.msra.mxu0 %v1219_v30 }
 0x138   :  { %v355_v49 = vpop.f32.mrf.mxu0  ;;  %1254 = vmatprep.subr.mxu0 %v11904_v0 }
 0x139   :  { %v577_v50 = vpop.f32.mrf.mxu1  ;;  %10891 = vmatmul.mubr.msk.f32.gmra.mxu1 %vm679_vm3, %v355_v49 }
 0x13a   :  { %10812 = vmatmul.mubr.msk.f32.gmra.mxu0 %vm679_vm3, %v577_v50  ;;  %v357_v55 = vpop.f32.mrf.mxu0  ;;  %10893 = vmatprep.mubr.msk.f32.mxu1 %vm11905_vm2, %v11904_v0  ;;  %v1218_v50 = vld [vmem:[%s15945_s25 + $0x4f] sm:$0xff] }
 0x13b   :  { %v579_v58 = vpop.f32.mrf.mxu1  ;;  %10814 = vmatprep.mubr.msk.f32.mxu0 %vm11905_vm2, %v11904_v0  ;;  %1255 = vmatpush1.msra.mxu0 %v1218_v50 }
 0x13c   :  { %v360_v59 = vpop.f32.mrf.mxu0  ;;  %1256 = vmatprep.subr.mxu0 %v11904_v0 }
 0x13d   :  { %v582_v29 = vpop.f32.mrf.mxu1  ;;  %10894 = vmatmul.mubr.msk.f32.gmra.mxu1 %vm679_vm3, %v360_v59 }
 0x13e   :  { %10815 = vmatmul.mubr.msk.f32.gmra.mxu0 %vm679_vm3, %v582_v29  ;;  %v362_v46 = vpop.f32.mrf.mxu0  ;;  %10896 = vmatprep.mubr.msk.f32.mxu1 %vm11905_vm2, %v11904_v0  ;;  %v1217_v29 = vld [vmem:[%s15945_s25 + $0x47] sm:$0xff] }
 0x13f   :  { %v584_v47 = vpop.f32.mrf.mxu1  ;;  %10817 = vmatprep.mubr.msk.f32.mxu0 %vm11905_vm2, %v11904_v0  ;;  %1257 = vmatpush1.msra.mxu0 %v1217_v29 }
 0x140   :  { %v365_v48 = vpop.f32.mrf.mxu0  ;;  %1258 = vmatprep.subr.mxu0 %v11904_v0 }
 0x141   :  { %v587_v49 = vpop.f32.mrf.mxu1  ;;  %10897 = vmatmul.mubr.msk.f32.gmra.mxu1 %vm679_vm3, %v365_v48 }
 0x142   :  { %10818 = vmatmul.mubr.msk.f32.gmra.mxu0 %vm679_vm3, %v587_v49  ;;  %v367_v52 = vpop.f32.mrf.mxu0  ;;  %10899 = vmatprep.mubr.msk.f32.mxu1 %vm11905_vm2, %v11904_v0  ;;  %v1216_v49 = vld [vmem:[%s15945_s25 + $0x3f] sm:$0xff] }
 0x143   :  { %v589_v55 = vpop.f32.mrf.mxu1  ;;  %10820 = vmatprep.mubr.msk.f32.mxu0 %vm11905_vm2, %v11904_v0  ;;  %1259 = vmatpush1.msra.mxu0 %v1216_v49 }
 0x144   :  { %v370_v58 = vpop.f32.mrf.mxu0  ;;  %1260 = vmatprep.subr.mxu0 %v11904_v0 }
 0x145   :  { %v592_v59 = vpop.f32.mrf.mxu1  ;;  %10900 = vmatmul.mubr.msk.f32.gmra.mxu1 %vm679_vm3, %v370_v58 }
 0x146   :  { %10821 = vmatmul.mubr.msk.f32.gmra.mxu0 %vm679_vm3, %v592_v59  ;;  %v372_v30 = vpop.f32.mrf.mxu0  ;;  %10902 = vmatprep.mubr.msk.f32.mxu1 %vm11905_vm2, %v11904_v0  ;;  %v1215_v59 = vld [vmem:[%s15945_s25 + $0x37] sm:$0xff] }
 0x147   :  { %v594_v46 = vpop.f32.mrf.mxu1  ;;  %10823 = vmatprep.mubr.msk.f32.mxu0 %vm11905_vm2, %v11904_v0  ;;  %1261 = vmatpush1.msra.mxu0 %v1215_v59 }
 0x148   :  { %v375_v47 = vpop.f32.mrf.mxu0  ;;  %1262 = vmatprep.subr.mxu0 %v11904_v0 }
 0x149   :  { %v597_v48 = vpop.f32.mrf.mxu1  ;;  %10903 = vmatmul.mubr.msk.f32.gmra.mxu1 %vm679_vm3, %v375_v47 }
 0x14a   :  { %10824 = vmatmul.mubr.msk.f32.gmra.mxu0 %vm679_vm3, %v597_v48  ;;  %v377_v50 = vpop.f32.mrf.mxu0  ;;  %10905 = vmatprep.mubr.msk.f32.mxu1 %vm11905_vm2, %v11904_v0  ;;  %v1214_v48 = vld [vmem:[%s15945_s25 + $0x2f] sm:$0xff] }
 0x14b   :  { %v599_v52 = vpop.f32.mrf.mxu1  ;;  %10826 = vmatprep.mubr.msk.f32.mxu0 %vm11905_vm2, %v11904_v0  ;;  %1263 = vmatpush1.msra.mxu0 %v1214_v48 }
 0x14c   :  { %v380_v55 = vpop.f32.mrf.mxu0  ;;  %1264 = vmatprep.subr.mxu0 %v11904_v0 }
 0x14d   :  { %v602_v58 = vpop.f32.mrf.mxu1  ;;  %10906 = vmatmul.mubr.msk.f32.gmra.mxu1 %vm679_vm3, %v380_v55 }
 0x14e   :  { %10827 = vmatmul.mubr.msk.f32.gmra.mxu0 %vm679_vm3, %v602_v58  ;;  %v382_v29 = vpop.f32.mrf.mxu0  ;;  %10908 = vmatprep.mubr.msk.f32.mxu1 %vm11905_vm2, %v11904_v0  ;;  %v1213_v58 = vld [vmem:[%s15945_s25 + $0x27] sm:$0xff] }
 0x14f   :  { %v604_v30 = vpop.f32.mrf.mxu1  ;;  %10829 = vmatprep.mubr.msk.f32.mxu0 %vm11905_vm2, %v11904_v0  ;;  %1265 = vmatpush1.msra.mxu0 %v1213_v58 }
 0x150   :  { %v385_v46 = vpop.f32.mrf.mxu0  ;;  %1266 = vmatprep.subr.mxu0 %v11904_v0 }
 0x151   :  { %v607_v47 = vpop.f32.mrf.mxu1  ;;  %10909 = vmatmul.mubr.msk.f32.gmra.mxu1 %vm679_vm3, %v385_v46 }
 0x152   :  { %10830 = vmatmul.mubr.msk.f32.gmra.mxu0 %vm679_vm3, %v607_v47  ;;  %v387_v49 = vpop.f32.mrf.mxu0  ;;  %10911 = vmatprep.mubr.msk.f32.mxu1 %vm11905_vm2, %v11904_v0  ;;  %v1212_v47 = vld [vmem:[%s15945_s25 + $0x1f] sm:$0xff] }
 0x153   :  { %v609_v50 = vpop.f32.mrf.mxu1  ;;  %10832 = vmatprep.mubr.msk.f32.mxu0 %vm11905_vm2, %v11904_v0  ;;  %1267 = vmatpush1.msra.mxu0 %v1212_v47 }
 0x154   :  { %v390_v52 = vpop.f32.mrf.mxu0  ;;  %1268 = vmatprep.subr.mxu0 %v11904_v0 }
 0x155   :  { %v612_v55 = vpop.f32.mrf.mxu1  ;;  %10912 = vmatmul.mubr.msk.f32.gmra.mxu1 %vm679_vm3, %v390_v52 }
 0x156   :  { %10833 = vmatmul.mubr.msk.f32.gmra.mxu0 %vm679_vm3, %v612_v55  ;;  %v392_v59 = vpop.f32.mrf.mxu0  ;;  %10914 = vmatprep.mubr.msk.f32.mxu1 %vm11905_vm2, %v11904_v0  ;;  %v1211_v55 = vld [vmem:[%s15945_s25 + $0x17] sm:$0xff] }
 0x157   :  { %v614_v29 = vpop.f32.mrf.mxu1  ;;  %10835 = vmatprep.mubr.msk.f32.mxu0 %vm11905_vm2, %v11904_v0  ;;  %1269 = vmatpush1.msra.mxu0 %v1211_v55 }
 0x158   :  { %v395_v30 = vpop.f32.mrf.mxu0  ;;  %1270 = vmatprep.subr.mxu0 %v11904_v0 }
 0x159   :  { %v617_v46 = vpop.f32.mrf.mxu1  ;;  %10915 = vmatmul.mubr.msk.f32.gmra.mxu1 %vm679_vm3, %v395_v30 }
 0x15a   :  { %10836 = vmatmul.mubr.msk.f32.gmra.mxu0 %vm679_vm3, %v617_v46  ;;  %v397_v48 = vpop.f32.mrf.mxu0  ;;  %10917 = vmatprep.mubr.msk.f32.mxu1 %vm11905_vm2, %v11904_v0  ;;  %v1210_v46 = vld [vmem:[%s15945_s25 + $0xf] sm:$0xff] }
 0x15b   :  { %v619_v49 = vpop.f32.mrf.mxu1  ;;  %10838 = vmatprep.mubr.msk.f32.mxu0 %vm11905_vm2, %v11904_v0  ;;  %1271 = vmatpush1.msra.mxu0 %v1210_v46 }
 0x15c   :  { %v400_v50 = vpop.f32.mrf.mxu0  ;;  %1282 = vmatprep.subr.mxu0 %v11904_v0 }
 0x15d   :  { %v622_v52 = vpop.f32.mrf.mxu1  ;;  %10918 = vmatmul.mubr.msk.f32.gmra.mxu1 %vm679_vm3, %v400_v50 }
 0x15e   :  { %10839 = vmatmul.mubr.msk.f32.gmra.mxu0 %vm679_vm3, %v622_v52  ;;  %v402_v58 = vpop.f32.mrf.mxu0  ;;  %10920 = vmatprep.mubr.msk.f32.mxu1 %vm11905_vm2, %v11904_v0  ;;  %v1236_v52 = vld [vmem:[%s15945_s25 + $0xdf] sm:$0x1] }
 0x15f   :  { %v624_v59 = vpop.f32.mrf.mxu1  ;;  %10841 = vmatprep.mubr.msk.f32.mxu0 %vm11905_vm2, %v11904_v0  ;;  %9663 = vmatpush2.msk.msra.mxu0 %vm260_vm0, %v1236_v52 }
 0x160   :  { %v405_v29 = vpop.f32.mrf.mxu0  ;;  %1284 = vmatprep.subr.mxu0 %v11904_v0 }
 0x161   :  { %v627_v30 = vpop.f32.mrf.mxu1  ;;  %10921 = vmatmul.mubr.msk.f32.gmra.mxu1 %vm679_vm3, %v405_v29 }
 0x162   :  { %10842 = vmatmul.mubr.msk.f32.gmra.mxu0 %vm679_vm3, %v627_v30  ;;  %v407_v47 = vpop.f32.mrf.mxu0  ;;  %10923 = vmatprep.mubr.msk.f32.mxu1 %vm11905_vm2, %v11904_v0  ;;  %v1235_v30 = vld [vmem:[%s15945_s25 + $0xd7] sm:$0xff] }
 0x163   :  { %v629_v48 = vpop.f32.mrf.mxu1  ;;  %10844 = vmatprep.mubr.msk.f32.mxu0 %vm11905_vm2, %v11904_v0  ;;  %1285 = vmatpush2.msra.mxu0 %v1235_v30 }
 0x164   :  { %v410_v49 = vpop.f32.mrf.mxu0  ;;  %1286 = vmatprep.subr.mxu0 %v11904_v0 }
 0x165   :  { %v632_v50 = vpop.f32.mrf.mxu1  ;;  %10924 = vmatmul.mubr.msk.f32.gmra.mxu1 %vm679_vm3, %v410_v49 }
 0x166   :  { %10845 = vmatmul.mubr.msk.f32.gmra.mxu0 %vm679_vm3, %v632_v50  ;;  %v412_v55 = vpop.f32.mrf.mxu0  ;;  %10926 = vmatprep.mubr.msk.f32.mxu1 %vm11905_vm2, %v11904_v0  ;;  %v1234_v50 = vld [vmem:[%s15945_s25 + $0xcf] sm:$0xff] }
 0x167   :  { %v634_v58 = vpop.f32.mrf.mxu1  ;;  %10847 = vmatprep.mubr.msk.f32.mxu0 %vm11905_vm2, %v11904_v0  ;;  %1287 = vmatpush2.msra.mxu0 %v1234_v50 }
 0x168   :  { %v415_v59 = vpop.f32.mrf.mxu0  ;;  %1288 = vmatprep.subr.mxu0 %v11904_v0 }
 0x169   :  { %v637_v29 = vpop.f32.mrf.mxu1  ;;  %10927 = vmatmul.mubr.msk.f32.gmra.mxu1 %vm679_vm3, %v415_v59 }
 0x16a   :  { %10848 = vmatmul.mubr.msk.f32.gmra.mxu0 %vm679_vm3, %v637_v29  ;;  %v417_v46 = vpop.f32.mrf.mxu0  ;;  %10929 = vmatprep.mubr.msk.f32.mxu1 %vm11905_vm2, %v11904_v0  ;;  %v1233_v29 = vld [vmem:[%s15945_s25 + $0xc7] sm:$0xff] }
 0x16b   :  { %v639_v47 = vpop.f32.mrf.mxu1  ;;  %10850 = vmatprep.mubr.msk.f32.mxu0 %vm11905_vm2, %v11904_v0  ;;  %1289 = vmatpush2.msra.mxu0 %v1233_v29 }
 0x16c   :  { %v420_v48 = vpop.f32.mrf.mxu0  ;;  %1290 = vmatprep.subr.mxu0 %v11904_v0 }
 0x16d   :  { %v642_v49 = vpop.f32.mrf.mxu1  ;;  %10930 = vmatmul.mubr.msk.f32.gmra.mxu1 %vm679_vm3, %v420_v48 }
 0x16e   :  { %10851 = vmatmul.mubr.msk.f32.gmra.mxu0 %vm679_vm3, %v642_v49  ;;  %v422_v52 = vpop.f32.mrf.mxu0  ;;  %10932 = vmatprep.mubr.msk.f32.mxu1 %vm11905_vm2, %v11904_v0  ;;  %v1232_v49 = vld [vmem:[%s15945_s25 + $0xbf] sm:$0xff] }
 0x16f   :  { %v644_v55 = vpop.f32.mrf.mxu1  ;;  %10853 = vmatprep.mubr.msk.f32.mxu0 %vm11905_vm2, %v11904_v0  ;;  %1291 = vmatpush2.msra.mxu0 %v1232_v49 }
 0x170   :  { %v425_v58 = vpop.f32.mrf.mxu0  ;;  %1292 = vmatprep.subr.mxu0 %v11904_v0 }
 0x171   :  { %v647_v59 = vpop.f32.mrf.mxu1  ;;  %10933 = vmatmul.mubr.msk.f32.gmra.mxu1 %vm679_vm3, %v425_v58 }
 0x172   :  { %10854 = vmatmul.mubr.msk.f32.gmra.mxu0 %vm679_vm3, %v647_v59  ;;  %v427_v30 = vpop.f32.mrf.mxu0  ;;  %10935 = vmatprep.mubr.msk.f32.mxu1 %vm11905_vm2, %v11904_v0  ;;  %v1231_v59 = vld [vmem:[%s15945_s25 + $0xb7] sm:$0xff] }
 0x173   :  { %v649_v46 = vpop.f32.mrf.mxu1  ;;  %10856 = vmatprep.mubr.msk.f32.mxu0 %vm11905_vm2, %v11904_v0  ;;  %1293 = vmatpush2.msra.mxu0 %v1231_v59  ;;  %v1228_v59 = vld [vmem:[%s15945_s25 + $0x9f] sm:$0xff] }
 0x174   :  { %v430_v47 = vpop.f32.mrf.mxu0  ;;  %1294 = vmatprep.subr.mxu0 %v11904_v0 }
 0x175   :  { %v652_v48 = vpop.f32.mrf.mxu1  ;;  %10936 = vmatmul.mubr.msk.f32.gmra.mxu1 %vm679_vm3, %v430_v47 }
 0x176   :  { %10857 = vmatmul.mubr.msk.f32.gmra.mxu0 %vm679_vm3, %v652_v48  ;;  %v432_v50 = vpop.f32.mrf.mxu0  ;;  %10938 = vmatprep.mubr.msk.f32.mxu1 %vm11905_vm2, %v11904_v0  ;;  %v1230_v48 = vld [vmem:[%s15945_s25 + $0xaf] sm:$0xff] }
 0x177   :  { %v654_v52 = vpop.f32.mrf.mxu1  ;;  %10859 = vmatprep.mubr.msk.f32.mxu0 %vm11905_vm2, %v11904_v0  ;;  %1295 = vmatpush2.msra.mxu0 %v1230_v48  ;;  %v1227_v48 = vld [vmem:[%s15945_s25 + $0x97] sm:$0xff] }
 0x178   :  { %v435_v55 = vpop.f32.mrf.mxu0  ;;  %v1229_v52 = vld [vmem:[%s15945_s25 + $0xa7] sm:$0xff]  ;;  %1296 = vmatprep.subr.mxu0 %v11904_v0 }
 0x179   :  { %v657_v58 = vpop.f32.mrf.mxu1  ;;  %10939 = vmatmul.mubr.msk.f32.gmra.mxu1 %vm679_vm3, %v435_v55  ;;  %1297 = vmatpush2.msra.mxu0 %v1229_v52 }
 0x17a   :  { %10860 = vmatmul.mubr.msk.f32.gmra.mxu0 %vm679_vm3, %v657_v58  ;;  %v437_v29 = vpop.f32.mrf.mxu0  ;;  %10941 = vmatprep.mubr.msk.f32.mxu1 %vm11905_vm2, %v11904_v0 }
 0x17b   :  { %v659_v30 = vpop.f32.mrf.mxu1  ;;  %10862 = vmatprep.mubr.msk.f32.mxu0 %vm11905_vm2, %v11904_v0  ;;  %1298 = vmatprep.subr.mxu0 %v11904_v0 }
 0x17c   :  { %v440_v46 = vpop.f32.mrf.mxu0  ;;  %1299 = vmatpush2.msra.mxu0 %v1228_v59 }
 0x17d   :  { %v662_v47 = vpop.f32.mrf.mxu1  ;;  %10942 = vmatmul.mubr.msk.f32.gmra.mxu1 %vm679_vm3, %v440_v46  ;;  %1300 = vmatprep.subr.mxu0 %v11904_v0 }
 0x17e   :  { %10863 = vmatmul.mubr.msk.f32.gmra.mxu0 %vm679_vm3, %v662_v47  ;;  %v442_v49 = vpop.f32.mrf.mxu0  ;;  %10944 = vmatprep.mubr.msk.f32.mxu1 %vm11905_vm2, %v11904_v0 }
 0x17f   :  { %v664_v50 = vpop.f32.mrf.mxu1  ;;  %10865 = vmatprep.mubr.msk.f32.mxu0 %vm11905_vm2, %v11904_v0  ;;  %1301 = vmatpush2.msra.mxu0 %v1227_v48 }
 0x180   :  { %v445_v55 = vpop.f32.mrf.mxu0  ;;  %v1226_v50 = vld [vmem:[%s15945_s25 + $0x8f] sm:$0xff]  ;;  %1302 = vmatprep.subr.mxu0 %v11904_v0 }
 0x181   :  { %v667_v58 = vpop.f32.mrf.mxu1  ;;  %10945 = vmatmul.mubr.msk.f32.gmra.mxu1 %vm679_vm3, %v445_v55  ;;  %1303 = vmatpush2.msra.mxu0 %v1226_v50 }
 0x182   :  { %10866 = vmatmul.mubr.msk.f32.gmra.mxu0 %vm679_vm3, %v667_v58  ;;  %v447_v29 = vpop.f32.mrf.mxu0  ;;  %10947 = vmatprep.mubr.msk.f32.mxu1 %vm11905_vm2, %v11904_v0 }
 0x183   :  { %v669_v30 = vpop.f32.mrf.mxu1  ;;  %10868 = vmatprep.mubr.msk.f32.mxu0 %vm11905_vm2, %v11904_v0  ;;  %1753 = vmatprep.subr.mxu0 %v11904_v0  ;;  %v11744_v29 = vld [vmem:[#allocation5 + $0x20] sm:$0xff] }
 0x184   :  { %v450_v46 = vpop.f32.mrf.mxu0 }
 0x185   :  { %v672_v47 = vpop.f32.mrf.mxu1  ;;  %10948 = vmatmul.mubr.msk.f32.gmra.mxu1 %vm679_vm3, %v450_v46 }
 0x186   :  { %10869 = vmatmul.mubr.msk.f32.gmra.mxu0 %vm679_vm3, %v672_v47  ;;  %v452_v52 = vpop.f32.mrf.mxu0  ;;  %10954 = vmatprep.mubr.msk.f32.mxu1 %vm11905_vm2, %v11904_v0  ;;  %v11745_v47 = vld [vmem:[#allocation5 + $0x38] sm:$0xff] }
 0x187   :  { %v674_v49 = vpop.f32.mrf.mxu1  ;;  %9664 = vmatprep.mubr.msk.f32.mxu0 %vm184_vm1, %v12219_v54  ;;  %v1736_v54 = vld [vmem:[%s15945_s25 + $0x78] sm:$0xff]  ;;  %v11746_v52 = vld [vmem:[#allocation5 + $0x30] sm:$0xff] }
 0x18a   :  { %1305 = vmatmul.mubr.f32.vlgmr.msra.gmra.mxu0 %v12227_v56  ;;  %v1735_v56 = vld [vmem:[%s15945_s25 + $0x70] sm:$0xff] }
 0x18b   :  { %9665 = vmatprep.mubr.msk.f32.mxu0 %vm184_vm1, %v12232_v57  ;;  %1754 = vmatpush1.msra.mxu0 %v12207_v51  ;;  %v1734_v51 = vld [vmem:[%s15945_s25 + $0x68] sm:$0xff]  ;;  %v1732_v57 = vld [vmem:[%s15945_s25 + $0x58] sm:$0xff] }
 0x18c   :  { %1755 = vmatprep.subr.mxu0 %v11904_v0 }
 0x18d   :  { %1756 = vmatpush1.msra.mxu0 %v12217_v53  ;;  %v1733_v53 = vld [vmem:[%s15945_s25 + $0x60] sm:$0xff] }
 0x18e   :  { %1310 = vmatmul.mubr.f32.gmra.mxu0 %v12242_v60  ;;  %1757 = vmatprep.subr.mxu0 %v11904_v0  ;;  %v1731_v60 = vld [vmem:[%s15945_s25 + $0x50] sm:$0xff] }
 0x18f   :  { %9666 = vmatprep.mubr.msk.f32.mxu0 %vm184_vm1, %v12244_v61  ;;  %1758 = vmatpush1.msra.mxu0 %v1736_v54  ;;  %v1730_v61 = vld [vmem:[%s15945_s25 + $0x48] sm:$0xff] }
 0x190   :  { %1759 = vmatprep.subr.mxu0 %v11904_v0 }
 0x191   :  { %1760 = vmatpush1.msra.mxu0 %v1735_v56 }
 0x192   :  { %1315 = vmatmul.mubr.f32.gmra.mxu0 %v12254_v62  ;;  %1761 = vmatprep.subr.mxu0 %v11904_v0  ;;  %v1729_v62 = vld [vmem:[%s15945_s25 + $0x40] sm:$0xff] }
 0x193   :  { %9667 = vmatprep.mubr.msk.f32.mxu0 %vm184_vm1, %v12256_v63  ;;  %1762 = vmatpush1.msra.mxu0 %v1734_v51  ;;  %v1728_v63 = vld [vmem:[%s15945_s25 + $0x38] sm:$0xff]  ;;  %v11747_v51 = vld [vmem:[#allocation5 + $0x48] sm:$0xff] }
 0x194   :  { %1763 = vmatprep.subr.mxu0 %v11904_v0 }
 0x195   :  { %1764 = vmatpush1.msra.mxu0 %v1733_v53 }
 0x196   :  { %1320 = vmatmul.mubr.f32.gmra.mxu0 %v12266_v1  ;;  %1765 = vmatprep.subr.mxu0 %v11904_v0  ;;  %v1727_v1 = vld [vmem:[%s15945_s25 + $0x30] sm:$0xff] }
 0x197   :  { %9668 = vmatprep.mubr.msk.f32.mxu0 %vm184_vm1, %v12268_v2  ;;  %1766 = vmatpush1.msra.mxu0 %v1732_v57  ;;  %v1726_v2 = vld [vmem:[%s15945_s25 + $0x28] sm:$0xff] }
 0x198   :  { %1767 = vmatprep.subr.mxu0 %v11904_v0 }
 0x199   :  { %1768 = vmatpush1.msra.mxu0 %v1731_v60 }
 0x19a   :  { %1325 = vmatmul.mubr.f32.gmra.mxu0 %v12276_v3  ;;  %1769 = vmatprep.subr.mxu0 %v11904_v0  ;;  %v1725_v3 = vld [vmem:[%s15945_s25 + $0x20] sm:$0xff] }
 0x19b   :  { %9669 = vmatprep.mubr.msk.f32.mxu0 %vm184_vm1, %v12278_v4  ;;  %1770 = vmatpush1.msra.mxu0 %v1730_v61  ;;  %v1724_v4 = vld [vmem:[%s15945_s25 + $0x18] sm:$0xff]  ;;  %v11748_v61 = vld [vmem:[#allocation5 + $0x40] sm:$0xff] }
 0x19c   :  { %1771 = vmatprep.subr.mxu0 %v11904_v0 }
 0x19d   :  { %1772 = vmatpush1.msra.mxu0 %v1729_v62 }
 0x19e   :  { %1330 = vmatmul.mubr.f32.gmra.mxu0 %v12286_v5  ;;  %1773 = vmatprep.subr.mxu0 %v11904_v0  ;;  %v1723_v5 = vld [vmem:[%s15945_s25 + $0x10] sm:$0xff] }
 0x19f   :  { %9670 = vmatprep.mubr.msk.f32.mxu0 %vm184_vm1, %v12288_v6  ;;  %1774 = vmatpush1.msra.mxu0 %v1728_v63  ;;  %v1432_v6 = vld [vmem:[#allocation10 + $0x28] sm:$0xff] }
 0x1a0   :  { %1775 = vmatprep.subr.mxu0 %v11904_v0  ;;  %10951 = vmatpush3.msra.mxu1 %v1432_v6 }
 0x1a1   :  { %1776 = vmatpush1.msra.mxu0 %v1727_v1  ;;  %10952 = vmatprep.subr.mxu1 %v11904_v0  ;;  %v11749_v1 = vld [vmem:[#allocation5 + $0x58] sm:$0xff] }
 0x1a2   :  { %1335 = vmatmul.mubr.f32.gmra.mxu0 %v12296_v7  ;;  %1777 = vmatprep.subr.mxu0 %v11904_v0  ;;  %v1749_v7 = vld [vmem:[%s15945_s25 + $0xe0] sm:$0x1] }
 0x1a3   :  { %9671 = vmatprep.mubr.msk.f32.mxu0 %vm184_vm1, %v12298_v8  ;;  %1778 = vmatpush1.msra.mxu0 %v1726_v2  ;;  %v1748_v8 = vld [vmem:[%s15945_s25 + $0xd8] sm:$0xff] }
 0x1a4   :  { %1779 = vmatprep.subr.mxu0 %v11904_v0 }
 0x1a5   :  { %1780 = vmatpush1.msra.mxu0 %v1725_v3 }
 0x1a6   :  { %1340 = vmatmul.mubr.f32.gmra.mxu0 %v12306_v9  ;;  %1781 = vmatprep.subr.mxu0 %v11904_v0  ;;  %v1747_v9 = vld [vmem:[%s15945_s25 + $0xd0] sm:$0xff] }
 0x1a7   :  { %9672 = vmatprep.mubr.msk.f32.mxu0 %vm184_vm1, %v12308_v10  ;;  %1782 = vmatpush1.msra.mxu0 %v1724_v4  ;;  %v1746_v10 = vld [vmem:[%s15945_s25 + $0xc8] sm:$0xff] }
 0x1a8   :  { %1783 = vmatprep.subr.mxu0 %v11904_v0 }
 0x1a9   :  { %1784 = vmatpush1.msra.mxu0 %v1723_v5  ;;  %v11750_v5 = vld [vmem:[#allocation5 + $0x50] sm:$0xff] }
 0x1aa   :  { %1345 = vmatmul.mubr.f32.gmra.mxu0 %v12316_v11  ;;  %1795 = vmatprep.subr.mxu0 %v11904_v0  ;;  %v1745_v11 = vld [vmem:[%s15945_s25 + $0xc0] sm:$0xff] }
 0x1ab   :  { %9673 = vmatprep.mubr.msk.f32.mxu0 %vm184_vm1, %v12318_v12  ;;  %9714 = vmatpush2.msk.msra.mxu0 %vm260_vm0, %v1749_v7  ;;  %v1744_v12 = vld [vmem:[%s15945_s25 + $0xb8] sm:$0xff] }
 0x1ac   :  { %1797 = vmatprep.subr.mxu0 %v11904_v0 }
 0x1ad   :  { %1798 = vmatpush2.msra.mxu0 %v1748_v8  ;;  %v11751_v8 = vld [vmem:[#allocation5 + $0x68] sm:$0xff] }
 0x1ae   :  { %1350 = vmatmul.mubr.f32.gmra.mxu0 %v12326_v13  ;;  %1799 = vmatprep.subr.mxu0 %v11904_v0  ;;  %v1743_v13 = vld [vmem:[%s15945_s25 + $0xb0] sm:$0xff] }
 0x1af   :  { %9674 = vmatprep.mubr.msk.f32.mxu0 %vm184_vm1, %v12328_v14  ;;  %1800 = vmatpush2.msra.mxu0 %v1747_v9  ;;  %v1742_v14 = vld [vmem:[%s15945_s25 + $0xa8] sm:$0xff] }
 0x1b0   :  { %1801 = vmatprep.subr.mxu0 %v11904_v0 }
 0x1b1   :  { %1802 = vmatpush2.msra.mxu0 %v1746_v10 }
 0x1b2   :  { %1355 = vmatmul.mubr.f32.gmra.mxu0 %v12336_v15  ;;  %1803 = vmatprep.subr.mxu0 %v11904_v0  ;;  %v1741_v15 = vld [vmem:[%s15945_s25 + $0xa0] sm:$0xff] }
 0x1b3   :  { %9675 = vmatprep.mubr.msk.f32.mxu0 %vm184_vm1, %v12338_v16  ;;  %1804 = vmatpush2.msra.mxu0 %v1745_v11  ;;  %v1740_v16 = vld [vmem:[%s15945_s25 + $0x98] sm:$0xff] }
 0x1b4   :  { %1805 = vmatprep.subr.mxu0 %v11904_v0 }
 0x1b5   :  { %1806 = vmatpush2.msra.mxu0 %v1744_v12  ;;  %v11752_v12 = vld [vmem:[#allocation5 + $0x60] sm:$0xff] }
 0x1b6   :  { %1360 = vmatmul.mubr.f32.gmra.mxu0 %v12346_v17  ;;  %1807 = vmatprep.subr.mxu0 %v11904_v0  ;;  %v1739_v17 = vld [vmem:[%s15945_s25 + $0x90] sm:$0xff] }
 0x1b7   :  { %9676 = vmatprep.mubr.msk.f32.mxu0 %vm184_vm1, %v12348_v18  ;;  %1808 = vmatpush2.msra.mxu0 %v1743_v13  ;;  %v1431_v18 = vld [vmem:[#allocation10 + $0x20] sm:$0xff] }
 0x1b8   :  { %1809 = vmatprep.subr.mxu0 %v11904_v0  ;;  %10953 = vmatpush3.msra.mxu1 %v1431_v18 }
 0x1b9   :  { %1810 = vmatpush2.msra.mxu0 %v1742_v14  ;;  %11029 = vmatprep.subr.mxu1 %v11904_v0 }
 0x1ba   :  { %1365 = vmatmul.mubr.f32.gmra.mxu0 %v12356_v19  ;;  %1811 = vmatprep.subr.mxu0 %v11904_v0 }
 0x1bb   :  { %9677 = vmatprep.mubr.msk.f32.mxu0 %vm184_vm1, %v12358_v20  ;;  %1812 = vmatpush2.msra.mxu0 %v1741_v15  ;;  %v11753_v15 = vld [vmem:[#allocation5 + $0x78] sm:$0xff] }
 0x1bc   :  { %1813 = vmatprep.subr.mxu0 %v11904_v0 }
 0x1bd   :  { %1814 = vmatpush2.msra.mxu0 %v1740_v16 }
 0x1be   :  { %1370 = vmatmul.mubr.f32.gmra.mxu0 %v12366_v21  ;;  %1815 = vmatprep.subr.mxu0 %v11904_v0 }
 0x1bf   :  { %9678 = vmatprep.mubr.msk.f32.mxu0 %vm184_vm1, %v12368_v22  ;;  %1816 = vmatpush2.msra.mxu0 %v1739_v17 }
 0x1c0   :  { %2359 = vmatprep.subr.mxu0 %v11904_v0 }
 0x1c2   :  { %1375 = vmatmul.mubr.f32.gmra.mxu0 %v12376_v23 }
 0x1c3   :  { %9679 = vmatprep.mubr.msk.f32.mxu0 %vm184_vm1, %v12378_v24 }
 0x1c6   :  { %1380 = vmatmul.mubr.f32.gmra.mxu0 %v12386_v25 }
 0x1c7   :  { %9680 = vmatprep.mubr.msk.f32.mxu0 %vm184_vm1, %v12388_v26 }
 0x1ca   :  { %1385 = vmatmul.mubr.f32.gmra.mxu0 %v12396_v27 }
 0x1cb   :  { %9681 = vmatprep.mubr.msk.f32.mxu0 %vm184_vm1, %v12398_v28 }
 0x1ce   :  { %1390 = vmatmul.mubr.f32.gmra.mxu0 %v12406_v31  ;;  %v11739_v31 = vld [vmem:[#allocation5 + $0x8] sm:$0xff] }
 0x1cf   :  { %9682 = vmatprep.mubr.msk.f32.mxu0 %vm184_vm1, %v12408_v32 }
 0x1d2   :  { %1395 = vmatmul.mubr.f32.gmra.mxu0 %v12418_v33 }
 0x1d3   :  { %9683 = vmatprep.mubr.msk.f32.mxu0 %vm184_vm1, %v12420_v34 }
 0x1d6   :  { %1400 = vmatmul.mubr.f32.gmra.mxu0 %v12428_v35  ;;  %v11740_v35 = vld [vmem:[#allocation5] sm:$0xff] }
 0x1d7   :  { %9684 = vmatprep.mubr.msk.f32.mxu0 %vm184_vm1, %v12430_v36 }
 0x1da   :  { %1405 = vmatmul.mubr.f32.gmra.mxu0 %v12438_v37 }
 0x1db   :  { %9685 = vmatprep.mubr.msk.f32.mxu0 %vm184_vm1, %v12440_v38  ;;  %v11741_v38 = vld [vmem:[#allocation5 + $0x18] sm:$0xff] }
 0x1de   :  { %1410 = vmatmul.mubr.f32.gmra.mxu0 %v12448_v39 }
 0x1df   :  { %9686 = vmatprep.mubr.msk.f32.mxu0 %vm184_vm1, %v12450_v40 }
 0x1e2   :  { %1415 = vmatmul.mubr.f32.gmra.mxu0 %v12458_v41 }
 0x1e3   :  { %9687 = vmatprep.mubr.msk.f32.mxu0 %vm184_vm1, %v12460_v42  ;;  %v11742_v42 = vld [vmem:[#allocation5 + $0x10] sm:$0xff] }
 0x1e5   :  { %v1086_v20 = vpop.f32.mrf.mxu1 }
 0x1e6   :  { %v821_v19 = vpop.f32.mrf.mxu0  ;;  %1420 = vmatmul.mubr.f32.gmra.mxu0 %v12468_v43 }
 0x1e7   :  { %v12921_v21 = vadd.f32 %v1086_v20, %v821_v19  ;;  %v10877_v23 = vpop.f32.mrf.mxu1  ;;  %9688 = vmatprep.mubr.msk.f32.mxu0 %vm184_vm1, %v12470_v44  ;;  %v11754_v19 = vld [vmem:[#allocation5 + $0x70] sm:$0xff] }
 0x1e8   :  { %v10798_v22 = vpop.f32.mrf.mxu0  ;;  %v11755_v23 = vld [vmem:[#allocation5 + $0x88] sm:$0xff] }
 0x1e9   :  { %v1091_v25 = vpop.f32.mrf.mxu1 }
 0x1ea   :  { %v826_v24 = vpop.f32.mrf.mxu0  ;;  %1425 = vmatmul.mubr.f32.gmra.mxu0 %v12478_v45  ;;  %v11743_v45 = vld [vmem:[#allocation5 + $0x28] sm:$0xff] }
 0x1eb   :  { %v12926_v26 = vadd.f32 %v1091_v25, %v826_v24  ;;  %v10880_v28 = vpop.f32.mrf.mxu1  ;;  %9715 = vmatprep.mubr.msk.f32.mxu0 %vm184_vm1, %v11739_v31 }
 0x1ec   :  { %v10801_v27 = vpop.f32.mrf.mxu0  ;;  %v11756_v28 = vld [vmem:[#allocation5 + $0x80] sm:$0xff] }
 0x1ed   :  { %v1096_v33 = vpop.f32.mrf.mxu1 }
 0x1ee   :  { %v831_v32 = vpop.f32.mrf.mxu0  ;;  %1818 = vmatmul.mubr.f32.vlgmr.msra.gmra.mxu0 %v11740_v35 }
 0x1ef   :  { %v12930_v34 = vadd.f32 %v1096_v33, %v831_v32  ;;  %v10883_v37 = vpop.f32.mrf.mxu1  ;;  %9716 = vmatprep.mubr.msk.f32.mxu0 %vm184_vm1, %v11741_v38  ;;  %v11757_v33 = vld [vmem:[#allocation5 + $0x98] sm:$0xff]  ;;  %v11758_v38 = vld [vmem:[#allocation5 + $0x90] sm:$0xff] }
 0x1f0   :  { %v10804_v36 = vpop.f32.mrf.mxu0 }
 0x1f1   :  { %v1101_v40 = vpop.f32.mrf.mxu1 }
 0x1f2   :  { %v836_v39 = vpop.f32.mrf.mxu0  ;;  %1823 = vmatmul.mubr.f32.gmra.mxu0 %v11742_v42  ;;  %v11759_v42 = vld [vmem:[#allocation5 + $0xa8] sm:$0xff] }
 0x1f3   :  { %v12933_v41 = vadd.f32 %v1101_v40, %v836_v39  ;;  %v10886_v44 = vpop.f32.mrf.mxu1  ;;  %9717 = vmatprep.mubr.msk.f32.mxu0 %vm184_vm1, %v11743_v45 }
 0x1f4   :  { %v10807_v43 = vpop.f32.mrf.mxu0 }
 0x1f5   :  { %v1106_v58 = vpop.f32.mrf.mxu1 }
 0x1f6   :  { %v841_v55 = vpop.f32.mrf.mxu0  ;;  %1828 = vmatmul.mubr.f32.gmra.mxu0 %v11744_v29 }
 0x1f7   :  { %v12936_v59 = vadd.f32 %v1106_v58, %v841_v55  ;;  %v10889_v46 = vpop.f32.mrf.mxu1  ;;  %9718 = vmatprep.mubr.msk.f32.mxu0 %vm184_vm1, %v11745_v47  ;;  %v11760_v55 = vld [vmem:[#allocation5 + $0xa0] sm:$0xff] }
 0x1f8   :  { %v10810_v30 = vpop.f32.mrf.mxu0 }
 0x1f9   :  { %v1111_v49 = vpop.f32.mrf.mxu1  ;;  %v11761_v30 = vld [vmem:[#allocation5 + $0xb8] sm:$0xff] }
 0x1fa   :  { %v846_v48 = vpop.f32.mrf.mxu0  ;;  %1833 = vmatmul.mubr.f32.gmra.mxu0 %v11746_v52 }
 0x1fb   :  { %v12939_v50 = vadd.f32 %v1111_v49, %v846_v48  ;;  %v10892_v56 = vpop.f32.mrf.mxu1  ;;  %9719 = vmatprep.mubr.msk.f32.mxu0 %vm184_vm1, %v11747_v51  ;;  %v11762_v49 = vld [vmem:[#allocation5 + $0xb0] sm:$0xff] }
 0x1fc   :  { %v10813_v54 = vpop.f32.mrf.mxu0  ;;  %v11763_v56 = vld [vmem:[#allocation5 + $0xc8] sm:$0xff] }
 0x1fd   :  { %v1116_v57 = vpop.f32.mrf.mxu1 }
 0x1fe   :  { %v851_v53 = vpop.f32.mrf.mxu0  ;;  %1838 = vmatmul.mubr.f32.gmra.mxu0 %v11748_v61  ;;  %v11764_v61 = vld [vmem:[#allocation5 + $0xc0] sm:$0xff] }
 0x1ff   :  { %v12942_v60 = vadd.f32 %v1116_v57, %v851_v53  ;;  %v10895_v63 = vpop.f32.mrf.mxu1  ;;  %9720 = vmatprep.mubr.msk.f32.mxu0 %vm184_vm1, %v11749_v1  ;;  %v11765_v1 = vld [vmem:[#allocation5 + $0xd8] sm:$0xff] }
 0x200   :  { %v10816_v62 = vpop.f32.mrf.mxu0 }
 0x201   :  { %v1121_v3 = vpop.f32.mrf.mxu1 }
 0x202   :  { %v856_v2 = vpop.f32.mrf.mxu0  ;;  %1843 = vmatmul.mubr.f32.gmra.mxu0 %v11750_v5 }
 0x203   :  { %v12945_v4 = vadd.f32 %v1121_v3, %v856_v2  ;;  %v10898_v7 = vpop.f32.mrf.mxu1  ;;  %9721 = vmatprep.mubr.msk.f32.mxu0 %vm184_vm1, %v11751_v8 }
 0x204   :  { %v10819_v6 = vpop.f32.mrf.mxu0 }
 0x205   :  { %v1126_v10 = vpop.f32.mrf.mxu1  ;;  %v11766_v6 = vld [vmem:[#allocation5 + $0xd0] sm:$0xff] }
 0x206   :  { %v861_v9 = vpop.f32.mrf.mxu0  ;;  %1848 = vmatmul.mubr.f32.gmra.mxu0 %v11752_v12 }
 0x207   :  { %v12948_v11 = vadd.f32 %v1126_v10, %v861_v9  ;;  %v10901_v14 = vpop.f32.mrf.mxu1  ;;  %9722 = vmatprep.mubr.msk.f32.mxu0 %vm184_vm1, %v11753_v15  ;;  %v11767_v9 = vld [vmem:[#allocation5 + $0xe8] sm:$0xff] }
 0x208   :  { %v10822_v13 = vpop.f32.mrf.mxu0  ;;  %v11768_v14 = vld [vmem:[#allocation5 + $0xe0] sm:$0xff] }
 0x209   :  { %v1131_v17 = vpop.f32.mrf.mxu1 }
 0x20a   :  { %v866_v16 = vpop.f32.mrf.mxu0  ;;  %1853 = vmatmul.mubr.f32.gmra.mxu0 %v11754_v19 }
 0x20b   :  { %v12951_v18 = vadd.f32 %v1131_v17, %v866_v16  ;;  %v10904_v22 = vpop.f32.mrf.mxu1  ;;  %9723 = vmatprep.mubr.msk.f32.mxu0 %vm184_vm1, %v11755_v23  ;;  %v11769_v17 = vld [vmem:[#allocation5 + $0xf8] sm:$0xff]  ;;  %v11770_v23 = vld [vmem:[#allocation5 + $0xf0] sm:$0xff] }
 0x20c   :  { %v10825_v20 = vpop.f32.mrf.mxu0 }
 0x20d   :  { %v1136_v25 = vpop.f32.mrf.mxu1 }
 0x20e   :  { %v871_v24 = vpop.f32.mrf.mxu0  ;;  %1858 = vmatmul.mubr.f32.gmra.mxu0 %v11756_v28  ;;  %v11771_v28 = vld [vmem:[#allocation5 + $0x108] sm:$0xff] }
 0x20f   :  { %v12954_v27 = vadd.f32 %v1136_v25, %v871_v24  ;;  %v10907_v32 = vpop.f32.mrf.mxu1  ;;  %9724 = vmatprep.mubr.msk.f32.mxu0 %vm184_vm1, %v11757_v33 }
 0x210   :  { %v10828_v31 = vpop.f32.mrf.mxu0 }
 0x211   :  { %v1141_v36 = vpop.f32.mrf.mxu1 }
 0x212   :  { %v876_v35 = vpop.f32.mrf.mxu0  ;;  %1863 = vmatmul.mubr.f32.gmra.mxu0 %v11758_v38 }
 0x213   :  { %v12957_v37 = vadd.f32 %v1141_v36, %v876_v35  ;;  %v10910_v40 = vpop.f32.mrf.mxu1  ;;  %9725 = vmatprep.mubr.msk.f32.mxu0 %vm184_vm1, %v11759_v42  ;;  %v11772_v35 = vld [vmem:[#allocation5 + $0x100] sm:$0xff] }
 0x214   :  { %v10831_v39 = vpop.f32.mrf.mxu0 }
 0x215   :  { %v1146_v44 = vpop.f32.mrf.mxu1  ;;  %v11773_v39 = vld [vmem:[#allocation5 + $0x118] sm:$0xff] }
 0x216   :  { %v881_v43 = vpop.f32.mrf.mxu0  ;;  %1868 = vmatmul.mubr.f32.gmra.mxu0 %v11760_v55 }
 0x217   :  { %v12960_v45 = vadd.f32 %v1146_v44, %v881_v43  ;;  %v10913_v29 = vpop.f32.mrf.mxu1  ;;  %9726 = vmatprep.mubr.msk.f32.mxu0 %vm184_vm1, %v11761_v30  ;;  %v11774_v44 = vld [vmem:[#allocation5 + $0x110] sm:$0xff] }
 0x218   :  { %v10834_v58 = vpop.f32.mrf.mxu0  ;;  %v11775_v29 = vld [vmem:[#allocation5 + $0x128] sm:$0xff] }
 0x219   :  { %v1151_v47 = vpop.f32.mrf.mxu1 }
 0x21a   :  { %v886_v46 = vpop.f32.mrf.mxu0  ;;  %1873 = vmatmul.mubr.f32.gmra.mxu0 %v11762_v49  ;;  %v11776_v49 = vld [vmem:[#allocation5 + $0x120] sm:$0xff] }
 0x21b   :  { %v12963_v48 = vadd.f32 %v1151_v47, %v886_v46  ;;  %v10916_v54 = vpop.f32.mrf.mxu1  ;;  %9727 = vmatprep.mubr.msk.f32.mxu0 %vm184_vm1, %v11763_v56  ;;  %v11777_v56 = vld [vmem:[#allocation5 + $0x138] sm:$0xff] }
 0x21c   :  { %v10837_v52 = vpop.f32.mrf.mxu0 }
 0x21d   :  { %v1156_v53 = vpop.f32.mrf.mxu1 }
 0x21e   :  { %v891_v51 = vpop.f32.mrf.mxu0  ;;  %1878 = vmatmul.mubr.f32.gmra.mxu0 %v11764_v61 }
 0x21f   :  { %v12966_v57 = vadd.f32 %v1156_v53, %v891_v51  ;;  %v10919_v63 = vpop.f32.mrf.mxu1  ;;  %9728 = vmatprep.mubr.msk.f32.mxu0 %vm184_vm1, %v11765_v1 }
 0x220   :  { %v10840_v62 = vpop.f32.mrf.mxu0 }
 0x221   :  { %v1161_v3 = vpop.f32.mrf.mxu1  ;;  %v11778_v62 = vld [vmem:[#allocation5 + $0x130] sm:$0xff] }
 0x222   :  { %v896_v2 = vpop.f32.mrf.mxu0  ;;  %1883 = vmatmul.mubr.f32.gmra.mxu0 %v11766_v6 }
 0x223   :  { %v12969_v5 = vadd.f32 %v1161_v3, %v896_v2  ;;  %v10922_v8 = vpop.f32.mrf.mxu1  ;;  %9729 = vmatprep.mubr.msk.f32.mxu0 %vm184_vm1, %v11767_v9  ;;  %v11779_v2 = vld [vmem:[#allocation5 + $0x148] sm:$0xff] }
 0x224   :  { %v10843_v7 = vpop.f32.mrf.mxu0  ;;  %v11780_v8 = vld [vmem:[#allocation5 + $0x140] sm:$0xff] }
 0x225   :  { %v1166_v12 = vpop.f32.mrf.mxu1 }
 0x226   :  { %v901_v10 = vpop.f32.mrf.mxu0  ;;  %1888 = vmatmul.mubr.f32.gmra.mxu0 %v11768_v14 }
 0x227   :  { %v12972_v13 = vadd.f32 %v1166_v12, %v901_v10  ;;  %v10925_v16 = vpop.f32.mrf.mxu1  ;;  %9730 = vmatprep.mubr.msk.f32.mxu0 %vm184_vm1, %v11769_v17  ;;  %v11781_v12 = vld [vmem:[#allocation5 + $0x158] sm:$0xff]  ;;  %v11782_v17 = vld [vmem:[#allocation5 + $0x150] sm:$0xff] }
 0x228   :  { %v10846_v15 = vpop.f32.mrf.mxu0 }
 0x229   :  { %v1171_v20 = vpop.f32.mrf.mxu1 }
 0x22a   :  { %v906_v19 = vpop.f32.mrf.mxu0  ;;  %1893 = vmatmul.mubr.f32.gmra.mxu0 %v11770_v23  ;;  %v11783_v23 = vld [vmem:[#allocation5 + $0x168] sm:$0xff] }
 0x22b   :  { %v12975_v22 = vadd.f32 %v1171_v20, %v906_v19  ;;  %v10928_v25 = vpop.f32.mrf.mxu1  ;;  %9731 = vmatprep.mubr.msk.f32.mxu0 %vm184_vm1, %v11771_v28 }
 0x22c   :  { %v10849_v24 = vpop.f32.mrf.mxu0 }
 0x22d   :  { %v1176_v32 = vpop.f32.mrf.mxu1 }
 0x22e   :  { %v911_v31 = vpop.f32.mrf.mxu0  ;;  %1898 = vmatmul.mubr.f32.gmra.mxu0 %v11772_v35  ;;  %v11785_v35 = vld [vmem:[#allocation5 + $0x178] sm:$0xff] }
 0x22f   :  { %v12978_v33 = vadd.f32 %v1176_v32, %v911_v31  ;;  %v10931_v38 = vpop.f32.mrf.mxu1  ;;  %9732 = vmatprep.mubr.msk.f32.mxu0 %vm184_vm1, %v11773_v39  ;;  %v11784_v31 = vld [vmem:[#allocation5 + $0x160] sm:$0xff] }
 0x230   :  { %v10852_v36 = vpop.f32.mrf.mxu0  ;;  %v1945_v38 = vld [vmem:[#allocation10 + $0x38] sm:$0xff] }
 0x231   :  { %v1181_v42 = vpop.f32.mrf.mxu1 }
 0x232   :  { %v916_v40 = vpop.f32.mrf.mxu0  ;;  %1903 = vmatmul.mubr.f32.gmra.mxu0 %v11774_v44  ;;  %v1944_v44 = vld [vmem:[#allocation10 + $0x30] sm:$0xff] }
 0x233   :  { %v12981_v43 = vadd.f32 %v1181_v42, %v916_v40  ;;  %v10934_v58 = vpop.f32.mrf.mxu1  ;;  %9733 = vmatprep.mubr.msk.f32.mxu0 %vm184_vm1, %v11775_v29  ;;  %v11786_v40 = vld [vmem:[#allocation5 + $0x170] sm:$0xff]  ;;  %v11787_v42 = vld [vmem:[#allocation5 + $0x188] sm:$0xf]  ;;  %v11788_v29 = vld [vmem:[#allocation5 + $0x180] sm:$0xf] }
 0x234   :  { %v10855_v55 = vpop.f32.mrf.mxu0 }
 0x235   :  { %v1186_v46 = vpop.f32.mrf.mxu1 }
 0x236   :  { %v921_v30 = vpop.f32.mrf.mxu0  ;;  %1908 = vmatmul.mubr.f32.gmra.mxu0 %v11776_v49 }
 0x237   :  { %v12984_v47 = vadd.f32 %v1186_v46, %v921_v30  ;;  %v10937_v54 = vpop.f32.mrf.mxu1  ;;  %9734 = vmatprep.mubr.msk.f32.mxu0 %vm184_vm1, %v11777_v56 }
 0x238   :  { %v10858_v52 = vpop.f32.mrf.mxu0 }
 0x239   :  { %v1191_v53 = vpop.f32.mrf.mxu1 }
 0x23a   :  { %v926_v51 = vpop.f32.mrf.mxu0  ;;  %1913 = vmatmul.mubr.f32.gmra.mxu0 %v11778_v62 }
 0x23b   :  { %v12987_v61 = vadd.f32 %v1191_v53, %v926_v51  ;;  %v10940_v1 = vpop.f32.mrf.mxu1  ;;  %9735 = vmatprep.mubr.msk.f32.mxu0 %vm184_vm1, %v11779_v2 }
 0x23c   :  { %v10861_v63 = vpop.f32.mrf.mxu0 }
 0x23d   :  { %v1196_v6 = vpop.f32.mrf.mxu1 }
 0x23e   :  { %v931_v3 = vpop.f32.mrf.mxu0  ;;  %1918 = vmatmul.mubr.f32.gmra.mxu0 %v11780_v8 }
 0x23f   :  { %v12990_v7 = vadd.f32 %v1196_v6, %v931_v3  ;;  %v10943_v10 = vpop.f32.mrf.mxu1  ;;  %9736 = vmatprep.mubr.msk.f32.mxu0 %vm184_vm1, %v11781_v12 }
 0x240   :  { %v10864_v9 = vpop.f32.mrf.mxu0 }
 0x241   :  { %v1201_v15 = vpop.f32.mrf.mxu1 }
 0x242   :  { %v936_v14 = vpop.f32.mrf.mxu0  ;;  %1923 = vmatmul.mubr.f32.gmra.mxu0 %v11782_v17 }
 0x243   :  { %v12993_v16 = vadd.f32 %v1201_v15, %v936_v14  ;;  %v10946_v20 = vpop.f32.mrf.mxu1  ;;  %9737 = vmatprep.mubr.msk.f32.mxu0 %vm184_vm1, %v11783_v23 }
 0x244   :  { %v10867_v19 = vpop.f32.mrf.mxu0 }
 0x245   :  { %v1206_v25 = vpop.f32.mrf.mxu1 }
 0x246   :  { %v941_v24 = vpop.f32.mrf.mxu0  ;;  %1928 = vmatmul.mubr.f32.gmra.mxu0 %v11784_v31 }
 0x247   :  { %v12996_v28 = vadd.f32 %v1206_v25, %v941_v24  ;;  %9738 = vmatprep.mubr.msk.f32.mxu0 %vm184_vm1, %v11785_v35  ;;  %v10949_v36 = vpop.f32.mrf.mxu1 }
 0x248   :  { %v10870_v32 = vpop.f32.mrf.mxu0 }
 0x24a   :  { %v1306_v39 = vpop.f32.mrf.mxu0  ;;  %1933 = vmatmul.mubr.f32.gmra.mxu0 %v11786_v40 }
 0x24b   :  { %10955 = vmatmul.mubr.msk.f32.vlgmr.msra.gmra.mxu1 %vm679_vm3, %v1306_v39  ;;  %9739 = vmatprep.mubr.msk.f32.mxu0 %vm184_vm1, %v11787_v42 }
 0x24c   :  { %v1308_v55 = vpop.f32.mrf.mxu0  ;;  %10957 = vmatprep.mubr.msk.f32.mxu1 %vm11905_vm2, %v11904_v0  ;;  %11030 = vmatpush3.msra.mxu1 %v1945_v38 }
 0x24d   :  { %11031 = vmatprep.subr.mxu1 %v11904_v0 }
 0x24e   :  { %v1311_v58 = vpop.f32.mrf.mxu0  ;;  %1938 = vmatmul.mubr.f32.gmra.mxu0 %v11788_v29  ;;  %11032 = vmatpush3.msra.mxu1 %v1944_v44 }
 0x24f   :  { %10958 = vmatmul.mubr.msk.f32.gmra.mxu1 %vm679_vm3, %v1311_v58  ;;  %2475 = vmatprep.subr.mxu1 %v11904_v0 }
 0x250   :  { %v1313_v30 = vpop.f32.mrf.mxu0  ;;  %10960 = vmatprep.mubr.msk.f32.mxu1 %vm11905_vm2, %v11904_v0 }
 0x252   :  { %v1316_v46 = vpop.f32.mrf.mxu0 }
 0x253   :  { %10961 = vmatmul.mubr.msk.f32.gmra.mxu1 %vm679_vm3, %v1316_v46 }
 0x254   :  { %v1318_v49 = vpop.f32.mrf.mxu0  ;;  %10963 = vmatprep.mubr.msk.f32.mxu1 %vm11905_vm2, %v11904_v0 }
 0x256   :  { %v1321_v52 = vpop.f32.mrf.mxu0 }
 0x257   :  { %10964 = vmatmul.mubr.msk.f32.gmra.mxu1 %vm679_vm3, %v1321_v52 }
 0x258   :  { %v1323_v54 = vpop.f32.mrf.mxu0  ;;  %10966 = vmatprep.mubr.msk.f32.mxu1 %vm11905_vm2, %v11904_v0 }
 0x25a   :  { %v1326_v56 = vpop.f32.mrf.mxu0 }
 0x25b   :  { %10967 = vmatmul.mubr.msk.f32.gmra.mxu1 %vm679_vm3, %v1326_v56 }
 0x25c   :  { %v1328_v51 = vpop.f32.mrf.mxu0  ;;  %10969 = vmatprep.mubr.msk.f32.mxu1 %vm11905_vm2, %v11904_v0 }
 0x25e   :  { %v1331_v53 = vpop.f32.mrf.mxu0 }
 0x25f   :  { %10970 = vmatmul.mubr.msk.f32.gmra.mxu1 %vm679_vm3, %v1331_v53 }
 0x260   :  { %v1333_v62 = vpop.f32.mrf.mxu0  ;;  %10972 = vmatprep.mubr.msk.f32.mxu1 %vm11905_vm2, %v11904_v0 }
 0x262   :  { %v1336_v63 = vpop.f32.mrf.mxu0 }
 0x263   :  { %10973 = vmatmul.mubr.msk.f32.gmra.mxu1 %vm679_vm3, %v1336_v63 }
 0x264   :  { %v1338_v1 = vpop.f32.mrf.mxu0  ;;  %10975 = vmatprep.mubr.msk.f32.mxu1 %vm11905_vm2, %v11904_v0 }
 0x266   :  { %v1341_v2 = vpop.f32.mrf.mxu0 }
 0x267   :  { %10976 = vmatmul.mubr.msk.f32.gmra.mxu1 %vm679_vm3, %v1341_v2 }
 0x268   :  { %v1343_v3 = vpop.f32.mrf.mxu0  ;;  %10978 = vmatprep.mubr.msk.f32.mxu1 %vm11905_vm2, %v11904_v0 }
 0x26a   :  { %v1346_v6 = vpop.f32.mrf.mxu0 }
 0x26b   :  { %10979 = vmatmul.mubr.msk.f32.gmra.mxu1 %vm679_vm3, %v1346_v6 }
 0x26c   :  { %v1348_v8 = vpop.f32.mrf.mxu0  ;;  %10981 = vmatprep.mubr.msk.f32.mxu1 %vm11905_vm2, %v11904_v0 }
 0x26e   :  { %v1351_v9 = vpop.f32.mrf.mxu0 }
 0x26f   :  { %10982 = vmatmul.mubr.msk.f32.gmra.mxu1 %vm679_vm3, %v1351_v9 }
 0x270   :  { %v1353_v10 = vpop.f32.mrf.mxu0  ;;  %10984 = vmatprep.mubr.msk.f32.mxu1 %vm11905_vm2, %v11904_v0 }
 0x272   :  { %v1356_v12 = vpop.f32.mrf.mxu0 }
 0x273   :  { %10985 = vmatmul.mubr.msk.f32.gmra.mxu1 %vm679_vm3, %v1356_v12 }
 0x274   :  { %v1358_v14 = vpop.f32.mrf.mxu0  ;;  %10987 = vmatprep.mubr.msk.f32.mxu1 %vm11905_vm2, %v11904_v0 }
 0x276   :  { %v1361_v15 = vpop.f32.mrf.mxu0 }
 0x277   :  { %10988 = vmatmul.mubr.msk.f32.gmra.mxu1 %vm679_vm3, %v1361_v15 }
 0x278   :  { %v1363_v17 = vpop.f32.mrf.mxu0  ;;  %10990 = vmatprep.mubr.msk.f32.mxu1 %vm11905_vm2, %v11904_v0 }
 0x27a   :  { %v1366_v19 = vpop.f32.mrf.mxu0 }
 0x27b   :  { %10991 = vmatmul.mubr.msk.f32.gmra.mxu1 %vm679_vm3, %v1366_v19 }
 0x27c   :  { %v1368_v20 = vpop.f32.mrf.mxu0  ;;  %10993 = vmatprep.mubr.msk.f32.mxu1 %vm11905_vm2, %v11904_v0 }
 0x27e   :  { %v1371_v23 = vpop.f32.mrf.mxu0 }
 0x27f   :  { %10994 = vmatmul.mubr.msk.f32.gmra.mxu1 %vm679_vm3, %v1371_v23 }
 0x280   :  { %v1373_v24 = vpop.f32.mrf.mxu0  ;;  %10996 = vmatprep.mubr.msk.f32.mxu1 %vm11905_vm2, %v11904_v0 }
 0x282   :  { %v1376_v25 = vpop.f32.mrf.mxu0 }
 0x283   :  { %10997 = vmatmul.mubr.msk.f32.gmra.mxu1 %vm679_vm3, %v1376_v25 }
 0x284   :  { %v1378_v31 = vpop.f32.mrf.mxu0  ;;  %10999 = vmatprep.mubr.msk.f32.mxu1 %vm11905_vm2, %v11904_v0 }
 0x286   :  { %v1381_v32 = vpop.f32.mrf.mxu0 }
 0x287   :  { %11000 = vmatmul.mubr.msk.f32.gmra.mxu1 %vm679_vm3, %v1381_v32 }
 0x288   :  { %v1383_v35 = vpop.f32.mrf.mxu0  ;;  %11002 = vmatprep.mubr.msk.f32.mxu1 %vm11905_vm2, %v11904_v0 }
 0x28a   :  { %v1386_v36 = vpop.f32.mrf.mxu0 }
 0x28b   :  { %11003 = vmatmul.mubr.msk.f32.gmra.mxu1 %vm679_vm3, %v1386_v36 }
 0x28c   :  { %v1388_v38 = vpop.f32.mrf.mxu0  ;;  %11005 = vmatprep.mubr.msk.f32.mxu1 %vm11905_vm2, %v11904_v0 }
 0x28e   :  { %v1391_v39 = vpop.f32.mrf.mxu0 }
 0x28f   :  { %11006 = vmatmul.mubr.msk.f32.gmra.mxu1 %vm679_vm3, %v1391_v39 }
 0x290   :  { %v1393_v40 = vpop.f32.mrf.mxu0  ;;  %11008 = vmatprep.mubr.msk.f32.mxu1 %vm11905_vm2, %v11904_v0 }
 0x292   :  { %v1396_v42 = vpop.f32.mrf.mxu0 }
 0x293   :  { %11009 = vmatmul.mubr.msk.f32.gmra.mxu1 %vm679_vm3, %v1396_v42 }
 0x294   :  { %v1398_v44 = vpop.f32.mrf.mxu0  ;;  %11011 = vmatprep.mubr.msk.f32.mxu1 %vm11905_vm2, %v11904_v0 }
 0x296   :  { %v1401_v55 = vpop.f32.mrf.mxu0 }
 0x297   :  { %11012 = vmatmul.mubr.msk.f32.gmra.mxu1 %vm679_vm3, %v1401_v55 }
 0x298   :  { %v1403_v58 = vpop.f32.mrf.mxu0  ;;  %11014 = vmatprep.mubr.msk.f32.mxu1 %vm11905_vm2, %v11904_v0 }
 0x29a   :  { %v1406_v29 = vpop.f32.mrf.mxu0 }
 0x29b   :  { %11015 = vmatmul.mubr.msk.f32.gmra.mxu1 %vm679_vm3, %v1406_v29 }
 0x29c   :  { %v1408_v30 = vpop.f32.mrf.mxu0  ;;  %11017 = vmatprep.mubr.msk.f32.mxu1 %vm11905_vm2, %v11904_v0 }
 0x29e   :  { %v1411_v46 = vpop.f32.mrf.mxu0 }
 0x29f   :  { %11018 = vmatmul.mubr.msk.f32.gmra.mxu1 %vm679_vm3, %v1411_v46 }
 0x2a0   :  { %v1413_v49 = vpop.f32.mrf.mxu0  ;;  %11020 = vmatprep.mubr.msk.f32.mxu1 %vm11905_vm2, %v11904_v0 }
 0x2a2   :  { %v1416_v52 = vpop.f32.mrf.mxu0 }
 0x2a3   :  { %11021 = vmatmul.mubr.msk.f32.gmra.mxu1 %vm679_vm3, %v1416_v52 }
 0x2a4   :  { %v1418_v54 = vpop.f32.mrf.mxu0  ;;  %11023 = vmatprep.mubr.msk.f32.mxu1 %vm11905_vm2, %v11904_v0 }
 0x2a6   :  { %v1421_v56 = vpop.f32.mrf.mxu0 }
 0x2a7   :  { %11024 = vmatmul.mubr.msk.f32.gmra.mxu1 %vm679_vm3, %v1421_v56 }
 0x2a8   :  { %v1423_v51 = vpop.f32.mrf.mxu0  ;;  %11026 = vmatprep.mubr.msk.f32.mxu1 %vm11905_vm2, %v11904_v0 }
 0x2aa   :  { %v1426_v53 = vpop.f32.mrf.mxu0 }
 0x2ab   :  { %11027 = vmatmul.mubr.msk.f32.gmra.mxu1 %vm679_vm3, %v1426_v53 }
 0x2ac   :  { %v1428_v62 = vpop.f32.mrf.mxu0  ;;  %11033 = vmatprep.mubr.msk.f32.mxu1 %vm11905_vm2, %v11904_v0 }
 0x2ae   :  { %v1819_v63 = vpop.f32.mrf.mxu0 }
 0x2af   :  { %11034 = vmatmul.mubr.msk.f32.vlgmr.msra.gmra.mxu1 %vm679_vm3, %v1819_v63 }
 0x2b0   :  { %v1821_v1 = vpop.f32.mrf.mxu0  ;;  %11036 = vmatprep.mubr.msk.f32.mxu1 %vm11905_vm2, %v11904_v0 }
 0x2b2   :  { %v1824_v2 = vpop.f32.mrf.mxu0 }
 0x2b3   :  { %11037 = vmatmul.mubr.msk.f32.gmra.mxu1 %vm679_vm3, %v1824_v2 }
 0x2b4   :  { %v1826_v3 = vpop.f32.mrf.mxu0  ;;  %11039 = vmatprep.mubr.msk.f32.mxu1 %vm11905_vm2, %v11904_v0 }
 0x2b6   :  { %v1829_v6 = vpop.f32.mrf.mxu0 }
 0x2b7   :  { %11040 = vmatmul.mubr.msk.f32.gmra.mxu1 %vm679_vm3, %v1829_v6 }
 0x2b8   :  { %v1831_v8 = vpop.f32.mrf.mxu0  ;;  %11042 = vmatprep.mubr.msk.f32.mxu1 %vm11905_vm2, %v11904_v0 }
 0x2ba   :  { %v1834_v9 = vpop.f32.mrf.mxu0 }
 0x2bb   :  { %11043 = vmatmul.mubr.msk.f32.gmra.mxu1 %vm679_vm3, %v1834_v9 }
 0x2bc   :  { %v1836_v10 = vpop.f32.mrf.mxu0  ;;  %11045 = vmatprep.mubr.msk.f32.mxu1 %vm11905_vm2, %v11904_v0 }
 0x2be   :  { %v1839_v12 = vpop.f32.mrf.mxu0 }
 0x2bf   :  { %11046 = vmatmul.mubr.msk.f32.gmra.mxu1 %vm679_vm3, %v1839_v12 }
 0x2c0   :  { %v1841_v14 = vpop.f32.mrf.mxu0  ;;  %11048 = vmatprep.mubr.msk.f32.mxu1 %vm11905_vm2, %v11904_v0 }
 0x2c2   :  { %v1844_v15 = vpop.f32.mrf.mxu0 }
 0x2c3   :  { %11049 = vmatmul.mubr.msk.f32.gmra.mxu1 %vm679_vm3, %v1844_v15 }
 0x2c4   :  { %v1846_v17 = vpop.f32.mrf.mxu0  ;;  %11051 = vmatprep.mubr.msk.f32.mxu1 %vm11905_vm2, %v11904_v0 }
 0x2c6   :  { %v1849_v19 = vpop.f32.mrf.mxu0 }
 0x2c7   :  { %11052 = vmatmul.mubr.msk.f32.gmra.mxu1 %vm679_vm3, %v1849_v19 }
 0x2c8   :  { %v1851_v20 = vpop.f32.mrf.mxu0  ;;  %11054 = vmatprep.mubr.msk.f32.mxu1 %vm11905_vm2, %v11904_v0 }
 0x2ca   :  { %v1854_v23 = vpop.f32.mrf.mxu0 }
 0x2cb   :  { %11055 = vmatmul.mubr.msk.f32.gmra.mxu1 %vm679_vm3, %v1854_v23 }
 0x2cc   :  { %v1856_v24 = vpop.f32.mrf.mxu0  ;;  %11057 = vmatprep.mubr.msk.f32.mxu1 %vm11905_vm2, %v11904_v0 }
 0x2ce   :  { %v1859_v25 = vpop.f32.mrf.mxu0 }
 0x2cf   :  { %11058 = vmatmul.mubr.msk.f32.gmra.mxu1 %vm679_vm3, %v1859_v25 }
 0x2d0   :  { %v1861_v31 = vpop.f32.mrf.mxu0  ;;  %11060 = vmatprep.mubr.msk.f32.mxu1 %vm11905_vm2, %v11904_v0 }
 0x2d2   :  { %v1864_v32 = vpop.f32.mrf.mxu0 }
 0x2d3   :  { %11061 = vmatmul.mubr.msk.f32.gmra.mxu1 %vm679_vm3, %v1864_v32 }
 0x2d4   :  { %v1866_v35 = vpop.f32.mrf.mxu0  ;;  %11063 = vmatprep.mubr.msk.f32.mxu1 %vm11905_vm2, %v11904_v0 }
 0x2d6   :  { %v1869_v36 = vpop.f32.mrf.mxu0 }
 0x2d7   :  { %11064 = vmatmul.mubr.msk.f32.gmra.mxu1 %vm679_vm3, %v1869_v36 }
 0x2d8   :  { %v1871_v38 = vpop.f32.mrf.mxu0  ;;  %11066 = vmatprep.mubr.msk.f32.mxu1 %vm11905_vm2, %v11904_v0 }
 0x2da   :  { %v1874_v39 = vpop.f32.mrf.mxu0 }
 0x2db   :  { %11067 = vmatmul.mubr.msk.f32.gmra.mxu1 %vm679_vm3, %v1874_v39 }
 0x2dc   :  { %v1876_v40 = vpop.f32.mrf.mxu0  ;;  %11069 = vmatprep.mubr.msk.f32.mxu1 %vm11905_vm2, %v11904_v0 }
 0x2de   :  { %v1879_v42 = vpop.f32.mrf.mxu0 }
 0x2df   :  { %11070 = vmatmul.mubr.msk.f32.gmra.mxu1 %vm679_vm3, %v1879_v42 }
 0x2e0   :  { %v1881_v44 = vpop.f32.mrf.mxu0  ;;  %11072 = vmatprep.mubr.msk.f32.mxu1 %vm11905_vm2, %v11904_v0 }
 0x2e2   :  { %v1884_v55 = vpop.f32.mrf.mxu0 }
 0x2e3   :  { %11073 = vmatmul.mubr.msk.f32.gmra.mxu1 %vm679_vm3, %v1884_v55 }
 0x2e4   :  { %v1886_v58 = vpop.f32.mrf.mxu0  ;;  %11075 = vmatprep.mubr.msk.f32.mxu1 %vm11905_vm2, %v11904_v0 }
 0x2e6   :  { %v1889_v29 = vpop.f32.mrf.mxu0 }
 0x2e7   :  { %11076 = vmatmul.mubr.msk.f32.gmra.mxu1 %vm679_vm3, %v1889_v29 }
 0x2e8   :  { %v1891_v30 = vpop.f32.mrf.mxu0  ;;  %11078 = vmatprep.mubr.msk.f32.mxu1 %vm11905_vm2, %v11904_v0 }
 0x2ea   :  { %v1894_v46 = vpop.f32.mrf.mxu0 }
 0x2eb   :  { %11079 = vmatmul.mubr.msk.f32.gmra.mxu1 %vm679_vm3, %v1894_v46 }
 0x2ec   :  { %v1896_v49 = vpop.f32.mrf.mxu0  ;;  %11081 = vmatprep.mubr.msk.f32.mxu1 %vm11905_vm2, %v11904_v0 }
 0x2ee   :  { %v1899_v52 = vpop.f32.mrf.mxu0 }
 0x2ef   :  { %11082 = vmatmul.mubr.msk.f32.gmra.mxu1 %vm679_vm3, %v1899_v52 }
 0x2f0   :  { %v1901_v54 = vpop.f32.mrf.mxu0  ;;  %11084 = vmatprep.mubr.msk.f32.mxu1 %vm11905_vm2, %v11904_v0 }
 0x2f2   :  { %v1904_v56 = vpop.f32.mrf.mxu0 }
 0x2f3   :  { %11085 = vmatmul.mubr.msk.f32.gmra.mxu1 %vm679_vm3, %v1904_v56 }
 0x2f4   :  { %v1906_v51 = vpop.f32.mrf.mxu0  ;;  %11087 = vmatprep.mubr.msk.f32.mxu1 %vm11905_vm2, %v11904_v0 }
 0x2f6   :  { %v1909_v53 = vpop.f32.mrf.mxu0 }
 0x2f7   :  { %11088 = vmatmul.mubr.msk.f32.gmra.mxu1 %vm679_vm3, %v1909_v53 }
 0x2f8   :  { %v1911_v62 = vpop.f32.mrf.mxu0  ;;  %11090 = vmatprep.mubr.msk.f32.mxu1 %vm11905_vm2, %v11904_v0 }
 0x2fa   :  { %v1914_v63 = vpop.f32.mrf.mxu0 }
 0x2fb   :  { %11091 = vmatmul.mubr.msk.f32.gmra.mxu1 %vm679_vm3, %v1914_v63 }
 0x2fc   :  { %v1916_v1 = vpop.f32.mrf.mxu0  ;;  %11093 = vmatprep.mubr.msk.f32.mxu1 %vm11905_vm2, %v11904_v0 }
 0x2fe   :  { %v1919_v2 = vpop.f32.mrf.mxu0 }
 0x2ff   :  { %11094 = vmatmul.mubr.msk.f32.gmra.mxu1 %vm679_vm3, %v1919_v2 }
 0x300   :  { %v1921_v3 = vpop.f32.mrf.mxu0  ;;  %11096 = vmatprep.mubr.msk.f32.mxu1 %vm11905_vm2, %v11904_v0 }
 0x302   :  { %v1924_v6 = vpop.f32.mrf.mxu0 }
 0x303   :  { %11097 = vmatmul.mubr.msk.f32.gmra.mxu1 %vm679_vm3, %v1924_v6 }
 0x304   :  { %v1926_v8 = vpop.f32.mrf.mxu0  ;;  %11099 = vmatprep.mubr.msk.f32.mxu1 %vm11905_vm2, %v11904_v0 }
 0x306   :  { %v1929_v9 = vpop.f32.mrf.mxu0 }
 0x307   :  { %11100 = vmatmul.mubr.msk.f32.gmra.mxu1 %vm679_vm3, %v1929_v9 }
 0x308   :  { %v1931_v10 = vpop.f32.mrf.mxu0  ;;  %11102 = vmatprep.mubr.msk.f32.mxu1 %vm11905_vm2, %v11904_v0 }
 0x30a   :  { %v1934_v12 = vpop.f32.mrf.mxu0 }
 0x30b   :  { %v1574_v14 = vpop.f32.mrf.mxu1  ;;  %11103 = vmatmul.mubr.msk.f32.gmra.mxu1 %vm679_vm3, %v1934_v12 }
 0x30c   :  { %v13148_v15 = vadd.f32 %v1574_v14, %v12921_v21  ;;  %v1936_v17 = vpop.f32.mrf.mxu0  ;;  %11105 = vmatprep.mubr.msk.f32.mxu1 %vm11905_vm2, %v11904_v0 }
 0x30d   :  { %v10956_v19 = vpop.f32.mrf.mxu1 }
 0x30e   :  { %v1939_v20 = vpop.f32.mrf.mxu0 }
 0x30f   :  { %v1579_v23 = vpop.f32.mrf.mxu1  ;;  %11106 = vmatmul.mubr.msk.f32.gmra.mxu1 %vm679_vm3, %v1939_v20 }
 0x310   :  { %v13154_v24 = vadd.f32 %v1579_v23, %v12926_v26  ;;  %v1941_v25 = vpop.f32.mrf.mxu0 }
 0x311   :  { %v10959_v31 = vpop.f32.mrf.mxu1 }
 0x313   :  { %v1584_v32 = vpop.f32.mrf.mxu1 }
 0x314   :  { %v13157_v35 = vadd.f32 %v1584_v32, %v12930_v34 }
 0x315   :  { %v10962_v21 = vpop.f32.mrf.mxu1 }
 0x317   :  { %v1589_v36 = vpop.f32.mrf.mxu1 }
 0x318   :  { %v13160_v38 = vadd.f32 %v1589_v36, %v12933_v41 }
 0x319   :  { %v10965_v39 = vpop.f32.mrf.mxu1 }
 0x31b   :  { %v1594_v40 = vpop.f32.mrf.mxu1 }
 0x31c   :  { %v13163_v42 = vadd.f32 %v1594_v40, %v12936_v59 }
 0x31d   :  { %v10968_v44 = vpop.f32.mrf.mxu1 }
 0x31f   :  { %v1599_v55 = vpop.f32.mrf.mxu1 }
 0x320   :  { %v13166_v26 = vadd.f32 %v1599_v55, %v12939_v50  ;;  %v13216_v55 = vld [vmem:[#allocation8 + $0x8] sm:$0xff] }
 0x321   :  { %v10971_v58 = vpop.f32.mrf.mxu1  ;;  %9773 = vmatprep.mubr.msk.f32.mxu1 %vm2339_vm4, %v13216_v55  ;;  %9767 = vmatprep.mubr.msk.f32.mxu0 %vm2339_vm4, %v13216_v55 }
 0x323   :  { %v1604_v29 = vpop.f32.mrf.mxu1 }
 0x324   :  { %v13169_v34 = vadd.f32 %v1604_v29, %v12942_v60 }
 0x325   :  { %v10974_v30 = vpop.f32.mrf.mxu1 }
 0x327   :  { %v1609_v46 = vpop.f32.mrf.mxu1 }
 0x328   :  { %v13172_v41 = vadd.f32 %v1609_v46, %v12945_v4 }
 0x329   :  { %v10977_v49 = vpop.f32.mrf.mxu1 }
 0x32b   :  { %v1614_v52 = vpop.f32.mrf.mxu1 }
 0x32c   :  { %v13175_v59 = vadd.f32 %v1614_v52, %v12948_v11 }
 0x32d   :  { %v10980_v54 = vpop.f32.mrf.mxu1 }
 0x32e   :  { %v13234_v54 = vld [vmem:[%s15932_s6] ss:$0 sm:$0xff] }
 0x32f   :  { %v1619_v56 = vpop.f32.mrf.mxu1 }
 0x330   :  { %v13178_v50 = vadd.f32 %v1619_v56, %v12951_v18 }
 0x331   :  { %v10983_v51 = vpop.f32.mrf.mxu1 }
 0x333   :  { %v1624_v53 = vpop.f32.mrf.mxu1 }
 0x334   :  { %v13181_v60 = vadd.f32 %v1624_v53, %v12954_v27 }
 0x335   :  { %v10986_v62 = vpop.f32.mrf.mxu1 }
 0x337   :  { %v1629_v63 = vpop.f32.mrf.mxu1 }
 0x338   :  { %v13184_v4 = vadd.f32 %v1629_v63, %v12957_v37 }
 0x339   :  { %v10989_v1 = vpop.f32.mrf.mxu1 }
 0x33b   :  { %v1634_v2 = vpop.f32.mrf.mxu1 }
 0x33c   :  { %v13187_v11 = vadd.f32 %v1634_v2, %v12960_v45 }
 0x33d   :  { %v10992_v3 = vpop.f32.mrf.mxu1 }
 0x33f   :  { %v1639_v6 = vpop.f32.mrf.mxu1 }
 0x340   :  { %v13190_v18 = vadd.f32 %v1639_v6, %v12963_v48 }
 0x341   :  { %v10995_v8 = vpop.f32.mrf.mxu1 }
 0x343   :  { %v1644_v9 = vpop.f32.mrf.mxu1 }
 0x344   :  { %v13193_v27 = vadd.f32 %v1644_v9, %v12966_v57 }
 0x345   :  { %v10998_v10 = vpop.f32.mrf.mxu1 }
 0x347   :  { %v1649_v12 = vpop.f32.mrf.mxu1 }
 0x348   :  { %v13196_v37 = vadd.f32 %v1649_v12, %v12969_v5 }
 0x349   :  { %v11001_v14 = vpop.f32.mrf.mxu1 }
 0x34b   :  { %v1654_v17 = vpop.f32.mrf.mxu1 }
 0x34c   :  { %v13199_v45 = vadd.f32 %v1654_v17, %v12972_v13 }
 0x34d   :  { %v11004_v19 = vpop.f32.mrf.mxu1 }
 0x34f   :  { %v1659_v20 = vpop.f32.mrf.mxu1 }
 0x350   :  { %v13202_v48 = vadd.f32 %v1659_v20, %v12975_v22 }
 0x351   :  { %v11007_v23 = vpop.f32.mrf.mxu1 }
 0x353   :  { %v1664_v25 = vpop.f32.mrf.mxu1 }
 0x354   :  { %v13205_v57 = vadd.f32 %v1664_v25, %v12978_v33 }
 0x355   :  { %v11010_v31 = vpop.f32.mrf.mxu1 }
 0x357   :  { %v1669_v32 = vpop.f32.mrf.mxu1 }
 0x358   :  { %v13208_v5 = vadd.f32 %v1669_v32, %v12981_v43 }
 0x359   :  { %v11013_v21 = vpop.f32.mrf.mxu1 }
 0x35b   :  { %v1674_v36 = vpop.f32.mrf.mxu1 }
 0x35c   :  { %v13211_v13 = vadd.f32 %v1674_v36, %v12984_v47 }
 0x35d   :  { %v11016_v39 = vpop.f32.mrf.mxu1 }
 0x35f   :  { %v1679_v40 = vpop.f32.mrf.mxu1 }
 0x360   :  { %v13214_v22 = vadd.f32 %v1679_v40, %v12987_v61 }
 0x361   :  { %v11019_v44 = vpop.f32.mrf.mxu1 }
 0x363   :  { %v1684_v33 = vpop.f32.mrf.mxu1 }
 0x364   :  { %v13223_v43 = vadd.f32 %v1684_v33, %v12990_v7 }
 0x365   :  { %v11022_v47 = vpop.f32.mrf.mxu1 }
 0x367   :  { %v1689_v58 = vpop.f32.mrf.mxu1 }
 0x368   :  { %v13226_v29 = vadd.f32 %v1689_v58, %v12993_v16 }
 0x369   :  { %v11025_v61 = vpop.f32.mrf.mxu1 }
 0x36b   :  { %v1694_v30 = vpop.f32.mrf.mxu1 }
 0x36c   :  { %v13229_v46 = vadd.f32 %v1694_v30, %v12996_v28 }
 0x36d   :  { %v11028_v49 = vpop.f32.mrf.mxu1 }
 0x36f   :  { %v2087_v52 = vpop.f32.mrf.mxu1 }
 0x370   :  { %v2211_v7 = vadd.f32 %v2087_v52, %v13148_v15 }
 0x371   :  { %v11035_v56 = vpop.f32.mrf.mxu1 }
 0x372   :  { %v2243_v51 = vadd.f32 %v13234_v54, %v2211_v7 }
 0x373   :  { %v2092_v16 = vpop.f32.mrf.mxu1 }
 0x374   :  { %v2268_v53 = vmax.f32 %v2243_v51, 0.0  ;;  %v2212_v62 = vadd.f32 %v2092_v16, %v13154_v24 }
 0x375   :  { %v11038_v63 = vpop.f32.mrf.mxu1 }
 0x376   :  { %2294 = vst.msk [vmem:[#allocation2] sm:$0xff] %vm2293_vm5, %v2268_v53  ;;  %v2244_v28 = vadd.f32 %v13234_v54, %v2212_v62 }
 0x377   :  { %v2097_v1 = vpop.f32.mrf.mxu1 }
 0x378   :  { %v2269_v2 = vmax.f32 %v2244_v28, 0.0  ;;  %v2213_v3 = vadd.f32 %v2097_v1, %v13157_v35 }
 0x379   :  { %v11041_v6 = vpop.f32.mrf.mxu1 }
 0x37a   :  { %2295 = vst.msk [vmem:[#allocation2 + $0x8] sm:$0xff] %vm2293_vm5, %v2269_v2  ;;  %v2245_v15 = vadd.f32 %v13234_v54, %v2213_v3 }
 0x37b   :  { %v2102_v8 = vpop.f32.mrf.mxu1 }
 0x37c   :  { %v2270_v9 = vmax.f32 %v2245_v15, 0.0  ;;  %v2214_v10 = vadd.f32 %v2102_v8, %v13160_v38 }
 0x37d   :  { %v11044_v12 = vpop.f32.mrf.mxu1 }
 0x37e   :  { %2296 = vst.msk [vmem:[#allocation2 + $0x10] sm:$0xff] %vm2293_vm5, %v2270_v9  ;;  %v2246_v24 = vadd.f32 %v13234_v54, %v2214_v10 }
 0x37f   :  { %v2107_v14 = vpop.f32.mrf.mxu1 }
 0x380   :  { %v2271_v17 = vmax.f32 %v2246_v24, 0.0  ;;  %v2215_v19 = vadd.f32 %v2107_v14, %v13163_v42 }
 0x381   :  { %v11047_v20 = vpop.f32.mrf.mxu1 }
 0x382   :  { %2297 = vst.msk [vmem:[#allocation2 + $0x18] sm:$0xff] %vm2293_vm5, %v2271_v17  ;;  %v2247_v35 = vadd.f32 %v13234_v54, %v2215_v19 }
 0x383   :  { %v2112_v23 = vpop.f32.mrf.mxu1 }
 0x384   :  { %v2272_v25 = vmax.f32 %v2247_v35, 0.0  ;;  %v2216_v31 = vadd.f32 %v2112_v23, %v13166_v26 }
 0x385   :  { %v11050_v32 = vpop.f32.mrf.mxu1 }
 0x386   :  { %2298 = vst.msk [vmem:[#allocation2 + $0x20] sm:$0xff] %vm2293_vm5, %v2272_v25  ;;  %v2248_v38 = vadd.f32 %v13234_v54, %v2216_v31 }
 0x387   :  { %v2117_v21 = vpop.f32.mrf.mxu1 }
 0x388   :  { %v2273_v36 = vmax.f32 %v2248_v38, 0.0  ;;  %v2217_v39 = vadd.f32 %v2117_v21, %v13169_v34 }
 0x389   :  { %v11053_v40 = vpop.f32.mrf.mxu1 }
 0x38a   :  { %2299 = vst.msk [vmem:[#allocation2 + $0x28] sm:$0xff] %vm2293_vm5, %v2273_v36  ;;  %v2249_v42 = vadd.f32 %v13234_v54, %v2217_v39 }
 0x38b   :  { %v2122_v44 = vpop.f32.mrf.mxu1 }
 0x38c   :  { %v2274_v33 = vmax.f32 %v2249_v42, 0.0  ;;  %v2218_v47 = vadd.f32 %v2122_v44, %v13172_v41 }
 0x38d   :  { %v11056_v58 = vpop.f32.mrf.mxu1 }
 0x38e   :  { %2300 = vst.msk [vmem:[#allocation2 + $0x30] sm:$0xff] %vm2293_vm5, %v2274_v33  ;;  %v2250_v26 = vadd.f32 %v13234_v54, %v2218_v47 }
 0x38f   :  { %v2127_v61 = vpop.f32.mrf.mxu1 }
 0x390   :  { %v2275_v30 = vmax.f32 %v2250_v26, 0.0  ;;  %v2219_v49 = vadd.f32 %v2127_v61, %v13175_v59 }
 0x391   :  { %v11059_v52 = vpop.f32.mrf.mxu1 }
 0x392   :  { %2301 = vst.msk [vmem:[#allocation2 + $0x38] sm:$0xff] %vm2293_vm5, %v2275_v30  ;;  %v2251_v34 = vadd.f32 %v13234_v54, %v2219_v49 }
 0x393   :  { %v2132_v7 = vpop.f32.mrf.mxu1 }
 0x394   :  { %v2276_v56 = vmax.f32 %v2251_v34, 0.0  ;;  %v2220_v51 = vadd.f32 %v2132_v7, %v13178_v50 }
 0x395   :  { %v11062_v16 = vpop.f32.mrf.mxu1 }
 0x396   :  { %2302 = vst.msk [vmem:[#allocation2 + $0x40] sm:$0xff] %vm2293_vm5, %v2276_v56  ;;  %v2252_v41 = vadd.f32 %v13234_v54, %v2220_v51 }
 0x397   :  { %v2137_v53 = vpop.f32.mrf.mxu1 }
 0x398   :  { %v2277_v62 = vmax.f32 %v2252_v41, 0.0  ;;  %v2221_v63 = vadd.f32 %v2137_v53, %v13181_v60 }
 0x399   :  { %v11065_v28 = vpop.f32.mrf.mxu1 }
 0x39a   :  { %2303 = vst.msk [vmem:[#allocation2 + $0x48] sm:$0xff] %vm2293_vm5, %v2277_v62  ;;  %v2253_v59 = vadd.f32 %v13234_v54, %v2221_v63 }
 0x39b   :  { %v2142_v1 = vpop.f32.mrf.mxu1 }
 0x39c   :  { %v2278_v2 = vmax.f32 %v2253_v59, 0.0  ;;  %v2222_v3 = vadd.f32 %v2142_v1, %v13184_v4 }
 0x39d   :  { %v11068_v6 = vpop.f32.mrf.mxu1 }
 0x39e   :  { %2304 = vst.msk [vmem:[#allocation2 + $0x50] sm:$0xff] %vm2293_vm5, %v2278_v2  ;;  %v2254_v50 = vadd.f32 %v13234_v54, %v2222_v3 }
 0x39f   :  { %v2147_v15 = vpop.f32.mrf.mxu1 }
 0x3a0   :  { %v2279_v8 = vmax.f32 %v2254_v50, 0.0  ;;  %v2223_v9 = vadd.f32 %v2147_v15, %v13187_v11 }
 0x3a1   :  { %v11071_v10 = vpop.f32.mrf.mxu1 }
 0x3a2   :  { %2305 = vst.msk [vmem:[#allocation2 + $0x58] sm:$0xff] %vm2293_vm5, %v2279_v8  ;;  %v2255_v60 = vadd.f32 %v13234_v54, %v2223_v9  ;;  %v2329_v9 = vld [vmem:[#allocation2 + $0x48] sm:$0xff] }
 0x3a3   :  { %v2152_v12 = vpop.f32.mrf.mxu1 }
 0x3a4   :  { %v2280_v24 = vmax.f32 %v2255_v60, 0.0  ;;  %v2224_v14 = vadd.f32 %v2152_v12, %v13190_v18 }
 0x3a5   :  { %v11074_v17 = vpop.f32.mrf.mxu1 }
 0x3a6   :  { %2306 = vst.msk [vmem:[#allocation2 + $0x60] sm:$0xff] %vm2293_vm5, %v2280_v24  ;;  %v2256_v4 = vadd.f32 %v13234_v54, %v2224_v14 }
 0x3a7   :  { %v2157_v19 = vpop.f32.mrf.mxu1 }
 0x3a8   :  { %v2281_v20 = vmax.f32 %v2256_v4, 0.0  ;;  %v2225_v35 = vadd.f32 %v2157_v19, %v13193_v27  ;;  %v2327_v19 = vld [vmem:[#allocation2 + $0x38] sm:$0xff] }
 0x3a9   :  { %v11077_v23 = vpop.f32.mrf.mxu1  ;;  %v2331_v59 = vld [vmem:[#allocation2 + $0x58] sm:$0xff] }
 0x3aa   :  { %2307 = vst.msk [vmem:[#allocation2 + $0x68] sm:$0xff] %vm2293_vm5, %v2281_v20  ;;  %v2257_v11 = vadd.f32 %v13234_v54, %v2225_v35  ;;  %v2463_v24 = vld [vmem:[#allocation2 + $0x51] sm:$0xff]  ;;  %v2462_v20 = vld [vmem:[#allocation2 + $0x49] sm:$0xff] }
 0x3ab   :  { %v2162_v25 = vpop.f32.mrf.mxu1 }
 0x3ac   :  { %v2282_v31 = vmax.f32 %v2257_v11, 0.0  ;;  %v2226_v32 = vadd.f32 %v2162_v25, %v13196_v37  ;;  %v2461_v11 = vld [vmem:[#allocation2 + $0x41] sm:$0xff] }
 0x3ad   :  { %v11080_v38 = vpop.f32.mrf.mxu1  ;;  %v2332_v53 = vld [vmem:[#allocation2 + $0x60] sm:$0xff] }
 0x3ae   :  { %2308 = vst.msk [vmem:[#allocation2 + $0x70] sm:$0xff] %vm2293_vm5, %v2282_v31  ;;  %v2258_v18 = vadd.f32 %v13234_v54, %v2226_v32  ;;  %v2464_v10 = vld [vmem:[#allocation2 + $0x59] sm:$0xff]  ;;  %v2325_v38 = vld [vmem:[#allocation2 + $0x28] sm:$0xff] }
 0x3af   :  { %v2167_v21 = vpop.f32.mrf.mxu1 }
 0x3b0   :  { %v2283_v36 = vmax.f32 %v2258_v18, 0.0  ;;  %v2227_v39 = vadd.f32 %v2167_v21, %v13199_v45  ;;  %v2460_v18 = vld [vmem:[#allocation2 + $0x39] sm:$0xff] }
 0x3b1   :  { %v11083_v40 = vpop.f32.mrf.mxu1  ;;  %v2333_v51 = vld [vmem:[#allocation2 + $0x68] sm:$0xff] }
 0x3b2   :  { %2309 = vst.msk [vmem:[#allocation2 + $0x78] sm:$0xff] %vm2293_vm5, %v2283_v36  ;;  %v2259_v27 = vadd.f32 %v13234_v54, %v2227_v39  ;;  %v2465_v6 = vld [vmem:[#allocation2 + $0x61] sm:$0xff]  ;;  %v2459_v39 = vld [vmem:[#allocation2 + $0x31] sm:$0xff] }
 0x3b3   :  { %v2172_v42 = vpop.f32.mrf.mxu1 }
 0x3b4   :  { %v2284_v44 = vmax.f32 %v2259_v27, 0.0  ;;  %v2228_v33 = vadd.f32 %v2172_v42, %v13202_v48  ;;  %v2323_v42 = vld [vmem:[#allocation2 + $0x18] sm:$0xff] }
 0x3b5   :  { %v11086_v47 = vpop.f32.mrf.mxu1  ;;  %v2334_v48 = vld [vmem:[#allocation2 + $0x70] sm:$0xff] }
 0x3b6   :  { %2310 = vst.msk [vmem:[#allocation2 + $0x80] sm:$0xff] %vm2293_vm5, %v2284_v44  ;;  %v2260_v37 = vadd.f32 %v13234_v54, %v2228_v33  ;;  %v2466_v1 = vld [vmem:[#allocation2 + $0x69] sm:$0xff] }
 0x3b7   :  { %v2177_v58 = vpop.f32.mrf.mxu1  ;;  %v2458_v44 = vld [vmem:[#allocation2 + $0x29] sm:$0xff] }
 0x3b8   :  { %v2285_v26 = vmax.f32 %v2260_v37, 0.0  ;;  %v2229_v61 = vadd.f32 %v2177_v58, %v13205_v57  ;;  %v2457_v37 = vld [vmem:[#allocation2 + $0x21] sm:$0xff] }
 0x3b9   :  { %v11089_v30 = vpop.f32.mrf.mxu1  ;;  %v2335_v45 = vld [vmem:[#allocation2 + $0x78] sm:$0xff] }
 0x3ba   :  { %2311 = vst.msk [vmem:[#allocation2 + $0x88] sm:$0xff] %vm2293_vm5, %v2285_v26  ;;  %v2261_v49 = vadd.f32 %v13234_v54, %v2229_v61  ;;  %2360 = vmatpush1.msra.mxu0 %v2335_v45  ;;  %v2467_v62 = vld [vmem:[#allocation2 + $0x71] sm:$0xff]  ;;  %v2321_v26 = vld [vmem:[#allocation2 + $0x8] sm:$0xff]  ;;  %v2456_v61 = vld [vmem:[#allocation2 + $0x19] sm:$0xff] }
 0x3bb   :  { %v2182_v52 = vpop.f32.mrf.mxu1  ;;  %2361 = vmatprep.subr.mxu0 %v11904_v0  ;;  %v2455_v30 = vld [vmem:[#allocation2 + $0x11] sm:$0xff] }
 0x3bc   :  { %v2286_v34 = vmax.f32 %v2261_v49, 0.0  ;;  %v2230_v7 = vadd.f32 %v2182_v52, %v13208_v5  ;;  %2362 = vmatpush1.msra.mxu0 %v2334_v48  ;;  %v2454_v49 = vld [vmem:[#allocation2 + $0x9] sm:$0xff]  ;;  %v2453_v48 = vld [vmem:[#allocation2 + $0x1] sm:$0xff] }
 0x3bd   :  { %v11092_v56 = vpop.f32.mrf.mxu1  ;;  %2363 = vmatprep.subr.mxu0 %v11904_v0  ;;  %v2468_v57 = vld [vmem:[#allocation2 + $0x79] sm:$0xff] }
 0x3be   :  { %2312 = vst.msk [vmem:[#allocation2 + $0x90] sm:$0xff] %vm2293_vm5, %v2286_v34  ;;  %v2262_v16 = vadd.f32 %v13234_v54, %v2230_v7  ;;  %2364 = vmatpush1.msra.mxu0 %v2333_v51  ;;  %2476 = vmatpush1.msra.mxu1 %v2468_v57  ;;  %v13343_v34 = vld [vmem:[#allocation8] sm:$0xff]  ;;  %v2336_v7 = vld [vmem:[#allocation2 + $0x80] sm:$0xff]  ;;  %v13349_v57 = vld [vmem:[#allocation8 + $0x18] sm:$0xff] }
 0x3bf   :  { %v2187_v41 = vpop.f32.mrf.mxu1  ;;  %2365 = vmatprep.subr.mxu0 %v11904_v0  ;;  %2477 = vmatprep.subr.mxu1 %v11904_v0 }
 0x3c0   :  { %v2287_v5 = vmax.f32 %v2262_v16, 0.0  ;;  %v2231_v63 = vadd.f32 %v2187_v41, %v13211_v13  ;;  %2366 = vmatpush1.msra.mxu0 %v2332_v53  ;;  %2478 = vmatpush1.msra.mxu1 %v2467_v62  ;;  %v2330_v13 = vld [vmem:[#allocation2 + $0x50] sm:$0xff]  ;;  %v9781_v16 = vld [vmem:[%s15933_s7 + $0x38] sm:$0xff]  ;;  %v13359_v53 = vld [vmem:[#allocation8 + $0x10] sm:$0xff] }
 0x3c1   :  { %v11095_v28 = vpop.f32.mrf.mxu1  ;;  %2367 = vmatprep.subr.mxu0 %v11904_v0  ;;  %2479 = vmatprep.subr.mxu1 %v11904_v0  ;;  %v2337_v52 = vld [vmem:[#allocation2 + $0x88] sm:$0xff]  ;;  %v13362_v62 = vld [vmem:[#allocation8 + $0x28] sm:$0xff] }
 0x3c2   :  { %2313 = vst.msk [vmem:[#allocation2 + $0x98] sm:$0xff] %vm2293_vm5, %v2287_v5  ;;  %v2263_v2 = vadd.f32 %v13234_v54, %v2231_v63  ;;  %2368 = vmatpush1.msra.mxu0 %v2331_v59  ;;  %2480 = vmatpush1.msra.mxu1 %v2466_v1  ;;  %v2469_v41 = vld [vmem:[#allocation2 + $0x81] sm:$0xff]  ;;  %v9780_v5 = vld [vmem:[%s15933_s7 + $0x30] sm:$0xff] }
 0x3c3   :  { %v2192_v3 = vpop.f32.mrf.mxu1  ;;  %2369 = vmatprep.subr.mxu0 %v11904_v0  ;;  %2481 = vmatprep.subr.mxu1 %v11904_v0  ;;  %v13374_v63 = vld [vmem:[#allocation8 + $0x20] sm:$0xff]  ;;  %v13377_v28 = vld [vmem:[#allocation8 + $0x38] sm:$0xff]  ;;  %v13388_v1 = vld [vmem:[#allocation8 + $0x30] sm:$0xff] }
 0x3c4   :  { %v2288_v50 = vmax.f32 %v2263_v2, 0.0  ;;  %v2232_v15 = vadd.f32 %v2192_v3, %v13214_v22  ;;  %2370 = vmatpush1.msra.mxu0 %v2330_v13  ;;  %2482 = vmatpush1.msra.mxu1 %v2465_v6  ;;  %v2328_v22 = vld [vmem:[#allocation2 + $0x40] sm:$0xff]  ;;  %v9779_v59 = vld [vmem:[%s15933_s7 + $0x28] sm:$0xff]  ;;  %v13391_v2 = vld [vmem:[#allocation8 + $0x48] sm:$0xf] }
 0x3c5   :  { %v11098_v8 = vpop.f32.mrf.mxu1  ;;  %2371 = vmatprep.subr.mxu0 %v11904_v0  ;;  %2483 = vmatprep.subr.mxu1 %v11904_v0  ;;  %v2338_v45 = vld [vmem:[#allocation2 + $0x90] sm:$0x7f]  ;;  %v9778_v3 = vld [vmem:[%s15933_s7 + $0x20] sm:$0xff]  ;;  %v2452_v6 = vld [vmem:[%s15933_s7 + $0x18] sm:$0xff] }
 0x3c6   :  { %2314 = vst.msk [vmem:[#allocation2 + $0xa0] sm:$0xff] %vm2293_vm5, %v2288_v50  ;;  %v2264_v60 = vadd.f32 %v13234_v54, %v2232_v15  ;;  %2372 = vmatpush1.msra.mxu0 %v2329_v9  ;;  %2484 = vmatpush1.msra.mxu1 %v2464_v10  ;;  %v2471_v56 = vld [vmem:[#allocation2 + $0x91] sm:$0x7f]  ;;  %v2470_v51 = vld [vmem:[#allocation2 + $0x89] sm:$0xff]  ;;  %v2449_v8 = vld [vmem:[%s15933_s7] sm:$0xff] }
 0x3c7   :  { %v2197_v12 = vpop.f32.mrf.mxu1  ;;  %2373 = vmatprep.subr.mxu0 %v11904_v0  ;;  %2485 = vmatprep.subr.mxu1 %v11904_v0  ;;  %v13402_v13 = vld [vmem:[#allocation8 + $0x40] sm:$0xf]  ;;  %v2450_v15 = vld [vmem:[%s15933_s7 + $0x8] sm:$0xff] }
 0x3c8   :  { %v2289_v14 = vmax.f32 %v2264_v60, 0.0  ;;  %v2233_v17 = vadd.f32 %v2197_v12, %v13223_v43  ;;  %2374 = vmatpush1.msra.mxu0 %v2328_v22  ;;  %2486 = vmatpush1.msra.mxu1 %v2463_v24  ;;  %v2326_v43 = vld [vmem:[#allocation2 + $0x30] sm:$0xff]  ;;  %v2795_v22 = vld [vmem:[#allocation2 + $0x7a] sm:$0xff] }
 0x3c9   :  { %v11101_v4 = vpop.f32.mrf.mxu1  ;;  %2375 = vmatprep.subr.mxu0 %v11904_v0  ;;  %2487 = vmatprep.subr.mxu1 %v11904_v0  ;;  %v2451_v50 = vld [vmem:[%s15933_s7 + $0x10] sm:$0xff] }
 0x3ca   :  { %2315 = vst.msk [vmem:[#allocation2 + $0xa8] sm:$0xff] %vm2293_vm5, %v2289_v14  ;;  %v2265_v35 = vadd.f32 %v13234_v54, %v2233_v17  ;;  %2376 = vmatpush1.msra.mxu0 %v2327_v19  ;;  %2488 = vmatpush1.msra.mxu1 %v2462_v20  ;;  %v2794_v17 = vld [vmem:[#allocation2 + $0x72] sm:$0xff]  ;;  %v2793_v20 = vld [vmem:[#allocation2 + $0x6a] sm:$0xff] }
 0x3cb   :  { %v2202_v23 = vpop.f32.mrf.mxu1  ;;  %2377 = vmatprep.subr.mxu0 %v11904_v0  ;;  %2489 = vmatprep.subr.mxu1 %v11904_v0 }
 0x3cc   :  { %v2290_v25 = vmax.f32 %v2265_v35, 0.0  ;;  %v2234_v31 = vadd.f32 %v2202_v23, %v13226_v29  ;;  %2378 = vmatpush1.msra.mxu0 %v2326_v43  ;;  %2490 = vmatpush1.msra.mxu1 %v2461_v11  ;;  %v2324_v29 = vld [vmem:[#allocation2 + $0x20] sm:$0xff] }
 0x3cd   :  { %v11104_v32 = vpop.f32.mrf.mxu1  ;;  %2379 = vmatprep.subr.mxu0 %v11904_v0  ;;  %2491 = vmatprep.subr.mxu1 %v11904_v0  ;;  %v2792_v43 = vld [vmem:[#allocation2 + $0x62] sm:$0xff] }
 0x3ce   :  { %2316 = vst.msk [vmem:[#allocation2 + $0xb0] sm:$0xff] %vm2293_vm5, %v2290_v25  ;;  %v2266_v21 = vadd.f32 %v13234_v54, %v2234_v31  ;;  %2380 = vmatpush1.msra.mxu0 %v2325_v38  ;;  %2492 = vmatpush1.msra.mxu1 %v2460_v18  ;;  %v2791_v31 = vld [vmem:[#allocation2 + $0x5a] sm:$0xff]  ;;  %v2790_v18 = vld [vmem:[#allocation2 + $0x52] sm:$0xff] }
 0x3cf   :  { %v2207_v36 = vpop.f32.mrf.mxu1  ;;  %2381 = vmatprep.subr.mxu0 %v11904_v0  ;;  %2493 = vmatprep.subr.mxu1 %v11904_v0 }
 0x3d0   :  { %v2291_v40 = vmax.f32 %v2266_v21, 0.0  ;;  %v2235_v27 = vadd.f32 %v2207_v36, %v13229_v46  ;;  %2382 = vmatpush1.msra.mxu0 %v2324_v29  ;;  %2494 = vmatpush1.msra.mxu1 %v2459_v39  ;;  %v2322_v46 = vld [vmem:[#allocation2 + $0x10] sm:$0xff] }
 0x3d1   :  { %2383 = vmatprep.subr.mxu0 %v11904_v0  ;;  %2495 = vmatprep.subr.mxu1 %v11904_v0  ;;  %v11107_v33 = vpop.f32.mrf.mxu1  ;;  %v2789_v29 = vld [vmem:[#allocation2 + $0x4a] sm:$0xff] }
 0x3d2   :  { %2317 = vst.msk [vmem:[#allocation2 + $0xb8] sm:$0xff] %vm2293_vm5, %v2291_v40  ;;  %v2267_v47 = vadd.f32 %v13234_v54, %v2235_v27  ;;  %2384 = vmatpush1.msra.mxu0 %v2323_v42  ;;  %2496 = vmatpush1.msra.mxu1 %v2458_v44  ;;  %v2320_v54 = vld [vmem:[#allocation2] sm:$0xff] }
 0x3d3   :  { %2385 = vmatprep.subr.mxu0 %v11904_v0  ;;  %2497 = vmatprep.subr.mxu1 %v11904_v0  ;;  %v2788_v27 = vld [vmem:[#allocation2 + $0x42] sm:$0xff]  ;;  %v2787_v44 = vld [vmem:[#allocation2 + $0x3a] sm:$0xff] }
 0x3d4   :  { %v2292_v58 = vmax.f32 %v2267_v47, 0.0  ;;  %2386 = vmatpush1.msra.mxu0 %v2322_v46  ;;  %2498 = vmatpush1.msra.mxu1 %v2457_v37  ;;  %v2786_v47 = vld [vmem:[#allocation2 + $0x32] sm:$0xff]  ;;  %v2785_v46 = vld [vmem:[#allocation2 + $0x2a] sm:$0xff]  ;;  %v2784_v37 = vld [vmem:[#allocation2 + $0x22] sm:$0xff] }
 0x3d5   :  { %2387 = vmatprep.subr.mxu0 %v11904_v0  ;;  %2499 = vmatprep.subr.mxu1 %v11904_v0 }
 0x3d6   :  { %2319 = vst.msk [vmem:[#allocation2 + $0xc0] sm:$0xf] %vm2318_vm6, %v2292_v58  ;;  %2388 = vmatpush1.msra.mxu0 %v2321_v26  ;;  %2500 = vmatpush1.msra.mxu1 %v2456_v61  ;;  %v2783_v58 = vld [vmem:[#allocation2 + $0x1a] sm:$0xff]  ;;  %v2781_v26 = vld [vmem:[#allocation2 + $0xa] sm:$0xff]  ;;  %v2780_v61 = vld [vmem:[#allocation2 + $0x2] sm:$0xff] }
 0x3d7   :  { %2389 = vmatprep.subr.mxu0 %v11904_v0  ;;  %2501 = vmatprep.subr.mxu1 %v11904_v0 }
 0x3d8   :  { %2390 = vmatpush1.msra.mxu0 %v2320_v54  ;;  %2502 = vmatpush1.msra.mxu1 %v2455_v30  ;;  %v2798_v54 = vld [vmem:[#allocation2 + $0x92] sm:$0x7f]  ;;  %v2797_v30 = vld [vmem:[#allocation2 + $0x8a] sm:$0xff] }
 0x3d9   :  { %2417 = vmatprep.subr.mxu0 %v11904_v0  ;;  %2503 = vmatprep.subr.mxu1 %v11904_v0 }
 0x3da   :  { %9766 = vmatpush2.msk.msra.mxu0 %vm2355_vm7, %v2338_v45  ;;  %2504 = vmatpush1.msra.mxu1 %v2454_v49  ;;  %v2796_v45 = vld [vmem:[#allocation2 + $0x82] sm:$0xff]  ;;  %v9801_v49 = vld [vmem:[%s15933_s7 + $0x58] sm:$0xff] }
 0x3db   :  { %2419 = vmatprep.subr.mxu0 %v11904_v0  ;;  %2505 = vmatprep.subr.mxu1 %v11904_v0 }
 0x3dc   :  { %2420 = vmatpush2.msra.mxu0 %v2337_v52  ;;  %2506 = vmatpush1.msra.mxu1 %v2453_v48  ;;  %v9800_v52 = vld [vmem:[%s15933_s7 + $0x50] sm:$0xff]  ;;  %v9799_v48 = vld [vmem:[%s15933_s7 + $0x48] sm:$0xff] }
 0x3dd   :  { %2421 = vmatprep.subr.mxu0 %v11904_v0  ;;  %2533 = vmatprep.subr.mxu1 %v11904_v0 }
 0x3de   :  { %2422 = vmatpush2.msra.mxu0 %v2336_v7  ;;  %9772 = vmatpush2.msk.msra.mxu1 %vm2355_vm7, %v2471_v56  ;;  %v9798_v7 = vld [vmem:[%s15933_s7 + $0x40] sm:$0xff] }
 0x3df   :  { %2535 = vmatprep.subr.mxu1 %v11904_v0  ;;  %2424 = vmatmul.mubr.f32.vlgmr.msra.gmra.mxu0 %v13343_v34 }
 0x3e0   :  { %2536 = vmatpush2.msra.mxu1 %v2470_v51  ;;  %9768 = vmatprep.mubr.msk.f32.mxu0 %vm2339_vm4, %v13349_v57 }
 0x3e1   :  { %2537 = vmatprep.subr.mxu1 %v11904_v0  ;;  %11108 = vmatprep.subr.mxu0 %v11904_v0 }
 0x3e2   :  { %2538 = vmatpush2.msra.mxu1 %v2469_v41  ;;  %11109 = vmatpush3.msra.mxu0 %v9781_v16 }
 0x3e3   :  { %2540 = vmatmul.mubr.f32.vlgmr.msra.gmra.mxu1 %v13343_v34  ;;  %2429 = vmatmul.mubr.f32.gmra.mxu0 %v13359_v53 }
 0x3e4   :  { %9774 = vmatprep.mubr.msk.f32.mxu1 %vm2339_vm4, %v13349_v57  ;;  %9769 = vmatprep.mubr.msk.f32.mxu0 %vm2339_vm4, %v13362_v62 }
 0x3e5   :  { %11110 = vmatprep.subr.mxu0 %v11904_v0  ;;  %11131 = vmatprep.subr.mxu1 %v11904_v0 }
 0x3e6   :  { %11111 = vmatpush3.msra.mxu0 %v9780_v5  ;;  %11132 = vmatpush3.msra.mxu1 %v2452_v6 }
 0x3e7   :  { %2545 = vmatmul.mubr.f32.gmra.mxu1 %v13359_v53  ;;  %2434 = vmatmul.mubr.f32.gmra.mxu0 %v13374_v63 }
 0x3e8   :  { %9775 = vmatprep.mubr.msk.f32.mxu1 %vm2339_vm4, %v13362_v62  ;;  %9770 = vmatprep.mubr.msk.f32.mxu0 %vm2339_vm4, %v13377_v28 }
 0x3e9   :  { %11112 = vmatprep.subr.mxu0 %v11904_v0  ;;  %11133 = vmatprep.subr.mxu1 %v11904_v0 }
 0x3ea   :  { %11113 = vmatpush3.msra.mxu0 %v9779_v59  ;;  %11134 = vmatpush3.msra.mxu1 %v2451_v50 }
 0x3eb   :  { %2550 = vmatmul.mubr.f32.gmra.mxu1 %v13374_v63  ;;  %2439 = vmatmul.mubr.f32.gmra.mxu0 %v13388_v1 }
 0x3ec   :  { %9776 = vmatprep.mubr.msk.f32.mxu1 %vm2339_vm4, %v13377_v28  ;;  %9771 = vmatprep.mubr.msk.f32.mxu0 %vm2339_vm4, %v13391_v2 }
 0x3ed   :  { %11114 = vmatprep.subr.mxu0 %v11904_v0  ;;  %11135 = vmatprep.subr.mxu1 %v11904_v0 }
 0x3ee   :  { %11115 = vmatpush3.msra.mxu0 %v9778_v3  ;;  %11136 = vmatpush3.msra.mxu1 %v2450_v15 }
 0x3ef   :  { %2555 = vmatmul.mubr.f32.gmra.mxu1 %v13388_v1  ;;  %2444 = vmatmul.mubr.f32.gmra.mxu0 %v13402_v13 }
 0x3f0   :  { %9777 = vmatprep.mubr.msk.f32.mxu1 %vm2339_vm4, %v13391_v2  ;;  %11116 = vmatprep.mubr.msk.f32.mxu0 %vm11905_vm2, %v11904_v0 }
 0x3f1   :  { %2802 = vmatprep.subr.mxu0 %v11904_v0  ;;  %11137 = vmatprep.subr.mxu1 %v11904_v0 }
 0x3f2   :  { %11138 = vmatpush3.msra.mxu1 %v2449_v8 }
 0x3f3   :  { %2560 = vmatmul.mubr.f32.gmra.mxu1 %v13402_v13  ;;  %11154 = vmatprep.subr.mxu1 %v11904_v0 }
 0x3f4   :  { %11139 = vmatprep.mubr.msk.f32.mxu1 %vm11905_vm2, %v11904_v0 }
 0x49f   :  { %v2425_v9 = vpop.f32.mrf.mxu0 }
 0x4a0   :  { %11140 = vmatmul.mubr.msk.f32.vlgmr.msra.gmra.mxu1 %vm2293_vm5, %v2425_v9 }
 0x4a1   :  { %v2427_v10 = vpop.f32.mrf.mxu0  ;;  %11142 = vmatprep.mubr.msk.f32.mxu1 %vm11905_vm2, %v11904_v0  ;;  %11155 = vmatpush3.msra.mxu1 %v9801_v49  ;;  %v3008_v49 = vld [vmem:[#allocation2 + $0xb] sm:$0xff] }
 0x4a2   :  { %11156 = vmatprep.subr.mxu1 %v11904_v0 }
 0x4a3   :  { %v2541_v60 = vpop.f32.mrf.mxu1  ;;  %v2430_v12 = vpop.f32.mrf.mxu0  ;;  %11157 = vmatpush3.msra.mxu1 %v9800_v52  ;;  %v3007_v52 = vld [vmem:[#allocation2 + $0x3] sm:$0xff] }
 0x4a4   :  { %11117 = vmatmul.mubr.msk.f32.vlgmr.msra.gmra.mxu0 %vm2293_vm5, %v2541_v60  ;;  %11143 = vmatmul.mubr.msk.f32.gmra.mxu1 %vm2293_vm5, %v2430_v12 }
 0x4a5   :  { %2803 = vmatpush1.msra.mxu0 %v2795_v22  ;;  %v2543_v24 = vpop.f32.mrf.mxu1  ;;  %11119 = vmatprep.mubr.msk.f32.mxu0 %vm11905_vm2, %v11904_v0  ;;  %v2432_v14 = vpop.f32.mrf.mxu0 }
 0x4a6   :  { %2804 = vmatprep.subr.mxu0 %v11904_v0  ;;  %11145 = vmatprep.mubr.msk.f32.mxu1 %vm11905_vm2, %v11904_v0 }
 0x4a7   :  { %2805 = vmatpush1.msra.mxu0 %v2794_v17  ;;  %v2546_v4 = vpop.f32.mrf.mxu1  ;;  %v2435_v19 = vpop.f32.mrf.mxu0  ;;  %11158 = vmatprep.subr.mxu1 %v11904_v0 }
 0x4a8   :  { %2806 = vmatprep.subr.mxu0 %v11904_v0  ;;  %11120 = vmatmul.mubr.msk.f32.gmra.mxu0 %vm2293_vm5, %v2546_v4 }
 0x4a9   :  { %2807 = vmatpush1.msra.mxu0 %v2793_v20  ;;  %v2548_v35 = vpop.f32.mrf.mxu1  ;;  %11122 = vmatprep.mubr.msk.f32.mxu0 %vm11905_vm2, %v11904_v0  ;;  %v2437_v23 = vpop.f32.mrf.mxu0 }
 0x4aa   :  { %2808 = vmatprep.subr.mxu0 %v11904_v0  ;;  %11146 = vmatmul.mubr.msk.f32.gmra.mxu1 %vm2293_vm5, %v2435_v19 }
 0x4ab   :  { %2809 = vmatpush1.msra.mxu0 %v2792_v43  ;;  %v2551_v11 = vpop.f32.mrf.mxu1  ;;  %v2440_v25 = vpop.f32.mrf.mxu0  ;;  %11148 = vmatprep.mubr.msk.f32.mxu1 %vm11905_vm2, %v11904_v0 }
 0x4ac   :  { %2810 = vmatprep.subr.mxu0 %v11904_v0  ;;  %11123 = vmatmul.mubr.msk.f32.gmra.mxu0 %vm2293_vm5, %v2551_v11 }
 0x4ad   :  { %2811 = vmatpush1.msra.mxu0 %v2791_v31  ;;  %v2553_v32 = vpop.f32.mrf.mxu1  ;;  %11125 = vmatprep.mubr.msk.f32.mxu0 %vm11905_vm2, %v11904_v0  ;;  %v2442_v38 = vpop.f32.mrf.mxu0 }
 0x4ae   :  { %2812 = vmatprep.subr.mxu0 %v11904_v0  ;;  %11149 = vmatmul.mubr.msk.f32.gmra.mxu1 %vm2293_vm5, %v2440_v25  ;;  %v3022_v25 = vld [vmem:[#allocation2 + $0x7b] sm:$0xff]  ;;  %v3021_v32 = vld [vmem:[#allocation2 + $0x73] sm:$0xff] }
 0x4af   :  { %2813 = vmatpush1.msra.mxu0 %v2790_v18  ;;  %v2556_v21 = vpop.f32.mrf.mxu1  ;;  %v2445_v36 = vpop.f32.mrf.mxu0  ;;  %11151 = vmatprep.mubr.msk.f32.mxu1 %vm11905_vm2, %v11904_v0  ;;  %v3020_v18 = vld [vmem:[#allocation2 + $0x6b] sm:$0xff] }
 0x4b0   :  { %2814 = vmatprep.subr.mxu0 %v11904_v0  ;;  %11126 = vmatmul.mubr.msk.f32.gmra.mxu0 %vm2293_vm5, %v2556_v21 }
 0x4b1   :  { %2815 = vmatpush1.msra.mxu0 %v2789_v29  ;;  %v2558_v39 = vpop.f32.mrf.mxu1  ;;  %11128 = vmatprep.mubr.msk.f32.mxu0 %vm11905_vm2, %v11904_v0  ;;  %v2447_v40 = vpop.f32.mrf.mxu0 }
 0x4b2   :  { %2816 = vmatprep.subr.mxu0 %v11904_v0  ;;  %11152 = vmatmul.mubr.msk.f32.gmra.mxu1 %vm2293_vm5, %v2445_v36  ;;  %v3019_v36 = vld [vmem:[#allocation2 + $0x63] sm:$0xff]  ;;  %v3018_v39 = vld [vmem:[#allocation2 + $0x5b] sm:$0xff] }
 0x4b3   :  { %2817 = vmatpush1.msra.mxu0 %v2788_v27  ;;  %v2561_v42 = vpop.f32.mrf.mxu1  ;;  %11162 = vmatprep.mubr.msk.f32.mxu1 %vm11905_vm2, %v11904_v0  ;;  %v3017_v27 = vld [vmem:[#allocation2 + $0x53] sm:$0xff] }
 0x4b4   :  { %2818 = vmatprep.subr.mxu0 %v11904_v0  ;;  %11129 = vmatmul.mubr.msk.f32.gmra.mxu0 %vm2293_vm5, %v2561_v42 }
 0x4b5   :  { %2819 = vmatpush1.msra.mxu0 %v2787_v44  ;;  %9793 = vmatprep.mubr.msk.f32.mxu0 %vm2339_vm4, %v13216_v55  ;;  %v2563_v33 = vpop.f32.mrf.mxu1  ;;  %v2782_v55 = vld [vmem:[#allocation2 + $0x12] sm:$0xff] }
 0x4b6   :  { %2820 = vmatprep.subr.mxu0 %v11904_v0  ;;  %11159 = vmatpush3.msra.mxu1 %v9799_v48  ;;  %v3016_v44 = vld [vmem:[#allocation2 + $0x4b] sm:$0xff]  ;;  %v3025_v48 = vld [vmem:[#allocation2 + $0x93] sm:$0x7f] }
 0x4b7   :  { %2821 = vmatpush1.msra.mxu0 %v2786_v47  ;;  %11160 = vmatprep.subr.mxu1 %v11904_v0  ;;  %v3015_v47 = vld [vmem:[#allocation2 + $0x43] sm:$0xff] }
 0x4b8   :  { %2822 = vmatprep.subr.mxu0 %v11904_v0  ;;  %11161 = vmatpush3.msra.mxu1 %v9798_v7  ;;  %v3024_v7 = vld [vmem:[#allocation2 + $0x8b] sm:$0xff] }
 0x4b9   :  { %2823 = vmatpush1.msra.mxu0 %v2785_v46  ;;  %3029 = vmatprep.subr.mxu1 %v11904_v0 }
 0x4ba   :  { %2824 = vmatprep.subr.mxu0 %v11904_v0 }
 0x4bb   :  { %2825 = vmatpush1.msra.mxu0 %v2784_v37  ;;  %v3014_v37 = vld [vmem:[#allocation2 + $0x3b] sm:$0xff] }
 0x4bc   :  { %2826 = vmatprep.subr.mxu0 %v11904_v0 }
 0x4bd   :  { %2827 = vmatpush1.msra.mxu0 %v2783_v58  ;;  %v13542_v58 = vld [vmem:[#allocation8 + $0x8] sm:$0xff] }
 0x4be   :  { %2828 = vmatprep.subr.mxu0 %v11904_v0 }
 0x4bf   :  { %2829 = vmatpush1.msra.mxu0 %v2782_v55 }
 0x4c0   :  { %2830 = vmatprep.subr.mxu0 %v11904_v0 }
 0x4c1   :  { %2831 = vmatpush1.msra.mxu0 %v2781_v26  ;;  %v3013_v26 = vld [vmem:[#allocation2 + $0x33] sm:$0xff] }
 0x4c2   :  { %2832 = vmatprep.subr.mxu0 %v11904_v0 }
 0x4c3   :  { %2833 = vmatpush1.msra.mxu0 %v2780_v61  ;;  %v3012_v61 = vld [vmem:[#allocation2 + $0x2b] sm:$0xff] }
 0x4c4   :  { %2860 = vmatprep.subr.mxu0 %v11904_v0 }
 0x4c5   :  { %9792 = vmatpush2.msk.msra.mxu0 %vm2355_vm7, %v2798_v54  ;;  %v3011_v54 = vld [vmem:[#allocation2 + $0x23] sm:$0xff] }
 0x4c6   :  { %2862 = vmatprep.subr.mxu0 %v11904_v0 }
 0x4c7   :  { %2863 = vmatpush2.msra.mxu0 %v2797_v30  ;;  %v3010_v30 = vld [vmem:[#allocation2 + $0x1b] sm:$0xff] }
 0x4c8   :  { %2864 = vmatprep.subr.mxu0 %v11904_v0 }
 0x4c9   :  { %2865 = vmatpush2.msra.mxu0 %v2796_v45  ;;  %v3009_v45 = vld [vmem:[#allocation2 + $0x13] sm:$0xff] }
 0x4ca   :  { %2867 = vmatmul.mubr.f32.vlgmr.msra.gmra.mxu0 %v13343_v34  ;;  %11177 = vmatprep.subr.mxu0 %v11904_v0 }
 0x4cb   :  { %9794 = vmatprep.mubr.msk.f32.mxu0 %vm2339_vm4, %v13349_v57 }
 0x4ce   :  { %2872 = vmatmul.mubr.f32.gmra.mxu0 %v13359_v53 }
 0x4cf   :  { %9795 = vmatprep.mubr.msk.f32.mxu0 %vm2339_vm4, %v13362_v62 }
 0x4d2   :  { %2877 = vmatmul.mubr.f32.gmra.mxu0 %v13374_v63 }
 0x4d3   :  { %9796 = vmatprep.mubr.msk.f32.mxu0 %vm2339_vm4, %v13377_v28 }
 0x4d6   :  { %2882 = vmatmul.mubr.f32.gmra.mxu0 %v13388_v1 }
 0x4d7   :  { %9797 = vmatprep.mubr.msk.f32.mxu0 %vm2339_vm4, %v13391_v2 }
 0x4da   :  { %2887 = vmatmul.mubr.f32.gmra.mxu0 %v13402_v13 }
 0x4db   :  { %11185 = vmatprep.mubr.msk.f32.mxu0 %vm11905_vm2, %v11904_v0 }
 0x560   :  { %v2756_v56 = vpop.f32.mrf.mxu1 }
 0x562   :  { %v11141_v51 = vpop.f32.mrf.mxu1 }
 0x563   :  { %v9816_v51 = vld [vmem:[%s15933_s7 + $0x78] sm:$0xff] }
 0x564   :  { %v2651_v16 = vpop.f32.mrf.mxu0  ;;  %v2761_v41 = vpop.f32.mrf.mxu1  ;;  %11178 = vmatpush3.msra.mxu0 %v9816_v51 }
 0x565   :  { %v13511_v5 = vadd.f32 %v2756_v56, %v2651_v16  ;;  %v3023_v56 = vld [vmem:[#allocation2 + $0x83] sm:$0xff]  ;;  %v9815_v16 = vld [vmem:[%s15933_s7 + $0x70] sm:$0xff]  ;;  %11179 = vmatprep.subr.mxu0 %v11904_v0 }
 0x566   :  { %v11118_v59 = vpop.f32.mrf.mxu0  ;;  %v11144_v3 = vpop.f32.mrf.mxu1  ;;  %11180 = vmatpush3.msra.mxu0 %v9815_v16 }
 0x567   :  { %11181 = vmatprep.subr.mxu0 %v11904_v0  ;;  %v9813_v59 = vld [vmem:[%s15933_s7 + $0x60] sm:$0xff] }
 0x568   :  { %v2656_v6 = vpop.f32.mrf.mxu0 }
 0x569   :  { %v13513_v50 = vadd.f32 %v2761_v41, %v2656_v6  ;;  %v9814_v41 = vld [vmem:[%s15933_s7 + $0x68] sm:$0xff] }
 0x56a   :  { %v11121_v15 = vpop.f32.mrf.mxu0  ;;  %v2766_v8 = vpop.f32.mrf.mxu1  ;;  %11182 = vmatpush3.msra.mxu0 %v9814_v41 }
 0x56b   :  { %11183 = vmatprep.subr.mxu0 %v11904_v0 }
 0x56c   :  { %v2661_v9 = vpop.f32.mrf.mxu0  ;;  %v11147_v10 = vpop.f32.mrf.mxu1  ;;  %11184 = vmatpush3.msra.mxu0 %v9813_v59 }
 0x56d   :  { %v13515_v60 = vadd.f32 %v2766_v8, %v2661_v9  ;;  %3256 = vmatprep.subr.mxu0 %v11904_v0 }
 0x56e   :  { %v11124_v12 = vpop.f32.mrf.mxu0  ;;  %v2771_v22 = vpop.f32.mrf.mxu1 }
 0x570   :  { %v2666_v24 = vpop.f32.mrf.mxu0  ;;  %v11150_v14 = vpop.f32.mrf.mxu1 }
 0x571   :  { %v13517_v17 = vadd.f32 %v2771_v22, %v2666_v24 }
 0x572   :  { %v11127_v4 = vpop.f32.mrf.mxu0  ;;  %v2776_v19 = vpop.f32.mrf.mxu1 }
 0x574   :  { %v2671_v20 = vpop.f32.mrf.mxu0  ;;  %v11153_v35 = vpop.f32.mrf.mxu1 }
 0x575   :  { %v13519_v23 = vadd.f32 %v2776_v19, %v2671_v20 }
 0x576   :  { %v11130_v43 = vpop.f32.mrf.mxu0 }
 0x58a   :  { %v2868_v11 = vpop.f32.mrf.mxu0 }
 0x58b   :  { %11163 = vmatmul.mubr.msk.f32.vlgmr.msra.gmra.mxu1 %vm2293_vm5, %v2868_v11 }
 0x58c   :  { %3030 = vmatpush1.msra.mxu1 %v3022_v25  ;;  %v2870_v31 = vpop.f32.mrf.mxu0  ;;  %11165 = vmatprep.mubr.msk.f32.mxu1 %vm11905_vm2, %v11904_v0 }
 0x58d   :  { %3031 = vmatprep.subr.mxu1 %v11904_v0  ;;  %v3246_v31 = vld [vmem:[#allocation2 + $0x6e] sm:$0xff] }
 0x58e   :  { %3032 = vmatpush1.msra.mxu1 %v3021_v32  ;;  %v2873_v38 = vpop.f32.mrf.mxu0 }
 0x58f   :  { %3033 = vmatprep.subr.mxu1 %v11904_v0  ;;  %11166 = vmatmul.mubr.msk.f32.gmra.mxu1 %vm2293_vm5, %v2873_v38  ;;  %v3245_v38 = vld [vmem:[#allocation2 + $0x66] sm:$0xff] }
 0x590   :  { %3034 = vmatpush1.msra.mxu1 %v3020_v18  ;;  %v2875_v21 = vpop.f32.mrf.mxu0  ;;  %11168 = vmatprep.mubr.msk.f32.mxu1 %vm11905_vm2, %v11904_v0 }
 0x591   :  { %3035 = vmatprep.subr.mxu1 %v11904_v0  ;;  %v3244_v21 = vld [vmem:[#allocation2 + $0x5e] sm:$0xff] }
 0x592   :  { %3036 = vmatpush1.msra.mxu1 %v3019_v36  ;;  %v2878_v29 = vpop.f32.mrf.mxu0 }
 0x593   :  { %3037 = vmatprep.subr.mxu1 %v11904_v0  ;;  %11169 = vmatmul.mubr.msk.f32.gmra.mxu1 %vm2293_vm5, %v2878_v29  ;;  %v3243_v29 = vld [vmem:[#allocation2 + $0x56] sm:$0xff] }
 0x594   :  { %3038 = vmatpush1.msra.mxu1 %v3018_v39  ;;  %v2880_v40 = vpop.f32.mrf.mxu0  ;;  %11171 = vmatprep.mubr.msk.f32.mxu1 %vm11905_vm2, %v11904_v0 }
 0x595   :  { %3039 = vmatprep.subr.mxu1 %v11904_v0  ;;  %v3242_v40 = vld [vmem:[#allocation2 + $0x4e] sm:$0xff] }
 0x596   :  { %3040 = vmatpush1.msra.mxu1 %v3017_v27  ;;  %v2883_v42 = vpop.f32.mrf.mxu0 }
 0x597   :  { %3041 = vmatprep.subr.mxu1 %v11904_v0  ;;  %11172 = vmatmul.mubr.msk.f32.gmra.mxu1 %vm2293_vm5, %v2883_v42  ;;  %v3241_v42 = vld [vmem:[#allocation2 + $0x46] sm:$0xff] }
 0x598   :  { %3042 = vmatpush1.msra.mxu1 %v3016_v44  ;;  %v2885_v33 = vpop.f32.mrf.mxu0  ;;  %11174 = vmatprep.mubr.msk.f32.mxu1 %vm11905_vm2, %v11904_v0 }
 0x599   :  { %3043 = vmatprep.subr.mxu1 %v11904_v0  ;;  %v3240_v33 = vld [vmem:[#allocation2 + $0x3e] sm:$0xff] }
 0x59a   :  { %3044 = vmatpush1.msra.mxu1 %v3015_v47  ;;  %v2888_v46 = vpop.f32.mrf.mxu0  ;;  %v3239_v47 = vld [vmem:[#allocation2 + $0x36] sm:$0xff] }
 0x59b   :  { %3045 = vmatprep.subr.mxu1 %v11904_v0  ;;  %11175 = vmatmul.mubr.msk.f32.gmra.mxu1 %vm2293_vm5, %v2888_v46  ;;  %v3238_v46 = vld [vmem:[#allocation2 + $0x2e] sm:$0xff] }
 0x59c   :  { %3046 = vmatpush1.msra.mxu1 %v3014_v37  ;;  %9808 = vmatprep.mubr.msk.f32.mxu1 %vm2339_vm4, %v13542_v58  ;;  %v2890_v55 = vpop.f32.mrf.mxu0  ;;  %v3237_v37 = vld [vmem:[#allocation2 + $0x26] sm:$0xff] }
 0x59d   :  { %3047 = vmatprep.subr.mxu1 %v11904_v0  ;;  %v3236_v55 = vld [vmem:[#allocation2 + $0x1e] sm:$0xff] }
 0x59e   :  { %3048 = vmatpush1.msra.mxu1 %v3013_v26  ;;  %v3235_v26 = vld [vmem:[#allocation2 + $0x16] sm:$0xff] }
 0x59f   :  { %3049 = vmatprep.subr.mxu1 %v11904_v0 }
 0x5a0   :  { %3050 = vmatpush1.msra.mxu1 %v3012_v61  ;;  %v3234_v61 = vld [vmem:[#allocation2 + $0xe] sm:$0xff] }
 0x5a1   :  { %3051 = vmatprep.subr.mxu1 %v11904_v0 }
 0x5a2   :  { %3052 = vmatpush1.msra.mxu1 %v3011_v54  ;;  %v3252_v54 = vld [vmem:[#allocation2 + $0x9e] sm:$0x7f] }
 0x5a3   :  { %3053 = vmatprep.subr.mxu1 %v11904_v0 }
 0x5a4   :  { %3054 = vmatpush1.msra.mxu1 %v3010_v30  ;;  %v3251_v30 = vld [vmem:[#allocation2 + $0x96] sm:$0xff] }
 0x5a5   :  { %3055 = vmatprep.subr.mxu1 %v11904_v0 }
 0x5a6   :  { %3056 = vmatpush1.msra.mxu1 %v3009_v45  ;;  %v3250_v45 = vld [vmem:[#allocation2 + $0x8e] sm:$0xff] }
 0x5a7   :  { %3057 = vmatprep.subr.mxu1 %v11904_v0 }
 0x5a8   :  { %3058 = vmatpush1.msra.mxu1 %v3008_v49  ;;  %v9830_v49 = vld [vmem:[%s15933_s7 + $0x90] sm:$0xff] }
 0x5a9   :  { %3059 = vmatprep.subr.mxu1 %v11904_v0 }
 0x5aa   :  { %3060 = vmatpush1.msra.mxu1 %v3007_v52  ;;  %v9829_v52 = vld [vmem:[%s15933_s7 + $0x88] sm:$0xff] }
 0x5ab   :  { %3087 = vmatprep.subr.mxu1 %v11904_v0 }
 0x5ac   :  { %9807 = vmatpush2.msk.msra.mxu1 %vm2355_vm7, %v3025_v48  ;;  %v9828_v48 = vld [vmem:[%s15933_s7 + $0x80] sm:$0xff] }
 0x5ad   :  { %3089 = vmatprep.subr.mxu1 %v11904_v0 }
 0x5ae   :  { %3090 = vmatpush2.msra.mxu1 %v3024_v7 }
 0x5af   :  { %3091 = vmatprep.subr.mxu1 %v11904_v0 }
 0x5b0   :  { %3092 = vmatpush2.msra.mxu1 %v3023_v56 }
 0x5b1   :  { %3094 = vmatmul.mubr.f32.vlgmr.msra.gmra.mxu1 %v13343_v34  ;;  %11200 = vmatprep.subr.mxu1 %v11904_v0 }
 0x5b2   :  { %9809 = vmatprep.mubr.msk.f32.mxu1 %vm2339_vm4, %v13349_v57 }
 0x5b5   :  { %3099 = vmatmul.mubr.f32.gmra.mxu1 %v13359_v53 }
 0x5b6   :  { %9810 = vmatprep.mubr.msk.f32.mxu1 %vm2339_vm4, %v13362_v62 }
 0x5b9   :  { %3104 = vmatmul.mubr.f32.gmra.mxu1 %v13374_v63 }
 0x5ba   :  { %9811 = vmatprep.mubr.msk.f32.mxu1 %vm2339_vm4, %v13377_v28 }
 0x5bd   :  { %3109 = vmatmul.mubr.f32.gmra.mxu1 %v13388_v1 }
 0x5be   :  { %9812 = vmatprep.mubr.msk.f32.mxu1 %vm2339_vm4, %v13391_v2 }
 0x5c1   :  { %3114 = vmatmul.mubr.f32.gmra.mxu1 %v13402_v13 }
 0x5c2   :  { %11208 = vmatprep.mubr.msk.f32.mxu1 %vm11905_vm2, %v11904_v0 }
 0x64b   :  { %v2978_v3 = vpop.f32.mrf.mxu1 }
 0x64c   :  { %v13590_v6 = vadd.f32 %v2978_v3, %v13511_v5 }
 0x64d   :  { %v11164_v15 = vpop.f32.mrf.mxu1 }
 0x64f   :  { %v2983_v8 = vpop.f32.mrf.mxu1 }
 0x650   :  { %v13593_v9 = vadd.f32 %v2983_v8, %v13513_v50  ;;  %v3249_v50 = vld [vmem:[#allocation2 + $0x86] sm:$0xff] }
 0x651   :  { %v11167_v10 = vpop.f32.mrf.mxu1 }
 0x653   :  { %v2988_v12 = vpop.f32.mrf.mxu1 }
 0x654   :  { %v13596_v22 = vadd.f32 %v2988_v12, %v13515_v60  ;;  %v3248_v60 = vld [vmem:[#allocation2 + $0x7e] sm:$0xff] }
 0x655   :  { %v11170_v24 = vpop.f32.mrf.mxu1 }
 0x657   :  { %v2993_v14 = vpop.f32.mrf.mxu1 }
 0x658   :  { %v13599_v4 = vadd.f32 %v2993_v14, %v13517_v17 }
 0x659   :  { %v11173_v19 = vpop.f32.mrf.mxu1 }
 0x65b   :  { %v2998_v20 = vpop.f32.mrf.mxu1 }
 0x65c   :  { %v13602_v5 = vadd.f32 %v2998_v20, %v13519_v23  ;;  %v3247_v23 = vld [vmem:[#allocation2 + $0x76] sm:$0xff] }
 0x65d   :  { %v11176_v35 = vpop.f32.mrf.mxu1 }
 0x671   :  { %v3095_v43 = vpop.f32.mrf.mxu1 }
 0x672   :  { %11186 = vmatmul.mubr.msk.f32.vlgmr.msra.gmra.mxu0 %vm2293_vm5, %v3095_v43 }
 0x673   :  { %3257 = vmatpush1.msra.mxu0 %v3249_v50  ;;  %v3097_v11 = vpop.f32.mrf.mxu1  ;;  %11188 = vmatprep.mubr.msk.f32.mxu0 %vm11905_vm2, %v11904_v0  ;;  %v3473_v50 = vld [vmem:[#allocation2 + $0x6f] sm:$0xff] }
 0x674   :  { %3258 = vmatprep.subr.mxu0 %v11904_v0 }
 0x675   :  { %3259 = vmatpush1.msra.mxu0 %v3248_v60  ;;  %v3100_v17 = vpop.f32.mrf.mxu1  ;;  %v3472_v60 = vld [vmem:[#allocation2 + $0x67] sm:$0xff] }
 0x676   :  { %3260 = vmatprep.subr.mxu0 %v11904_v0  ;;  %11189 = vmatmul.mubr.msk.f32.gmra.mxu0 %vm2293_vm5, %v3100_v17 }
 0x677   :  { %3261 = vmatpush1.msra.mxu0 %v3247_v23  ;;  %v3102_v25 = vpop.f32.mrf.mxu1  ;;  %11191 = vmatprep.mubr.msk.f32.mxu0 %vm11905_vm2, %v11904_v0  ;;  %v3471_v23 = vld [vmem:[#allocation2 + $0x5f] sm:$0xff] }
 0x678   :  { %3262 = vmatprep.subr.mxu0 %v11904_v0 }
 0x679   :  { %3263 = vmatpush1.msra.mxu0 %v3246_v31  ;;  %v3105_v32 = vpop.f32.mrf.mxu1  ;;  %v3470_v31 = vld [vmem:[#allocation2 + $0x57] sm:$0xff] }
 0x67a   :  { %3264 = vmatprep.subr.mxu0 %v11904_v0  ;;  %11192 = vmatmul.mubr.msk.f32.gmra.mxu0 %vm2293_vm5, %v3105_v32 }
 0x67b   :  { %3265 = vmatpush1.msra.mxu0 %v3245_v38  ;;  %v3107_v18 = vpop.f32.mrf.mxu1  ;;  %11194 = vmatprep.mubr.msk.f32.mxu0 %vm11905_vm2, %v11904_v0  ;;  %v3469_v38 = vld [vmem:[#allocation2 + $0x4f] sm:$0xff] }
 0x67c   :  { %3266 = vmatprep.subr.mxu0 %v11904_v0 }
 0x67d   :  { %3267 = vmatpush1.msra.mxu0 %v3244_v21  ;;  %v3110_v36 = vpop.f32.mrf.mxu1  ;;  %v3468_v21 = vld [vmem:[#allocation2 + $0x47] sm:$0xff] }
 0x67e   :  { %3268 = vmatprep.subr.mxu0 %v11904_v0  ;;  %11195 = vmatmul.mubr.msk.f32.gmra.mxu0 %vm2293_vm5, %v3110_v36 }
 0x67f   :  { %3269 = vmatpush1.msra.mxu0 %v3243_v29  ;;  %v3112_v39 = vpop.f32.mrf.mxu1  ;;  %11197 = vmatprep.mubr.msk.f32.mxu0 %vm11905_vm2, %v11904_v0  ;;  %v3467_v29 = vld [vmem:[#allocation2 + $0x3f] sm:$0xff] }
 0x680   :  { %3270 = vmatprep.subr.mxu0 %v11904_v0  ;;  %v3466_v39 = vld [vmem:[#allocation2 + $0x37] sm:$0xff] }
 0x681   :  { %3271 = vmatpush1.msra.mxu0 %v3242_v40  ;;  %v3115_v27 = vpop.f32.mrf.mxu1  ;;  %v3465_v40 = vld [vmem:[#allocation2 + $0x2f] sm:$0xff] }
 0x682   :  { %3272 = vmatprep.subr.mxu0 %v11904_v0  ;;  %11198 = vmatmul.mubr.msk.f32.gmra.mxu0 %vm2293_vm5, %v3115_v27  ;;  %v3464_v27 = vld [vmem:[#allocation2 + $0x27] sm:$0xff] }
 0x683   :  { %3273 = vmatpush1.msra.mxu0 %v3241_v42  ;;  %9823 = vmatprep.mubr.msk.f32.mxu0 %vm2339_vm4, %v13542_v58  ;;  %v3117_v44 = vpop.f32.mrf.mxu1  ;;  %v3463_v42 = vld [vmem:[#allocation2 + $0x1f] sm:$0xff] }
 0x684   :  { %3274 = vmatprep.subr.mxu0 %v11904_v0  ;;  %v3462_v44 = vld [vmem:[#allocation2 + $0x17] sm:$0xff] }
 0x685   :  { %3275 = vmatpush1.msra.mxu0 %v3240_v33  ;;  %v3461_v33 = vld [vmem:[#allocation2 + $0xf] sm:$0xff] }
 0x686   :  { %3276 = vmatprep.subr.mxu0 %v11904_v0 }
 0x687   :  { %3277 = vmatpush1.msra.mxu0 %v3239_v47  ;;  %v3479_v47 = vld [vmem:[#allocation2 + $0x9f] sm:$0x7f] }
 0x688   :  { %3278 = vmatprep.subr.mxu0 %v11904_v0 }
 0x689   :  { %3279 = vmatpush1.msra.mxu0 %v3238_v46  ;;  %v3478_v46 = vld [vmem:[#allocation2 + $0x97] sm:$0xff] }
 0x68a   :  { %3280 = vmatprep.subr.mxu0 %v11904_v0 }
 0x68b   :  { %3281 = vmatpush1.msra.mxu0 %v3237_v37  ;;  %v3477_v37 = vld [vmem:[#allocation2 + $0x8f] sm:$0xff] }
 0x68c   :  { %3282 = vmatprep.subr.mxu0 %v11904_v0 }
 0x68d   :  { %3283 = vmatpush1.msra.mxu0 %v3236_v55  ;;  %v13719_v55 = vld [vmem:[#allocation8] sm:$0xff] }
 0x68e   :  { %3284 = vmatprep.subr.mxu0 %v11904_v0 }
 0x68f   :  { %3285 = vmatpush1.msra.mxu0 %v3235_v26 }
 0x690   :  { %3286 = vmatprep.subr.mxu0 %v11904_v0 }
 0x691   :  { %3287 = vmatpush1.msra.mxu0 %v3234_v61 }
 0x692   :  { %3314 = vmatprep.subr.mxu0 %v11904_v0 }
 0x693   :  { %9822 = vmatpush2.msk.msra.mxu0 %vm2355_vm7, %v3252_v54 }
 0x694   :  { %3316 = vmatprep.subr.mxu0 %v11904_v0 }
 0x695   :  { %3317 = vmatpush2.msra.mxu0 %v3251_v30 }
 0x696   :  { %3318 = vmatprep.subr.mxu0 %v11904_v0 }
 0x697   :  { %3319 = vmatpush2.msra.mxu0 %v3250_v45 }
 0x698   :  { %3321 = vmatmul.mubr.f32.vlgmr.msra.gmra.mxu0 %v13343_v34  ;;  %11223 = vmatprep.subr.mxu0 %v11904_v0  ;;  %v9831_v34 = vld [vmem:[%s15933_s7 + $0x98] sm:$0xff] }
 0x699   :  { %9824 = vmatprep.mubr.msk.f32.mxu0 %vm2339_vm4, %v13349_v57  ;;  %11201 = vmatpush3.msra.mxu1 %v9831_v34 }
 0x69a   :  { %11202 = vmatprep.subr.mxu1 %v11904_v0 }
 0x69b   :  { %11203 = vmatpush3.msra.mxu1 %v9830_v49 }
 0x69c   :  { %3326 = vmatmul.mubr.f32.gmra.mxu0 %v13359_v53  ;;  %11204 = vmatprep.subr.mxu1 %v11904_v0 }
 0x69d   :  { %9825 = vmatprep.mubr.msk.f32.mxu0 %vm2339_vm4, %v13362_v62  ;;  %11205 = vmatpush3.msra.mxu1 %v9829_v52 }
 0x69e   :  { %11206 = vmatprep.subr.mxu1 %v11904_v0 }
 0x69f   :  { %11207 = vmatpush3.msra.mxu1 %v9828_v48 }
 0x6a0   :  { %3331 = vmatmul.mubr.f32.gmra.mxu0 %v13374_v63  ;;  %3483 = vmatprep.subr.mxu1 %v11904_v0 }
 0x6a1   :  { %9826 = vmatprep.mubr.msk.f32.mxu0 %vm2339_vm4, %v13377_v28 }
 0x6a4   :  { %3336 = vmatmul.mubr.f32.gmra.mxu0 %v13388_v1 }
 0x6a5   :  { %9827 = vmatprep.mubr.msk.f32.mxu0 %vm2339_vm4, %v13391_v2 }
 0x6a8   :  { %3341 = vmatmul.mubr.f32.gmra.mxu0 %v13402_v13 }
 0x6a9   :  { %11231 = vmatprep.mubr.msk.f32.mxu0 %vm11905_vm2, %v11904_v0 }
 0x732   :  { %v3205_v7 = vpop.f32.mrf.mxu0 }
 0x733   :  { %v13671_v56 = vadd.f32 %v3205_v7, %v13590_v6 }
 0x734   :  { %v11187_v51 = vpop.f32.mrf.mxu0 }
 0x736   :  { %v3210_v16 = vpop.f32.mrf.mxu0 }
 0x737   :  { %v13674_v41 = vadd.f32 %v3210_v16, %v13593_v9  ;;  %v3476_v9 = vld [vmem:[#allocation2 + $0x87] sm:$0xff] }
 0x738   :  { %v11190_v59 = vpop.f32.mrf.mxu0  ;;  %v3703_v16 = vld [vmem:[#allocation2 + $0x88] sm:$0xff] }
 0x739   :  { %v3702_v59 = vld [vmem:[#allocation2 + $0x80] sm:$0xff] }
 0x73a   :  { %v3215_v3 = vpop.f32.mrf.mxu0 }
 0x73b   :  { %v13677_v15 = vadd.f32 %v3215_v3, %v13596_v22  ;;  %v3475_v22 = vld [vmem:[#allocation2 + $0x7f] sm:$0xff] }
 0x73c   :  { %v11193_v8 = vpop.f32.mrf.mxu0 }
 0x73e   :  { %v3220_v10 = vpop.f32.mrf.mxu0 }
 0x73f   :  { %v13680_v12 = vadd.f32 %v3220_v10, %v13599_v4  ;;  %v3700_v10 = vld [vmem:[#allocation2 + $0x70] sm:$0xff] }
 0x740   :  { %v11196_v24 = vpop.f32.mrf.mxu0 }
 0x741   :  { %v3699_v24 = vld [vmem:[#allocation2 + $0x68] sm:$0xff] }
 0x742   :  { %v3225_v14 = vpop.f32.mrf.mxu0 }
 0x743   :  { %v13683_v6 = vadd.f32 %v3225_v14, %v13602_v5  ;;  %v3474_v5 = vld [vmem:[#allocation2 + $0x77] sm:$0xff] }
 0x744   :  { %v11199_v19 = vpop.f32.mrf.mxu0 }
 0x758   :  { %v3322_v20 = vpop.f32.mrf.mxu0 }
 0x759   :  { %11209 = vmatmul.mubr.msk.f32.vlgmr.msra.gmra.mxu1 %vm2293_vm5, %v3322_v20  ;;  %v3697_v20 = vld [vmem:[#allocation2 + $0x58] sm:$0xff] }
 0x75a   :  { %3484 = vmatpush1.msra.mxu1 %v3476_v9  ;;  %v3324_v35 = vpop.f32.mrf.mxu0  ;;  %11211 = vmatprep.mubr.msk.f32.mxu1 %vm11905_vm2, %v11904_v0 }
 0x75b   :  { %3485 = vmatprep.subr.mxu1 %v11904_v0  ;;  %v3696_v35 = vld [vmem:[#allocation2 + $0x50] sm:$0xff] }
 0x75c   :  { %3486 = vmatpush1.msra.mxu1 %v3475_v22  ;;  %v3327_v4 = vpop.f32.mrf.mxu0 }
 0x75d   :  { %3487 = vmatprep.subr.mxu1 %v11904_v0  ;;  %11212 = vmatmul.mubr.msk.f32.gmra.mxu1 %vm2293_vm5, %v3327_v4  ;;  %v3695_v4 = vld [vmem:[#allocation2 + $0x48] sm:$0xff] }
 0x75e   :  { %3488 = vmatpush1.msra.mxu1 %v3474_v5  ;;  %v3329_v43 = vpop.f32.mrf.mxu0  ;;  %11214 = vmatprep.mubr.msk.f32.mxu1 %vm11905_vm2, %v11904_v0 }
 0x75f   :  { %3489 = vmatprep.subr.mxu1 %v11904_v0  ;;  %v3694_v43 = vld [vmem:[#allocation2 + $0x40] sm:$0xff] }
 0x760   :  { %3490 = vmatpush1.msra.mxu1 %v3473_v50  ;;  %v3332_v11 = vpop.f32.mrf.mxu0  ;;  %v3693_v50 = vld [vmem:[#allocation2 + $0x38] sm:$0xff] }
 0x761   :  { %3491 = vmatprep.subr.mxu1 %v11904_v0  ;;  %11215 = vmatmul.mubr.msk.f32.gmra.mxu1 %vm2293_vm5, %v3332_v11  ;;  %v3692_v11 = vld [vmem:[#allocation2 + $0x30] sm:$0xff] }
 0x762   :  { %3492 = vmatpush1.msra.mxu1 %v3472_v60  ;;  %v3334_v17 = vpop.f32.mrf.mxu0  ;;  %11217 = vmatprep.mubr.msk.f32.mxu1 %vm11905_vm2, %v11904_v0  ;;  %v3691_v60 = vld [vmem:[#allocation2 + $0x28] sm:$0xff] }
 0x763   :  { %3493 = vmatprep.subr.mxu1 %v11904_v0  ;;  %v3690_v17 = vld [vmem:[#allocation2 + $0x20] sm:$0xff] }
 0x764   :  { %3494 = vmatpush1.msra.mxu1 %v3471_v23  ;;  %v3337_v25 = vpop.f32.mrf.mxu0  ;;  %v3689_v23 = vld [vmem:[#allocation2 + $0x18] sm:$0xff] }
 0x765   :  { %3495 = vmatprep.subr.mxu1 %v11904_v0  ;;  %11218 = vmatmul.mubr.msk.f32.gmra.mxu1 %vm2293_vm5, %v3337_v25  ;;  %v3688_v25 = vld [vmem:[#allocation2 + $0x10] sm:$0xff] }
 0x766   :  { %3496 = vmatpush1.msra.mxu1 %v3470_v31  ;;  %v3339_v32 = vpop.f32.mrf.mxu0  ;;  %11220 = vmatprep.mubr.msk.f32.mxu1 %vm11905_vm2, %v11904_v0  ;;  %v3706_v31 = vld [vmem:[#allocation2 + $0xa0] sm:$0x7f] }
 0x767   :  { %3497 = vmatprep.subr.mxu1 %v11904_v0  ;;  %v3705_v32 = vld [vmem:[#allocation2 + $0x98] sm:$0xff] }
 0x768   :  { %3498 = vmatpush1.msra.mxu1 %v3469_v38  ;;  %v3342_v18 = vpop.f32.mrf.mxu0  ;;  %v3704_v38 = vld [vmem:[#allocation2 + $0x90] sm:$0xff] }
 0x769   :  { %3499 = vmatprep.subr.mxu1 %v11904_v0  ;;  %11221 = vmatmul.mubr.msk.f32.gmra.mxu1 %vm2293_vm5, %v3342_v18  ;;  %v13804_v18 = vld [vmem:[#allocation8 + $0x18] sm:$0xff] }
 0x76a   :  { %3500 = vmatpush1.msra.mxu1 %v3468_v21  ;;  %9838 = vmatprep.mubr.msk.f32.mxu1 %vm2339_vm4, %v13542_v58  ;;  %v3344_v36 = vpop.f32.mrf.mxu0  ;;  %v13808_v21 = vld [vmem:[#allocation8 + $0x10] sm:$0xff] }
 0x76b   :  { %3501 = vmatprep.subr.mxu1 %v11904_v0  ;;  %v13811_v36 = vld [vmem:[#allocation8 + $0x28] sm:$0xff] }
 0x76c   :  { %3502 = vmatpush1.msra.mxu1 %v3467_v29  ;;  %v13815_v29 = vld [vmem:[#allocation8 + $0x20] sm:$0xff] }
 0x76d   :  { %3503 = vmatprep.subr.mxu1 %v11904_v0 }
 0x76e   :  { %3504 = vmatpush1.msra.mxu1 %v3466_v39  ;;  %v13818_v39 = vld [vmem:[#allocation8 + $0x38] sm:$0xff] }
 0x76f   :  { %3505 = vmatprep.subr.mxu1 %v11904_v0 }
 0x770   :  { %3506 = vmatpush1.msra.mxu1 %v3465_v40  ;;  %v13822_v40 = vld [vmem:[#allocation8 + $0x30] sm:$0xff] }
 0x771   :  { %3507 = vmatprep.subr.mxu1 %v11904_v0 }
 0x772   :  { %3508 = vmatpush1.msra.mxu1 %v3464_v27  ;;  %v13825_v27 = vld [vmem:[#allocation8 + $0x48] sm:$0xf] }
 0x773   :  { %3509 = vmatprep.subr.mxu1 %v11904_v0 }
 0x774   :  { %3510 = vmatpush1.msra.mxu1 %v3463_v42  ;;  %v13829_v42 = vld [vmem:[#allocation8 + $0x40] sm:$0xf] }
 0x775   :  { %3511 = vmatprep.subr.mxu1 %v11904_v0 }
 0x776   :  { %3512 = vmatpush1.msra.mxu1 %v3462_v44  ;;  %v9861_v44 = vld [vmem:[%s15933_s7 + $0xd8] sm:$0xff] }
 0x777   :  { %3513 = vmatprep.subr.mxu1 %v11904_v0 }
 0x778   :  { %3514 = vmatpush1.msra.mxu1 %v3461_v33  ;;  %v9860_v33 = vld [vmem:[%s15933_s7 + $0xd0] sm:$0xff] }
 0x779   :  { %3541 = vmatprep.subr.mxu1 %v11904_v0 }
 0x77a   :  { %9837 = vmatpush2.msk.msra.mxu1 %vm2355_vm7, %v3479_v47  ;;  %v9859_v47 = vld [vmem:[%s15933_s7 + $0xc8] sm:$0xff] }
 0x77b   :  { %3543 = vmatprep.subr.mxu1 %v11904_v0 }
 0x77c   :  { %3544 = vmatpush2.msra.mxu1 %v3478_v46  ;;  %v9858_v46 = vld [vmem:[%s15933_s7 + $0xc0] sm:$0xff] }
 0x77d   :  { %3545 = vmatprep.subr.mxu1 %v11904_v0 }
 0x77e   :  { %3546 = vmatpush2.msra.mxu1 %v3477_v37 }
 0x77f   :  { %3548 = vmatmul.mubr.f32.vlgmr.msra.gmra.mxu1 %v13719_v55  ;;  %11246 = vmatprep.subr.mxu1 %v11904_v0 }
 0x780   :  { %9839 = vmatprep.mubr.msk.f32.mxu1 %vm2339_vm4, %v13349_v57  ;;  %v9846_v57 = vld [vmem:[%s15933_s7 + $0xb8] sm:$0xff]  ;;  %11247 = vmatpush3.msra.mxu1 %v9861_v44 }
 0x781   :  { %11224 = vmatpush3.msra.mxu0 %v9846_v57  ;;  %11248 = vmatprep.subr.mxu1 %v11904_v0 }
 0x782   :  { %11225 = vmatprep.subr.mxu0 %v11904_v0  ;;  %11249 = vmatpush3.msra.mxu1 %v9860_v33 }
 0x783   :  { %3553 = vmatmul.mubr.f32.gmra.mxu1 %v13359_v53  ;;  %v9845_v53 = vld [vmem:[%s15933_s7 + $0xb0] sm:$0xff]  ;;  %11250 = vmatprep.subr.mxu1 %v11904_v0 }
 0x784   :  { %9840 = vmatprep.mubr.msk.f32.mxu1 %vm2339_vm4, %v13362_v62  ;;  %v9844_v62 = vld [vmem:[%s15933_s7 + $0xa8] sm:$0xff]  ;;  %11226 = vmatpush3.msra.mxu0 %v9845_v53 }
 0x785   :  { %11227 = vmatprep.subr.mxu0 %v11904_v0  ;;  %11251 = vmatpush3.msra.mxu1 %v9859_v47 }
 0x786   :  { %11228 = vmatpush3.msra.mxu0 %v9844_v62  ;;  %11252 = vmatprep.subr.mxu1 %v11904_v0 }
 0x787   :  { %3558 = vmatmul.mubr.f32.gmra.mxu1 %v13374_v63  ;;  %v9843_v63 = vld [vmem:[%s15933_s7 + $0xa0] sm:$0xff]  ;;  %11229 = vmatprep.subr.mxu0 %v11904_v0 }
 0x788   :  { %9841 = vmatprep.mubr.msk.f32.mxu1 %vm2339_vm4, %v13377_v28  ;;  %11230 = vmatpush3.msra.mxu0 %v9843_v63 }
 0x789   :  { %3710 = vmatprep.subr.mxu0 %v11904_v0  ;;  %11253 = vmatpush3.msra.mxu1 %v9858_v46 }
 0x78a   :  { %3937 = vmatprep.subr.mxu1 %v11904_v0 }
 0x78b   :  { %3563 = vmatmul.mubr.f32.gmra.mxu1 %v13388_v1 }
 0x78c   :  { %9842 = vmatprep.mubr.msk.f32.mxu1 %vm2339_vm4, %v13391_v2 }
 0x78f   :  { %3568 = vmatmul.mubr.f32.gmra.mxu1 %v13402_v13 }
 0x790   :  { %11254 = vmatprep.mubr.msk.f32.mxu1 %vm11905_vm2, %v11904_v0 }
 0x819   :  { %v3432_v28 = vpop.f32.mrf.mxu1 }
 0x81a   :  { %v13754_v1 = vadd.f32 %v3432_v28, %v13671_v56 }
 0x81b   :  { %v11210_v2 = vpop.f32.mrf.mxu1 }
 0x81d   :  { %v3437_v13 = vpop.f32.mrf.mxu1 }
 0x81e   :  { %v13757_v26 = vadd.f32 %v3437_v13, %v13674_v41 }
 0x81f   :  { %v11213_v61 = vpop.f32.mrf.mxu1 }
 0x821   :  { %v3442_v54 = vpop.f32.mrf.mxu1 }
 0x822   :  { %v13760_v30 = vadd.f32 %v3442_v54, %v13677_v15  ;;  %v3701_v15 = vld [vmem:[#allocation2 + $0x78] sm:$0xff] }
 0x823   :  { %v11216_v45 = vpop.f32.mrf.mxu1 }
 0x825   :  { %v3447_v34 = vpop.f32.mrf.mxu1 }
 0x826   :  { %v13763_v49 = vadd.f32 %v3447_v34, %v13680_v12 }
 0x827   :  { %v11219_v52 = vpop.f32.mrf.mxu1 }
 0x829   :  { %v3452_v48 = vpop.f32.mrf.mxu1 }
 0x82a   :  { %v13766_v7 = vadd.f32 %v3452_v48, %v13683_v6  ;;  %v3698_v6 = vld [vmem:[#allocation2 + $0x60] sm:$0xff] }
 0x82b   :  { %v11222_v56 = vpop.f32.mrf.mxu1 }
 0x83f   :  { %v3549_v51 = vpop.f32.mrf.mxu1 }
 0x840   :  { %11232 = vmatmul.mubr.msk.f32.vlgmr.msra.gmra.mxu0 %vm2293_vm5, %v3549_v51 }
 0x841   :  { %3711 = vmatpush1.msra.mxu0 %v3703_v16  ;;  %v3551_v41 = vpop.f32.mrf.mxu1  ;;  %11234 = vmatprep.mubr.msk.f32.mxu0 %vm11905_vm2, %v11904_v0 }
 0x842   :  { %3712 = vmatprep.subr.mxu0 %v11904_v0  ;;  %v3927_v41 = vld [vmem:[#allocation2 + $0x71] sm:$0xff] }
 0x843   :  { %3713 = vmatpush1.msra.mxu0 %v3702_v59  ;;  %v3554_v3 = vpop.f32.mrf.mxu1 }
 0x844   :  { %3714 = vmatprep.subr.mxu0 %v11904_v0  ;;  %11235 = vmatmul.mubr.msk.f32.gmra.mxu0 %vm2293_vm5, %v3554_v3  ;;  %v3926_v3 = vld [vmem:[#allocation2 + $0x69] sm:$0xff] }
 0x845   :  { %3715 = vmatpush1.msra.mxu0 %v3701_v15  ;;  %v3556_v8 = vpop.f32.mrf.mxu1  ;;  %11237 = vmatprep.mubr.msk.f32.mxu0 %vm11905_vm2, %v11904_v0 }
 0x846   :  { %3716 = vmatprep.subr.mxu0 %v11904_v0  ;;  %v3925_v8 = vld [vmem:[#allocation2 + $0x61] sm:$0xff] }
 0x847   :  { %3717 = vmatpush1.msra.mxu0 %v3700_v10  ;;  %v3559_v12 = vpop.f32.mrf.mxu1 }
 0x848   :  { %3718 = vmatprep.subr.mxu0 %v11904_v0  ;;  %11238 = vmatmul.mubr.msk.f32.gmra.mxu0 %vm2293_vm5, %v3559_v12  ;;  %v3924_v12 = vld [vmem:[#allocation2 + $0x59] sm:$0xff] }
 0x849   :  { %3719 = vmatpush1.msra.mxu0 %v3699_v24  ;;  %v3561_v14 = vpop.f32.mrf.mxu1  ;;  %11240 = vmatprep.mubr.msk.f32.mxu0 %vm11905_vm2, %v11904_v0 }
 0x84a   :  { %3720 = vmatprep.subr.mxu0 %v11904_v0  ;;  %v3923_v14 = vld [vmem:[#allocation2 + $0x51] sm:$0xff] }
 0x84b   :  { %3721 = vmatpush1.msra.mxu0 %v3698_v6  ;;  %v3564_v19 = vpop.f32.mrf.mxu1 }
 0x84c   :  { %3722 = vmatprep.subr.mxu0 %v11904_v0  ;;  %11241 = vmatmul.mubr.msk.f32.gmra.mxu0 %vm2293_vm5, %v3564_v19  ;;  %v3922_v19 = vld [vmem:[#allocation2 + $0x49] sm:$0xff] }
 0x84d   :  { %3723 = vmatpush1.msra.mxu0 %v3697_v20  ;;  %v3566_v9 = vpop.f32.mrf.mxu1  ;;  %11243 = vmatprep.mubr.msk.f32.mxu0 %vm11905_vm2, %v11904_v0 }
 0x84e   :  { %3724 = vmatprep.subr.mxu0 %v11904_v0  ;;  %v3921_v9 = vld [vmem:[#allocation2 + $0x41] sm:$0xff] }
 0x84f   :  { %3725 = vmatpush1.msra.mxu0 %v3696_v35  ;;  %v3569_v22 = vpop.f32.mrf.mxu1  ;;  %v3920_v35 = vld [vmem:[#allocation2 + $0x39] sm:$0xff] }
 0x850   :  { %3726 = vmatprep.subr.mxu0 %v11904_v0  ;;  %11244 = vmatmul.mubr.msk.f32.gmra.mxu0 %vm2293_vm5, %v3569_v22  ;;  %v3919_v22 = vld [vmem:[#allocation2 + $0x31] sm:$0xff] }
 0x851   :  { %3727 = vmatpush1.msra.mxu0 %v3695_v4  ;;  %9853 = vmatprep.mubr.msk.f32.mxu0 %vm2339_vm4, %v13542_v58  ;;  %v3571_v5 = vpop.f32.mrf.mxu1  ;;  %v3918_v4 = vld [vmem:[#allocation2 + $0x29] sm:$0xff] }
 0x852   :  { %3728 = vmatprep.subr.mxu0 %v11904_v0  ;;  %v3916_v5 = vld [vmem:[#allocation2 + $0x19] sm:$0xff] }
 0x853   :  { %3729 = vmatpush1.msra.mxu0 %v3694_v43  ;;  %v3915_v43 = vld [vmem:[#allocation2 + $0x11] sm:$0xff] }
 0x854   :  { %3730 = vmatprep.subr.mxu0 %v11904_v0 }
 0x855   :  { %3731 = vmatpush1.msra.mxu0 %v3693_v50  ;;  %v3933_v50 = vld [vmem:[#allocation2 + $0xa1] sm:$0x7f] }
 0x856   :  { %3732 = vmatprep.subr.mxu0 %v11904_v0 }
 0x857   :  { %3733 = vmatpush1.msra.mxu0 %v3692_v11  ;;  %v3932_v11 = vld [vmem:[#allocation2 + $0x99] sm:$0xff] }
 0x858   :  { %3734 = vmatprep.subr.mxu0 %v11904_v0 }
 0x859   :  { %3735 = vmatpush1.msra.mxu0 %v3691_v60  ;;  %v3931_v60 = vld [vmem:[#allocation2 + $0x91] sm:$0xff] }
 0x85a   :  { %3736 = vmatprep.subr.mxu0 %v11904_v0 }
 0x85b   :  { %3737 = vmatpush1.msra.mxu0 %v3690_v17  ;;  %v9876_v17 = vld [vmem:[%s15933_s7 + $0xf8] sm:$0xff] }
 0x85c   :  { %3738 = vmatprep.subr.mxu0 %v11904_v0 }
 0x85d   :  { %3739 = vmatpush1.msra.mxu0 %v3689_v23  ;;  %v9875_v23 = vld [vmem:[%s15933_s7 + $0xf0] sm:$0xff] }
 0x85e   :  { %3740 = vmatprep.subr.mxu0 %v11904_v0 }
 0x85f   :  { %3741 = vmatpush1.msra.mxu0 %v3688_v25  ;;  %v9874_v25 = vld [vmem:[%s15933_s7 + $0xe8] sm:$0xff] }
 0x860   :  { %3768 = vmatprep.subr.mxu0 %v11904_v0 }
 0x861   :  { %9852 = vmatpush2.msk.msra.mxu0 %vm2355_vm7, %v3706_v31  ;;  %v9873_v31 = vld [vmem:[%s15933_s7 + $0xe0] sm:$0xff] }
 0x862   :  { %3770 = vmatprep.subr.mxu0 %v11904_v0 }
 0x863   :  { %3771 = vmatpush2.msra.mxu0 %v3705_v32 }
 0x864   :  { %3772 = vmatprep.subr.mxu0 %v11904_v0 }
 0x865   :  { %3773 = vmatpush2.msra.mxu0 %v3704_v38 }
 0x866   :  { %3775 = vmatmul.mubr.f32.vlgmr.msra.gmra.mxu0 %v13719_v55  ;;  %11269 = vmatprep.subr.mxu0 %v11904_v0 }
 0x867   :  { %9854 = vmatprep.mubr.msk.f32.mxu0 %vm2339_vm4, %v13804_v18  ;;  %11270 = vmatpush3.msra.mxu0 %v9876_v17 }
 0x868   :  { %11271 = vmatprep.subr.mxu0 %v11904_v0 }
 0x869   :  { %11272 = vmatpush3.msra.mxu0 %v9875_v23 }
 0x86a   :  { %3780 = vmatmul.mubr.f32.gmra.mxu0 %v13808_v21  ;;  %11273 = vmatprep.subr.mxu0 %v11904_v0 }
 0x86b   :  { %9855 = vmatprep.mubr.msk.f32.mxu0 %vm2339_vm4, %v13811_v36  ;;  %11274 = vmatpush3.msra.mxu0 %v9874_v25 }
 0x86c   :  { %11275 = vmatprep.subr.mxu0 %v11904_v0 }
 0x86d   :  { %11276 = vmatpush3.msra.mxu0 %v9873_v31 }
 0x86e   :  { %3785 = vmatmul.mubr.f32.gmra.mxu0 %v13815_v29  ;;  %4164 = vmatprep.subr.mxu0 %v11904_v0 }
 0x86f   :  { %9856 = vmatprep.mubr.msk.f32.mxu0 %vm2339_vm4, %v13818_v39 }
 0x872   :  { %3790 = vmatmul.mubr.f32.gmra.mxu0 %v13822_v40 }
 0x873   :  { %9857 = vmatprep.mubr.msk.f32.mxu0 %vm2339_vm4, %v13825_v27 }
 0x876   :  { %3795 = vmatmul.mubr.f32.gmra.mxu0 %v13829_v42 }
 0x877   :  { %11277 = vmatprep.mubr.msk.f32.mxu0 %vm11905_vm2, %v11904_v0 }
 0x900   :  { %v3659_v37 = vpop.f32.mrf.mxu0 }
 0x901   :  { %v13851_v57 = vadd.f32 %v3659_v37, %v13754_v1 }
 0x902   :  { %v11233_v53 = vpop.f32.mrf.mxu0 }
 0x904   :  { %v3664_v62 = vpop.f32.mrf.mxu0 }
 0x905   :  { %v13854_v63 = vadd.f32 %v3664_v62, %v13757_v26  ;;  %v3930_v26 = vld [vmem:[#allocation2 + $0x89] sm:$0xff] }
 0x906   :  { %v11236_v28 = vpop.f32.mrf.mxu0 }
 0x908   :  { %v3669_v2 = vpop.f32.mrf.mxu0 }
 0x909   :  { %v13857_v13 = vadd.f32 %v3669_v2, %v13760_v30  ;;  %v3929_v30 = vld [vmem:[#allocation2 + $0x81] sm:$0xff] }
 0x90a   :  { %v11239_v61 = vpop.f32.mrf.mxu0 }
 0x90c   :  { %v3674_v54 = vpop.f32.mrf.mxu0 }
 0x90d   :  { %v13860_v45 = vadd.f32 %v3674_v54, %v13763_v49 }
 0x90e   :  { %v11242_v34 = vpop.f32.mrf.mxu0 }
 0x910   :  { %v3679_v52 = vpop.f32.mrf.mxu0 }
 0x911   :  { %v13863_v1 = vadd.f32 %v3679_v52, %v13766_v7  ;;  %v3928_v7 = vld [vmem:[#allocation2 + $0x79] sm:$0xff] }
 0x912   :  { %v11245_v48 = vpop.f32.mrf.mxu0 }
 0x926   :  { %v3776_v56 = vpop.f32.mrf.mxu0 }
 0x927   :  { %11255 = vmatmul.mubr.msk.f32.vlgmr.msra.gmra.mxu1 %vm2293_vm5, %v3776_v56 }
 0x928   :  { %3938 = vmatpush1.msra.mxu1 %v3930_v26  ;;  %v3778_v51 = vpop.f32.mrf.mxu0  ;;  %11257 = vmatprep.mubr.msk.f32.mxu1 %vm11905_vm2, %v11904_v0  ;;  %v4154_v26 = vld [vmem:[#allocation2 + $0x7c] sm:$0xff] }
 0x929   :  { %3939 = vmatprep.subr.mxu1 %v11904_v0 }
 0x92a   :  { %3940 = vmatpush1.msra.mxu1 %v3929_v30  ;;  %v3781_v49 = vpop.f32.mrf.mxu0  ;;  %v4153_v30 = vld [vmem:[#allocation2 + $0x74] sm:$0xff] }
 0x92b   :  { %3941 = vmatprep.subr.mxu1 %v11904_v0  ;;  %11258 = vmatmul.mubr.msk.f32.gmra.mxu1 %vm2293_vm5, %v3781_v49 }
 0x92c   :  { %3942 = vmatpush1.msra.mxu1 %v3928_v7  ;;  %v3783_v16 = vpop.f32.mrf.mxu0  ;;  %11260 = vmatprep.mubr.msk.f32.mxu1 %vm11905_vm2, %v11904_v0  ;;  %v4152_v7 = vld [vmem:[#allocation2 + $0x6c] sm:$0xff] }
 0x92d   :  { %3943 = vmatprep.subr.mxu1 %v11904_v0 }
 0x92e   :  { %3944 = vmatpush1.msra.mxu1 %v3927_v41  ;;  %v3786_v59 = vpop.f32.mrf.mxu0  ;;  %v4151_v41 = vld [vmem:[#allocation2 + $0x64] sm:$0xff] }
 0x92f   :  { %3945 = vmatprep.subr.mxu1 %v11904_v0  ;;  %11261 = vmatmul.mubr.msk.f32.gmra.mxu1 %vm2293_vm5, %v3786_v59 }
 0x930   :  { %3946 = vmatpush1.msra.mxu1 %v3926_v3  ;;  %v3788_v15 = vpop.f32.mrf.mxu0  ;;  %11263 = vmatprep.mubr.msk.f32.mxu1 %vm11905_vm2, %v11904_v0  ;;  %v4150_v3 = vld [vmem:[#allocation2 + $0x5c] sm:$0xff] }
 0x931   :  { %3947 = vmatprep.subr.mxu1 %v11904_v0 }
 0x932   :  { %3948 = vmatpush1.msra.mxu1 %v3925_v8  ;;  %v3791_v10 = vpop.f32.mrf.mxu0  ;;  %v4149_v8 = vld [vmem:[#allocation2 + $0x54] sm:$0xff] }
 0x933   :  { %3949 = vmatprep.subr.mxu1 %v11904_v0  ;;  %11264 = vmatmul.mubr.msk.f32.gmra.mxu1 %vm2293_vm5, %v3791_v10  ;;  %v13967_v10 = vld [vmem:[#allocation8 + $0x8] sm:$0xff] }
 0x934   :  { %3950 = vmatpush1.msra.mxu1 %v3924_v12  ;;  %v3793_v24 = vpop.f32.mrf.mxu0  ;;  %11266 = vmatprep.mubr.msk.f32.mxu1 %vm11905_vm2, %v11904_v0 }
 0x935   :  { %3951 = vmatprep.subr.mxu1 %v11904_v0  ;;  %v4148_v24 = vld [vmem:[#allocation2 + $0x4c] sm:$0xff] }
 0x936   :  { %3952 = vmatpush1.msra.mxu1 %v3923_v14  ;;  %v3796_v6 = vpop.f32.mrf.mxu0  ;;  %v4147_v14 = vld [vmem:[#allocation2 + $0x44] sm:$0xff] }
 0x937   :  { %3953 = vmatprep.subr.mxu1 %v11904_v0  ;;  %11267 = vmatmul.mubr.msk.f32.gmra.mxu1 %vm2293_vm5, %v3796_v6  ;;  %v4146_v6 = vld [vmem:[#allocation2 + $0x3c] sm:$0xff] }
 0x938   :  { %3954 = vmatpush1.msra.mxu1 %v3922_v19  ;;  %9868 = vmatprep.mubr.msk.f32.mxu1 %vm2339_vm4, %v13542_v58  ;;  %v3798_v20 = vpop.f32.mrf.mxu0  ;;  %v3917_v58 = vld [vmem:[#allocation2 + $0x21] sm:$0xff]  ;;  %v4145_v19 = vld [vmem:[#allocation2 + $0x34] sm:$0xff] }
 0x939   :  { %3955 = vmatprep.subr.mxu1 %v11904_v0  ;;  %v4144_v20 = vld [vmem:[#allocation2 + $0x2c] sm:$0xff] }
 0x93a   :  { %3956 = vmatpush1.msra.mxu1 %v3921_v9  ;;  %v4143_v9 = vld [vmem:[#allocation2 + $0x24] sm:$0xff] }
 0x93b   :  { %3957 = vmatprep.subr.mxu1 %v11904_v0 }
 0x93c   :  { %3958 = vmatpush1.msra.mxu1 %v3920_v35  ;;  %v4142_v35 = vld [vmem:[#allocation2 + $0x1c] sm:$0xff] }
 0x93d   :  { %3959 = vmatprep.subr.mxu1 %v11904_v0 }
 0x93e   :  { %3960 = vmatpush1.msra.mxu1 %v3919_v22  ;;  %v4160_v22 = vld [vmem:[#allocation2 + $0xac] sm:$0x7f] }
 0x93f   :  { %3961 = vmatprep.subr.mxu1 %v11904_v0 }
 0x940   :  { %3962 = vmatpush1.msra.mxu1 %v3918_v4  ;;  %v4159_v4 = vld [vmem:[#allocation2 + $0xa4] sm:$0xff] }
 0x941   :  { %3963 = vmatprep.subr.mxu1 %v11904_v0 }
 0x942   :  { %3964 = vmatpush1.msra.mxu1 %v3917_v58  ;;  %v4158_v58 = vld [vmem:[#allocation2 + $0x9c] sm:$0xff] }
 0x943   :  { %3965 = vmatprep.subr.mxu1 %v11904_v0 }
 0x944   :  { %3966 = vmatpush1.msra.mxu1 %v3916_v5  ;;  %v9891_v5 = vld [vmem:[%s15933_s7 + $0x118] sm:$0xff] }
 0x945   :  { %3967 = vmatprep.subr.mxu1 %v11904_v0 }
 0x946   :  { %3968 = vmatpush1.msra.mxu1 %v3915_v43  ;;  %v9890_v43 = vld [vmem:[%s15933_s7 + $0x110] sm:$0xff] }
 0x947   :  { %3995 = vmatprep.subr.mxu1 %v11904_v0 }
 0x948   :  { %9867 = vmatpush2.msk.msra.mxu1 %vm2355_vm7, %v3933_v50  ;;  %v9889_v50 = vld [vmem:[%s15933_s7 + $0x108] sm:$0xff] }
 0x949   :  { %3997 = vmatprep.subr.mxu1 %v11904_v0 }
 0x94a   :  { %3998 = vmatpush2.msra.mxu1 %v3932_v11  ;;  %v9888_v11 = vld [vmem:[%s15933_s7 + $0x100] sm:$0xff] }
 0x94b   :  { %3999 = vmatprep.subr.mxu1 %v11904_v0 }
 0x94c   :  { %4000 = vmatpush2.msra.mxu1 %v3931_v60 }
 0x94d   :  { %4002 = vmatmul.mubr.f32.vlgmr.msra.gmra.mxu1 %v13719_v55  ;;  %11292 = vmatprep.subr.mxu1 %v11904_v0 }
 0x94e   :  { %9869 = vmatprep.mubr.msk.f32.mxu1 %vm2339_vm4, %v13804_v18  ;;  %11293 = vmatpush3.msra.mxu1 %v9891_v5 }
 0x94f   :  { %11294 = vmatprep.subr.mxu1 %v11904_v0 }
 0x950   :  { %11295 = vmatpush3.msra.mxu1 %v9890_v43 }
 0x951   :  { %4007 = vmatmul.mubr.f32.gmra.mxu1 %v13808_v21  ;;  %11296 = vmatprep.subr.mxu1 %v11904_v0 }
 0x952   :  { %9870 = vmatprep.mubr.msk.f32.mxu1 %vm2339_vm4, %v13811_v36  ;;  %11297 = vmatpush3.msra.mxu1 %v9889_v50 }
 0x953   :  { %11298 = vmatprep.subr.mxu1 %v11904_v0 }
 0x954   :  { %11299 = vmatpush3.msra.mxu1 %v9888_v11 }
 0x955   :  { %4012 = vmatmul.mubr.f32.gmra.mxu1 %v13815_v29  ;;  %4391 = vmatprep.subr.mxu1 %v11904_v0 }
 0x956   :  { %9871 = vmatprep.mubr.msk.f32.mxu1 %vm2339_vm4, %v13818_v39 }
 0x959   :  { %4017 = vmatmul.mubr.f32.gmra.mxu1 %v13822_v40 }
 0x95a   :  { %9872 = vmatprep.mubr.msk.f32.mxu1 %vm2339_vm4, %v13825_v27 }
 0x95d   :  { %4022 = vmatmul.mubr.f32.gmra.mxu1 %v13829_v42 }
 0x95e   :  { %11300 = vmatprep.mubr.msk.f32.mxu1 %vm11905_vm2, %v11904_v0 }
 0x9e7   :  { %v3886_v32 = vpop.f32.mrf.mxu1 }
 0x9e8   :  { %v13932_v38 = vadd.f32 %v3886_v32, %v13851_v57 }
 0x9e9   :  { %v11256_v44 = vpop.f32.mrf.mxu1 }
 0x9eb   :  { %v3891_v33 = vpop.f32.mrf.mxu1 }
 0x9ec   :  { %v13935_v47 = vadd.f32 %v3891_v33, %v13854_v63  ;;  %v4157_v63 = vld [vmem:[#allocation2 + $0x94] sm:$0xff] }
 0x9ed   :  { %v11259_v46 = vpop.f32.mrf.mxu1 }
 0x9ef   :  { %v3896_v37 = vpop.f32.mrf.mxu1 }
 0x9f0   :  { %v13938_v53 = vadd.f32 %v3896_v37, %v13857_v13  ;;  %v4156_v13 = vld [vmem:[#allocation2 + $0x8c] sm:$0xff] }
 0x9f1   :  { %v11262_v62 = vpop.f32.mrf.mxu1 }
 0x9f3   :  { %v3901_v28 = vpop.f32.mrf.mxu1 }
 0x9f4   :  { %v13941_v2 = vadd.f32 %v3901_v28, %v13860_v45 }
 0x9f5   :  { %v11265_v61 = vpop.f32.mrf.mxu1 }
 0x9f7   :  { %v3906_v54 = vpop.f32.mrf.mxu1 }
 0x9f8   :  { %v13944_v57 = vadd.f32 %v3906_v54, %v13863_v1  ;;  %v4155_v1 = vld [vmem:[#allocation2 + $0x84] sm:$0xff] }
 0x9f9   :  { %v11268_v34 = vpop.f32.mrf.mxu1 }
 0xa0d   :  { %v4003_v52 = vpop.f32.mrf.mxu1 }
 0xa0e   :  { %11278 = vmatmul.mubr.msk.f32.vlgmr.msra.gmra.mxu0 %vm2293_vm5, %v4003_v52 }
 0xa0f   :  { %4165 = vmatpush1.msra.mxu0 %v4157_v63  ;;  %v4005_v48 = vpop.f32.mrf.mxu1  ;;  %11280 = vmatprep.mubr.msk.f32.mxu0 %vm11905_vm2, %v11904_v0 }
 0xa10   :  { %4166 = vmatprep.subr.mxu0 %v11904_v0  ;;  %v4381_v48 = vld [vmem:[#allocation2 + $0x7d] sm:$0xff] }
 0xa11   :  { %4167 = vmatpush1.msra.mxu0 %v4156_v13  ;;  %v4008_v45 = vpop.f32.mrf.mxu1 }
 0xa12   :  { %4168 = vmatprep.subr.mxu0 %v11904_v0  ;;  %11281 = vmatmul.mubr.msk.f32.gmra.mxu0 %vm2293_vm5, %v4008_v45  ;;  %v4380_v45 = vld [vmem:[#allocation2 + $0x75] sm:$0xff] }
 0xa13   :  { %4169 = vmatpush1.msra.mxu0 %v4155_v1  ;;  %v4010_v56 = vpop.f32.mrf.mxu1  ;;  %11283 = vmatprep.mubr.msk.f32.mxu0 %vm11905_vm2, %v11904_v0 }
 0xa14   :  { %4170 = vmatprep.subr.mxu0 %v11904_v0  ;;  %v4379_v56 = vld [vmem:[#allocation2 + $0x6d] sm:$0xff] }
 0xa15   :  { %4171 = vmatpush1.msra.mxu0 %v4154_v26  ;;  %v4013_v51 = vpop.f32.mrf.mxu1 }
 0xa16   :  { %4172 = vmatprep.subr.mxu0 %v11904_v0  ;;  %11284 = vmatmul.mubr.msk.f32.gmra.mxu0 %vm2293_vm5, %v4013_v51  ;;  %v4378_v51 = vld [vmem:[#allocation2 + $0x65] sm:$0xff] }
 0xa17   :  { %4173 = vmatpush1.msra.mxu0 %v4153_v30  ;;  %v4015_v49 = vpop.f32.mrf.mxu1  ;;  %11286 = vmatprep.mubr.msk.f32.mxu0 %vm11905_vm2, %v11904_v0 }
 0xa18   :  { %4174 = vmatprep.subr.mxu0 %v11904_v0  ;;  %v4377_v49 = vld [vmem:[#allocation2 + $0x5d] sm:$0xff] }
 0xa19   :  { %4175 = vmatpush1.msra.mxu0 %v4152_v7  ;;  %v4018_v16 = vpop.f32.mrf.mxu1 }
 0xa1a   :  { %4176 = vmatprep.subr.mxu0 %v11904_v0  ;;  %11287 = vmatmul.mubr.msk.f32.gmra.mxu0 %vm2293_vm5, %v4018_v16  ;;  %v4376_v16 = vld [vmem:[#allocation2 + $0x55] sm:$0xff] }
 0xa1b   :  { %4177 = vmatpush1.msra.mxu0 %v4151_v41  ;;  %v4020_v59 = vpop.f32.mrf.mxu1  ;;  %11289 = vmatprep.mubr.msk.f32.mxu0 %vm11905_vm2, %v11904_v0 }
 0xa1c   :  { %4178 = vmatprep.subr.mxu0 %v11904_v0  ;;  %v4375_v59 = vld [vmem:[#allocation2 + $0x4d] sm:$0xff] }
 0xa1d   :  { %4179 = vmatpush1.msra.mxu0 %v4150_v3  ;;  %v4023_v15 = vpop.f32.mrf.mxu1  ;;  %v4374_v3 = vld [vmem:[#allocation2 + $0x45] sm:$0xff] }
 0xa1e   :  { %4180 = vmatprep.subr.mxu0 %v11904_v0  ;;  %11290 = vmatmul.mubr.msk.f32.gmra.mxu0 %vm2293_vm5, %v4023_v15  ;;  %v4373_v15 = vld [vmem:[#allocation2 + $0x3d] sm:$0xff] }
 0xa1f   :  { %4181 = vmatpush1.msra.mxu0 %v4149_v8  ;;  %9883 = vmatprep.mubr.msk.f32.mxu0 %vm2339_vm4, %v13967_v10  ;;  %v4025_v12 = vpop.f32.mrf.mxu1  ;;  %v4372_v8 = vld [vmem:[#allocation2 + $0x35] sm:$0xff] }
 0xa20   :  { %4182 = vmatprep.subr.mxu0 %v11904_v0  ;;  %v4371_v12 = vld [vmem:[#allocation2 + $0x2d] sm:$0xff] }
 0xa21   :  { %4183 = vmatpush1.msra.mxu0 %v4148_v24  ;;  %v4370_v24 = vld [vmem:[#allocation2 + $0x25] sm:$0xff] }
 0xa22   :  { %4184 = vmatprep.subr.mxu0 %v11904_v0 }
 0xa23   :  { %4185 = vmatpush1.msra.mxu0 %v4147_v14  ;;  %v4369_v14 = vld [vmem:[#allocation2 + $0x1d] sm:$0xff] }
 0xa24   :  { %4186 = vmatprep.subr.mxu0 %v11904_v0 }
 0xa25   :  { %4187 = vmatpush1.msra.mxu0 %v4146_v6  ;;  %v4387_v6 = vld [vmem:[#allocation2 + $0xad] sm:$0x7f] }
 0xa26   :  { %4188 = vmatprep.subr.mxu0 %v11904_v0 }
 0xa27   :  { %4189 = vmatpush1.msra.mxu0 %v4145_v19  ;;  %v4386_v19 = vld [vmem:[#allocation2 + $0xa5] sm:$0xff] }
 0xa28   :  { %4190 = vmatprep.subr.mxu0 %v11904_v0 }
 0xa29   :  { %4191 = vmatpush1.msra.mxu0 %v4144_v20  ;;  %v4385_v20 = vld [vmem:[#allocation2 + $0x9d] sm:$0xff] }
 0xa2a   :  { %4192 = vmatprep.subr.mxu0 %v11904_v0 }
 0xa2b   :  { %4193 = vmatpush1.msra.mxu0 %v4143_v9  ;;  %v9905_v9 = vld [vmem:[%s15933_s7 + $0x130] sm:$0xff] }
 0xa2c   :  { %4194 = vmatprep.subr.mxu0 %v11904_v0 }
 0xa2d   :  { %4195 = vmatpush1.msra.mxu0 %v4142_v35  ;;  %v9904_v35 = vld [vmem:[%s15933_s7 + $0x128] sm:$0xff] }
 0xa2e   :  { %4222 = vmatprep.subr.mxu0 %v11904_v0 }
 0xa2f   :  { %9882 = vmatpush2.msk.msra.mxu0 %vm2355_vm7, %v4160_v22  ;;  %v9903_v22 = vld [vmem:[%s15933_s7 + $0x120] sm:$0xff] }
 0xa30   :  { %4224 = vmatprep.subr.mxu0 %v11904_v0 }
 0xa31   :  { %4225 = vmatpush2.msra.mxu0 %v4159_v4 }
 0xa32   :  { %4226 = vmatprep.subr.mxu0 %v11904_v0 }
 0xa33   :  { %4227 = vmatpush2.msra.mxu0 %v4158_v58 }
 0xa34   :  { %4229 = vmatmul.mubr.f32.vlgmr.msra.gmra.mxu0 %v13719_v55  ;;  %11315 = vmatprep.subr.mxu0 %v11904_v0 }
 0xa35   :  { %9884 = vmatprep.mubr.msk.f32.mxu0 %vm2339_vm4, %v13804_v18 }
 0xa38   :  { %4234 = vmatmul.mubr.f32.gmra.mxu0 %v13808_v21 }
 0xa39   :  { %9885 = vmatprep.mubr.msk.f32.mxu0 %vm2339_vm4, %v13811_v36 }
 0xa3c   :  { %4239 = vmatmul.mubr.f32.gmra.mxu0 %v13815_v29 }
 0xa3d   :  { %9886 = vmatprep.mubr.msk.f32.mxu0 %vm2339_vm4, %v13818_v39 }
 0xa40   :  { %4244 = vmatmul.mubr.f32.gmra.mxu0 %v13822_v40 }
 0xa41   :  { %9887 = vmatprep.mubr.msk.f32.mxu0 %vm2339_vm4, %v13825_v27 }
 0xa44   :  { %4249 = vmatmul.mubr.f32.gmra.mxu0 %v13829_v42 }
 0xa45   :  { %11323 = vmatprep.mubr.msk.f32.mxu0 %vm11905_vm2, %v11904_v0 }
 0xace   :  { %v4113_v60 = vpop.f32.mrf.mxu0 }
 0xacf   :  { %v14015_v17 = vadd.f32 %v4113_v60, %v13932_v38 }
 0xad0   :  { %v11279_v23 = vpop.f32.mrf.mxu0 }
 0xad2   :  { %v4118_v25 = vpop.f32.mrf.mxu0 }
 0xad3   :  { %v14018_v31 = vadd.f32 %v4118_v25, %v13935_v47  ;;  %v4384_v47 = vld [vmem:[#allocation2 + $0x95] sm:$0xff] }
 0xad4   :  { %v11282_v32 = vpop.f32.mrf.mxu0 }
 0xad6   :  { %v4123_v44 = vpop.f32.mrf.mxu0 }
 0xad7   :  { %v14021_v33 = vadd.f32 %v4123_v44, %v13938_v53  ;;  %v4383_v53 = vld [vmem:[#allocation2 + $0x8d] sm:$0xff] }
 0xad8   :  { %v11285_v46 = vpop.f32.mrf.mxu0 }
 0xada   :  { %v4128_v37 = vpop.f32.mrf.mxu0 }
 0xadb   :  { %v14024_v62 = vadd.f32 %v4128_v37, %v13941_v2 }
 0xadc   :  { %v11288_v28 = vpop.f32.mrf.mxu0 }
 0xade   :  { %v4133_v61 = vpop.f32.mrf.mxu0 }
 0xadf   :  { %v14027_v38 = vadd.f32 %v4133_v61, %v13944_v57  ;;  %v4382_v57 = vld [vmem:[#allocation2 + $0x85] sm:$0xff] }
 0xae0   :  { %v11291_v54 = vpop.f32.mrf.mxu0 }
 0xaf4   :  { %v4230_v34 = vpop.f32.mrf.mxu0 }
 0xaf5   :  { %11301 = vmatmul.mubr.msk.f32.vlgmr.msra.gmra.mxu1 %vm2293_vm5, %v4230_v34 }
 0xaf6   :  { %4392 = vmatpush1.msra.mxu1 %v4384_v47  ;;  %v4232_v52 = vpop.f32.mrf.mxu0  ;;  %11303 = vmatprep.mubr.msk.f32.mxu1 %vm11905_vm2, %v11904_v0  ;;  %v4608_v47 = vld [vmem:[#allocation2 + $0x7e] sm:$0xff] }
 0xaf7   :  { %4393 = vmatprep.subr.mxu1 %v11904_v0 }
 0xaf8   :  { %4394 = vmatpush1.msra.mxu1 %v4383_v53  ;;  %v4235_v2 = vpop.f32.mrf.mxu0  ;;  %v4607_v53 = vld [vmem:[#allocation2 + $0x76] sm:$0xff] }
 0xaf9   :  { %4395 = vmatprep.subr.mxu1 %v11904_v0  ;;  %11304 = vmatmul.mubr.msk.f32.gmra.mxu1 %vm2293_vm5, %v4235_v2 }
 0xafa   :  { %4396 = vmatpush1.msra.mxu1 %v4382_v57  ;;  %v4237_v63 = vpop.f32.mrf.mxu0  ;;  %11306 = vmatprep.mubr.msk.f32.mxu1 %vm11905_vm2, %v11904_v0  ;;  %v4606_v57 = vld [vmem:[#allocation2 + $0x6e] sm:$0xff] }
 0xafb   :  { %4397 = vmatprep.subr.mxu1 %v11904_v0 }
 0xafc   :  { %4398 = vmatpush1.msra.mxu1 %v4381_v48  ;;  %v4240_v13 = vpop.f32.mrf.mxu0  ;;  %v4605_v48 = vld [vmem:[#allocation2 + $0x66] sm:$0xff] }
 0xafd   :  { %4399 = vmatprep.subr.mxu1 %v11904_v0  ;;  %11307 = vmatmul.mubr.msk.f32.gmra.mxu1 %vm2293_vm5, %v4240_v13 }
 0xafe   :  { %4400 = vmatpush1.msra.mxu1 %v4380_v45  ;;  %v4242_v1 = vpop.f32.mrf.mxu0  ;;  %11309 = vmatprep.mubr.msk.f32.mxu1 %vm11905_vm2, %v11904_v0  ;;  %v4604_v45 = vld [vmem:[#allocation2 + $0x5e] sm:$0xff] }
 0xaff   :  { %4401 = vmatprep.subr.mxu1 %v11904_v0 }
 0xb00   :  { %4402 = vmatpush1.msra.mxu1 %v4379_v56  ;;  %v4245_v26 = vpop.f32.mrf.mxu0  ;;  %v4603_v56 = vld [vmem:[#allocation2 + $0x56] sm:$0xff] }
 0xb01   :  { %4403 = vmatprep.subr.mxu1 %v11904_v0  ;;  %11310 = vmatmul.mubr.msk.f32.gmra.mxu1 %vm2293_vm5, %v4245_v26 }
 0xb02   :  { %4404 = vmatpush1.msra.mxu1 %v4378_v51  ;;  %v4247_v30 = vpop.f32.mrf.mxu0  ;;  %11312 = vmatprep.mubr.msk.f32.mxu1 %vm11905_vm2, %v11904_v0  ;;  %v4602_v51 = vld [vmem:[#allocation2 + $0x4e] sm:$0xff] }
 0xb03   :  { %4405 = vmatprep.subr.mxu1 %v11904_v0  ;;  %v4601_v30 = vld [vmem:[#allocation2 + $0x46] sm:$0xff] }
 0xb04   :  { %4406 = vmatpush1.msra.mxu1 %v4377_v49  ;;  %v4250_v7 = vpop.f32.mrf.mxu0  ;;  %v4600_v49 = vld [vmem:[#allocation2 + $0x3e] sm:$0xff] }
 0xb05   :  { %4407 = vmatprep.subr.mxu1 %v11904_v0  ;;  %11313 = vmatmul.mubr.msk.f32.gmra.mxu1 %vm2293_vm5, %v4250_v7  ;;  %v4599_v7 = vld [vmem:[#allocation2 + $0x36] sm:$0xff] }
 0xb06   :  { %4408 = vmatpush1.msra.mxu1 %v4376_v16  ;;  %9898 = vmatprep.mubr.msk.f32.mxu1 %vm2339_vm4, %v13967_v10  ;;  %v4252_v41 = vpop.f32.mrf.mxu0  ;;  %v4598_v16 = vld [vmem:[#allocation2 + $0x2e] sm:$0xff] }
 0xb07   :  { %4409 = vmatprep.subr.mxu1 %v11904_v0  ;;  %v4597_v41 = vld [vmem:[#allocation2 + $0x26] sm:$0xff] }
 0xb08   :  { %4410 = vmatpush1.msra.mxu1 %v4375_v59  ;;  %v4596_v59 = vld [vmem:[#allocation2 + $0x1e] sm:$0xff] }
 0xb09   :  { %4411 = vmatprep.subr.mxu1 %v11904_v0 }
 0xb0a   :  { %4412 = vmatpush1.msra.mxu1 %v4374_v3  ;;  %v4614_v3 = vld [vmem:[#allocation2 + $0xae] sm:$0x7f] }
 0xb0b   :  { %4413 = vmatprep.subr.mxu1 %v11904_v0 }
 0xb0c   :  { %4414 = vmatpush1.msra.mxu1 %v4373_v15  ;;  %v4613_v15 = vld [vmem:[#allocation2 + $0xa6] sm:$0xff] }
 0xb0d   :  { %4415 = vmatprep.subr.mxu1 %v11904_v0 }
 0xb0e   :  { %4416 = vmatpush1.msra.mxu1 %v4372_v8  ;;  %v4612_v8 = vld [vmem:[#allocation2 + $0x9e] sm:$0xff] }
 0xb0f   :  { %4417 = vmatprep.subr.mxu1 %v11904_v0 }
 0xb10   :  { %4418 = vmatpush1.msra.mxu1 %v4371_v12  ;;  %v14144_v12 = vld [vmem:[#allocation8] sm:$0xff] }
 0xb11   :  { %4419 = vmatprep.subr.mxu1 %v11904_v0 }
 0xb12   :  { %4420 = vmatpush1.msra.mxu1 %v4370_v24 }
 0xb13   :  { %4421 = vmatprep.subr.mxu1 %v11904_v0 }
 0xb14   :  { %4422 = vmatpush1.msra.mxu1 %v4369_v14 }
 0xb15   :  { %4449 = vmatprep.subr.mxu1 %v11904_v0 }
 0xb16   :  { %9897 = vmatpush2.msk.msra.mxu1 %vm2355_vm7, %v4387_v6 }
 0xb17   :  { %4451 = vmatprep.subr.mxu1 %v11904_v0 }
 0xb18   :  { %4452 = vmatpush2.msra.mxu1 %v4386_v19 }
 0xb19   :  { %4453 = vmatprep.subr.mxu1 %v11904_v0 }
 0xb1a   :  { %4454 = vmatpush2.msra.mxu1 %v4385_v20 }
 0xb1b   :  { %4456 = vmatmul.mubr.f32.vlgmr.msra.gmra.mxu1 %v13719_v55  ;;  %11338 = vmatprep.subr.mxu1 %v11904_v0  ;;  %v9906_v55 = vld [vmem:[%s15933_s7 + $0x138] sm:$0xff] }
 0xb1c   :  { %9899 = vmatprep.mubr.msk.f32.mxu1 %vm2339_vm4, %v13804_v18  ;;  %11316 = vmatpush3.msra.mxu0 %v9906_v55 }
 0xb1d   :  { %11317 = vmatprep.subr.mxu0 %v11904_v0 }
 0xb1e   :  { %11318 = vmatpush3.msra.mxu0 %v9905_v9 }
 0xb1f   :  { %4461 = vmatmul.mubr.f32.gmra.mxu1 %v13808_v21  ;;  %11319 = vmatprep.subr.mxu0 %v11904_v0 }
 0xb20   :  { %9900 = vmatprep.mubr.msk.f32.mxu1 %vm2339_vm4, %v13811_v36  ;;  %11320 = vmatpush3.msra.mxu0 %v9904_v35 }
 0xb21   :  { %11321 = vmatprep.subr.mxu0 %v11904_v0 }
 0xb22   :  { %11322 = vmatpush3.msra.mxu0 %v9903_v22 }
 0xb23   :  { %4466 = vmatmul.mubr.f32.gmra.mxu1 %v13815_v29  ;;  %4618 = vmatprep.subr.mxu0 %v11904_v0 }
 0xb24   :  { %9901 = vmatprep.mubr.msk.f32.mxu1 %vm2339_vm4, %v13818_v39 }
 0xb27   :  { %4471 = vmatmul.mubr.f32.gmra.mxu1 %v13822_v40 }
 0xb28   :  { %9902 = vmatprep.mubr.msk.f32.mxu1 %vm2339_vm4, %v13825_v27 }
 0xb2b   :  { %4476 = vmatmul.mubr.f32.gmra.mxu1 %v13829_v42 }
 0xb2c   :  { %11346 = vmatprep.mubr.msk.f32.mxu1 %vm11905_vm2, %v11904_v0 }
 0xbb5   :  { %v4340_v4 = vpop.f32.mrf.mxu1 }
 0xbb6   :  { %v14096_v58 = vadd.f32 %v4340_v4, %v14015_v17 }
 0xbb7   :  { %v11302_v5 = vpop.f32.mrf.mxu1 }
 0xbb9   :  { %v4345_v43 = vpop.f32.mrf.mxu1 }
 0xbba   :  { %v14099_v50 = vadd.f32 %v4345_v43, %v14018_v31  ;;  %v4611_v31 = vld [vmem:[#allocation2 + $0x96] sm:$0xff] }
 0xbbb   :  { %v11305_v11 = vpop.f32.mrf.mxu1  ;;  %v4838_v43 = vld [vmem:[#allocation2 + $0x97] sm:$0xff] }
 0xbbc   :  { %v4837_v11 = vld [vmem:[#allocation2 + $0x8f] sm:$0xff] }
 0xbbd   :  { %v4350_v60 = vpop.f32.mrf.mxu1 }
 0xbbe   :  { %v14102_v23 = vadd.f32 %v4350_v60, %v14021_v33  ;;  %v4610_v33 = vld [vmem:[#allocation2 + $0x8e] sm:$0xff] }
 0xbbf   :  { %v11308_v25 = vpop.f32.mrf.mxu1 }
 0xbc1   :  { %v4355_v32 = vpop.f32.mrf.mxu1 }
 0xbc2   :  { %v14105_v44 = vadd.f32 %v4355_v32, %v14024_v62  ;;  %v4835_v32 = vld [vmem:[#allocation2 + $0x7f] sm:$0xff] }
 0xbc3   :  { %v11311_v46 = vpop.f32.mrf.mxu1 }
 0xbc4   :  { %v4834_v46 = vld [vmem:[#allocation2 + $0x77] sm:$0xff] }
 0xbc5   :  { %v4360_v37 = vpop.f32.mrf.mxu1 }
 0xbc6   :  { %v14108_v17 = vadd.f32 %v4360_v37, %v14027_v38  ;;  %v4609_v38 = vld [vmem:[#allocation2 + $0x86] sm:$0xff] }
 0xbc7   :  { %v11314_v28 = vpop.f32.mrf.mxu1 }
 0xbdb   :  { %v4457_v61 = vpop.f32.mrf.mxu1 }
 0xbdc   :  { %11324 = vmatmul.mubr.msk.f32.vlgmr.msra.gmra.mxu0 %vm2293_vm5, %v4457_v61  ;;  %v4832_v61 = vld [vmem:[#allocation2 + $0x67] sm:$0xff] }
 0xbdd   :  { %4619 = vmatpush1.msra.mxu0 %v4611_v31  ;;  %v4459_v54 = vpop.f32.mrf.mxu1  ;;  %11326 = vmatprep.mubr.msk.f32.mxu0 %vm11905_vm2, %v11904_v0 }
 0xbde   :  { %4620 = vmatprep.subr.mxu0 %v11904_v0  ;;  %v4831_v54 = vld [vmem:[#allocation2 + $0x5f] sm:$0xff] }
 0xbdf   :  { %4621 = vmatpush1.msra.mxu0 %v4610_v33  ;;  %v4462_v62 = vpop.f32.mrf.mxu1 }
 0xbe0   :  { %4622 = vmatprep.subr.mxu0 %v11904_v0  ;;  %11327 = vmatmul.mubr.msk.f32.gmra.mxu0 %vm2293_vm5, %v4462_v62  ;;  %v4830_v62 = vld [vmem:[#allocation2 + $0x57] sm:$0xff] }
 0xbe1   :  { %4623 = vmatpush1.msra.mxu0 %v4609_v38  ;;  %v4464_v34 = vpop.f32.mrf.mxu1  ;;  %11329 = vmatprep.mubr.msk.f32.mxu0 %vm11905_vm2, %v11904_v0 }
 0xbe2   :  { %4624 = vmatprep.subr.mxu0 %v11904_v0  ;;  %v4829_v34 = vld [vmem:[#allocation2 + $0x4f] sm:$0xff] }
 0xbe3   :  { %4625 = vmatpush1.msra.mxu0 %v4608_v47  ;;  %v4467_v52 = vpop.f32.mrf.mxu1  ;;  %v4828_v47 = vld [vmem:[#allocation2 + $0x47] sm:$0xff] }
 0xbe4   :  { %4626 = vmatprep.subr.mxu0 %v11904_v0  ;;  %11330 = vmatmul.mubr.msk.f32.gmra.mxu0 %vm2293_vm5, %v4467_v52  ;;  %v4827_v52 = vld [vmem:[#allocation2 + $0x3f] sm:$0xff] }
 0xbe5   :  { %4627 = vmatpush1.msra.mxu0 %v4607_v53  ;;  %v4469_v2 = vpop.f32.mrf.mxu1  ;;  %11332 = vmatprep.mubr.msk.f32.mxu0 %vm11905_vm2, %v11904_v0  ;;  %v4826_v53 = vld [vmem:[#allocation2 + $0x37] sm:$0xff] }
 0xbe6   :  { %4628 = vmatprep.subr.mxu0 %v11904_v0  ;;  %v4825_v2 = vld [vmem:[#allocation2 + $0x2f] sm:$0xff] }
 0xbe7   :  { %4629 = vmatpush1.msra.mxu0 %v4606_v57  ;;  %v4472_v63 = vpop.f32.mrf.mxu1  ;;  %v4824_v57 = vld [vmem:[#allocation2 + $0x27] sm:$0xff] }
 0xbe8   :  { %4630 = vmatprep.subr.mxu0 %v11904_v0  ;;  %11333 = vmatmul.mubr.msk.f32.gmra.mxu0 %vm2293_vm5, %v4472_v63  ;;  %v4823_v63 = vld [vmem:[#allocation2 + $0x1f] sm:$0xff] }
 0xbe9   :  { %4631 = vmatpush1.msra.mxu0 %v4605_v48  ;;  %v4474_v13 = vpop.f32.mrf.mxu1  ;;  %11335 = vmatprep.mubr.msk.f32.mxu0 %vm11905_vm2, %v11904_v0  ;;  %v4841_v48 = vld [vmem:[#allocation2 + $0xaf] sm:$0x7f] }
 0xbea   :  { %4632 = vmatprep.subr.mxu0 %v11904_v0  ;;  %v4840_v13 = vld [vmem:[#allocation2 + $0xa7] sm:$0xff] }
 0xbeb   :  { %4633 = vmatpush1.msra.mxu0 %v4604_v45  ;;  %v4477_v1 = vpop.f32.mrf.mxu1  ;;  %v4839_v45 = vld [vmem:[#allocation2 + $0x9f] sm:$0xff] }
 0xbec   :  { %4634 = vmatprep.subr.mxu0 %v11904_v0  ;;  %11336 = vmatmul.mubr.msk.f32.gmra.mxu0 %vm2293_vm5, %v4477_v1  ;;  %v14229_v1 = vld [vmem:[#allocation8 + $0x18] sm:$0xff] }
 0xbed   :  { %4635 = vmatpush1.msra.mxu0 %v4603_v56  ;;  %9913 = vmatprep.mubr.msk.f32.mxu0 %vm2339_vm4, %v13967_v10  ;;  %v4479_v26 = vpop.f32.mrf.mxu1  ;;  %v14233_v56 = vld [vmem:[#allocation8 + $0x10] sm:$0xff] }
 0xbee   :  { %4636 = vmatprep.subr.mxu0 %v11904_v0  ;;  %v14236_v26 = vld [vmem:[#allocation8 + $0x28] sm:$0xff] }
 0xbef   :  { %4637 = vmatpush1.msra.mxu0 %v4602_v51  ;;  %v14240_v51 = vld [vmem:[#allocation8 + $0x20] sm:$0xff] }
 0xbf0   :  { %4638 = vmatprep.subr.mxu0 %v11904_v0 }
 0xbf1   :  { %4639 = vmatpush1.msra.mxu0 %v4601_v30  ;;  %v14243_v30 = vld [vmem:[#allocation8 + $0x38] sm:$0xff] }
 0xbf2   :  { %4640 = vmatprep.subr.mxu0 %v11904_v0 }
 0xbf3   :  { %4641 = vmatpush1.msra.mxu0 %v4600_v49  ;;  %v14247_v49 = vld [vmem:[#allocation8 + $0x30] sm:$0xff] }
 0xbf4   :  { %4642 = vmatprep.subr.mxu0 %v11904_v0 }
 0xbf5   :  { %4643 = vmatpush1.msra.mxu0 %v4599_v7  ;;  %v14250_v7 = vld [vmem:[#allocation8 + $0x48] sm:$0xf] }
 0xbf6   :  { %4644 = vmatprep.subr.mxu0 %v11904_v0 }
 0xbf7   :  { %4645 = vmatpush1.msra.mxu0 %v4598_v16  ;;  %v14254_v16 = vld [vmem:[#allocation8 + $0x40] sm:$0xf] }
 0xbf8   :  { %4646 = vmatprep.subr.mxu0 %v11904_v0 }
 0xbf9   :  { %4647 = vmatpush1.msra.mxu0 %v4597_v41  ;;  %v9936_v41 = vld [vmem:[%s15933_s7 + $0x178] sm:$0xff] }
 0xbfa   :  { %4648 = vmatprep.subr.mxu0 %v11904_v0 }
 0xbfb   :  { %4649 = vmatpush1.msra.mxu0 %v4596_v59  ;;  %v9935_v59 = vld [vmem:[%s15933_s7 + $0x170] sm:$0xff] }
 0xbfc   :  { %4676 = vmatprep.subr.mxu0 %v11904_v0 }
 0xbfd   :  { %9912 = vmatpush2.msk.msra.mxu0 %vm2355_vm7, %v4614_v3  ;;  %v9934_v3 = vld [vmem:[%s15933_s7 + $0x168] sm:$0xff] }
 0xbfe   :  { %4678 = vmatprep.subr.mxu0 %v11904_v0 }
 0xbff   :  { %4679 = vmatpush2.msra.mxu0 %v4613_v15  ;;  %v9933_v15 = vld [vmem:[%s15933_s7 + $0x160] sm:$0xff] }
 0xc00   :  { %4680 = vmatprep.subr.mxu0 %v11904_v0 }
 0xc01   :  { %4681 = vmatpush2.msra.mxu0 %v4612_v8 }
 0xc02   :  { %4683 = vmatmul.mubr.f32.vlgmr.msra.gmra.mxu0 %v14144_v12  ;;  %11361 = vmatprep.subr.mxu0 %v11904_v0 }
 0xc03   :  { %9914 = vmatprep.mubr.msk.f32.mxu0 %vm2339_vm4, %v13804_v18  ;;  %v9921_v18 = vld [vmem:[%s15933_s7 + $0x158] sm:$0xff]  ;;  %11362 = vmatpush3.msra.mxu0 %v9936_v41 }
 0xc04   :  { %11339 = vmatpush3.msra.mxu1 %v9921_v18  ;;  %11363 = vmatprep.subr.mxu0 %v11904_v0 }
 0xc05   :  { %11340 = vmatprep.subr.mxu1 %v11904_v0  ;;  %11364 = vmatpush3.msra.mxu0 %v9935_v59 }
 0xc06   :  { %4688 = vmatmul.mubr.f32.gmra.mxu0 %v13808_v21  ;;  %v9920_v21 = vld [vmem:[%s15933_s7 + $0x150] sm:$0xff]  ;;  %11365 = vmatprep.subr.mxu0 %v11904_v0 }
 0xc07   :  { %9915 = vmatprep.mubr.msk.f32.mxu0 %vm2339_vm4, %v13811_v36  ;;  %v9919_v36 = vld [vmem:[%s15933_s7 + $0x148] sm:$0xff]  ;;  %11341 = vmatpush3.msra.mxu1 %v9920_v21 }
 0xc08   :  { %11342 = vmatprep.subr.mxu1 %v11904_v0  ;;  %11366 = vmatpush3.msra.mxu0 %v9934_v3 }
 0xc09   :  { %11343 = vmatpush3.msra.mxu1 %v9919_v36  ;;  %11367 = vmatprep.subr.mxu0 %v11904_v0 }
 0xc0a   :  { %4693 = vmatmul.mubr.f32.gmra.mxu0 %v13815_v29  ;;  %v9918_v29 = vld [vmem:[%s15933_s7 + $0x140] sm:$0xff]  ;;  %11344 = vmatprep.subr.mxu1 %v11904_v0 }
 0xc0b   :  { %9916 = vmatprep.mubr.msk.f32.mxu0 %vm2339_vm4, %v13818_v39  ;;  %11345 = vmatpush3.msra.mxu1 %v9918_v29 }
 0xc0c   :  { %4845 = vmatprep.subr.mxu1 %v11904_v0  ;;  %11368 = vmatpush3.msra.mxu0 %v9933_v15 }
 0xc0d   :  { %5072 = vmatprep.subr.mxu0 %v11904_v0 }
 0xc0e   :  { %4698 = vmatmul.mubr.f32.gmra.mxu0 %v13822_v40 }
 0xc0f   :  { %9917 = vmatprep.mubr.msk.f32.mxu0 %vm2339_vm4, %v13825_v27 }
 0xc12   :  { %4703 = vmatmul.mubr.f32.gmra.mxu0 %v13829_v42 }
 0xc13   :  { %11369 = vmatprep.mubr.msk.f32.mxu0 %vm11905_vm2, %v11904_v0 }
 0xc9c   :  { %v4567_v39 = vpop.f32.mrf.mxu0 }
 0xc9d   :  { %v14179_v40 = vadd.f32 %v4567_v39, %v14096_v58 }
 0xc9e   :  { %v11325_v27 = vpop.f32.mrf.mxu0 }
 0xca0   :  { %v4572_v42 = vpop.f32.mrf.mxu0 }
 0xca1   :  { %v14182_v24 = vadd.f32 %v4572_v42, %v14099_v50 }
 0xca2   :  { %v11328_v14 = vpop.f32.mrf.mxu0 }
 0xca4   :  { %v4577_v6 = vpop.f32.mrf.mxu0 }
 0xca5   :  { %v14185_v19 = vadd.f32 %v4577_v6, %v14102_v23  ;;  %v4836_v23 = vld [vmem:[#allocation2 + $0x87] sm:$0xff] }
 0xca6   :  { %v11331_v20 = vpop.f32.mrf.mxu0 }
 0xca8   :  { %v4582_v55 = vpop.f32.mrf.mxu0 }
 0xca9   :  { %v14188_v9 = vadd.f32 %v4582_v55, %v14105_v44 }
 0xcaa   :  { %v11334_v35 = vpop.f32.mrf.mxu0 }
 0xcac   :  { %v4587_v22 = vpop.f32.mrf.mxu0 }
 0xcad   :  { %v14191_v4 = vadd.f32 %v4587_v22, %v14108_v17  ;;  %v4833_v17 = vld [vmem:[#allocation2 + $0x6f] sm:$0xff] }
 0xcae   :  { %v11337_v58 = vpop.f32.mrf.mxu0 }
 0xcc2   :  { %v4684_v5 = vpop.f32.mrf.mxu0 }
 0xcc3   :  { %11347 = vmatmul.mubr.msk.f32.vlgmr.msra.gmra.mxu1 %vm2293_vm5, %v4684_v5 }
 0xcc4   :  { %4846 = vmatpush1.msra.mxu1 %v4838_v43  ;;  %v4686_v50 = vpop.f32.mrf.mxu0  ;;  %11349 = vmatprep.mubr.msk.f32.mxu1 %vm11905_vm2, %v11904_v0 }
 0xcc5   :  { %4847 = vmatprep.subr.mxu1 %v11904_v0  ;;  %v5062_v50 = vld [vmem:[#allocation2 + $0x8a] sm:$0xff] }
 0xcc6   :  { %4848 = vmatpush1.msra.mxu1 %v4837_v11  ;;  %v4689_v60 = vpop.f32.mrf.mxu0 }
 0xcc7   :  { %4849 = vmatprep.subr.mxu1 %v11904_v0  ;;  %11350 = vmatmul.mubr.msk.f32.gmra.mxu1 %vm2293_vm5, %v4689_v60  ;;  %v5061_v60 = vld [vmem:[#allocation2 + $0x82] sm:$0xff] }
 0xcc8   :  { %4850 = vmatpush1.msra.mxu1 %v4836_v23  ;;  %v4691_v25 = vpop.f32.mrf.mxu0  ;;  %11352 = vmatprep.mubr.msk.f32.mxu1 %vm11905_vm2, %v11904_v0 }
 0xcc9   :  { %4851 = vmatprep.subr.mxu1 %v11904_v0  ;;  %v5060_v25 = vld [vmem:[#allocation2 + $0x7a] sm:$0xff] }
 0xcca   :  { %4852 = vmatpush1.msra.mxu1 %v4835_v32  ;;  %v4694_v44 = vpop.f32.mrf.mxu0 }
 0xccb   :  { %4853 = vmatprep.subr.mxu1 %v11904_v0  ;;  %11353 = vmatmul.mubr.msk.f32.gmra.mxu1 %vm2293_vm5, %v4694_v44  ;;  %v5059_v44 = vld [vmem:[#allocation2 + $0x72] sm:$0xff] }
 0xccc   :  { %4854 = vmatpush1.msra.mxu1 %v4834_v46  ;;  %v4696_v37 = vpop.f32.mrf.mxu0  ;;  %11355 = vmatprep.mubr.msk.f32.mxu1 %vm11905_vm2, %v11904_v0 }
 0xccd   :  { %4855 = vmatprep.subr.mxu1 %v11904_v0  ;;  %v5058_v37 = vld [vmem:[#allocation2 + $0x6a] sm:$0xff] }
 0xcce   :  { %4856 = vmatpush1.msra.mxu1 %v4833_v17  ;;  %v4699_v28 = vpop.f32.mrf.mxu0 }
 0xccf   :  { %4857 = vmatprep.subr.mxu1 %v11904_v0  ;;  %11356 = vmatmul.mubr.msk.f32.gmra.mxu1 %vm2293_vm5, %v4699_v28  ;;  %v5057_v28 = vld [vmem:[#allocation2 + $0x62] sm:$0xff] }
 0xcd0   :  { %4858 = vmatpush1.msra.mxu1 %v4832_v61  ;;  %v4701_v31 = vpop.f32.mrf.mxu0  ;;  %11358 = vmatprep.mubr.msk.f32.mxu1 %vm11905_vm2, %v11904_v0 }
 0xcd1   :  { %4859 = vmatprep.subr.mxu1 %v11904_v0  ;;  %v5056_v31 = vld [vmem:[#allocation2 + $0x5a] sm:$0xff] }
 0xcd2   :  { %4860 = vmatpush1.msra.mxu1 %v4831_v54  ;;  %v4704_v33 = vpop.f32.mrf.mxu0  ;;  %v5055_v54 = vld [vmem:[#allocation2 + $0x52] sm:$0xff] }
 0xcd3   :  { %4861 = vmatprep.subr.mxu1 %v11904_v0  ;;  %11359 = vmatmul.mubr.msk.f32.gmra.mxu1 %vm2293_vm5, %v4704_v33  ;;  %v5054_v33 = vld [vmem:[#allocation2 + $0x4a] sm:$0xff] }
 0xcd4   :  { %4862 = vmatpush1.msra.mxu1 %v4830_v62  ;;  %9928 = vmatprep.mubr.msk.f32.mxu1 %vm2339_vm4, %v13967_v10  ;;  %v4706_v38 = vpop.f32.mrf.mxu0  ;;  %v5053_v62 = vld [vmem:[#allocation2 + $0x42] sm:$0xff] }
 0xcd5   :  { %4863 = vmatprep.subr.mxu1 %v11904_v0  ;;  %v5051_v38 = vld [vmem:[#allocation2 + $0x32] sm:$0xff] }
 0xcd6   :  { %4864 = vmatpush1.msra.mxu1 %v4829_v34  ;;  %v5050_v34 = vld [vmem:[#allocation2 + $0x2a] sm:$0xff] }
 0xcd7   :  { %4865 = vmatprep.subr.mxu1 %v11904_v0 }
 0xcd8   :  { %4866 = vmatpush1.msra.mxu1 %v4828_v47  ;;  %v5068_v47 = vld [vmem:[#allocation2 + $0xba] sm:$0x7f] }
 0xcd9   :  { %4867 = vmatprep.subr.mxu1 %v11904_v0 }
 0xcda   :  { %4868 = vmatpush1.msra.mxu1 %v4827_v52  ;;  %v5067_v52 = vld [vmem:[#allocation2 + $0xb2] sm:$0xff] }
 0xcdb   :  { %4869 = vmatprep.subr.mxu1 %v11904_v0 }
 0xcdc   :  { %4870 = vmatpush1.msra.mxu1 %v4826_v53  ;;  %v5066_v53 = vld [vmem:[#allocation2 + $0xaa] sm:$0xff] }
 0xcdd   :  { %4871 = vmatprep.subr.mxu1 %v11904_v0 }
 0xcde   :  { %4872 = vmatpush1.msra.mxu1 %v4825_v2  ;;  %v9951_v2 = vld [vmem:[%s15933_s7 + $0x198] sm:$0xff] }
 0xcdf   :  { %4873 = vmatprep.subr.mxu1 %v11904_v0 }
 0xce0   :  { %4874 = vmatpush1.msra.mxu1 %v4824_v57  ;;  %v9950_v57 = vld [vmem:[%s15933_s7 + $0x190] sm:$0xff] }
 0xce1   :  { %4875 = vmatprep.subr.mxu1 %v11904_v0 }
 0xce2   :  { %4876 = vmatpush1.msra.mxu1 %v4823_v63  ;;  %v9949_v63 = vld [vmem:[%s15933_s7 + $0x188] sm:$0xff] }
 0xce3   :  { %4903 = vmatprep.subr.mxu1 %v11904_v0 }
 0xce4   :  { %9927 = vmatpush2.msk.msra.mxu1 %vm2355_vm7, %v4841_v48  ;;  %v9948_v48 = vld [vmem:[%s15933_s7 + $0x180] sm:$0xff] }
 0xce5   :  { %4905 = vmatprep.subr.mxu1 %v11904_v0 }
 0xce6   :  { %4906 = vmatpush2.msra.mxu1 %v4840_v13 }
 0xce7   :  { %4907 = vmatprep.subr.mxu1 %v11904_v0 }
 0xce8   :  { %4908 = vmatpush2.msra.mxu1 %v4839_v45 }
 0xce9   :  { %4910 = vmatmul.mubr.f32.vlgmr.msra.gmra.mxu1 %v14144_v12  ;;  %11384 = vmatprep.subr.mxu1 %v11904_v0 }
 0xcea   :  { %9929 = vmatprep.mubr.msk.f32.mxu1 %vm2339_vm4, %v14229_v1  ;;  %11385 = vmatpush3.msra.mxu1 %v9951_v2 }
 0xceb   :  { %11386 = vmatprep.subr.mxu1 %v11904_v0 }
 0xcec   :  { %11387 = vmatpush3.msra.mxu1 %v9950_v57 }
 0xced   :  { %4915 = vmatmul.mubr.f32.gmra.mxu1 %v14233_v56  ;;  %11388 = vmatprep.subr.mxu1 %v11904_v0 }
 0xcee   :  { %9930 = vmatprep.mubr.msk.f32.mxu1 %vm2339_vm4, %v14236_v26  ;;  %11389 = vmatpush3.msra.mxu1 %v9949_v63 }
 0xcef   :  { %11390 = vmatprep.subr.mxu1 %v11904_v0 }
 0xcf0   :  { %11391 = vmatpush3.msra.mxu1 %v9948_v48 }
 0xcf1   :  { %4920 = vmatmul.mubr.f32.gmra.mxu1 %v14240_v51  ;;  %5299 = vmatprep.subr.mxu1 %v11904_v0 }
 0xcf2   :  { %9931 = vmatprep.mubr.msk.f32.mxu1 %vm2339_vm4, %v14243_v30 }
 0xcf5   :  { %4925 = vmatmul.mubr.f32.gmra.mxu1 %v14247_v49 }
 0xcf6   :  { %9932 = vmatprep.mubr.msk.f32.mxu1 %vm2339_vm4, %v14250_v7 }
 0xcf9   :  { %4930 = vmatmul.mubr.f32.gmra.mxu1 %v14254_v16 }
 0xcfa   :  { %11392 = vmatprep.mubr.msk.f32.mxu1 %vm11905_vm2, %v11904_v0 }
 0xd83   :  { %v4794_v8 = vpop.f32.mrf.mxu1 }
 0xd84   :  { %v14276_v18 = vadd.f32 %v4794_v8, %v14179_v40 }
 0xd85   :  { %v11348_v21 = vpop.f32.mrf.mxu1 }
 0xd87   :  { %v4799_v36 = vpop.f32.mrf.mxu1 }
 0xd88   :  { %v14279_v29 = vadd.f32 %v4799_v36, %v14182_v24  ;;  %v5065_v24 = vld [vmem:[#allocation2 + $0xa2] sm:$0xff] }
 0xd89   :  { %v11351_v39 = vpop.f32.mrf.mxu1 }
 0xd8b   :  { %v4804_v27 = vpop.f32.mrf.mxu1 }
 0xd8c   :  { %v14282_v42 = vadd.f32 %v4804_v27, %v14185_v19  ;;  %v5064_v19 = vld [vmem:[#allocation2 + $0x9a] sm:$0xff] }
 0xd8d   :  { %v11354_v14 = vpop.f32.mrf.mxu1 }
 0xd8f   :  { %v4809_v6 = vpop.f32.mrf.mxu1 }
 0xd90   :  { %v14285_v20 = vadd.f32 %v4809_v6, %v14188_v9 }
 0xd91   :  { %v11357_v55 = vpop.f32.mrf.mxu1 }
 0xd93   :  { %v4814_v35 = vpop.f32.mrf.mxu1 }
 0xd94   :  { %v14288_v40 = vadd.f32 %v4814_v35, %v14191_v4  ;;  %v5063_v4 = vld [vmem:[#allocation2 + $0x92] sm:$0xff] }
 0xd95   :  { %v11360_v22 = vpop.f32.mrf.mxu1 }
 0xda9   :  { %v4911_v58 = vpop.f32.mrf.mxu1 }
 0xdaa   :  { %11370 = vmatmul.mubr.msk.f32.vlgmr.msra.gmra.mxu0 %vm2293_vm5, %v4911_v58 }
 0xdab   :  { %5073 = vmatpush1.msra.mxu0 %v5065_v24  ;;  %v4913_v5 = vpop.f32.mrf.mxu1  ;;  %11372 = vmatprep.mubr.msk.f32.mxu0 %vm11905_vm2, %v11904_v0  ;;  %v5289_v24 = vld [vmem:[#allocation2 + $0x8b] sm:$0xff] }
 0xdac   :  { %5074 = vmatprep.subr.mxu0 %v11904_v0 }
 0xdad   :  { %5075 = vmatpush1.msra.mxu0 %v5064_v19  ;;  %v4916_v9 = vpop.f32.mrf.mxu1  ;;  %v5288_v19 = vld [vmem:[#allocation2 + $0x83] sm:$0xff] }
 0xdae   :  { %5076 = vmatprep.subr.mxu0 %v11904_v0  ;;  %11373 = vmatmul.mubr.msk.f32.gmra.mxu0 %vm2293_vm5, %v4916_v9 }
 0xdaf   :  { %5077 = vmatpush1.msra.mxu0 %v5063_v4  ;;  %v4918_v43 = vpop.f32.mrf.mxu1  ;;  %11375 = vmatprep.mubr.msk.f32.mxu0 %vm11905_vm2, %v11904_v0  ;;  %v5287_v4 = vld [vmem:[#allocation2 + $0x7b] sm:$0xff] }
 0xdb0   :  { %5078 = vmatprep.subr.mxu0 %v11904_v0 }
 0xdb1   :  { %5079 = vmatpush1.msra.mxu0 %v5062_v50  ;;  %v4921_v11 = vpop.f32.mrf.mxu1  ;;  %v5286_v50 = vld [vmem:[#allocation2 + $0x73] sm:$0xff] }
 0xdb2   :  { %5080 = vmatprep.subr.mxu0 %v11904_v0  ;;  %11376 = vmatmul.mubr.msk.f32.gmra.mxu0 %vm2293_vm5, %v4921_v11 }
 0xdb3   :  { %5081 = vmatpush1.msra.mxu0 %v5061_v60  ;;  %v4923_v23 = vpop.f32.mrf.mxu1  ;;  %11378 = vmatprep.mubr.msk.f32.mxu0 %vm11905_vm2, %v11904_v0  ;;  %v5285_v60 = vld [vmem:[#allocation2 + $0x6b] sm:$0xff] }
 0xdb4   :  { %5082 = vmatprep.subr.mxu0 %v11904_v0 }
 0xdb5   :  { %5083 = vmatpush1.msra.mxu0 %v5060_v25  ;;  %v4926_v32 = vpop.f32.mrf.mxu1  ;;  %v5284_v25 = vld [vmem:[#allocation2 + $0x63] sm:$0xff] }
 0xdb6   :  { %5084 = vmatprep.subr.mxu0 %v11904_v0  ;;  %11379 = vmatmul.mubr.msk.f32.gmra.mxu0 %vm2293_vm5, %v4926_v32  ;;  %v14392_v32 = vld [vmem:[#allocation8 + $0x8] sm:$0xff] }
 0xdb7   :  { %5085 = vmatpush1.msra.mxu0 %v5059_v44  ;;  %v4928_v46 = vpop.f32.mrf.mxu1  ;;  %11381 = vmatprep.mubr.msk.f32.mxu0 %vm11905_vm2, %v11904_v0 }
 0xdb8   :  { %5086 = vmatprep.subr.mxu0 %v11904_v0  ;;  %v5283_v46 = vld [vmem:[#allocation2 + $0x5b] sm:$0xff] }
 0xdb9   :  { %5087 = vmatpush1.msra.mxu0 %v5058_v37  ;;  %v4931_v17 = vpop.f32.mrf.mxu1  ;;  %v5282_v37 = vld [vmem:[#allocation2 + $0x53] sm:$0xff] }
 0xdba   :  { %5088 = vmatprep.subr.mxu0 %v11904_v0  ;;  %11382 = vmatmul.mubr.msk.f32.gmra.mxu0 %vm2293_vm5, %v4931_v17  ;;  %v5281_v17 = vld [vmem:[#allocation2 + $0x4b] sm:$0xff] }
 0xdbb   :  { %5089 = vmatpush1.msra.mxu0 %v5057_v28  ;;  %9943 = vmatprep.mubr.msk.f32.mxu0 %vm2339_vm4, %v13967_v10  ;;  %v4933_v61 = vpop.f32.mrf.mxu1  ;;  %v5052_v10 = vld [vmem:[#allocation2 + $0x3a] sm:$0xff]  ;;  %v5280_v28 = vld [vmem:[#allocation2 + $0x43] sm:$0xff] }
 0xdbc   :  { %5090 = vmatprep.subr.mxu0 %v11904_v0  ;;  %v5279_v61 = vld [vmem:[#allocation2 + $0x3b] sm:$0xff] }
 0xdbd   :  { %5091 = vmatpush1.msra.mxu0 %v5056_v31  ;;  %v5278_v31 = vld [vmem:[#allocation2 + $0x33] sm:$0xff] }
 0xdbe   :  { %5092 = vmatprep.subr.mxu0 %v11904_v0 }
 0xdbf   :  { %5093 = vmatpush1.msra.mxu0 %v5055_v54  ;;  %v5277_v54 = vld [vmem:[#allocation2 + $0x2b] sm:$0xff] }
 0xdc0   :  { %5094 = vmatprep.subr.mxu0 %v11904_v0 }
 0xdc1   :  { %5095 = vmatpush1.msra.mxu0 %v5054_v33  ;;  %v5295_v33 = vld [vmem:[#allocation2 + $0xbb] sm:$0x7f] }
 0xdc2   :  { %5096 = vmatprep.subr.mxu0 %v11904_v0 }
 0xdc3   :  { %5097 = vmatpush1.msra.mxu0 %v5053_v62  ;;  %v5294_v62 = vld [vmem:[#allocation2 + $0xb3] sm:$0xff] }
 0xdc4   :  { %5098 = vmatprep.subr.mxu0 %v11904_v0 }
 0xdc5   :  { %5099 = vmatpush1.msra.mxu0 %v5052_v10  ;;  %v5293_v10 = vld [vmem:[#allocation2 + $0xab] sm:$0xff] }
 0xdc6   :  { %5100 = vmatprep.subr.mxu0 %v11904_v0 }
 0xdc7   :  { %5101 = vmatpush1.msra.mxu0 %v5051_v38  ;;  %v9966_v38 = vld [vmem:[%s15933_s7 + $0x1b8] sm:$0xff] }
 0xdc8   :  { %5102 = vmatprep.subr.mxu0 %v11904_v0 }
 0xdc9   :  { %5103 = vmatpush1.msra.mxu0 %v5050_v34  ;;  %v9965_v34 = vld [vmem:[%s15933_s7 + $0x1b0] sm:$0xff] }
 0xdca   :  { %5130 = vmatprep.subr.mxu0 %v11904_v0 }
 0xdcb   :  { %9942 = vmatpush2.msk.msra.mxu0 %vm2355_vm7, %v5068_v47  ;;  %v9964_v47 = vld [vmem:[%s15933_s7 + $0x1a8] sm:$0xff] }
 0xdcc   :  { %5132 = vmatprep.subr.mxu0 %v11904_v0 }
 0xdcd   :  { %5133 = vmatpush2.msra.mxu0 %v5067_v52  ;;  %v9963_v52 = vld [vmem:[%s15933_s7 + $0x1a0] sm:$0xff] }
 0xdce   :  { %5134 = vmatprep.subr.mxu0 %v11904_v0 }
 0xdcf   :  { %5135 = vmatpush2.msra.mxu0 %v5066_v53 }
 0xdd0   :  { %5137 = vmatmul.mubr.f32.vlgmr.msra.gmra.mxu0 %v14144_v12  ;;  %11407 = vmatprep.subr.mxu0 %v11904_v0 }
 0xdd1   :  { %9944 = vmatprep.mubr.msk.f32.mxu0 %vm2339_vm4, %v14229_v1  ;;  %11408 = vmatpush3.msra.mxu0 %v9966_v38 }
 0xdd2   :  { %11409 = vmatprep.subr.mxu0 %v11904_v0 }
 0xdd3   :  { %11410 = vmatpush3.msra.mxu0 %v9965_v34 }
 0xdd4   :  { %5142 = vmatmul.mubr.f32.gmra.mxu0 %v14233_v56  ;;  %11411 = vmatprep.subr.mxu0 %v11904_v0 }
 0xdd5   :  { %9945 = vmatprep.mubr.msk.f32.mxu0 %vm2339_vm4, %v14236_v26  ;;  %11412 = vmatpush3.msra.mxu0 %v9964_v47 }
 0xdd6   :  { %11413 = vmatprep.subr.mxu0 %v11904_v0 }
 0xdd7   :  { %11414 = vmatpush3.msra.mxu0 %v9963_v52 }
 0xdd8   :  { %5147 = vmatmul.mubr.f32.gmra.mxu0 %v14240_v51  ;;  %5526 = vmatprep.subr.mxu0 %v11904_v0 }
 0xdd9   :  { %9946 = vmatprep.mubr.msk.f32.mxu0 %vm2339_vm4, %v14243_v30 }
 0xddc   :  { %5152 = vmatmul.mubr.f32.gmra.mxu0 %v14247_v49 }
 0xddd   :  { %9947 = vmatprep.mubr.msk.f32.mxu0 %vm2339_vm4, %v14250_v7 }
 0xde0   :  { %5157 = vmatmul.mubr.f32.gmra.mxu0 %v14254_v16 }
 0xde1   :  { %11415 = vmatprep.mubr.msk.f32.mxu0 %vm11905_vm2, %v11904_v0 }
 0xe6a   :  { %v5021_v13 = vpop.f32.mrf.mxu0 }
 0xe6b   :  { %v14357_v45 = vadd.f32 %v5021_v13, %v14276_v18 }
 0xe6c   :  { %v11371_v41 = vpop.f32.mrf.mxu0 }
 0xe6e   :  { %v5026_v59 = vpop.f32.mrf.mxu0 }
 0xe6f   :  { %v14360_v3 = vadd.f32 %v5026_v59, %v14279_v29  ;;  %v5292_v29 = vld [vmem:[#allocation2 + $0xa3] sm:$0xff] }
 0xe70   :  { %v11374_v15 = vpop.f32.mrf.mxu0 }
 0xe72   :  { %v5031_v8 = vpop.f32.mrf.mxu0 }
 0xe73   :  { %v14363_v21 = vadd.f32 %v5031_v8, %v14282_v42  ;;  %v5291_v42 = vld [vmem:[#allocation2 + $0x9b] sm:$0xff] }
 0xe74   :  { %v11377_v36 = vpop.f32.mrf.mxu0 }
 0xe76   :  { %v5036_v39 = vpop.f32.mrf.mxu0 }
 0xe77   :  { %v14366_v27 = vadd.f32 %v5036_v39, %v14285_v20 }
 0xe78   :  { %v11380_v14 = vpop.f32.mrf.mxu0 }
 0xe7a   :  { %v5041_v6 = vpop.f32.mrf.mxu0 }
 0xe7b   :  { %v14369_v18 = vadd.f32 %v5041_v6, %v14288_v40  ;;  %v5290_v40 = vld [vmem:[#allocation2 + $0x93] sm:$0xff] }
 0xe7c   :  { %v11383_v55 = vpop.f32.mrf.mxu0 }
 0xe90   :  { %v5138_v35 = vpop.f32.mrf.mxu0 }
 0xe91   :  { %11393 = vmatmul.mubr.msk.f32.vlgmr.msra.gmra.mxu1 %vm2293_vm5, %v5138_v35 }
 0xe92   :  { %5300 = vmatpush1.msra.mxu1 %v5292_v29  ;;  %v5140_v22 = vpop.f32.mrf.mxu0  ;;  %11395 = vmatprep.mubr.msk.f32.mxu1 %vm11905_vm2, %v11904_v0 }
 0xe93   :  { %5301 = vmatprep.subr.mxu1 %v11904_v0  ;;  %v5516_v22 = vld [vmem:[#allocation2 + $0x8c] sm:$0xff] }
 0xe94   :  { %5302 = vmatpush1.msra.mxu1 %v5291_v42  ;;  %v5143_v20 = vpop.f32.mrf.mxu0 }
 0xe95   :  { %5303 = vmatprep.subr.mxu1 %v11904_v0  ;;  %11396 = vmatmul.mubr.msk.f32.gmra.mxu1 %vm2293_vm5, %v5143_v20  ;;  %v5515_v20 = vld [vmem:[#allocation2 + $0x84] sm:$0xff] }
 0xe96   :  { %5304 = vmatpush1.msra.mxu1 %v5290_v40  ;;  %v5145_v58 = vpop.f32.mrf.mxu0  ;;  %11398 = vmatprep.mubr.msk.f32.mxu1 %vm11905_vm2, %v11904_v0 }
 0xe97   :  { %5305 = vmatprep.subr.mxu1 %v11904_v0  ;;  %v5514_v58 = vld [vmem:[#allocation2 + $0x7c] sm:$0xff] }
 0xe98   :  { %5306 = vmatpush1.msra.mxu1 %v5289_v24  ;;  %v5148_v5 = vpop.f32.mrf.mxu0 }
 0xe99   :  { %5307 = vmatprep.subr.mxu1 %v11904_v0  ;;  %11399 = vmatmul.mubr.msk.f32.gmra.mxu1 %vm2293_vm5, %v5148_v5  ;;  %v5513_v5 = vld [vmem:[#allocation2 + $0x74] sm:$0xff] }
 0xe9a   :  { %5308 = vmatpush1.msra.mxu1 %v5288_v19  ;;  %v5150_v9 = vpop.f32.mrf.mxu0  ;;  %11401 = vmatprep.mubr.msk.f32.mxu1 %vm11905_vm2, %v11904_v0 }
 0xe9b   :  { %5309 = vmatprep.subr.mxu1 %v11904_v0  ;;  %v5512_v9 = vld [vmem:[#allocation2 + $0x6c] sm:$0xff] }
 0xe9c   :  { %5310 = vmatpush1.msra.mxu1 %v5287_v4  ;;  %v5153_v43 = vpop.f32.mrf.mxu0 }
 0xe9d   :  { %5311 = vmatprep.subr.mxu1 %v11904_v0  ;;  %11402 = vmatmul.mubr.msk.f32.gmra.mxu1 %vm2293_vm5, %v5153_v43  ;;  %v5511_v43 = vld [vmem:[#allocation2 + $0x64] sm:$0xff] }
 0xe9e   :  { %5312 = vmatpush1.msra.mxu1 %v5286_v50  ;;  %v5155_v11 = vpop.f32.mrf.mxu0  ;;  %11404 = vmatprep.mubr.msk.f32.mxu1 %vm11905_vm2, %v11904_v0 }
 0xe9f   :  { %5313 = vmatprep.subr.mxu1 %v11904_v0  ;;  %v5510_v11 = vld [vmem:[#allocation2 + $0x5c] sm:$0xff] }
 0xea0   :  { %5314 = vmatpush1.msra.mxu1 %v5285_v60  ;;  %v5158_v23 = vpop.f32.mrf.mxu0  ;;  %v5509_v60 = vld [vmem:[#allocation2 + $0x54] sm:$0xff] }
 0xea1   :  { %5315 = vmatprep.subr.mxu1 %v11904_v0  ;;  %11405 = vmatmul.mubr.msk.f32.gmra.mxu1 %vm2293_vm5, %v5158_v23  ;;  %v5508_v23 = vld [vmem:[#allocation2 + $0x4c] sm:$0xff] }
 0xea2   :  { %5316 = vmatpush1.msra.mxu1 %v5284_v25  ;;  %9958 = vmatprep.mubr.msk.f32.mxu1 %vm2339_vm4, %v14392_v32  ;;  %v5160_v44 = vpop.f32.mrf.mxu0  ;;  %v5507_v25 = vld [vmem:[#allocation2 + $0x44] sm:$0xff] }
 0xea3   :  { %5317 = vmatprep.subr.mxu1 %v11904_v0  ;;  %v5506_v44 = vld [vmem:[#allocation2 + $0x3c] sm:$0xff] }
 0xea4   :  { %5318 = vmatpush1.msra.mxu1 %v5283_v46  ;;  %v5505_v46 = vld [vmem:[#allocation2 + $0x34] sm:$0xff] }
 0xea5   :  { %5319 = vmatprep.subr.mxu1 %v11904_v0 }
 0xea6   :  { %5320 = vmatpush1.msra.mxu1 %v5282_v37  ;;  %v5504_v37 = vld [vmem:[#allocation2 + $0x2c] sm:$0xff] }
 0xea7   :  { %5321 = vmatprep.subr.mxu1 %v11904_v0 }
 0xea8   :  { %5322 = vmatpush1.msra.mxu1 %v5281_v17  ;;  %v5522_v17 = vld [vmem:[#allocation2 + $0xbc] sm:$0x7f] }
 0xea9   :  { %5323 = vmatprep.subr.mxu1 %v11904_v0 }
 0xeaa   :  { %5324 = vmatpush1.msra.mxu1 %v5280_v28  ;;  %v5521_v28 = vld [vmem:[#allocation2 + $0xb4] sm:$0xff] }
 0xeab   :  { %5325 = vmatprep.subr.mxu1 %v11904_v0 }
 0xeac   :  { %5326 = vmatpush1.msra.mxu1 %v5279_v61  ;;  %v5520_v61 = vld [vmem:[#allocation2 + $0xac] sm:$0xff] }
 0xead   :  { %5327 = vmatprep.subr.mxu1 %v11904_v0 }
 0xeae   :  { %5328 = vmatpush1.msra.mxu1 %v5278_v31  ;;  %v9980_v31 = vld [vmem:[%s15933_s7 + $0x1d0] sm:$0xff] }
 0xeaf   :  { %5329 = vmatprep.subr.mxu1 %v11904_v0 }
 0xeb0   :  { %5330 = vmatpush1.msra.mxu1 %v5277_v54  ;;  %v9979_v54 = vld [vmem:[%s15933_s7 + $0x1c8] sm:$0xff] }
 0xeb1   :  { %5357 = vmatprep.subr.mxu1 %v11904_v0 }
 0xeb2   :  { %9957 = vmatpush2.msk.msra.mxu1 %vm2355_vm7, %v5295_v33  ;;  %v9978_v33 = vld [vmem:[%s15933_s7 + $0x1c0] sm:$0xff] }
 0xeb3   :  { %5359 = vmatprep.subr.mxu1 %v11904_v0 }
 0xeb4   :  { %5360 = vmatpush2.msra.mxu1 %v5294_v62 }
 0xeb5   :  { %5361 = vmatprep.subr.mxu1 %v11904_v0 }
 0xeb6   :  { %5362 = vmatpush2.msra.mxu1 %v5293_v10 }
 0xeb7   :  { %5364 = vmatmul.mubr.f32.vlgmr.msra.gmra.mxu1 %v14144_v12  ;;  %11430 = vmatprep.subr.mxu1 %v11904_v0 }
 0xeb8   :  { %9959 = vmatprep.mubr.msk.f32.mxu1 %vm2339_vm4, %v14229_v1 }
 0xebb   :  { %5369 = vmatmul.mubr.f32.gmra.mxu1 %v14233_v56 }
 0xebc   :  { %9960 = vmatprep.mubr.msk.f32.mxu1 %vm2339_vm4, %v14236_v26 }
 0xebf   :  { %5374 = vmatmul.mubr.f32.gmra.mxu1 %v14240_v51 }
 0xec0   :  { %9961 = vmatprep.mubr.msk.f32.mxu1 %vm2339_vm4, %v14243_v30 }
 0xec3   :  { %5379 = vmatmul.mubr.f32.gmra.mxu1 %v14247_v49 }
 0xec4   :  { %9962 = vmatprep.mubr.msk.f32.mxu1 %vm2339_vm4, %v14250_v7 }
 0xec7   :  { %5384 = vmatmul.mubr.f32.gmra.mxu1 %v14254_v16 }
 0xec8   :  { %11438 = vmatprep.mubr.msk.f32.mxu1 %vm11905_vm2, %v11904_v0 }
 0xf51   :  { %v5248_v53 = vpop.f32.mrf.mxu1 }
 0xf52   :  { %v14440_v2 = vadd.f32 %v5248_v53, %v14357_v45 }
 0xf53   :  { %v11394_v57 = vpop.f32.mrf.mxu1 }
 0xf55   :  { %v5253_v63 = vpop.f32.mrf.mxu1 }
 0xf56   :  { %v14443_v48 = vadd.f32 %v5253_v63, %v14360_v3  ;;  %v5519_v3 = vld [vmem:[#allocation2 + $0xa4] sm:$0xff] }
 0xf57   :  { %v11397_v13 = vpop.f32.mrf.mxu1 }
 0xf59   :  { %v5258_v41 = vpop.f32.mrf.mxu1 }
 0xf5a   :  { %v14446_v59 = vadd.f32 %v5258_v41, %v14363_v21  ;;  %v5518_v21 = vld [vmem:[#allocation2 + $0x9c] sm:$0xff] }
 0xf5b   :  { %v11400_v15 = vpop.f32.mrf.mxu1 }
 0xf5d   :  { %v5263_v8 = vpop.f32.mrf.mxu1 }
 0xf5e   :  { %v14449_v36 = vadd.f32 %v5263_v8, %v14366_v27 }
 0xf5f   :  { %v11403_v39 = vpop.f32.mrf.mxu1 }
 0xf61   :  { %v5268_v14 = vpop.f32.mrf.mxu1 }
 0xf62   :  { %v14452_v45 = vadd.f32 %v5268_v14, %v14369_v18  ;;  %v5517_v18 = vld [vmem:[#allocation2 + $0x94] sm:$0xff] }
 0xf63   :  { %v11406_v6 = vpop.f32.mrf.mxu1 }
 0xf77   :  { %v5365_v55 = vpop.f32.mrf.mxu1 }
 0xf78   :  { %11416 = vmatmul.mubr.msk.f32.vlgmr.msra.gmra.mxu0 %vm2293_vm5, %v5365_v55 }
 0xf79   :  { %5527 = vmatpush1.msra.mxu0 %v5519_v3  ;;  %v5367_v35 = vpop.f32.mrf.mxu1  ;;  %11418 = vmatprep.mubr.msk.f32.mxu0 %vm11905_vm2, %v11904_v0  ;;  %v5743_v3 = vld [vmem:[#allocation2 + $0x8d] sm:$0xff] }
 0xf7a   :  { %5528 = vmatprep.subr.mxu0 %v11904_v0 }
 0xf7b   :  { %5529 = vmatpush1.msra.mxu0 %v5518_v21  ;;  %v5370_v27 = vpop.f32.mrf.mxu1  ;;  %v5742_v21 = vld [vmem:[#allocation2 + $0x85] sm:$0xff] }
 0xf7c   :  { %5530 = vmatprep.subr.mxu0 %v11904_v0  ;;  %11419 = vmatmul.mubr.msk.f32.gmra.mxu0 %vm2293_vm5, %v5370_v27 }
 0xf7d   :  { %5531 = vmatpush1.msra.mxu0 %v5517_v18  ;;  %v5372_v29 = vpop.f32.mrf.mxu1  ;;  %11421 = vmatprep.mubr.msk.f32.mxu0 %vm11905_vm2, %v11904_v0  ;;  %v5741_v18 = vld [vmem:[#allocation2 + $0x7d] sm:$0xff] }
 0xf7e   :  { %5532 = vmatprep.subr.mxu0 %v11904_v0 }
 0xf7f   :  { %5533 = vmatpush1.msra.mxu0 %v5516_v22  ;;  %v5375_v42 = vpop.f32.mrf.mxu1  ;;  %v5740_v22 = vld [vmem:[#allocation2 + $0x75] sm:$0xff] }
 0xf80   :  { %5534 = vmatprep.subr.mxu0 %v11904_v0  ;;  %11422 = vmatmul.mubr.msk.f32.gmra.mxu0 %vm2293_vm5, %v5375_v42 }
 0xf81   :  { %5535 = vmatpush1.msra.mxu0 %v5515_v20  ;;  %v5377_v40 = vpop.f32.mrf.mxu1  ;;  %11424 = vmatprep.mubr.msk.f32.mxu0 %vm11905_vm2, %v11904_v0  ;;  %v5739_v20 = vld [vmem:[#allocation2 + $0x6d] sm:$0xff] }
 0xf82   :  { %5536 = vmatprep.subr.mxu0 %v11904_v0 }
 0xf83   :  { %5537 = vmatpush1.msra.mxu0 %v5514_v58  ;;  %v5380_v24 = vpop.f32.mrf.mxu1  ;;  %v5738_v58 = vld [vmem:[#allocation2 + $0x65] sm:$0xff] }
 0xf84   :  { %5538 = vmatprep.subr.mxu0 %v11904_v0  ;;  %11425 = vmatmul.mubr.msk.f32.gmra.mxu0 %vm2293_vm5, %v5380_v24 }
 0xf85   :  { %5539 = vmatpush1.msra.mxu0 %v5513_v5  ;;  %v5382_v19 = vpop.f32.mrf.mxu1  ;;  %11427 = vmatprep.mubr.msk.f32.mxu0 %vm11905_vm2, %v11904_v0  ;;  %v5737_v5 = vld [vmem:[#allocation2 + $0x5d] sm:$0xff] }
 0xf86   :  { %5540 = vmatprep.subr.mxu0 %v11904_v0  ;;  %v5736_v19 = vld [vmem:[#allocation2 + $0x55] sm:$0xff] }
 0xf87   :  { %5541 = vmatpush1.msra.mxu0 %v5512_v9  ;;  %v5385_v4 = vpop.f32.mrf.mxu1  ;;  %v5735_v9 = vld [vmem:[#allocation2 + $0x4d] sm:$0xff] }
 0xf88   :  { %5542 = vmatprep.subr.mxu0 %v11904_v0  ;;  %11428 = vmatmul.mubr.msk.f32.gmra.mxu0 %vm2293_vm5, %v5385_v4  ;;  %v5734_v4 = vld [vmem:[#allocation2 + $0x45] sm:$0xff] }
 0xf89   :  { %5543 = vmatpush1.msra.mxu0 %v5511_v43  ;;  %9973 = vmatprep.mubr.msk.f32.mxu0 %vm2339_vm4, %v14392_v32  ;;  %v5387_v50 = vpop.f32.mrf.mxu1  ;;  %v5732_v43 = vld [vmem:[#allocation2 + $0x35] sm:$0xff] }
 0xf8a   :  { %5544 = vmatprep.subr.mxu0 %v11904_v0  ;;  %v5731_v50 = vld [vmem:[#allocation2 + $0x2d] sm:$0xff] }
 0xf8b   :  { %5545 = vmatpush1.msra.mxu0 %v5510_v11  ;;  %v5749_v11 = vld [vmem:[#allocation2 + $0xbd] sm:$0x7f] }
 0xf8c   :  { %5546 = vmatprep.subr.mxu0 %v11904_v0 }
 0xf8d   :  { %5547 = vmatpush1.msra.mxu0 %v5509_v60  ;;  %v5748_v60 = vld [vmem:[#allocation2 + $0xb5] sm:$0xff] }
 0xf8e   :  { %5548 = vmatprep.subr.mxu0 %v11904_v0 }
 0xf8f   :  { %5549 = vmatpush1.msra.mxu0 %v5508_v23  ;;  %v5747_v23 = vld [vmem:[#allocation2 + $0xad] sm:$0xff] }
 0xf90   :  { %5550 = vmatprep.subr.mxu0 %v11904_v0 }
 0xf91   :  { %5551 = vmatpush1.msra.mxu0 %v5507_v25  ;;  %v11810_v25 = vld [vmem:[#allocation8] sm:$0xff] }
 0xf92   :  { %5552 = vmatprep.subr.mxu0 %v11904_v0 }
 0xf93   :  { %5553 = vmatpush1.msra.mxu0 %v5506_v44 }
 0xf94   :  { %5554 = vmatprep.subr.mxu0 %v11904_v0 }
 0xf95   :  { %5555 = vmatpush1.msra.mxu0 %v5505_v46 }
 0xf96   :  { %5556 = vmatprep.subr.mxu0 %v11904_v0 }
 0xf97   :  { %5557 = vmatpush1.msra.mxu0 %v5504_v37 }
 0xf98   :  { %5584 = vmatprep.subr.mxu0 %v11904_v0 }
 0xf99   :  { %9972 = vmatpush2.msk.msra.mxu0 %vm2355_vm7, %v5522_v17 }
 0xf9a   :  { %5586 = vmatprep.subr.mxu0 %v11904_v0 }
 0xf9b   :  { %5587 = vmatpush2.msra.mxu0 %v5521_v28 }
 0xf9c   :  { %5588 = vmatprep.subr.mxu0 %v11904_v0 }
 0xf9d   :  { %5589 = vmatpush2.msra.mxu0 %v5520_v61 }
 0xf9e   :  { %5591 = vmatmul.mubr.f32.vlgmr.msra.gmra.mxu0 %v14144_v12  ;;  %11453 = vmatprep.subr.mxu0 %v11904_v0  ;;  %v9981_v12 = vld [vmem:[%s15933_s7 + $0x1d8] sm:$0xff] }
 0xf9f   :  { %9974 = vmatprep.mubr.msk.f32.mxu0 %vm2339_vm4, %v14229_v1  ;;  %11431 = vmatpush3.msra.mxu1 %v9981_v12 }
 0xfa0   :  { %11432 = vmatprep.subr.mxu1 %v11904_v0 }
 0xfa1   :  { %11433 = vmatpush3.msra.mxu1 %v9980_v31 }
 0xfa2   :  { %5596 = vmatmul.mubr.f32.gmra.mxu0 %v14233_v56  ;;  %11434 = vmatprep.subr.mxu1 %v11904_v0 }
 0xfa3   :  { %9975 = vmatprep.mubr.msk.f32.mxu0 %vm2339_vm4, %v14236_v26  ;;  %11435 = vmatpush3.msra.mxu1 %v9979_v54 }
 0xfa4   :  { %11436 = vmatprep.subr.mxu1 %v11904_v0 }
 0xfa5   :  { %11437 = vmatpush3.msra.mxu1 %v9978_v33 }
 0xfa6   :  { %5601 = vmatmul.mubr.f32.gmra.mxu0 %v14240_v51  ;;  %5753 = vmatprep.subr.mxu1 %v11904_v0 }
 0xfa7   :  { %9976 = vmatprep.mubr.msk.f32.mxu0 %vm2339_vm4, %v14243_v30 }
 0xfaa   :  { %5606 = vmatmul.mubr.f32.gmra.mxu0 %v14247_v49 }
 0xfab   :  { %9977 = vmatprep.mubr.msk.f32.mxu0 %vm2339_vm4, %v14250_v7 }
 0xfae   :  { %5611 = vmatmul.mubr.f32.gmra.mxu0 %v14254_v16 }
 0xfaf   :  { %11461 = vmatprep.mubr.msk.f32.mxu0 %vm11905_vm2, %v11904_v0 }
0x1038   :  { %v5475_v62 = vpop.f32.mrf.mxu0 }
0x1039   :  { %v14521_v10 = vadd.f32 %v5475_v62, %v14440_v2 }
0x103a   :  { %v11417_v38 = vpop.f32.mrf.mxu0 }
0x103c   :  { %v5480_v34 = vpop.f32.mrf.mxu0 }
0x103d   :  { %v14524_v47 = vadd.f32 %v5480_v34, %v14443_v48  ;;  %v5746_v48 = vld [vmem:[#allocation2 + $0xa5] sm:$0xff] }
0x103e   :  { %v11420_v52 = vpop.f32.mrf.mxu0 }
0x1040   :  { %v5485_v53 = vpop.f32.mrf.mxu0 }
0x1041   :  { %v14527_v57 = vadd.f32 %v5485_v53, %v14446_v59  ;;  %v5745_v59 = vld [vmem:[#allocation2 + $0x9d] sm:$0xff] }
0x1042   :  { %v11423_v63 = vpop.f32.mrf.mxu0 }
0x1044   :  { %v5490_v13 = vpop.f32.mrf.mxu0 }
0x1045   :  { %v14530_v41 = vadd.f32 %v5490_v13, %v14449_v36 }
0x1046   :  { %v11426_v15 = vpop.f32.mrf.mxu0 }
0x1047   :  { %v10016_v15 = vld [vmem:[%s15935_s9 + $0x78] sm:$0xff] }
0x1048   :  { %v5495_v8 = vpop.f32.mrf.mxu0 }
0x1049   :  { %v14533_v2 = vadd.f32 %v5495_v8, %v14452_v45  ;;  %v5744_v45 = vld [vmem:[#allocation2 + $0x95] sm:$0xff] }
0x104a   :  { %v11429_v39 = vpop.f32.mrf.mxu0  ;;  %v10015_v8 = vld [vmem:[%s15935_s9 + $0x70] sm:$0xff] }
0x104b   :  { %v10013_v39 = vld [vmem:[%s15935_s9 + $0x60] sm:$0xff] }
0x105e   :  { %v5592_v14 = vpop.f32.mrf.mxu0 }
0x105f   :  { %11439 = vmatmul.mubr.msk.f32.vlgmr.msra.gmra.mxu1 %vm2293_vm5, %v5592_v14  ;;  %v10012_v14 = vld [vmem:[%s15935_s9 + $0x58] sm:$0xff] }
0x1060   :  { %5754 = vmatpush1.msra.mxu1 %v5746_v48  ;;  %v5594_v6 = vpop.f32.mrf.mxu0  ;;  %11441 = vmatprep.mubr.msk.f32.mxu1 %vm11905_vm2, %v11904_v0  ;;  %v10011_v48 = vld [vmem:[%s15935_s9 + $0x50] sm:$0xff] }
0x1061   :  { %5755 = vmatprep.subr.mxu1 %v11904_v0  ;;  %v10010_v6 = vld [vmem:[%s15935_s9 + $0x48] sm:$0xff] }
0x1062   :  { %5756 = vmatpush1.msra.mxu1 %v5745_v59  ;;  %v5597_v36 = vpop.f32.mrf.mxu0  ;;  %v10009_v59 = vld [vmem:[%s15935_s9 + $0x40] sm:$0xff] }
0x1063   :  { %5757 = vmatprep.subr.mxu1 %v11904_v0  ;;  %11442 = vmatmul.mubr.msk.f32.gmra.mxu1 %vm2293_vm5, %v5597_v36  ;;  %v14649_v36 = vld [vmem:[%s15930_s4] sm:$0xff] }
0x1064   :  { %5758 = vmatpush1.msra.mxu1 %v5744_v45  ;;  %v5599_v55 = vpop.f32.mrf.mxu0  ;;  %11444 = vmatprep.mubr.msk.f32.mxu1 %vm11905_vm2, %v11904_v0 }
0x1065   :  { %5759 = vmatprep.subr.mxu1 %v11904_v0  ;;  %v10002_v55 = vld [vmem:[%s15934_s8] ss:$0 sm:$0xff] }
0x1066   :  { %5760 = vmatpush1.msra.mxu1 %v5743_v3  ;;  %v5602_v35 = vpop.f32.mrf.mxu0 }
0x1067   :  { %5761 = vmatprep.subr.mxu1 %v11904_v0  ;;  %11445 = vmatmul.mubr.msk.f32.gmra.mxu1 %vm2293_vm5, %v5602_v35 }
0x1068   :  { %5762 = vmatpush1.msra.mxu1 %v5742_v21  ;;  %v5604_v27 = vpop.f32.mrf.mxu0  ;;  %11447 = vmatprep.mubr.msk.f32.mxu1 %vm11905_vm2, %v11904_v0 }
0x1069   :  { %5763 = vmatprep.subr.mxu1 %v11904_v0 }
0x106a   :  { %5764 = vmatpush1.msra.mxu1 %v5741_v18  ;;  %v5607_v29 = vpop.f32.mrf.mxu0 }
0x106b   :  { %5765 = vmatprep.subr.mxu1 %v11904_v0  ;;  %11448 = vmatmul.mubr.msk.f32.gmra.mxu1 %vm2293_vm5, %v5607_v29 }
0x106c   :  { %5766 = vmatpush1.msra.mxu1 %v5740_v22  ;;  %v5609_v42 = vpop.f32.mrf.mxu0  ;;  %11450 = vmatprep.mubr.msk.f32.mxu1 %vm11905_vm2, %v11904_v0 }
0x106d   :  { %5767 = vmatprep.subr.mxu1 %v11904_v0 }
0x106e   :  { %5768 = vmatpush1.msra.mxu1 %v5739_v20  ;;  %v5612_v40 = vpop.f32.mrf.mxu0 }
0x106f   :  { %5769 = vmatprep.subr.mxu1 %v11904_v0  ;;  %11451 = vmatmul.mubr.msk.f32.gmra.mxu1 %vm2293_vm5, %v5612_v40 }
0x1070   :  { %5770 = vmatpush1.msra.mxu1 %v5738_v58  ;;  %9988 = vmatprep.mubr.msk.f32.mxu1 %vm2339_vm4, %v14392_v32  ;;  %v5614_v24 = vpop.f32.mrf.mxu0  ;;  %v5733_v32 = vld [vmem:[#allocation2 + $0x3d] sm:$0xff] }
0x1071   :  { %5771 = vmatprep.subr.mxu1 %v11904_v0 }
0x1072   :  { %5772 = vmatpush1.msra.mxu1 %v5737_v5 }
0x1073   :  { %5773 = vmatprep.subr.mxu1 %v11904_v0 }
0x1074   :  { %5774 = vmatpush1.msra.mxu1 %v5736_v19 }
0x1075   :  { %5775 = vmatprep.subr.mxu1 %v11904_v0 }
0x1076   :  { %5776 = vmatpush1.msra.mxu1 %v5735_v9 }
0x1077   :  { %5777 = vmatprep.subr.mxu1 %v11904_v0 }
0x1078   :  { %5778 = vmatpush1.msra.mxu1 %v5734_v4 }
0x1079   :  { %5779 = vmatprep.subr.mxu1 %v11904_v0 }
0x107a   :  { %5780 = vmatpush1.msra.mxu1 %v5733_v32 }
0x107b   :  { %5781 = vmatprep.subr.mxu1 %v11904_v0 }
0x107c   :  { %5782 = vmatpush1.msra.mxu1 %v5732_v43 }
0x107d   :  { %5783 = vmatprep.subr.mxu1 %v11904_v0 }
0x107e   :  { %5784 = vmatpush1.msra.mxu1 %v5731_v50 }
0x107f   :  { %5811 = vmatprep.subr.mxu1 %v11904_v0 }
0x1080   :  { %9987 = vmatpush2.msk.msra.mxu1 %vm2355_vm7, %v5749_v11 }
0x1081   :  { %5813 = vmatprep.subr.mxu1 %v11904_v0 }
0x1082   :  { %5814 = vmatpush2.msra.mxu1 %v5748_v60 }
0x1083   :  { %5815 = vmatprep.subr.mxu1 %v11904_v0 }
0x1084   :  { %5816 = vmatpush2.msra.mxu1 %v5747_v23 }
0x1085   :  { %5818 = vmatmul.mubr.f32.vlgmr.msra.gmra.mxu1 %v11810_v25 }
0x1086   :  { %9989 = vmatprep.mubr.msk.f32.mxu1 %vm2339_vm4, %v14229_v1  ;;  %v9996_v1 = vld [vmem:[%s15933_s7 + $0x1f8] sm:$0xff] }
0x1087   :  { %11454 = vmatpush3.msra.mxu0 %v9996_v1 }
0x1088   :  { %11455 = vmatprep.subr.mxu0 %v11904_v0 }
0x1089   :  { %5823 = vmatmul.mubr.f32.gmra.mxu1 %v14233_v56  ;;  %v9995_v56 = vld [vmem:[%s15933_s7 + $0x1f0] sm:$0xff] }
0x108a   :  { %9990 = vmatprep.mubr.msk.f32.mxu1 %vm2339_vm4, %v14236_v26  ;;  %v9994_v26 = vld [vmem:[%s15933_s7 + $0x1e8] sm:$0xff]  ;;  %11456 = vmatpush3.msra.mxu0 %v9995_v56 }
0x108b   :  { %11457 = vmatprep.subr.mxu0 %v11904_v0 }
0x108c   :  { %11458 = vmatpush3.msra.mxu0 %v9994_v26 }
0x108d   :  { %5828 = vmatmul.mubr.f32.gmra.mxu1 %v14240_v51  ;;  %11459 = vmatprep.subr.mxu0 %v11904_v0  ;;  %v9993_v51 = vld [vmem:[%s15933_s7 + $0x1e0] sm:$0xff] }
0x108e   :  { %9991 = vmatprep.mubr.msk.f32.mxu1 %vm2339_vm4, %v14243_v30  ;;  %11460 = vmatpush3.msra.mxu0 %v9993_v51 }
0x108f   :  { %11494 = vmatprep.subr.mxu0 %v10016_v15 }
0x1091   :  { %5833 = vmatmul.mubr.f32.gmra.mxu1 %v14247_v49 }
0x1092   :  { %9992 = vmatprep.mubr.msk.f32.mxu1 %vm2339_vm4, %v14250_v7 }
0x1095   :  { %5838 = vmatmul.mubr.f32.gmra.mxu1 %v14254_v16 }
0x1096   :  { %11482 = vmatprep.mubr.msk.f32.mxu1 %vm5985_vm8, %v14649_v36 }
0x111f   :  { %v5702_v30 = vpop.f32.mrf.mxu1 }
0x1120   :  { %v5726_v49 = vadd.f32 %v5702_v30, %v14521_v10 }
0x1121   :  { %v11440_v7 = vpop.f32.mrf.mxu1 }
0x1123   :  { %v5707_v16 = vpop.f32.mrf.mxu1 }
0x1124   :  { %v14598_v44 = vadd.f32 %v5707_v16, %v14524_v47 }
0x1125   :  { %v11443_v46 = vpop.f32.mrf.mxu1 }
0x1126   :  { %v6078_v46 = vld [vmem:[%s15935_s9 + $0x38] sm:$0xff] }
0x1127   :  { %v5712_v37 = vpop.f32.mrf.mxu1 }
0x1128   :  { %v14601_v17 = vadd.f32 %v5712_v37, %v14527_v57  ;;  %v6077_v37 = vld [vmem:[%s15935_s9 + $0x30] sm:$0xff] }
0x1129   :  { %v11446_v28 = vpop.f32.mrf.mxu1 }
0x112a   :  { %v6075_v28 = vld [vmem:[%s15935_s9 + $0x20] sm:$0xff] }
0x112b   :  { %v5717_v61 = vpop.f32.mrf.mxu1 }
0x112c   :  { %v14604_v12 = vadd.f32 %v5717_v61, %v14530_v41  ;;  %v6074_v61 = vld [vmem:[%s15935_s9 + $0x18] sm:$0xff] }
0x112d   :  { %v11449_v31 = vpop.f32.mrf.mxu1 }
0x112e   :  { %v6072_v31 = vld [vmem:[%s15935_s9 + $0x8] sm:$0xff] }
0x112f   :  { %v5722_v54 = vpop.f32.mrf.mxu1 }
0x1130   :  { %v14607_v33 = vadd.f32 %v5722_v54, %v14533_v2  ;;  %v10014_v2 = vld [vmem:[%s15935_s9 + $0x68] sm:$0xff]  ;;  %v6071_v54 = vld [vmem:[%s15935_s9] sm:$0xff] }
0x1131   :  { %v11452_v62 = vpop.f32.mrf.mxu1 }
0x1145   :  { %v5819_v10 = vpop.f32.mrf.mxu1 }
0x1146   :  { %11462 = vmatmul.mubr.msk.f32.vlgmr.msra.gmra.mxu0 %vm2293_vm5, %v5819_v10 }
0x1147   :  { %v5821_v38 = vpop.f32.mrf.mxu1  ;;  %11464 = vmatprep.mubr.msk.f32.mxu0 %vm11905_vm2, %v11904_v0  ;;  %11495 = vmatpush3.msra.mxu0 %v10016_v15  ;;  %v10025_v15 = vld [vmem:[%s15935_s9 + $0x88] sm:$0xff] }
0x1148   :  { %11496 = vmatprep.subr.mxu0 %v10015_v8  ;;  %v10030_v38 = vld [vmem:[%s15935_s9 + $0xb0] sm:$0xff] }
0x1149   :  { %v5824_v34 = vpop.f32.mrf.mxu1  ;;  %11497 = vmatpush3.msra.mxu0 %v10015_v8 }
0x114a   :  { %11465 = vmatmul.mubr.msk.f32.gmra.mxu0 %vm2293_vm5, %v5824_v34  ;;  %11498 = vmatprep.subr.mxu0 %v10014_v2  ;;  %v10029_v34 = vld [vmem:[%s15935_s9 + $0xa8] sm:$0xff] }
0x114b   :  { %v5826_v47 = vpop.f32.mrf.mxu1  ;;  %11467 = vmatprep.mubr.msk.f32.mxu0 %vm11905_vm2, %v11904_v0  ;;  %11499 = vmatpush3.msra.mxu0 %v10014_v2  ;;  %v10024_v2 = vld [vmem:[%s15935_s9 + $0x80] sm:$0xff] }
0x114c   :  { %11500 = vmatprep.subr.mxu0 %v10013_v39 }
0x114d   :  { %v5829_v52 = vpop.f32.mrf.mxu1  ;;  %11501 = vmatpush3.msra.mxu0 %v10013_v39 }
0x114e   :  { %11468 = vmatmul.mubr.msk.f32.gmra.mxu0 %vm2293_vm5, %v5829_v52  ;;  %11502 = vmatprep.subr.mxu0 %v10012_v14  ;;  %v10028_v52 = vld [vmem:[%s15935_s9 + $0xa0] sm:$0xff] }
0x114f   :  { %v5831_v53 = vpop.f32.mrf.mxu1  ;;  %11470 = vmatprep.mubr.msk.f32.mxu0 %vm11905_vm2, %v11904_v0  ;;  %11503 = vmatpush3.msra.mxu0 %v10012_v14 }
0x1150   :  { %11504 = vmatprep.subr.mxu0 %v10011_v48 }
0x1151   :  { %v5834_v57 = vpop.f32.mrf.mxu1  ;;  %11505 = vmatpush3.msra.mxu0 %v10011_v48 }
0x1152   :  { %11471 = vmatmul.mubr.msk.f32.gmra.mxu0 %vm2293_vm5, %v5834_v57  ;;  %11506 = vmatprep.subr.mxu0 %v10010_v6  ;;  %v10027_v57 = vld [vmem:[%s15935_s9 + $0x98] sm:$0xff] }
0x1153   :  { %v5836_v63 = vpop.f32.mrf.mxu1  ;;  %11473 = vmatprep.mubr.msk.f32.mxu0 %vm11905_vm2, %v11904_v0  ;;  %11507 = vmatpush3.msra.mxu0 %v10010_v6  ;;  %v10044_v6 = vld [vmem:[%s15935_s9 + $0xf8] sm:$0xff] }
0x1154   :  { %11508 = vmatprep.subr.mxu0 %v10009_v59 }
0x1155   :  { %v5839_v13 = vpop.f32.mrf.mxu1  ;;  %11509 = vmatpush3.msra.mxu0 %v10009_v59  ;;  %v10043_v59 = vld [vmem:[%s15935_s9 + $0xf0] sm:$0xff] }
0x1156   :  { %11474 = vmatmul.mubr.msk.f32.gmra.mxu0 %vm2293_vm5, %v5839_v13  ;;  %v10026_v13 = vld [vmem:[%s15935_s9 + $0x90] sm:$0xff] }
0x1157   :  { %v5841_v41 = vpop.f32.mrf.mxu1 }
0x1206   :  { %v5929_v45 = vpop.f32.mrf.mxu0 }
0x1207   :  { %v5953_v3 = vadd.f32 %v5929_v45, %v5726_v49  ;;  %v14677_v49 = vld [vmem:[%s15930_s4 + $0x8] sm:$0xff] }
0x1208   :  { %v11463_v35 = vpop.f32.mrf.mxu0  ;;  %v10042_v45 = vld [vmem:[%s15935_s9 + $0xe8] sm:$0xff] }
0x1209   :  { %v5965_v21 = vadd.f32 %v10002_v55, %v5953_v3  ;;  %v10040_v3 = vld [vmem:[%s15935_s9 + $0xd8] sm:$0xff]  ;;  %v10039_v35 = vld [vmem:[%s15935_s9 + $0xd0] sm:$0xff] }
0x120a   :  { %v5934_v27 = vpop.f32.mrf.mxu0 }
0x120b   :  { %v5970_v18 = vmax.f32 %v5965_v21, 0.0  ;;  %v5954_v29 = vadd.f32 %v5934_v27, %v14598_v44  ;;  %v10038_v21 = vld [vmem:[%s15935_s9 + $0xc8] sm:$0xff]  ;;  %v10037_v27 = vld [vmem:[%s15935_s9 + $0xc0] sm:$0xff] }
0x120c   :  { %v11466_v22 = vpop.f32.mrf.mxu0 }
0x120d   :  { %5976 = vst.msk [vmem:[#allocation3] sm:$0xff] %vm5975_vm9, %v5970_v18  ;;  %v5966_v42 = vadd.f32 %v10002_v55, %v5954_v29 }
0x120e   :  { %v5939_v20 = vpop.f32.mrf.mxu0 }
0x120f   :  { %v5971_v40 = vmax.f32 %v5966_v42, 0.0  ;;  %v5955_v58 = vadd.f32 %v5939_v20, %v14601_v17  ;;  %v6076_v17 = vld [vmem:[%s15935_s9 + $0x28] sm:$0xff] }
0x1210   :  { %v11469_v24 = vpop.f32.mrf.mxu0 }
0x1211   :  { %5977 = vst.msk [vmem:[#allocation3 + $0x8] sm:$0xff] %vm5975_vm9, %v5971_v40  ;;  %v5967_v5 = vadd.f32 %v10002_v55, %v5955_v58 }
0x1212   :  { %v5944_v19 = vpop.f32.mrf.mxu0 }
0x1213   :  { %v5972_v9 = vmax.f32 %v5967_v5, 0.0  ;;  %v5956_v4 = vadd.f32 %v5944_v19, %v14604_v12  ;;  %v6073_v12 = vld [vmem:[%s15935_s9 + $0x10] sm:$0xff] }
0x1214   :  { %v11472_v32 = vpop.f32.mrf.mxu0  ;;  %v5982_v30 = vld [vmem:[#allocation3] sm:$0xff] }
0x1215   :  { %5978 = vst.msk [vmem:[#allocation3 + $0x10] sm:$0xff] %vm5975_vm9, %v5972_v9  ;;  %v5968_v43 = vadd.f32 %v10002_v55, %v5956_v4  ;;  %v10057_v9 = vld [vmem:[%s15935_s9 + $0x138] sm:$0xff]  ;;  %v10056_v32 = vld [vmem:[%s15935_s9 + $0x130] sm:$0xff] }
0x1216   :  { %v5949_v50 = vpop.f32.mrf.mxu0 }
0x1217   :  { %v5973_v11 = vmax.f32 %v5968_v43, 0.0  ;;  %v5957_v60 = vadd.f32 %v5949_v50, %v14607_v33  ;;  %v10031_v33 = vld [vmem:[%s15935_s9 + $0xb8] sm:$0xff]  ;;  %v10055_v50 = vld [vmem:[%s15935_s9 + $0x128] sm:$0xff] }
0x1218   :  { %v11475_v23 = vpop.f32.mrf.mxu0  ;;  %v14670_v51 = vld [vmem:[#allocation3 + $0x8] sm:$0xff] }
0x1219   :  { %5979 = vst.msk [vmem:[#allocation3 + $0x18] sm:$0xff] %vm5975_vm9, %v5973_v11  ;;  %v5969_v25 = vadd.f32 %v10002_v55, %v5957_v60  ;;  %v6079_v44 = vld [vmem:[#allocation3 + $0x1] sm:$0xff]  ;;  %v10041_v55 = vld [vmem:[%s15935_s9 + $0xe0] sm:$0xff]  ;;  %v10070_v60 = vld [vmem:[%s15935_s9 + $0x178] sm:$0xff] }
0x121a   :  { %v6331_v41 = vld [vmem:[#allocation3 + $0x2] sm:$0xff]  ;;  %v10054_v11 = vld [vmem:[%s15935_s9 + $0x120] sm:$0xff]  ;;  %v10053_v23 = vld [vmem:[%s15935_s9 + $0x118] sm:$0xff] }
0x121b   :  { %v5974_v1 = vmax.f32 %v5969_v25, 0.0  ;;  %v6504_v14 = vld [vmem:[#allocation3 + $0x6] sm:$0xff] }
0x121c   :  { %v5984_v56 = vld [vmem:[#allocation3 + $0x10] sm:$0x3f]  ;;  %v6677_v19 = vld [vmem:[#allocation3 + $0x7] sm:$0xff] }
0x121d   :  { %v14664_v26 = vld [vmem:[#allocation3 + $0x12] sm:$0x3f]  ;;  %5981 = vst.msk [vmem:[#allocation3 + $0x20] sm:$0xf] %vm5980_vm10, %v5974_v1  ;;  %11476 = vmatprep.subr.msk.mxu1 %vm5992_vm11, %v5984_v56  ;;  %v6080_v16 = vld [vmem:[#allocation3 + $0x9] sm:$0xff] }
0x121e   :  { %11532 = vmatprep.subr.msk.mxu0 %vm5992_vm11, %v14664_v26  ;;  %11477 = vmatpush3.msk.msra.mxu1 %vm5992_vm11, %v5984_v56  ;;  %v6081_v7 = vld [vmem:[#allocation3 + $0x11] sm:$0x3f]  ;;  %v10069_v25 = vld [vmem:[%s15935_s9 + $0x170] sm:$0xff]  ;;  %v10068_v56 = vld [vmem:[%s15935_s9 + $0x168] sm:$0xff] }
0x121f   :  { %11478 = vmatprep.subr.mxu1 %v14670_v51  ;;  %v6332_v63 = vld [vmem:[#allocation3 + $0xa] sm:$0xff] }
0x1220   :  { %11479 = vmatpush3.msra.mxu1 %v14670_v51  ;;  %v6506_v8 = vld [vmem:[#allocation3 + $0x16] sm:$0x3f]  ;;  %v14747_v39 = vld [vmem:[#allocation3 + $0xe] sm:$0xff] }
0x1221   :  { %11480 = vmatprep.subr.mxu1 %v5982_v30  ;;  %v6679_v48 = vld [vmem:[#allocation3 + $0x17] sm:$0x3f]  ;;  %v6678_v24 = vld [vmem:[#allocation3 + $0xf] sm:$0xff] }
0x1222   :  { %11481 = vmatpush3.msra.mxu1 %v5982_v30  ;;  %v6852_v18 = vld [vmem:[#allocation3 + $0x18] sm:$0x3f]  ;;  %v6851_v43 = vld [vmem:[#allocation3 + $0x10] sm:$0xff]  ;;  %v10052_v1 = vld [vmem:[%s15935_s9 + $0x110] sm:$0xff] }
0x1223   :  { %11483 = vmatmul.mubr.msk.f32.vlgmr.msra.gmra.mxu1 %vm5985_vm8, %v14677_v49  ;;  %11485 = vmatprep.subr.msk.mxu1 %vm5992_vm11, %v6081_v7  ;;  %v10050_v30 = vld [vmem:[%s15935_s9 + $0x100] sm:$0xff] }
0x1224   :  { %11486 = vmatpush3.msk.msra.mxu1 %vm5992_vm11, %v6081_v7  ;;  %11491 = vmatprep.mubr.msk.f32.mxu1 %vm5985_vm8, %v14649_v36  ;;  %v10066_v7 = vld [vmem:[%s15935_s9 + $0x158] sm:$0xff] }
0x1225   :  { %11487 = vmatprep.subr.mxu1 %v6080_v16 }
0x1226   :  { %11488 = vmatpush3.msra.mxu1 %v6080_v16  ;;  %v10065_v16 = vld [vmem:[%s15935_s9 + $0x150] sm:$0xff] }
0x1227   :  { %11489 = vmatprep.subr.mxu1 %v6079_v44 }
0x1228   :  { %11490 = vmatpush3.msra.mxu1 %v6079_v44  ;;  %v7025_v44 = vld [vmem:[#allocation3 + $0x1c] sm:$0x3f] }
0x1229   :  { %11492 = vmatmul.mubr.msk.f32.vlgmr.msra.gmra.mxu1 %vm5985_vm8, %v14677_v49  ;;  %11513 = vmatprep.subr.mxu1 %v6078_v46 }
0x122a   :  { %11514 = vmatpush3.msra.mxu1 %v6078_v46  ;;  %v10064_v46 = vld [vmem:[%s15935_s9 + $0x148] sm:$0xff] }
0x122b   :  { %11515 = vmatprep.subr.mxu1 %v6077_v37 }
0x122c   :  { %11516 = vmatpush3.msra.mxu1 %v6077_v37  ;;  %v10063_v37 = vld [vmem:[%s15935_s9 + $0x140] sm:$0xff] }
0x122d   :  { %11517 = vmatprep.subr.mxu1 %v6076_v17 }
0x122e   :  { %11518 = vmatpush3.msra.mxu1 %v6076_v17  ;;  %v7198_v17 = vld [vmem:[#allocation3 + $0x1d] sm:$0x3f] }
0x122f   :  { %11519 = vmatprep.subr.mxu1 %v6075_v28 }
0x1230   :  { %11520 = vmatpush3.msra.mxu1 %v6075_v28 }
0x1231   :  { %11521 = vmatprep.subr.mxu1 %v6074_v61 }
0x1232   :  { %11522 = vmatpush3.msra.mxu1 %v6074_v61 }
0x1233   :  { %11523 = vmatprep.subr.mxu1 %v6073_v12 }
0x1234   :  { %11524 = vmatpush3.msra.mxu1 %v6073_v12 }
0x1235   :  { %11525 = vmatprep.subr.mxu1 %v6072_v31 }
0x1236   :  { %11526 = vmatpush3.msra.mxu1 %v6072_v31 }
0x1237   :  { %11527 = vmatprep.subr.mxu1 %v6071_v54 }
0x1238   :  { %11528 = vmatpush3.msra.mxu1 %v6071_v54 }
0x1239   :  { %11541 = vmatprep.subr.mxu1 %v10031_v33 }
0x12e3   :  { %v11484_v62 = vpop.f32.mrf.mxu1 }
0x12e5   :  { %v6062_v10 = vpop.f32.mrf.mxu1 }
0x12e6   :  { %11529 = vmatprep.mubr.msk.f32.mxu1 %vm5975_vm9, %v6062_v10 }
0x12e7   :  { %11530 = vmatmul.mubr.msk.f32.vlgmr.msra.gmra.mxu1 %vm5975_vm9, %v11484_v62 }
0x12e8   :  { %11542 = vmatpush3.msra.mxu1 %v10031_v33 }
0x12e9   :  { %11543 = vmatprep.subr.mxu1 %v10030_v38  ;;  %v11493_v47 = vpop.f32.mrf.mxu1 }
0x12ea   :  { %11544 = vmatpush3.msra.mxu1 %v10030_v38 }
0x12eb   :  { %11545 = vmatprep.subr.mxu1 %v10029_v34  ;;  %v6151_v53 = vpop.f32.mrf.mxu1 }
0x12ec   :  { %11546 = vmatpush3.msra.mxu1 %v10029_v34  ;;  %11510 = vmatprep.mubr.msk.f32.mxu0 %vm5975_vm9, %v6151_v53  ;;  %v7024_v53 = vld [vmem:[#allocation3 + $0x14] sm:$0xff] }
0x12ed   :  { %11547 = vmatprep.subr.mxu1 %v10028_v52  ;;  %11511 = vmatmul.mubr.msk.f32.vlgmr.msra.gmra.mxu0 %vm5975_vm9, %v11493_v47 }
0x12ee   :  { %11533 = vmatpush3.msk.msra.mxu0 %vm5992_vm11, %v14664_v26  ;;  %11548 = vmatpush3.msra.mxu1 %v10028_v52  ;;  %v10051_v26 = vld [vmem:[%s15935_s9 + $0x108] sm:$0xff] }
0x12ef   :  { %11534 = vmatprep.subr.mxu0 %v6332_v63  ;;  %11549 = vmatprep.subr.mxu1 %v10027_v57 }
0x12f0   :  { %11535 = vmatpush3.msra.mxu0 %v6332_v63  ;;  %11550 = vmatpush3.msra.mxu1 %v10027_v57  ;;  %v7023_v57 = vld [vmem:[#allocation3 + $0xc] sm:$0xff] }
0x12f1   :  { %11536 = vmatprep.subr.mxu0 %v6331_v41  ;;  %11551 = vmatprep.subr.mxu1 %v10026_v13  ;;  %v10083_v63 = vld [vmem:[%s15935_s9 + $0x1b8] sm:$0xff] }
0x12f2   :  { %11537 = vmatpush3.msra.mxu0 %v6331_v41  ;;  %11538 = vmatprep.mubr.msk.f32.mxu0 %vm5985_vm8, %v14649_v36  ;;  %v10082_v41 = vld [vmem:[%s15935_s9 + $0x1b0] sm:$0xff] }
0x12f3   :  { %11552 = vmatpush3.msra.mxu1 %v10026_v13  ;;  %11539 = vmatmul.mubr.msk.f32.vlgmr.msra.gmra.mxu0 %vm5985_vm8, %v14677_v49 }
0x12f4   :  { %11553 = vmatprep.subr.mxu1 %v10025_v15  ;;  %11560 = vmatprep.subr.msk.mxu0 %vm5992_vm11, %v6506_v8 }
0x12f5   :  { %11554 = vmatpush3.msra.mxu1 %v10025_v15  ;;  %11561 = vmatpush3.msk.msra.mxu0 %vm5992_vm11, %v6506_v8  ;;  %v10081_v8 = vld [vmem:[%s15935_s9 + $0x1a8] sm:$0xff] }
0x12f6   :  { %11555 = vmatprep.subr.mxu1 %v10024_v2  ;;  %11562 = vmatprep.subr.mxu0 %v14747_v39 }
0x12f7   :  { %11556 = vmatpush3.msra.mxu1 %v10024_v2  ;;  %11563 = vmatpush3.msra.mxu0 %v14747_v39  ;;  %v7197_v2 = vld [vmem:[#allocation3 + $0x15] sm:$0xff] }
0x12f8   :  { %11564 = vmatprep.subr.mxu0 %v6504_v14  ;;  %11588 = vmatprep.subr.msk.mxu1 %vm5992_vm11, %v6679_v48 }
0x12f9   :  { %11565 = vmatpush3.msra.mxu0 %v6504_v14  ;;  %11566 = vmatprep.mubr.msk.f32.mxu0 %vm5985_vm8, %v14649_v36  ;;  %v10080_v14 = vld [vmem:[%s15935_s9 + $0x1a0] sm:$0xff] }
0x12fa   :  { %11567 = vmatmul.mubr.msk.f32.vlgmr.msra.gmra.mxu0 %vm5985_vm8, %v14677_v49  ;;  %11569 = vmatprep.subr.mxu0 %v10044_v6 }
0x12fb   :  { %11570 = vmatpush3.msra.mxu0 %v10044_v6  ;;  %v10079_v6 = vld [vmem:[%s15935_s9 + $0x198] sm:$0xff] }
0x12fc   :  { %11571 = vmatprep.subr.mxu0 %v10043_v59 }
0x12fd   :  { %11572 = vmatpush3.msra.mxu0 %v10043_v59  ;;  %v10096_v59 = vld [vmem:[%s15935_s9 + $0x1f8] sm:$0xff] }
0x12fe   :  { %11573 = vmatprep.subr.mxu0 %v10042_v45 }
0x12ff   :  { %11574 = vmatpush3.msra.mxu0 %v10042_v45  ;;  %v10078_v45 = vld [vmem:[%s15935_s9 + $0x190] sm:$0xff] }
0x1300   :  { %11575 = vmatprep.subr.mxu0 %v10041_v55 }
0x1301   :  { %11576 = vmatpush3.msra.mxu0 %v10041_v55  ;;  %v10077_v55 = vld [vmem:[%s15935_s9 + $0x188] sm:$0xff] }
0x1302   :  { %11577 = vmatprep.subr.mxu0 %v10040_v3 }
0x1303   :  { %11578 = vmatpush3.msra.mxu0 %v10040_v3  ;;  %v10076_v3 = vld [vmem:[%s15935_s9 + $0x180] sm:$0xff] }
0x1304   :  { %11579 = vmatprep.subr.mxu0 %v10039_v35 }
0x1305   :  { %11580 = vmatpush3.msra.mxu0 %v10039_v35  ;;  %v7371_v35 = vld [vmem:[#allocation3 + $0x1e] sm:$0x3f] }
0x1306   :  { %11581 = vmatprep.subr.mxu0 %v10038_v21 }
0x1307   :  { %11582 = vmatpush3.msra.mxu0 %v10038_v21  ;;  %v10095_v21 = vld [vmem:[%s15935_s9 + $0x1f0] sm:$0xff] }
0x1308   :  { %11583 = vmatprep.subr.mxu0 %v10037_v27 }
0x1309   :  { %11584 = vmatpush3.msra.mxu0 %v10037_v27  ;;  %v10094_v27 = vld [vmem:[%s15935_s9 + $0x1e8] sm:$0xff] }
0x130a   :  { %11616 = vmatprep.subr.msk.mxu0 %vm5992_vm11, %v6852_v18 }
0x13a7   :  { %v11531_v22 = vpop.f32.mrf.mxu1 }
0x13a9   :  { %v6322_v28 = vpop.f32.mrf.mxu1 }
0x13ad   :  { %v11512_v29 = vpop.f32.mrf.mxu0 }
0x13ae   :  { %v14781_v42 = vadd.f32 %v11531_v22, %v11512_v29  ;;  %v10092_v29 = vld [vmem:[%s15935_s9 + $0x1d8] sm:$0xff]  ;;  %v10091_v22 = vld [vmem:[%s15935_s9 + $0x1d0] sm:$0xff] }
0x13af   :  { %v14783_v20 = vpop.f32.mrf.mxu0 }
0x13b0   :  { %v6323_v12 = vadd.f32 %v6322_v28, %v14783_v20  ;;  %v10089_v20 = vld [vmem:[%s15935_s9 + $0x1c0] sm:$0xff] }
0x13b3   :  { %v11540_v40 = vpop.f32.mrf.mxu0 }
0x13b5   :  { %v6403_v58 = vpop.f32.mrf.mxu0 }
0x13b6   :  { %11557 = vmatprep.mubr.msk.f32.mxu1 %vm5975_vm9, %v6403_v58 }
0x13b7   :  { %11558 = vmatmul.mubr.msk.f32.vlgmr.msra.gmra.mxu1 %vm5975_vm9, %v11540_v40 }
0x13b8   :  { %11589 = vmatpush3.msk.msra.mxu1 %vm5992_vm11, %v6679_v48  ;;  %11594 = vmatprep.mubr.msk.f32.mxu1 %vm5985_vm8, %v14649_v36  ;;  %v7196_v48 = vld [vmem:[#allocation3 + $0xd] sm:$0xff] }
0x13b9   :  { %11590 = vmatprep.subr.mxu1 %v6678_v24 }
0x13ba   :  { %v11568_v5 = vpop.f32.mrf.mxu0  ;;  %11591 = vmatpush3.msra.mxu1 %v6678_v24 }
0x13bb   :  { %11592 = vmatprep.subr.mxu1 %v6677_v19 }
0x13bc   :  { %v6576_v4 = vpop.f32.mrf.mxu0  ;;  %11593 = vmatpush3.msra.mxu1 %v6677_v19 }
0x13bd   :  { %11585 = vmatprep.mubr.msk.f32.mxu0 %vm5975_vm9, %v6576_v4  ;;  %11595 = vmatmul.mubr.msk.f32.vlgmr.msra.gmra.mxu1 %vm5985_vm8, %v14677_v49 }
0x13be   :  { %11597 = vmatprep.subr.mxu1 %v10057_v9  ;;  %11586 = vmatmul.mubr.msk.f32.vlgmr.msra.gmra.mxu0 %vm5975_vm9, %v11568_v5 }
0x13bf   :  { %11598 = vmatpush3.msra.mxu1 %v10057_v9  ;;  %11617 = vmatpush3.msk.msra.mxu0 %vm5992_vm11, %v6852_v18  ;;  %v10093_v18 = vld [vmem:[%s15935_s9 + $0x1e0] sm:$0xff] }
0x13c0   :  { %11599 = vmatprep.subr.mxu1 %v10056_v32  ;;  %11618 = vmatprep.subr.mxu0 %v6851_v43 }
0x13c1   :  { %11600 = vmatpush3.msra.mxu1 %v10056_v32  ;;  %11619 = vmatpush3.msra.mxu0 %v6851_v43 }
0x13c2   :  { %11601 = vmatprep.subr.mxu1 %v10055_v50  ;;  %11620 = vmatprep.subr.mxu0 %v14670_v51 }
0x13c3   :  { %11602 = vmatpush3.msra.mxu1 %v10055_v50  ;;  %11621 = vmatpush3.msra.mxu0 %v14670_v51  ;;  %v10067_v51 = vld [vmem:[%s15935_s9 + $0x160] sm:$0xff] }
0x13c4   :  { %11622 = vmatprep.mubr.msk.f32.mxu0 %vm5985_vm8, %v14649_v36  ;;  %11603 = vmatprep.subr.mxu1 %v10054_v11 }
0x13c5   :  { %11623 = vmatmul.mubr.msk.f32.vlgmr.msra.gmra.mxu0 %vm5985_vm8, %v14677_v49  ;;  %11625 = vmatprep.subr.mxu0 %v10070_v60 }
0x13c6   :  { %11604 = vmatpush3.msra.mxu1 %v10054_v11  ;;  %11626 = vmatpush3.msra.mxu0 %v10070_v60  ;;  %v7370_v11 = vld [vmem:[#allocation3 + $0x16] sm:$0xff] }
0x13c7   :  { %11605 = vmatprep.subr.mxu1 %v10053_v23  ;;  %11627 = vmatprep.subr.mxu0 %v10069_v25  ;;  %v10109_v60 = vld [vmem:[%s15935_s9 + $0x238] sm:$0xff] }
0x13c8   :  { %11606 = vmatpush3.msra.mxu1 %v10053_v23  ;;  %11628 = vmatpush3.msra.mxu0 %v10069_v25  ;;  %v10108_v25 = vld [vmem:[%s15935_s9 + $0x230] sm:$0xff] }
0x13c9   :  { %11607 = vmatprep.subr.mxu1 %v10052_v1  ;;  %11629 = vmatprep.subr.mxu0 %v10068_v56 }
0x13ca   :  { %11608 = vmatpush3.msra.mxu1 %v10052_v1  ;;  %11630 = vmatpush3.msra.mxu0 %v10068_v56  ;;  %v10104_v56 = vld [vmem:[%s15935_s9 + $0x210] sm:$0xff] }
0x13cb   :  { %11609 = vmatprep.subr.mxu1 %v10051_v26  ;;  %11631 = vmatprep.subr.mxu0 %v10067_v51 }
0x13cc   :  { %11610 = vmatpush3.msra.mxu1 %v10051_v26  ;;  %11632 = vmatpush3.msra.mxu0 %v10067_v51  ;;  %v10103_v26 = vld [vmem:[%s15935_s9 + $0x208] sm:$0xff]  ;;  %v10102_v51 = vld [vmem:[%s15935_s9 + $0x200] sm:$0xff] }
0x13cd   :  { %11611 = vmatprep.subr.mxu1 %v10050_v30  ;;  %11633 = vmatprep.subr.mxu0 %v10066_v7 }
0x13ce   :  { %11612 = vmatpush3.msra.mxu1 %v10050_v30  ;;  %11634 = vmatpush3.msra.mxu0 %v10066_v7  ;;  %v7558_v30 = vld [vmem:[%s15938_s12 + $0x8] sm:$0xff]  ;;  %v7557_v7 = vld [vmem:[%s15938_s12] sm:$0xff] }
0x13cf   :  { %11635 = vmatprep.subr.mxu0 %v10065_v16  ;;  %11644 = vmatprep.subr.msk.mxu1 %vm5992_vm11, %v7025_v44 }
0x13d0   :  { %11636 = vmatpush3.msra.mxu0 %v10065_v16 }
0x13d1   :  { %11637 = vmatprep.subr.mxu0 %v10064_v46 }
0x13d2   :  { %11638 = vmatpush3.msra.mxu0 %v10064_v46 }
0x13d3   :  { %11639 = vmatprep.subr.mxu0 %v10063_v37 }
0x13d4   :  { %11640 = vmatpush3.msra.mxu0 %v10063_v37 }
0x13d5   :  { %11672 = vmatprep.subr.msk.mxu0 %vm5992_vm11, %v7198_v17 }
0x1477   :  { %v11559_v61 = vpop.f32.mrf.mxu1 }
0x1478   :  { %v6503_v31 = vadd.f32 %v11559_v61, %v14781_v42  ;;  %v10090_v42 = vld [vmem:[%s15935_s9 + $0x1c8] sm:$0xff]  ;;  %v7669_v61 = vld [vmem:[%s15937_s11 + $0x78] sm:$0xff] }
0x1479   :  { %v6493_v54 = vpop.f32.mrf.mxu1 }
0x147a   :  { %v6502_v33 = vadd.f32 %v6493_v54, %v6323_v12  ;;  %v10130_v12 = vld [vmem:[%s15937_s11 + $0xf8] sm:$0xff]  ;;  %v7668_v54 = vld [vmem:[%s15937_s11 + $0x70] sm:$0xff] }
0x147d   :  { %v11596_v62 = vpop.f32.mrf.mxu1 }
0x147e   :  { %v11587_v10 = vpop.f32.mrf.mxu0 }
0x147f   :  { %v14853_v38 = vadd.f32 %v11587_v10, %v6503_v31  ;;  %v6749_v34 = vpop.f32.mrf.mxu1  ;;  %v7556_v31 = vld [vmem:[%s15927_s1] sm:$0x1]  ;;  %v10128_v10 = vld [vmem:[%s15937_s11 + $0xe8] sm:$0xff] }
0x1480   :  { %v6666_v47 = vpop.f32.mrf.mxu0  ;;  %11613 = vmatprep.mubr.msk.f32.mxu1 %vm5975_vm9, %v6749_v34  ;;  %v10127_v34 = vld [vmem:[%s15937_s11 + $0xe0] sm:$0xff] }
0x1481   :  { %v14856_v52 = vadd.f32 %v6666_v47, %v6502_v33  ;;  %11614 = vmatmul.mubr.msk.f32.vlgmr.msra.gmra.mxu1 %vm5975_vm9, %v11596_v62  ;;  %v10129_v33 = vld [vmem:[%s15937_s11 + $0xf0] sm:$0xff]  ;;  %v7667_v62 = vld [vmem:[%s15937_s11 + $0x68] sm:$0xff]  ;;  %v7665_v47 = vld [vmem:[%s15937_s11 + $0x58] sm:$0xff] }
0x1482   :  { %11645 = vmatpush3.msk.msra.mxu1 %vm5992_vm11, %v7025_v44  ;;  %11650 = vmatprep.mubr.msk.f32.mxu1 %vm5985_vm8, %v14649_v36 }
0x1483   :  { %11646 = vmatprep.subr.mxu1 %v7024_v53 }
0x1484   :  { %11647 = vmatpush3.msra.mxu1 %v7024_v53  ;;  %v7664_v53 = vld [vmem:[%s15937_s11 + $0x50] sm:$0xff] }
0x1485   :  { %v11624_v13 = vpop.f32.mrf.mxu0  ;;  %11648 = vmatprep.subr.mxu1 %v7023_v57 }
0x1486   :  { %11649 = vmatpush3.msra.mxu1 %v7023_v57  ;;  %v10125_v57 = vld [vmem:[%s15937_s11 + $0xd0] sm:$0xff] }
0x1487   :  { %v6922_v15 = vpop.f32.mrf.mxu0  ;;  %11651 = vmatmul.mubr.msk.f32.vlgmr.msra.gmra.mxu1 %vm5985_vm8, %v14677_v49  ;;  %11653 = vmatprep.subr.mxu1 %v10083_v63 }
0x1488   :  { %11641 = vmatprep.mubr.msk.f32.mxu0 %vm5975_vm9, %v6922_v15  ;;  %11654 = vmatpush3.msra.mxu1 %v10083_v63  ;;  %v7663_v63 = vld [vmem:[%s15937_s11 + $0x48] sm:$0xff]  ;;  %v7662_v15 = vld [vmem:[%s15937_s11 + $0x40] sm:$0xff] }
0x1489   :  { %11642 = vmatmul.mubr.msk.f32.vlgmr.msra.gmra.mxu0 %vm5975_vm9, %v11624_v13  ;;  %11655 = vmatprep.subr.mxu1 %v10082_v41  ;;  %v10124_v13 = vld [vmem:[%s15937_s11 + $0xc8] sm:$0xff] }
0x148a   :  { %11673 = vmatpush3.msk.msra.mxu0 %vm5992_vm11, %v7198_v17  ;;  %11656 = vmatpush3.msra.mxu1 %v10082_v41  ;;  %v10123_v41 = vld [vmem:[%s15937_s11 + $0xc0] sm:$0xff] }
0x148b   :  { %11674 = vmatprep.subr.mxu0 %v7197_v2  ;;  %11657 = vmatprep.subr.mxu1 %v10081_v8 }
0x148c   :  { %11675 = vmatpush3.msra.mxu0 %v7197_v2  ;;  %11658 = vmatpush3.msra.mxu1 %v10081_v8  ;;  %v10122_v8 = vld [vmem:[%s15937_s11 + $0xb8] sm:$0xff] }
0x148d   :  { %11676 = vmatprep.subr.mxu0 %v7196_v48  ;;  %11678 = vmatprep.mubr.msk.f32.mxu0 %vm5985_vm8, %v14649_v36  ;;  %v7661_v2 = vld [vmem:[%s15937_s11 + $0x38] sm:$0xff] }
0x148e   :  { %11677 = vmatpush3.msra.mxu0 %v7196_v48  ;;  %11659 = vmatprep.subr.mxu1 %v10080_v14  ;;  %v7660_v48 = vld [vmem:[%s15937_s11 + $0x30] sm:$0xff] }
0x148f   :  { %11679 = vmatmul.mubr.msk.f32.vlgmr.msra.gmra.mxu0 %vm5985_vm8, %v14677_v49  ;;  %11660 = vmatpush3.msra.mxu1 %v10080_v14  ;;  %v10121_v14 = vld [vmem:[%s15937_s11 + $0xb0] sm:$0xff] }
0x1490   :  { %11661 = vmatprep.subr.mxu1 %v10079_v6  ;;  %11681 = vmatprep.subr.mxu0 %v10096_v59 }
0x1491   :  { %11662 = vmatpush3.msra.mxu1 %v10079_v6  ;;  %11682 = vmatpush3.msra.mxu0 %v10096_v59  ;;  %v10120_v6 = vld [vmem:[%s15937_s11 + $0xa8] sm:$0xff] }
0x1492   :  { %11663 = vmatprep.subr.mxu1 %v10078_v45  ;;  %11683 = vmatprep.subr.mxu0 %v10095_v21  ;;  %v7659_v59 = vld [vmem:[%s15937_s11 + $0x28] sm:$0xff] }
0x1493   :  { %11664 = vmatpush3.msra.mxu1 %v10078_v45  ;;  %11684 = vmatpush3.msra.mxu0 %v10095_v21  ;;  %v10119_v45 = vld [vmem:[%s15937_s11 + $0xa0] sm:$0xff]  ;;  %v10117_v21 = vld [vmem:[%s15937_s11 + $0x90] sm:$0xff] }
0x1494   :  { %11665 = vmatprep.subr.mxu1 %v10077_v55  ;;  %11685 = vmatprep.subr.mxu0 %v10094_v27 }
0x1495   :  { %11666 = vmatpush3.msra.mxu1 %v10077_v55  ;;  %11686 = vmatpush3.msra.mxu0 %v10094_v27  ;;  %v7658_v55 = vld [vmem:[%s15937_s11 + $0x20] sm:$0xff]  ;;  %v7656_v27 = vld [vmem:[%s15937_s11 + $0x10] sm:$0xff] }
0x1496   :  { %11667 = vmatprep.subr.mxu1 %v10076_v3  ;;  %11687 = vmatprep.subr.mxu0 %v10093_v18 }
0x1497   :  { %11668 = vmatpush3.msra.mxu1 %v10076_v3  ;;  %11688 = vmatpush3.msra.mxu0 %v10093_v18  ;;  %v10118_v3 = vld [vmem:[%s15937_s11 + $0x98] sm:$0xff]  ;;  %v10116_v18 = vld [vmem:[%s15937_s11 + $0x88] sm:$0xff] }
0x1498   :  { %11700 = vmatprep.subr.msk.mxu1 %vm5992_vm11, %v7371_v35  ;;  %11689 = vmatprep.subr.mxu0 %v10092_v29 }
0x1499   :  { %11690 = vmatpush3.msra.mxu0 %v10092_v29  ;;  %v7655_v29 = vld [vmem:[%s15937_s11 + $0x8] sm:$0xff] }
0x149a   :  { %11691 = vmatprep.subr.mxu0 %v10091_v22 }
0x149b   :  { %11692 = vmatpush3.msra.mxu0 %v10091_v22  ;;  %v10115_v22 = vld [vmem:[%s15937_s11 + $0x80] sm:$0xff] }
0x149c   :  { %11693 = vmatprep.subr.mxu0 %v10090_v42 }
0x149d   :  { %11694 = vmatpush3.msra.mxu0 %v10090_v42  ;;  %v7654_v42 = vld [vmem:[%s15937_s11] sm:$0xff] }
0x149e   :  { %11695 = vmatprep.subr.mxu0 %v10089_v20 }
0x149f   :  { %11696 = vmatpush3.msra.mxu0 %v10089_v20  ;;  %v10147_v20 = vld [vmem:[%s15937_s11 + $0x178] sm:$0xff] }
0x14a0   :  { %7593 = vmatprep.subr.mxu0 %v7558_v30  ;;  %v10161_v30 = vld [vmem:[%s15937_s11 + $0x1e0] sm:$0xff] }
0x1541   :  { %v11615_v40 = vpop.f32.mrf.mxu1 }
0x1542   :  { %v6849_v58 = vadd.f32 %v11615_v40, %v14853_v38  ;;  %v7666_v38 = vld [vmem:[%s15937_s11 + $0x60] sm:$0xff]  ;;  %v10164_v40 = vld [vmem:[%s15937_s11 + $0x1f8] sm:$0xff] }
0x1543   :  { %v6839_v24 = vpop.f32.mrf.mxu1 }
0x1544   :  { %v6848_v5 = vadd.f32 %v6839_v24, %v14856_v52  ;;  %v10126_v52 = vld [vmem:[%s15937_s11 + $0xd8] sm:$0xff] }
0x1547   :  { %v11652_v19 = vpop.f32.mrf.mxu1 }
0x1549   :  { %v11643_v9 = vpop.f32.mrf.mxu0  ;;  %v7095_v4 = vpop.f32.mrf.mxu1 }
0x154a   :  { %v7022_v32 = vadd.f32 %v11643_v9, %v6849_v58  ;;  %11669 = vmatprep.mubr.msk.f32.mxu1 %vm5975_vm9, %v7095_v4  ;;  %v10112_v9 = vld [vmem:[%s15936_s10] ss:$0 sm:$0xff] }
0x154b   :  { %v7012_v43 = vpop.f32.mrf.mxu0  ;;  %11670 = vmatmul.mubr.msk.f32.vlgmr.msra.gmra.mxu1 %vm5975_vm9, %v11652_v19 }
0x154c   :  { %v7021_v50 = vadd.f32 %v7012_v43, %v6848_v5  ;;  %11701 = vmatpush3.msk.msra.mxu1 %vm5992_vm11, %v7371_v35  ;;  %11706 = vmatprep.mubr.msk.f32.mxu1 %vm5985_vm8, %v14649_v36  ;;  %v10107_v36 = vld [vmem:[%s15935_s9 + $0x228] sm:$0xff]  ;;  %v7657_v35 = vld [vmem:[%s15937_s11 + $0x18] sm:$0xff] }
0x154d   :  { %11702 = vmatprep.subr.mxu1 %v7370_v11 }
0x154e   :  { %11703 = vmatpush3.msra.mxu1 %v7370_v11 }
0x154f   :  { %v11680_v23 = vpop.f32.mrf.mxu0  ;;  %11704 = vmatprep.subr.mxu1 %v14747_v39 }
0x1550   :  { %11705 = vmatpush3.msra.mxu1 %v14747_v39  ;;  %v10106_v39 = vld [vmem:[%s15935_s9 + $0x220] sm:$0xff] }
0x1551   :  { %v7268_v1 = vpop.f32.mrf.mxu0  ;;  %11707 = vmatmul.mubr.msk.f32.vlgmr.msra.gmra.mxu1 %vm5985_vm8, %v14677_v49  ;;  %11709 = vmatprep.subr.mxu1 %v10109_v60  ;;  %v10105_v49 = vld [vmem:[%s15935_s9 + $0x218] sm:$0xff] }
0x1552   :  { %11697 = vmatprep.mubr.msk.f32.mxu0 %vm5975_vm9, %v7268_v1  ;;  %11710 = vmatpush3.msra.mxu1 %v10109_v60  ;;  %v10146_v1 = vld [vmem:[%s15937_s11 + $0x170] sm:$0xff] }
0x1553   :  { %11698 = vmatmul.mubr.msk.f32.vlgmr.msra.gmra.mxu0 %vm5975_vm9, %v11680_v23  ;;  %11711 = vmatprep.subr.mxu1 %v10108_v25 }
0x1554   :  { %11712 = vmatpush3.msra.mxu1 %v10108_v25  ;;  %7627 = vmatprep.mubr.f32.mxu0 %v11904_v0 }
0x1555   :  { %11713 = vmatprep.subr.mxu1 %v10107_v36  ;;  %7594 = vmatpush1.msra.mxu0 %v7557_v7  ;;  %v10143_v7 = vld [vmem:[%s15937_s11 + $0x158] sm:$0xff] }
0x1556   :  { %11714 = vmatpush3.msra.mxu1 %v10107_v36  ;;  %7689 = vmatprep.subr.mxu0 %v7669_v61  ;;  %v10163_v36 = vld [vmem:[%s15937_s11 + $0x1f0] sm:$0xff]  ;;  %v10157_v61 = vld [vmem:[%s15937_s11 + $0x1c0] sm:$0xff] }
0x1557   :  { %11715 = vmatprep.subr.mxu1 %v10106_v39  ;;  %10113 = vmatmul.mubr.msk.f32.vlgmr.msra.gmra.mxu0 %vm7559_vm12, %v7556_v31  ;;  %v10156_v31 = vld [vmem:[%s15937_s11 + $0x1b8] sm:$0xff] }
0x1558   :  { %11716 = vmatpush3.msra.mxu1 %v10106_v39  ;;  %7690 = vmatpush1.msra.mxu0 %v7668_v54  ;;  %v10145_v39 = vld [vmem:[%s15937_s11 + $0x168] sm:$0xff]  ;;  %v10138_v54 = vld [vmem:[%s15937_s11 + $0x130] sm:$0xff] }
0x1559   :  { %11717 = vmatprep.subr.mxu1 %v10105_v49  ;;  %7691 = vmatprep.subr.mxu0 %v7667_v62  ;;  %v10137_v62 = vld [vmem:[%s15937_s11 + $0x128] sm:$0xff] }
0x155a   :  { %11718 = vmatpush3.msra.mxu1 %v10105_v49  ;;  %7692 = vmatpush1.msra.mxu0 %v7666_v38  ;;  %v10136_v38 = vld [vmem:[%s15937_s11 + $0x120] sm:$0xff] }
0x155b   :  { %11719 = vmatprep.subr.mxu1 %v10104_v56  ;;  %7693 = vmatprep.subr.mxu0 %v7665_v47  ;;  %v10135_v47 = vld [vmem:[%s15937_s11 + $0x118] sm:$0xff] }
0x155c   :  { %11720 = vmatpush3.msra.mxu1 %v10104_v56  ;;  %7694 = vmatpush1.msra.mxu0 %v7664_v53  ;;  %v10134_v53 = vld [vmem:[%s15937_s11 + $0x110] sm:$0xff] }
0x155d   :  { %11721 = vmatprep.subr.mxu1 %v10103_v26  ;;  %7695 = vmatprep.subr.mxu0 %v7663_v63  ;;  %v10133_v63 = vld [vmem:[%s15937_s11 + $0x108] sm:$0xff] }
0x155e   :  { %11722 = vmatpush3.msra.mxu1 %v10103_v26  ;;  %7696 = vmatpush1.msra.mxu0 %v7662_v15  ;;  %v10162_v26 = vld [vmem:[%s15937_s11 + $0x1e8] sm:$0xff]  ;;  %v10149_v15 = vld [vmem:[%s15937_s11 + $0x180] sm:$0xff] }
0x155f   :  { %11723 = vmatprep.subr.mxu1 %v10102_v51  ;;  %7697 = vmatprep.subr.mxu0 %v7661_v2  ;;  %v10198_v2 = vld [vmem:[%s15937_s11 + $0x2f8] sm:$0xff] }
0x1560   :  { %11724 = vmatpush3.msra.mxu1 %v10102_v51  ;;  %7698 = vmatpush1.msra.mxu0 %v7660_v48  ;;  %v10144_v51 = vld [vmem:[%s15937_s11 + $0x160] sm:$0xff] }
0x1561   :  { %7800 = vmatprep.subr.mxu1 %v10130_v12  ;;  %7699 = vmatprep.subr.mxu0 %v7659_v59  ;;  %v10139_v12 = vld [vmem:[%s15937_s11 + $0x138] sm:$0xff]  ;;  %v10197_v59 = vld [vmem:[%s15937_s11 + $0x2f0] sm:$0xff] }
0x1562   :  { %7700 = vmatpush1.msra.mxu0 %v7658_v55  ;;  %7737 = vmatprep.mubr.f32.mxu0 %v11904_v0  ;;  %v10196_v55 = vld [vmem:[%s15937_s11 + $0x2e8] sm:$0xff] }
0x1563   :  { %7701 = vmatprep.subr.mxu0 %v7657_v35  ;;  %v10195_v35 = vld [vmem:[%s15937_s11 + $0x2e0] sm:$0xff] }
0x1564   :  { %7702 = vmatpush1.msra.mxu0 %v7656_v27  ;;  %v10194_v27 = vld [vmem:[%s15937_s11 + $0x2d8] sm:$0xff] }
0x1565   :  { %7703 = vmatprep.subr.mxu0 %v7655_v29  ;;  %v10193_v29 = vld [vmem:[%s15937_s11 + $0x2d0] sm:$0xff] }
0x1566   :  { %7704 = vmatpush1.msra.mxu0 %v7654_v42  ;;  %v10192_v42 = vld [vmem:[%s15937_s11 + $0x2c8] sm:$0xff] }
0x1567   :  { %7911 = vmatprep.subr.mxu0 %v10147_v20  ;;  %v10174_v20 = vld [vmem:[%s15937_s11 + $0x240] sm:$0xff] }
0x160b   :  { %v11671_v16 = vpop.f32.mrf.mxu1 }
0x160c   :  { %v14964_v44 = vadd.f32 %v11671_v16, %v7022_v32  ;;  %v10160_v16 = vld [vmem:[%s15937_s11 + $0x1d8] sm:$0xff] }
0x160d   :  { %v7185_v46 = vpop.f32.mrf.mxu1 }
0x160e   :  { %v14966_v37 = vadd.f32 %v7185_v46, %v7021_v50  ;;  %v10159_v46 = vld [vmem:[%s15937_s11 + $0x1d0] sm:$0xff] }
0x1611   :  { %v11708_v17 = vpop.f32.mrf.mxu1 }
0x1613   :  { %v7441_v28 = vpop.f32.mrf.mxu1  ;;  %v11699_v58 = vpop.f32.mrf.mxu0 }
0x1614   :  { %11725 = vmatprep.mubr.msk.f32.mxu1 %vm5975_vm9, %v7441_v28  ;;  %v7368_v5 = vadd.f32 %v11699_v58, %v14964_v44  ;;  %v10142_v44 = vld [vmem:[%s15937_s11 + $0x150] sm:$0xff]  ;;  %v10140_v28 = vld [vmem:[%s15937_s11 + $0x140] sm:$0xff]  ;;  %v10173_v58 = vld [vmem:[%s15937_s11 + $0x238] sm:$0xff] }
0x1615   :  { %11726 = vmatmul.mubr.msk.f32.vlgmr.msra.gmra.mxu1 %vm5975_vm9, %v11708_v17  ;;  %v7358_v24 = vpop.f32.mrf.mxu0  ;;  %v10158_v17 = vld [vmem:[%s15937_s11 + $0x1c8] sm:$0xff] }
0x1616   :  { %7848 = vmatprep.mubr.f32.mxu1 %v11904_v0  ;;  %7801 = vmatpush1.msra.mxu1 %v10129_v33  ;;  %v7367_v4 = vadd.f32 %v7358_v24, %v14966_v37  ;;  %v10141_v37 = vld [vmem:[%s15937_s11 + $0x148] sm:$0xff]  ;;  %v10155_v33 = vld [vmem:[%s15937_s11 + $0x1b0] sm:$0xff]  ;;  %v10190_v24 = vld [vmem:[%s15937_s11 + $0x2b8] sm:$0xff] }
0x1617   :  { %7802 = vmatprep.subr.mxu1 %v10128_v10  ;;  %v10154_v10 = vld [vmem:[%s15937_s11 + $0x1a8] sm:$0xff] }
0x1618   :  { %7803 = vmatpush1.msra.mxu1 %v10127_v34  ;;  %v10153_v34 = vld [vmem:[%s15937_s11 + $0x1a0] sm:$0xff] }
0x1619   :  { %7804 = vmatprep.subr.mxu1 %v10126_v52  ;;  %v10152_v52 = vld [vmem:[%s15937_s11 + $0x198] sm:$0xff] }
0x161a   :  { %7805 = vmatpush1.msra.mxu1 %v10125_v57  ;;  %v10151_v57 = vld [vmem:[%s15937_s11 + $0x190] sm:$0xff] }
0x161b   :  { %7806 = vmatprep.subr.mxu1 %v10124_v13  ;;  %v10150_v13 = vld [vmem:[%s15937_s11 + $0x188] sm:$0xff] }
0x161c   :  { %7807 = vmatpush1.msra.mxu1 %v10123_v41  ;;  %v10132_v41 = vld [vmem:[%s15937_s11 + $0x100] sm:$0xff] }
0x161d   :  { %7808 = vmatprep.subr.mxu1 %v10122_v8  ;;  %v10181_v8 = vld [vmem:[%s15937_s11 + $0x278] sm:$0xff] }
0x161e   :  { %7809 = vmatpush1.msra.mxu1 %v10121_v14  ;;  %v10180_v14 = vld [vmem:[%s15937_s11 + $0x270] sm:$0xff] }
0x161f   :  { %7810 = vmatprep.subr.mxu1 %v10120_v6 }
0x1620   :  { %7811 = vmatpush1.msra.mxu1 %v10119_v45  ;;  %v10179_v45 = vld [vmem:[%s15937_s11 + $0x268] sm:$0xff] }
0x1621   :  { %7812 = vmatprep.subr.mxu1 %v10118_v3  ;;  %v10178_v3 = vld [vmem:[%s15937_s11 + $0x260] sm:$0xff] }
0x1622   :  { %7813 = vmatpush1.msra.mxu1 %v10117_v21  ;;  %v10177_v21 = vld [vmem:[%s15937_s11 + $0x258] sm:$0xff] }
0x1623   :  { %7814 = vmatprep.subr.mxu1 %v10116_v18  ;;  %v10176_v18 = vld [vmem:[%s15937_s11 + $0x250] sm:$0xff] }
0x1624   :  { %7815 = vmatpush1.msra.mxu1 %v10115_v22  ;;  %v10175_v22 = vld [vmem:[%s15937_s11 + $0x248] sm:$0xff] }
0x1625   :  { %8022 = vmatprep.subr.mxu1 %v10164_v40  ;;  %v10191_v40 = vld [vmem:[%s15937_s11 + $0x2c0] sm:$0xff] }
0x16d5   :  { %v11727_v19 = vpop.f32.mrf.mxu1 }
0x16d6   :  { %v7541_v32 = vadd.f32 %v11727_v19, %v7368_v5  ;;  %v10172_v5 = vld [vmem:[%s15937_s11 + $0x230] sm:$0xff] }
0x16d7   :  { %v7531_v43 = vpop.f32.mrf.mxu1  ;;  %v10189_v19 = vld [vmem:[%s15937_s11 + $0x2b0] sm:$0xff] }
0x16d8   :  { %v7550_v50 = vadd.f32 %v10112_v9, %v7541_v32  ;;  %v7540_v11 = vadd.f32 %v7531_v43, %v7367_v4  ;;  %v10188_v4 = vld [vmem:[%s15937_s11 + $0x2a8] sm:$0xff]  ;;  %v10170_v32 = vld [vmem:[%s15937_s11 + $0x220] sm:$0xff] }
0x16d9   :  { %v10187_v43 = vld [vmem:[%s15937_s11 + $0x2a0] sm:$0xff] }
0x16da   :  { %v7552_v60 = vmax.f32 %v7550_v50, 0.0  ;;  %v7549_v23 = vadd.f32 %v10112_v9, %v7540_v11  ;;  %v10171_v9 = vld [vmem:[%s15937_s11 + $0x228] sm:$0xff]  ;;  %v10169_v50 = vld [vmem:[%s15937_s11 + $0x218] sm:$0xff] }
0x16db   :  { %v10186_v11 = vld [vmem:[%s15937_s11 + $0x298] sm:$0xff] }
0x16dc   :  { %7554 = vst.msk [vmem:[#allocation4 + $0x8] sm:$0xff] %vm5975_vm9, %v7552_v60  ;;  %v7551_v25 = vmax.f32 %v7549_v23, 0.0  ;;  %v10168_v60 = vld [vmem:[%s15937_s11 + $0x210] sm:$0xff] }
0x16dd   :  { %v10185_v23 = vld [vmem:[%s15937_s11 + $0x290] sm:$0xff] }
0x16de   :  { %7553 = vst.msk [vmem:[#allocation4] sm:$0xff] %vm5975_vm9, %v7551_v25  ;;  %v10167_v25 = vld [vmem:[%s15937_s11 + $0x208] sm:$0xff] }
0x16e5   :  { %v7653_v49 = vld [vmem:[#allocation4] sm:$0x1]  ;;  %v7763_v56 = vld [vmem:[#allocation4 + $0x1] sm:$0x1]  ;;  %v7874_v48 = vld [vmem:[#allocation4 + $0x2] sm:$0x1] }
0x16e6   :  { %10114 = vmatmul.mubr.msk.f32.vlgmr.msra.gmra.mxu0 %vm5975_vm9, %v7653_v49  ;;  %10131 = vmatmul.mubr.msk.f32.vlgmr.msra.gmra.mxu1 %vm5975_vm9, %v7763_v56  ;;  %v7985_v6 = vld [vmem:[#allocation4 + $0x3] sm:$0x1]  ;;  %v10215_v49 = vld [vmem:[%s15937_s11 + $0x378] sm:$0xff] }
0x16e7   :  { %7912 = vmatpush1.msra.mxu0 %v10146_v1  ;;  %8023 = vmatpush1.msra.mxu1 %v10163_v36  ;;  %v10184_v1 = vld [vmem:[%s15937_s11 + $0x288] sm:$0xff]  ;;  %v10166_v36 = vld [vmem:[%s15937_s11 + $0x200] sm:$0xff]  ;;  %v10232_v56 = vld [vmem:[%s15937_s11 + $0x3f8] sm:$0xff] }
0x16e8   :  { %7913 = vmatprep.subr.mxu0 %v10145_v39  ;;  %8024 = vmatprep.subr.mxu1 %v10162_v26  ;;  %v10183_v39 = vld [vmem:[%s15937_s11 + $0x280] sm:$0xff]  ;;  %v10214_v26 = vld [vmem:[%s15937_s11 + $0x370] sm:$0xff] }
0x16e9   :  { %7914 = vmatpush1.msra.mxu0 %v10144_v51  ;;  %8025 = vmatpush1.msra.mxu1 %v10161_v30  ;;  %v8096_v51 = vld [vmem:[#allocation4 + $0x4] sm:$0x1]  ;;  %v8207_v30 = vld [vmem:[#allocation4 + $0x5] sm:$0x1] }
0x16ea   :  { %7915 = vmatprep.subr.mxu0 %v10143_v7  ;;  %8026 = vmatprep.subr.mxu1 %v10160_v16  ;;  %v10231_v7 = vld [vmem:[%s15937_s11 + $0x3f0] sm:$0xff]  ;;  %v10213_v16 = vld [vmem:[%s15937_s11 + $0x368] sm:$0xff] }
0x16eb   :  { %7916 = vmatpush1.msra.mxu0 %v10142_v44  ;;  %8027 = vmatpush1.msra.mxu1 %v10159_v46  ;;  %v10230_v44 = vld [vmem:[%s15937_s11 + $0x3e8] sm:$0xff]  ;;  %v10212_v46 = vld [vmem:[%s15937_s11 + $0x360] sm:$0xff] }
0x16ec   :  { %7917 = vmatprep.subr.mxu0 %v10141_v37  ;;  %8028 = vmatprep.subr.mxu1 %v10158_v17  ;;  %v10229_v37 = vld [vmem:[%s15937_s11 + $0x3e0] sm:$0xff]  ;;  %v10211_v17 = vld [vmem:[%s15937_s11 + $0x358] sm:$0xff] }
0x16ed   :  { %7918 = vmatpush1.msra.mxu0 %v10140_v28  ;;  %8029 = vmatpush1.msra.mxu1 %v10157_v61  ;;  %v10228_v28 = vld [vmem:[%s15937_s11 + $0x3d8] sm:$0xff]  ;;  %v10210_v61 = vld [vmem:[%s15937_s11 + $0x350] sm:$0xff] }
0x16ee   :  { %7919 = vmatprep.subr.mxu0 %v10139_v12  ;;  %8030 = vmatprep.subr.mxu1 %v10156_v31  ;;  %v10227_v12 = vld [vmem:[%s15937_s11 + $0x3d0] sm:$0xff]  ;;  %v10209_v31 = vld [vmem:[%s15937_s11 + $0x348] sm:$0xff] }
0x16ef   :  { %7920 = vmatpush1.msra.mxu0 %v10138_v54  ;;  %8031 = vmatpush1.msra.mxu1 %v10155_v33  ;;  %v10226_v54 = vld [vmem:[%s15937_s11 + $0x3c8] sm:$0xff]  ;;  %v10208_v33 = vld [vmem:[%s15937_s11 + $0x340] sm:$0xff] }
0x16f0   :  { %7921 = vmatprep.subr.mxu0 %v10137_v62  ;;  %8032 = vmatprep.subr.mxu1 %v10154_v10  ;;  %v10225_v62 = vld [vmem:[%s15937_s11 + $0x3c0] sm:$0xff]  ;;  %v10207_v10 = vld [vmem:[%s15937_s11 + $0x338] sm:$0xff] }
0x16f1   :  { %7922 = vmatpush1.msra.mxu0 %v10136_v38  ;;  %8033 = vmatpush1.msra.mxu1 %v10153_v34  ;;  %v10224_v38 = vld [vmem:[%s15937_s11 + $0x3b8] sm:$0xff]  ;;  %v10206_v34 = vld [vmem:[%s15937_s11 + $0x330] sm:$0xff] }
0x16f2   :  { %7923 = vmatprep.subr.mxu0 %v10135_v47  ;;  %8034 = vmatprep.subr.mxu1 %v10152_v52  ;;  %v10223_v47 = vld [vmem:[%s15937_s11 + $0x3b0] sm:$0xff]  ;;  %v10205_v52 = vld [vmem:[%s15937_s11 + $0x328] sm:$0xff] }
0x16f3   :  { %7924 = vmatpush1.msra.mxu0 %v10134_v53  ;;  %8035 = vmatpush1.msra.mxu1 %v10151_v57  ;;  %v10222_v53 = vld [vmem:[%s15937_s11 + $0x3a8] sm:$0xff]  ;;  %v10204_v57 = vld [vmem:[%s15937_s11 + $0x320] sm:$0xff] }
0x16f4   :  { %7925 = vmatprep.subr.mxu0 %v10133_v63  ;;  %8036 = vmatprep.subr.mxu1 %v10150_v13  ;;  %v10221_v63 = vld [vmem:[%s15937_s11 + $0x3a0] sm:$0xff]  ;;  %v10203_v13 = vld [vmem:[%s15937_s11 + $0x318] sm:$0xff] }
0x16f5   :  { %7926 = vmatpush1.msra.mxu0 %v10132_v41  ;;  %7959 = vmatprep.mubr.f32.mxu0 %v11904_v0  ;;  %v10220_v41 = vld [vmem:[%s15937_s11 + $0x398] sm:$0xff] }
0x16f6   :  { %8037 = vmatpush1.msra.mxu1 %v10149_v15  ;;  %8070 = vmatprep.mubr.f32.mxu1 %v11904_v0  ;;  %v10202_v15 = vld [vmem:[%s15937_s11 + $0x310] sm:$0xff] }
0x16f7   :  { %10148 = vmatmul.mubr.msk.f32.vlgmr.msra.gmra.mxu0 %vm5975_vm9, %v7874_v48  ;;  %10165 = vmatmul.mubr.msk.f32.vlgmr.msra.gmra.mxu1 %vm5975_vm9, %v7985_v6  ;;  %v10200_v48 = vld [vmem:[%s15937_s11 + $0x300] sm:$0xff] }
0x16f8   :  { %8133 = vmatprep.subr.mxu0 %v10181_v8  ;;  %8244 = vmatprep.subr.mxu1 %v10198_v2  ;;  %v10219_v8 = vld [vmem:[%s15937_s11 + $0x390] sm:$0xff]  ;;  %v10201_v2 = vld [vmem:[%s15937_s11 + $0x308] sm:$0xff]  ;;  %v10217_v6 = vld [vmem:[%s15937_s11 + $0x380] sm:$0xff] }
0x16f9   :  { %8134 = vmatpush1.msra.mxu0 %v10180_v14  ;;  %8245 = vmatpush1.msra.mxu1 %v10197_v59  ;;  %v10218_v14 = vld [vmem:[%s15937_s11 + $0x388] sm:$0xff]  ;;  %v10249_v59 = vld [vmem:[%s15937_s11 + $0x478] sm:$0xff] }
0x16fa   :  { %8135 = vmatprep.subr.mxu0 %v10179_v45  ;;  %8246 = vmatprep.subr.mxu1 %v10196_v55  ;;  %v10266_v45 = vld [vmem:[%s15937_s11 + $0x4f8] sm:$0xff]  ;;  %v10248_v55 = vld [vmem:[%s15937_s11 + $0x470] sm:$0xff] }
0x16fb   :  { %8136 = vmatpush1.msra.mxu0 %v10178_v3  ;;  %8247 = vmatpush1.msra.mxu1 %v10195_v35  ;;  %v8318_v3 = vld [vmem:[#allocation4 + $0x6] sm:$0x1]  ;;  %v8429_v35 = vld [vmem:[#allocation4 + $0x7] sm:$0x1] }
0x16fc   :  { %8137 = vmatprep.subr.mxu0 %v10177_v21  ;;  %8248 = vmatprep.subr.mxu1 %v10194_v27  ;;  %v10265_v21 = vld [vmem:[%s15937_s11 + $0x4f0] sm:$0xff]  ;;  %v10247_v27 = vld [vmem:[%s15937_s11 + $0x468] sm:$0xff] }
0x16fd   :  { %8138 = vmatpush1.msra.mxu0 %v10176_v18  ;;  %8249 = vmatpush1.msra.mxu1 %v10193_v29  ;;  %v10264_v18 = vld [vmem:[%s15937_s11 + $0x4e8] sm:$0xff]  ;;  %v10246_v29 = vld [vmem:[%s15937_s11 + $0x460] sm:$0xff] }
0x16fe   :  { %8139 = vmatprep.subr.mxu0 %v10175_v22  ;;  %8250 = vmatprep.subr.mxu1 %v10192_v42  ;;  %v10263_v22 = vld [vmem:[%s15937_s11 + $0x4e0] sm:$0xff]  ;;  %v10245_v42 = vld [vmem:[%s15937_s11 + $0x458] sm:$0xff] }
0x16ff   :  { %8140 = vmatpush1.msra.mxu0 %v10174_v20  ;;  %8251 = vmatpush1.msra.mxu1 %v10191_v40  ;;  %v10262_v20 = vld [vmem:[%s15937_s11 + $0x4d8] sm:$0xff]  ;;  %v10244_v40 = vld [vmem:[%s15937_s11 + $0x450] sm:$0xff] }
0x1700   :  { %8141 = vmatprep.subr.mxu0 %v10173_v58  ;;  %8252 = vmatprep.subr.mxu1 %v10190_v24  ;;  %v10261_v58 = vld [vmem:[%s15937_s11 + $0x4d0] sm:$0xff]  ;;  %v10243_v24 = vld [vmem:[%s15937_s11 + $0x448] sm:$0xff] }
0x1701   :  { %8142 = vmatpush1.msra.mxu0 %v10172_v5  ;;  %8253 = vmatpush1.msra.mxu1 %v10189_v19  ;;  %v10260_v5 = vld [vmem:[%s15937_s11 + $0x4c8] sm:$0xff]  ;;  %v10242_v19 = vld [vmem:[%s15937_s11 + $0x440] sm:$0xff] }
0x1702   :  { %8143 = vmatprep.subr.mxu0 %v10171_v9  ;;  %8254 = vmatprep.subr.mxu1 %v10188_v4  ;;  %v10259_v9 = vld [vmem:[%s15937_s11 + $0x4c0] sm:$0xff]  ;;  %v10241_v4 = vld [vmem:[%s15937_s11 + $0x438] sm:$0xff] }
0x1703   :  { %8144 = vmatpush1.msra.mxu0 %v10170_v32  ;;  %8255 = vmatpush1.msra.mxu1 %v10187_v43  ;;  %v10258_v32 = vld [vmem:[%s15937_s11 + $0x4b8] sm:$0xff]  ;;  %v10240_v43 = vld [vmem:[%s15937_s11 + $0x430] sm:$0xff] }
0x1704   :  { %8145 = vmatprep.subr.mxu0 %v10169_v50  ;;  %8256 = vmatprep.subr.mxu1 %v10186_v11  ;;  %v10257_v50 = vld [vmem:[%s15937_s11 + $0x4b0] sm:$0xff]  ;;  %v10239_v11 = vld [vmem:[%s15937_s11 + $0x428] sm:$0xff] }
0x1705   :  { %8146 = vmatpush1.msra.mxu0 %v10168_v60  ;;  %8257 = vmatpush1.msra.mxu1 %v10185_v23  ;;  %v10256_v60 = vld [vmem:[%s15937_s11 + $0x4a8] sm:$0xff]  ;;  %v10238_v23 = vld [vmem:[%s15937_s11 + $0x420] sm:$0xff] }
0x1706   :  { %8147 = vmatprep.subr.mxu0 %v10167_v25  ;;  %8258 = vmatprep.subr.mxu1 %v10184_v1  ;;  %v10255_v25 = vld [vmem:[%s15937_s11 + $0x4a0] sm:$0xff]  ;;  %v10237_v1 = vld [vmem:[%s15937_s11 + $0x418] sm:$0xff] }
0x1707   :  { %8148 = vmatpush1.msra.mxu0 %v10166_v36  ;;  %8181 = vmatprep.mubr.f32.mxu0 %v11904_v0  ;;  %v10254_v36 = vld [vmem:[%s15937_s11 + $0x498] sm:$0xff] }
0x1708   :  { %8259 = vmatpush1.msra.mxu1 %v10183_v39  ;;  %8292 = vmatprep.mubr.f32.mxu1 %v11904_v0  ;;  %v10236_v39 = vld [vmem:[%s15937_s11 + $0x410] sm:$0xff] }
0x1709   :  { %10182 = vmatmul.mubr.msk.f32.vlgmr.msra.gmra.mxu0 %vm5975_vm9, %v8096_v51  ;;  %10199 = vmatmul.mubr.msk.f32.vlgmr.msra.gmra.mxu1 %vm5975_vm9, %v8207_v30  ;;  %v10234_v51 = vld [vmem:[%s15937_s11 + $0x400] sm:$0xff] }
0x170a   :  { %8355 = vmatprep.subr.mxu0 %v10215_v49  ;;  %8466 = vmatprep.subr.mxu1 %v10232_v56  ;;  %v10253_v49 = vld [vmem:[%s15937_s11 + $0x490] sm:$0xff]  ;;  %v10235_v56 = vld [vmem:[%s15937_s11 + $0x408] sm:$0xff]  ;;  %v10251_v30 = vld [vmem:[%s15937_s11 + $0x480] sm:$0xff] }
0x170b   :  { %8356 = vmatpush1.msra.mxu0 %v10214_v26  ;;  %8467 = vmatpush1.msra.mxu1 %v10231_v7  ;;  %v10252_v26 = vld [vmem:[%s15937_s11 + $0x488] sm:$0xff]  ;;  %v10283_v7 = vld [vmem:[%s15937_s11 + $0x578] sm:$0xff] }
0x170c   :  { %8357 = vmatprep.subr.mxu0 %v10213_v16  ;;  %8468 = vmatprep.subr.mxu1 %v10230_v44  ;;  %v10300_v16 = vld [vmem:[%s15937_s11 + $0x5f8] sm:$0xff]  ;;  %v10282_v44 = vld [vmem:[%s15937_s11 + $0x570] sm:$0xff] }
0x170d   :  { %8358 = vmatpush1.msra.mxu0 %v10212_v46  ;;  %8469 = vmatpush1.msra.mxu1 %v10229_v37  ;;  %v8540_v46 = vld [vmem:[#allocation4 + $0x8] sm:$0x1]  ;;  %v8651_v37 = vld [vmem:[#allocation4 + $0x9] sm:$0x1] }
0x170e   :  { %8359 = vmatprep.subr.mxu0 %v10211_v17  ;;  %8470 = vmatprep.subr.mxu1 %v10228_v28  ;;  %v10299_v17 = vld [vmem:[%s15937_s11 + $0x5f0] sm:$0xff]  ;;  %v10281_v28 = vld [vmem:[%s15937_s11 + $0x568] sm:$0xff] }
0x170f   :  { %8360 = vmatpush1.msra.mxu0 %v10210_v61  ;;  %8471 = vmatpush1.msra.mxu1 %v10227_v12  ;;  %v10298_v61 = vld [vmem:[%s15937_s11 + $0x5e8] sm:$0xff]  ;;  %v10280_v12 = vld [vmem:[%s15937_s11 + $0x560] sm:$0xff] }
0x1710   :  { %8361 = vmatprep.subr.mxu0 %v10209_v31  ;;  %8472 = vmatprep.subr.mxu1 %v10226_v54  ;;  %v10297_v31 = vld [vmem:[%s15937_s11 + $0x5e0] sm:$0xff]  ;;  %v10279_v54 = vld [vmem:[%s15937_s11 + $0x558] sm:$0xff] }
0x1711   :  { %8362 = vmatpush1.msra.mxu0 %v10208_v33  ;;  %8473 = vmatpush1.msra.mxu1 %v10225_v62  ;;  %v10296_v33 = vld [vmem:[%s15937_s11 + $0x5d8] sm:$0xff]  ;;  %v10278_v62 = vld [vmem:[%s15937_s11 + $0x550] sm:$0xff] }
0x1712   :  { %8363 = vmatprep.subr.mxu0 %v10207_v10  ;;  %8474 = vmatprep.subr.mxu1 %v10224_v38  ;;  %v10295_v10 = vld [vmem:[%s15937_s11 + $0x5d0] sm:$0xff]  ;;  %v10277_v38 = vld [vmem:[%s15937_s11 + $0x548] sm:$0xff] }
0x1713   :  { %8364 = vmatpush1.msra.mxu0 %v10206_v34  ;;  %8475 = vmatpush1.msra.mxu1 %v10223_v47  ;;  %v10294_v34 = vld [vmem:[%s15937_s11 + $0x5c8] sm:$0xff]  ;;  %v10276_v47 = vld [vmem:[%s15937_s11 + $0x540] sm:$0xff] }
0x1714   :  { %8365 = vmatprep.subr.mxu0 %v10205_v52  ;;  %8476 = vmatprep.subr.mxu1 %v10222_v53  ;;  %v10293_v52 = vld [vmem:[%s15937_s11 + $0x5c0] sm:$0xff]  ;;  %v10275_v53 = vld [vmem:[%s15937_s11 + $0x538] sm:$0xff] }
0x1715   :  { %8366 = vmatpush1.msra.mxu0 %v10204_v57  ;;  %8477 = vmatpush1.msra.mxu1 %v10221_v63  ;;  %v10292_v57 = vld [vmem:[%s15937_s11 + $0x5b8] sm:$0xff]  ;;  %v10274_v63 = vld [vmem:[%s15937_s11 + $0x530] sm:$0xff] }
0x1716   :  { %8367 = vmatprep.subr.mxu0 %v10203_v13  ;;  %8478 = vmatprep.subr.mxu1 %v10220_v41  ;;  %v10291_v13 = vld [vmem:[%s15937_s11 + $0x5b0] sm:$0xff]  ;;  %v10273_v41 = vld [vmem:[%s15937_s11 + $0x528] sm:$0xff] }
0x1717   :  { %8368 = vmatpush1.msra.mxu0 %v10202_v15  ;;  %8479 = vmatpush1.msra.mxu1 %v10219_v8  ;;  %v10290_v15 = vld [vmem:[%s15937_s11 + $0x5a8] sm:$0xff]  ;;  %v10272_v8 = vld [vmem:[%s15937_s11 + $0x520] sm:$0xff] }
0x1718   :  { %8369 = vmatprep.subr.mxu0 %v10201_v2  ;;  %8480 = vmatprep.subr.mxu1 %v10218_v14  ;;  %v10289_v2 = vld [vmem:[%s15937_s11 + $0x5a0] sm:$0xff]  ;;  %v10271_v14 = vld [vmem:[%s15937_s11 + $0x518] sm:$0xff] }
0x1719   :  { %8370 = vmatpush1.msra.mxu0 %v10200_v48  ;;  %8403 = vmatprep.mubr.f32.mxu0 %v11904_v0  ;;  %v10288_v48 = vld [vmem:[%s15937_s11 + $0x598] sm:$0xff] }
0x171a   :  { %8481 = vmatpush1.msra.mxu1 %v10217_v6  ;;  %8514 = vmatprep.mubr.f32.mxu1 %v11904_v0  ;;  %v10270_v6 = vld [vmem:[%s15937_s11 + $0x510] sm:$0xff] }
0x171b   :  { %10216 = vmatmul.mubr.msk.f32.vlgmr.msra.gmra.mxu0 %vm5975_vm9, %v8318_v3  ;;  %10233 = vmatmul.mubr.msk.f32.vlgmr.msra.gmra.mxu1 %vm5975_vm9, %v8429_v35  ;;  %v10268_v3 = vld [vmem:[%s15937_s11 + $0x500] sm:$0xff] }
0x171c   :  { %8577 = vmatprep.subr.mxu0 %v10249_v59  ;;  %8688 = vmatprep.subr.mxu1 %v10266_v45  ;;  %v10287_v59 = vld [vmem:[%s15937_s11 + $0x590] sm:$0xff]  ;;  %v10269_v45 = vld [vmem:[%s15937_s11 + $0x508] sm:$0xff]  ;;  %v10285_v35 = vld [vmem:[%s15937_s11 + $0x580] sm:$0xff] }
0x171d   :  { %8578 = vmatpush1.msra.mxu0 %v10248_v55  ;;  %8689 = vmatpush1.msra.mxu1 %v10265_v21  ;;  %v10286_v55 = vld [vmem:[%s15937_s11 + $0x588] sm:$0xff]  ;;  %v10317_v21 = vld [vmem:[%s15937_s11 + $0x678] sm:$0xff] }
0x171e   :  { %8579 = vmatprep.subr.mxu0 %v10247_v27  ;;  %8690 = vmatprep.subr.mxu1 %v10264_v18  ;;  %v10334_v27 = vld [vmem:[%s15937_s11 + $0x6f8] sm:$0xff]  ;;  %v10316_v18 = vld [vmem:[%s15937_s11 + $0x670] sm:$0xff] }
0x171f   :  { %8580 = vmatpush1.msra.mxu0 %v10246_v29  ;;  %8691 = vmatpush1.msra.mxu1 %v10263_v22  ;;  %v8762_v29 = vld [vmem:[#allocation4 + $0xa] sm:$0x1]  ;;  %v8873_v22 = vld [vmem:[#allocation4 + $0xb] sm:$0x1] }
0x1720   :  { %8581 = vmatprep.subr.mxu0 %v10245_v42  ;;  %8692 = vmatprep.subr.mxu1 %v10262_v20  ;;  %v10333_v42 = vld [vmem:[%s15937_s11 + $0x6f0] sm:$0xff]  ;;  %v10315_v20 = vld [vmem:[%s15937_s11 + $0x668] sm:$0xff] }
0x1721   :  { %8582 = vmatpush1.msra.mxu0 %v10244_v40  ;;  %8693 = vmatpush1.msra.mxu1 %v10261_v58  ;;  %v10332_v40 = vld [vmem:[%s15937_s11 + $0x6e8] sm:$0xff]  ;;  %v10314_v58 = vld [vmem:[%s15937_s11 + $0x660] sm:$0xff] }
0x1722   :  { %8583 = vmatprep.subr.mxu0 %v10243_v24  ;;  %8694 = vmatprep.subr.mxu1 %v10260_v5  ;;  %v10331_v24 = vld [vmem:[%s15937_s11 + $0x6e0] sm:$0xff]  ;;  %v10313_v5 = vld [vmem:[%s15937_s11 + $0x658] sm:$0xff] }
0x1723   :  { %8584 = vmatpush1.msra.mxu0 %v10242_v19  ;;  %8695 = vmatpush1.msra.mxu1 %v10259_v9  ;;  %v10330_v19 = vld [vmem:[%s15937_s11 + $0x6d8] sm:$0xff]  ;;  %v10312_v9 = vld [vmem:[%s15937_s11 + $0x650] sm:$0xff] }
0x1724   :  { %8585 = vmatprep.subr.mxu0 %v10241_v4  ;;  %8696 = vmatprep.subr.mxu1 %v10258_v32  ;;  %v10329_v4 = vld [vmem:[%s15937_s11 + $0x6d0] sm:$0xff]  ;;  %v10311_v32 = vld [vmem:[%s15937_s11 + $0x648] sm:$0xff] }
0x1725   :  { %8586 = vmatpush1.msra.mxu0 %v10240_v43  ;;  %8697 = vmatpush1.msra.mxu1 %v10257_v50  ;;  %v10328_v43 = vld [vmem:[%s15937_s11 + $0x6c8] sm:$0xff]  ;;  %v10310_v50 = vld [vmem:[%s15937_s11 + $0x640] sm:$0xff] }
0x1726   :  { %8587 = vmatprep.subr.mxu0 %v10239_v11  ;;  %8698 = vmatprep.subr.mxu1 %v10256_v60  ;;  %v10327_v11 = vld [vmem:[%s15937_s11 + $0x6c0] sm:$0xff]  ;;  %v10309_v60 = vld [vmem:[%s15937_s11 + $0x638] sm:$0xff] }
0x1727   :  { %8588 = vmatpush1.msra.mxu0 %v10238_v23  ;;  %8699 = vmatpush1.msra.mxu1 %v10255_v25  ;;  %v10326_v23 = vld [vmem:[%s15937_s11 + $0x6b8] sm:$0xff]  ;;  %v10308_v25 = vld [vmem:[%s15937_s11 + $0x630] sm:$0xff] }
0x1728   :  { %8589 = vmatprep.subr.mxu0 %v10237_v1  ;;  %8700 = vmatprep.subr.mxu1 %v10254_v36  ;;  %v10325_v1 = vld [vmem:[%s15937_s11 + $0x6b0] sm:$0xff]  ;;  %v10307_v36 = vld [vmem:[%s15937_s11 + $0x628] sm:$0xff] }
0x1729   :  { %8590 = vmatpush1.msra.mxu0 %v10236_v39  ;;  %8701 = vmatpush1.msra.mxu1 %v10253_v49  ;;  %v10324_v39 = vld [vmem:[%s15937_s11 + $0x6a8] sm:$0xff]  ;;  %v10306_v49 = vld [vmem:[%s15937_s11 + $0x620] sm:$0xff] }
0x172a   :  { %8591 = vmatprep.subr.mxu0 %v10235_v56  ;;  %8702 = vmatprep.subr.mxu1 %v10252_v26  ;;  %v10323_v56 = vld [vmem:[%s15937_s11 + $0x6a0] sm:$0xff]  ;;  %v10305_v26 = vld [vmem:[%s15937_s11 + $0x618] sm:$0xff] }
0x172b   :  { %8592 = vmatpush1.msra.mxu0 %v10234_v51  ;;  %8625 = vmatprep.mubr.f32.mxu0 %v11904_v0  ;;  %v10322_v51 = vld [vmem:[%s15937_s11 + $0x698] sm:$0xff] }
0x172c   :  { %8703 = vmatpush1.msra.mxu1 %v10251_v30  ;;  %8736 = vmatprep.mubr.f32.mxu1 %v11904_v0  ;;  %v10304_v30 = vld [vmem:[%s15937_s11 + $0x610] sm:$0xff] }
0x172d   :  { %10250 = vmatmul.mubr.msk.f32.vlgmr.msra.gmra.mxu0 %vm5975_vm9, %v8540_v46  ;;  %10267 = vmatmul.mubr.msk.f32.vlgmr.msra.gmra.mxu1 %vm5975_vm9, %v8651_v37  ;;  %v10302_v46 = vld [vmem:[%s15937_s11 + $0x600] sm:$0xff] }
0x172e   :  { %8799 = vmatprep.subr.mxu0 %v10283_v7  ;;  %8910 = vmatprep.subr.mxu1 %v10300_v16  ;;  %v10321_v7 = vld [vmem:[%s15937_s11 + $0x690] sm:$0xff]  ;;  %v10303_v16 = vld [vmem:[%s15937_s11 + $0x608] sm:$0xff]  ;;  %v10319_v37 = vld [vmem:[%s15937_s11 + $0x680] sm:$0xff] }
0x172f   :  { %8800 = vmatpush1.msra.mxu0 %v10282_v44  ;;  %8911 = vmatpush1.msra.mxu1 %v10299_v17  ;;  %v10320_v44 = vld [vmem:[%s15937_s11 + $0x688] sm:$0xff]  ;;  %v10351_v17 = vld [vmem:[%s15937_s11 + $0x778] sm:$0xff] }
0x1730   :  { %8801 = vmatprep.subr.mxu0 %v10281_v28  ;;  %8912 = vmatprep.subr.mxu1 %v10298_v61  ;;  %v10368_v28 = vld [vmem:[%s15937_s11 + $0x7f8] sm:$0xff]  ;;  %v10350_v61 = vld [vmem:[%s15937_s11 + $0x770] sm:$0xff] }
0x1731   :  { %8802 = vmatpush1.msra.mxu0 %v10280_v12  ;;  %8913 = vmatpush1.msra.mxu1 %v10297_v31  ;;  %v8984_v12 = vld [vmem:[#allocation4 + $0xc] sm:$0x1]  ;;  %v9095_v31 = vld [vmem:[#allocation4 + $0xd] sm:$0x1] }
0x1732   :  { %8803 = vmatprep.subr.mxu0 %v10279_v54  ;;  %8914 = vmatprep.subr.mxu1 %v10296_v33  ;;  %v10367_v54 = vld [vmem:[%s15937_s11 + $0x7f0] sm:$0xff]  ;;  %v10349_v33 = vld [vmem:[%s15937_s11 + $0x768] sm:$0xff] }
0x1733   :  { %8804 = vmatpush1.msra.mxu0 %v10278_v62  ;;  %8915 = vmatpush1.msra.mxu1 %v10295_v10  ;;  %v10366_v62 = vld [vmem:[%s15937_s11 + $0x7e8] sm:$0xff]  ;;  %v10348_v10 = vld [vmem:[%s15937_s11 + $0x760] sm:$0xff] }
0x1734   :  { %8805 = vmatprep.subr.mxu0 %v10277_v38  ;;  %8916 = vmatprep.subr.mxu1 %v10294_v34  ;;  %v10365_v38 = vld [vmem:[%s15937_s11 + $0x7e0] sm:$0xff]  ;;  %v10347_v34 = vld [vmem:[%s15937_s11 + $0x758] sm:$0xff] }
0x1735   :  { %8806 = vmatpush1.msra.mxu0 %v10276_v47  ;;  %8917 = vmatpush1.msra.mxu1 %v10293_v52  ;;  %v10364_v47 = vld [vmem:[%s15937_s11 + $0x7d8] sm:$0xff]  ;;  %v10346_v52 = vld [vmem:[%s15937_s11 + $0x750] sm:$0xff] }
0x1736   :  { %8807 = vmatprep.subr.mxu0 %v10275_v53  ;;  %8918 = vmatprep.subr.mxu1 %v10292_v57  ;;  %v10363_v53 = vld [vmem:[%s15937_s11 + $0x7d0] sm:$0xff]  ;;  %v10345_v57 = vld [vmem:[%s15937_s11 + $0x748] sm:$0xff] }
0x1737   :  { %8808 = vmatpush1.msra.mxu0 %v10274_v63  ;;  %8919 = vmatpush1.msra.mxu1 %v10291_v13  ;;  %v10362_v63 = vld [vmem:[%s15937_s11 + $0x7c8] sm:$0xff]  ;;  %v10344_v13 = vld [vmem:[%s15937_s11 + $0x740] sm:$0xff] }
0x1738   :  { %8809 = vmatprep.subr.mxu0 %v10273_v41  ;;  %8920 = vmatprep.subr.mxu1 %v10290_v15  ;;  %v10361_v41 = vld [vmem:[%s15937_s11 + $0x7c0] sm:$0xff]  ;;  %v10343_v15 = vld [vmem:[%s15937_s11 + $0x738] sm:$0xff] }
0x1739   :  { %8810 = vmatpush1.msra.mxu0 %v10272_v8  ;;  %8921 = vmatpush1.msra.mxu1 %v10289_v2  ;;  %v10360_v8 = vld [vmem:[%s15937_s11 + $0x7b8] sm:$0xff]  ;;  %v10342_v2 = vld [vmem:[%s15937_s11 + $0x730] sm:$0xff] }
0x173a   :  { %8811 = vmatprep.subr.mxu0 %v10271_v14  ;;  %8922 = vmatprep.subr.mxu1 %v10288_v48  ;;  %v10359_v14 = vld [vmem:[%s15937_s11 + $0x7b0] sm:$0xff]  ;;  %v10341_v48 = vld [vmem:[%s15937_s11 + $0x728] sm:$0xff] }
0x173b   :  { %8812 = vmatpush1.msra.mxu0 %v10270_v6  ;;  %8923 = vmatpush1.msra.mxu1 %v10287_v59  ;;  %v10358_v6 = vld [vmem:[%s15937_s11 + $0x7a8] sm:$0xff]  ;;  %v10340_v59 = vld [vmem:[%s15937_s11 + $0x720] sm:$0xff] }
0x173c   :  { %8813 = vmatprep.subr.mxu0 %v10269_v45  ;;  %8924 = vmatprep.subr.mxu1 %v10286_v55  ;;  %v10357_v45 = vld [vmem:[%s15937_s11 + $0x7a0] sm:$0xff]  ;;  %v10339_v55 = vld [vmem:[%s15937_s11 + $0x718] sm:$0xff] }
0x173d   :  { %8814 = vmatpush1.msra.mxu0 %v10268_v3  ;;  %8847 = vmatprep.mubr.f32.mxu0 %v11904_v0  ;;  %v10356_v3 = vld [vmem:[%s15937_s11 + $0x798] sm:$0xff] }
0x173e   :  { %8925 = vmatpush1.msra.mxu1 %v10285_v35  ;;  %8958 = vmatprep.mubr.f32.mxu1 %v11904_v0  ;;  %v10338_v35 = vld [vmem:[%s15937_s11 + $0x710] sm:$0xff] }
0x173f   :  { %10284 = vmatmul.mubr.msk.f32.vlgmr.msra.gmra.mxu0 %vm5975_vm9, %v8762_v29  ;;  %10301 = vmatmul.mubr.msk.f32.vlgmr.msra.gmra.mxu1 %vm5975_vm9, %v8873_v22  ;;  %v10336_v29 = vld [vmem:[%s15937_s11 + $0x700] sm:$0xff] }
0x1740   :  { %9021 = vmatprep.subr.mxu0 %v10317_v21  ;;  %9132 = vmatprep.subr.mxu1 %v10334_v27  ;;  %v10355_v21 = vld [vmem:[%s15937_s11 + $0x790] sm:$0xff]  ;;  %v10337_v27 = vld [vmem:[%s15937_s11 + $0x708] sm:$0xff]  ;;  %v10353_v22 = vld [vmem:[%s15937_s11 + $0x780] sm:$0xff] }
0x1741   :  { %9022 = vmatpush1.msra.mxu0 %v10316_v18  ;;  %9133 = vmatpush1.msra.mxu1 %v10333_v42  ;;  %v10354_v18 = vld [vmem:[%s15937_s11 + $0x788] sm:$0xff]  ;;  %v9206_v42 = vld [vmem:[#allocation4 + $0xe] sm:$0x1] }
0x1742   :  { %9023 = vmatprep.subr.mxu0 %v10315_v20  ;;  %9134 = vmatprep.subr.mxu1 %v10332_v40  ;;  %v9317_v20 = vld [vmem:[#allocation4 + $0xf] sm:$0x1] }
0x1743   :  { %9024 = vmatpush1.msra.mxu0 %v10314_v58  ;;  %9135 = vmatpush1.msra.mxu1 %v10331_v24  ;;  %v9460_v40 = vld [vmem:[%s15940_s14 + $0xf8] sm:$0xff]  ;;  %v9459_v24 = vld [vmem:[%s15940_s14 + $0xf0] sm:$0xff] }
0x1744   :  { %9025 = vmatprep.subr.mxu0 %v10313_v5  ;;  %9136 = vmatprep.subr.mxu1 %v10330_v19  ;;  %v9444_v58 = vld [vmem:[%s15940_s14 + $0x78] sm:$0xff]  ;;  %v9458_v5 = vld [vmem:[%s15940_s14 + $0xe8] sm:$0xff] }
0x1745   :  { %9026 = vmatpush1.msra.mxu0 %v10312_v9  ;;  %9137 = vmatpush1.msra.mxu1 %v10329_v4  ;;  %v9442_v19 = vld [vmem:[%s15940_s14 + $0x68] sm:$0xff]  ;;  %v9457_v9 = vld [vmem:[%s15940_s14 + $0xe0] sm:$0xff] }
0x1746   :  { %9027 = vmatprep.subr.mxu0 %v10311_v32  ;;  %9138 = vmatprep.subr.mxu1 %v10328_v43  ;;  %v9441_v4 = vld [vmem:[%s15940_s14 + $0x60] sm:$0xff]  ;;  %v9456_v32 = vld [vmem:[%s15940_s14 + $0xd8] sm:$0xff] }
0x1747   :  { %9028 = vmatpush1.msra.mxu0 %v10310_v50  ;;  %9139 = vmatpush1.msra.mxu1 %v10327_v11  ;;  %v9440_v43 = vld [vmem:[%s15940_s14 + $0x58] sm:$0xff]  ;;  %v9455_v50 = vld [vmem:[%s15940_s14 + $0xd0] sm:$0xff] }
0x1748   :  { %9029 = vmatprep.subr.mxu0 %v10309_v60  ;;  %9140 = vmatprep.subr.mxu1 %v10326_v23  ;;  %v9439_v11 = vld [vmem:[%s15940_s14 + $0x50] sm:$0xff]  ;;  %v9454_v60 = vld [vmem:[%s15940_s14 + $0xc8] sm:$0xff] }
0x1749   :  { %9030 = vmatpush1.msra.mxu0 %v10308_v25  ;;  %9141 = vmatpush1.msra.mxu1 %v10325_v1  ;;  %v9438_v23 = vld [vmem:[%s15940_s14 + $0x48] sm:$0xff]  ;;  %v9453_v25 = vld [vmem:[%s15940_s14 + $0xc0] sm:$0xff] }
0x174a   :  { %9031 = vmatprep.subr.mxu0 %v10307_v36  ;;  %9142 = vmatprep.subr.mxu1 %v10324_v39  ;;  %v9437_v1 = vld [vmem:[%s15940_s14 + $0x40] sm:$0xff]  ;;  %v9452_v36 = vld [vmem:[%s15940_s14 + $0xb8] sm:$0xff] }
0x174b   :  { %9032 = vmatpush1.msra.mxu0 %v10306_v49  ;;  %9143 = vmatpush1.msra.mxu1 %v10323_v56  ;;  %v9436_v39 = vld [vmem:[%s15940_s14 + $0x38] sm:$0xff]  ;;  %v9451_v49 = vld [vmem:[%s15940_s14 + $0xb0] sm:$0xff] }
0x174c   :  { %9033 = vmatprep.subr.mxu0 %v10305_v26  ;;  %9144 = vmatprep.subr.mxu1 %v10322_v51  ;;  %v9435_v56 = vld [vmem:[%s15940_s14 + $0x30] sm:$0xff]  ;;  %v9450_v26 = vld [vmem:[%s15940_s14 + $0xa8] sm:$0xff] }
0x174d   :  { %9034 = vmatpush1.msra.mxu0 %v10304_v30  ;;  %9145 = vmatpush1.msra.mxu1 %v10321_v7  ;;  %v9434_v51 = vld [vmem:[%s15940_s14 + $0x28] sm:$0xff]  ;;  %v9449_v30 = vld [vmem:[%s15940_s14 + $0xa0] sm:$0xff] }
0x174e   :  { %9035 = vmatprep.subr.mxu0 %v10303_v16  ;;  %9146 = vmatprep.subr.mxu1 %v10320_v44  ;;  %v9433_v7 = vld [vmem:[%s15940_s14 + $0x20] sm:$0xff]  ;;  %v9448_v16 = vld [vmem:[%s15940_s14 + $0x98] sm:$0xff] }
0x174f   :  { %9036 = vmatpush1.msra.mxu0 %v10302_v46  ;;  %9069 = vmatprep.mubr.f32.mxu0 %v11904_v0  ;;  %v9432_v44 = vld [vmem:[%s15940_s14 + $0x18] sm:$0xff]  ;;  %v9447_v46 = vld [vmem:[%s15940_s14 + $0x90] sm:$0xff] }
0x1750   :  { %9147 = vmatpush1.msra.mxu1 %v10319_v37  ;;  %9180 = vmatprep.mubr.f32.mxu1 %v11904_v0  ;;  %v9431_v37 = vld [vmem:[%s15940_s14 + $0x10] sm:$0xff] }
0x1751   :  { %10318 = vmatmul.mubr.msk.f32.vlgmr.msra.gmra.mxu0 %vm5975_vm9, %v8984_v12  ;;  %10335 = vmatmul.mubr.msk.f32.vlgmr.msra.gmra.mxu1 %vm5975_vm9, %v9095_v31  ;;  %v9429_v12 = vld [vmem:[%s15940_s14] sm:$0xff]  ;;  %v7629_v31 = vpop.f32.mrf.mxu0 }
0x1752   :  { %9243 = vmatprep.subr.mxu0 %v10351_v17  ;;  %9354 = vmatprep.subr.mxu1 %v10368_v28  ;;  %v9446_v17 = vld [vmem:[%s15940_s14 + $0x88] sm:$0xff] }
0x1753   :  { %9244 = vmatpush1.msra.mxu0 %v10350_v61  ;;  %9355 = vmatpush1.msra.mxu1 %v10367_v54  ;;  %v9430_v28 = vld [vmem:[%s15940_s14 + $0x8] sm:$0xff]  ;;  %v9445_v61 = vld [vmem:[%s15940_s14 + $0x80] sm:$0xff]  ;;  %v11906_v54 = vmov 1966171168  }
0x1754   :  { %9245 = vmatprep.subr.mxu0 %v10349_v33  ;;  %9356 = vmatprep.subr.mxu1 %v10366_v62  ;;  %v7638_v33 = vunpack.c.l.s4 %v11906_v54  ;;  %v7640_v62 = vlaneseq }
0x1755   :  { %9246 = vmatpush1.msra.mxu0 %v10348_v10  ;;  %9357 = vmatpush1.msra.mxu1 %v10365_v38  ;;  %v7631_v10 = vpop.f32.mrf.mxu0 }
0x1756   :  { %9247 = vmatprep.subr.mxu0 %v10347_v34  ;;  %9358 = vmatprep.subr.mxu1 %v10364_v47  ;;  %v7639_v34 = vunpack.c.0.s8 %v7638_v33  ;;  %v15876_v47 = vshrl.u32 %v7640_v62, 7 }
0x1757   :  { %9248 = vmatpush1.msra.mxu0 %v10346_v52  ;;  %9359 = vmatpush1.msra.mxu1 %v10363_v53  ;;  %v7636_v53 = vcombine.low %v7629_v31, %v7631_v10 }
0x1758   :  { %9249 = vmatprep.subr.mxu0 %v10345_v57  ;;  %9360 = vmatprep.subr.mxu1 %v10362_v63  ;;  %v15879_v57 = vsub.s32 %v7639_v34, %v15876_v47 }
0x1759   :  { %9250 = vmatpush1.msra.mxu0 %v10344_v13  ;;  %9361 = vmatpush1.msra.mxu1 %v10361_v41 }
0x175a   :  { %9251 = vmatprep.subr.mxu0 %v10343_v15  ;;  %9362 = vmatprep.subr.mxu1 %v10360_v8  ;;  %v7643_v15 = vrot.slane %v7636_v53, %v15879_v57 }
0x175b   :  { %9252 = vmatpush1.msra.mxu0 %v10342_v2  ;;  %9363 = vmatpush1.msra.mxu1 %v10359_v14 }
0x175c   :  { %9253 = vmatprep.subr.mxu0 %v10341_v48  ;;  %9364 = vmatprep.subr.mxu1 %v10358_v6 }
0x175d   :  { %9254 = vmatpush1.msra.mxu0 %v10340_v59  ;;  %9365 = vmatpush1.msra.mxu1 %v10357_v45  ;;  %v7650_v59 = vrot.slane %v7643_v15, %v15879_v57 }
0x175e   :  { %9255 = vmatprep.subr.mxu0 %v10339_v55  ;;  %9366 = vmatprep.subr.mxu1 %v10356_v3  ;;  %v7555_v3 = vld [vmem:[%s15939_s13] sm:$0x3] }
0x175f   :  { %9256 = vmatpush1.msra.mxu0 %v10338_v35  ;;  %9367 = vmatpush1.msra.mxu1 %v10355_v21 }
0x1760   :  { %9257 = vmatprep.subr.mxu0 %v10337_v27  ;;  %9368 = vmatprep.subr.mxu1 %v10354_v18  ;;  %v7652_v18 = vadd.f32 %v7650_v59, %v7555_v3 }
0x1761   :  { %9258 = vmatpush1.msra.mxu0 %v10336_v29  ;;  %9291 = vmatprep.mubr.f32.mxu0 %v11904_v0 }
0x1762   :  { %9369 = vmatpush1.msra.mxu1 %v10353_v22  ;;  %9402 = vmatprep.mubr.f32.mxu1 %v11904_v0  ;;  %v9443_v0 = vld [vmem:[%s15940_s14 + $0x70] sm:$0xff] }
0x1763   :  { %10352 = vmatmul.mubr.msk.f32.vlgmr.msra.gmra.mxu0 %vm5975_vm9, %v9206_v42  ;;  %10369 = vmatmul.mubr.msk.f32.vlgmr.msra.gmra.mxu1 %vm5975_vm9, %v9317_v20 }
0x1764   :  { %10757 = vmatprep.subr.mxu0 %v9460_v40 }
0x1765   :  { %10758 = vmatpush3.msra.mxu0 %v9444_v58 }
0x1766   :  { %10759 = vmatprep.subr.mxu0 %v9459_v24 }
0x1767   :  { %10760 = vmatpush3.msra.mxu0 %v9443_v0 }
0x1768   :  { %10761 = vmatprep.subr.mxu0 %v9458_v5 }
0x1769   :  { %10762 = vmatpush3.msra.mxu0 %v9442_v19 }
0x176a   :  { %10763 = vmatprep.subr.mxu0 %v9457_v9 }
0x176b   :  { %10764 = vmatpush3.msra.mxu0 %v9441_v4 }
0x176c   :  { %10765 = vmatprep.subr.mxu0 %v9456_v32 }
0x176d   :  { %10766 = vmatpush3.msra.mxu0 %v9440_v43 }
0x176e   :  { %10767 = vmatprep.subr.mxu0 %v9455_v50 }
0x176f   :  { %10768 = vmatpush3.msra.mxu0 %v9439_v11 }
0x1770   :  { %10769 = vmatprep.subr.mxu0 %v9454_v60 }
0x1771   :  { %10770 = vmatpush3.msra.mxu0 %v9438_v23 }
0x1772   :  { %10771 = vmatprep.subr.mxu0 %v9453_v25 }
0x1773   :  { %10772 = vmatpush3.msra.mxu0 %v9437_v1 }
0x1774   :  { %10773 = vmatprep.subr.mxu0 %v9452_v36 }
0x1775   :  { %10774 = vmatpush3.msra.mxu0 %v9436_v39 }
0x1776   :  { %10775 = vmatprep.subr.mxu0 %v9451_v49 }
0x1777   :  { %10776 = vmatpush3.msra.mxu0 %v9435_v56 }
0x1778   :  { %10777 = vmatprep.subr.mxu0 %v9450_v26 }
0x1779   :  { %10778 = vmatpush3.msra.mxu0 %v9434_v51 }
0x177a   :  { %10779 = vmatprep.subr.mxu0 %v9449_v30 }
0x177b   :  { %10780 = vmatpush3.msra.mxu0 %v9433_v7 }
0x177c   :  { %10781 = vmatprep.subr.mxu0 %v9448_v16 }
0x177d   :  { %10782 = vmatpush3.msra.mxu0 %v9432_v44 }
0x177e   :  { %10783 = vmatprep.subr.mxu0 %v9447_v46 }
0x177f   :  { %10784 = vmatpush3.msra.mxu0 %v9431_v37 }
0x1780   :  { %10785 = vmatprep.subr.mxu0 %v9446_v17 }
0x1781   :  { %10786 = vmatpush3.msra.mxu0 %v9430_v28 }
0x1782   :  { %10787 = vmatprep.subr.mxu0 %v9445_v61 }
0x1783   :  { %10788 = vmatpush3.msra.mxu0 %v9429_v12 }
0x17a6   :  { %v7739_v38 = vpop.f32.mrf.mxu0  ;;  %v7850_v63 = vpop.f32.mrf.mxu1 }
0x17a8   :  { %v7741_v52 = vpop.f32.mrf.mxu0  ;;  %v7852_v8 = vpop.f32.mrf.mxu1 }
0x17a9   :  { %v7746_v41 = vcombine.low %v7739_v38, %v7741_v52  ;;  %v7857_v45 = vcombine.low %v7850_v63, %v7852_v8 }
0x17ab   :  { %v7753_v14 = vrot.slane %v7746_v41, %v15879_v57  ;;  %v7864_v29 = vrot.slane %v7857_v45, %v15879_v57 }
0x17ad   :  { %v7760_v35 = vrot.slane %v7753_v14, %v15879_v57  ;;  %v7871_v0 = vrot.slane %v7864_v29, %v15879_v57 }
0x17af   :  { %v7762_v40 = vadd.f32 %v7760_v35, %v7652_v18 }
0x17b1   :  { %v7873_v4 = vadd.f32 %v7871_v0, %v7762_v40 }
0x17b7   :  { %v7961_v13 = vpop.f32.mrf.mxu0  ;;  %v8072_v48 = vpop.f32.mrf.mxu1 }
0x17b9   :  { %v7963_v2 = vpop.f32.mrf.mxu0  ;;  %v8074_v21 = vpop.f32.mrf.mxu1 }
0x17ba   :  { %v7968_v55 = vcombine.low %v7961_v13, %v7963_v2  ;;  %v8079_v58 = vcombine.low %v8072_v48, %v8074_v21 }
0x17bc   :  { %v7975_v22 = vrot.slane %v7968_v55, %v15879_v57  ;;  %v8086_v32 = vrot.slane %v8079_v58, %v15879_v57 }
0x17be   :  { %v7982_v5 = vrot.slane %v7975_v22, %v15879_v57  ;;  %v8093_v1 = vrot.slane %v8086_v32, %v15879_v57 }
0x17c0   :  { %v7984_v60 = vadd.f32 %v7982_v5, %v7873_v4 }
0x17c2   :  { %v8095_v56 = vadd.f32 %v8093_v1, %v7984_v60  ;;  %v9465_v1 = vsub.s32 0, %v15876_v47 }
0x17c9   :  { %v8183_v6 = vpop.f32.mrf.mxu0  ;;  %v8294_v42 = vpop.f32.mrf.mxu1 }
0x17cb   :  { %v8185_v27 = vpop.f32.mrf.mxu0  ;;  %v8296_v19 = vpop.f32.mrf.mxu1 }
0x17cc   :  { %v8190_v24 = vcombine.low %v8183_v6, %v8185_v27  ;;  %v8301_v23 = vcombine.low %v8294_v42, %v8296_v19 }
0x17ce   :  { %v8197_v43 = vrot.slane %v8190_v24, %v15879_v57  ;;  %v8308_v26 = vrot.slane %v8301_v23, %v15879_v57 }
0x17d0   :  { %v8204_v36 = vrot.slane %v8197_v43, %v15879_v57  ;;  %v8315_v37 = vrot.slane %v8308_v26, %v15879_v57 }
0x17d2   :  { %v8206_v16 = vadd.f32 %v8204_v36, %v8095_v56  ;;  %v9469_v36 = vsub.s32 1, %v15876_v47 }
0x17d4   :  { %v8317_v12 = vadd.f32 %v8315_v37, %v8206_v16 }
0x17db   :  { %v8405_v20 = vpop.f32.mrf.mxu0  ;;  %v8516_v50 = vpop.f32.mrf.mxu1 }
0x17dd   :  { %v8407_v9 = vpop.f32.mrf.mxu0  ;;  %v8518_v39 = vpop.f32.mrf.mxu1 }
0x17de   :  { %v8412_v25 = vcombine.low %v8405_v20, %v8407_v9  ;;  %v8523_v44 = vcombine.low %v8516_v50, %v8518_v39 }
0x17e0   :  { %v8419_v51 = vrot.slane %v8412_v25, %v15879_v57  ;;  %v8530_v31 = vrot.slane %v8523_v44, %v15879_v57 }
0x17e2   :  { %v8426_v17 = vrot.slane %v8419_v51, %v15879_v57  ;;  %v8537_v52 = vrot.slane %v8530_v31, %v15879_v57  ;;  %v9461_v51 = vld [vmem:[%s15941_s15] sm:$0x1] }
0x17e4   :  { %v8428_v10 = vadd.f32 %v8426_v17, %v8317_v12 }
0x17e6   :  { %v8539_v41 = vadd.f32 %v8537_v52, %v8428_v10 }
0x17ed   :  { %v8627_v11 = vpop.f32.mrf.mxu0  ;;  %v8738_v30 = vpop.f32.mrf.mxu1 }
0x17ef   :  { %v8629_v49 = vpop.f32.mrf.mxu0  ;;  %v8740_v28 = vpop.f32.mrf.mxu1 }
0x17f0   :  { %v8634_v46 = vcombine.low %v8627_v11, %v8629_v49  ;;  %v8745_v38 = vcombine.low %v8738_v30, %v8740_v28 }
0x17f2   :  { %v8641_v54 = vrot.slane %v8634_v46, %v15879_v57  ;;  %v8752_v15 = vrot.slane %v8745_v38, %v15879_v57 }
0x17f4   :  { %v8648_v53 = vrot.slane %v8641_v54, %v15879_v57  ;;  %v8759_v59 = vrot.slane %v8752_v15, %v15879_v57 }
0x17f6   :  { %v8650_v14 = vadd.f32 %v8648_v53, %v8539_v41 }
0x17f8   :  { %v8761_v3 = vadd.f32 %v8759_v59, %v8650_v14 }
0x17ff   :  { %v8849_v7 = vpop.f32.mrf.mxu0  ;;  %v8960_v33 = vpop.f32.mrf.mxu1 }
0x1801   :  { %v8851_v61 = vpop.f32.mrf.mxu0  ;;  %v8962_v63 = vpop.f32.mrf.mxu1 }
0x1802   :  { %v8856_v34 = vcombine.low %v8849_v7, %v8851_v61  ;;  %v8967_v48 = vcombine.low %v8960_v33, %v8962_v63 }
0x1804   :  { %v8863_v8 = vrot.slane %v8856_v34, %v15879_v57  ;;  %v8974_v35 = vrot.slane %v8967_v48, %v15879_v57 }
0x1806   :  { %v8870_v45 = vrot.slane %v8863_v8, %v15879_v57  ;;  %v8981_v29 = vrot.slane %v8974_v35, %v15879_v57 }
0x1808   :  { %v8872_v27 = vadd.f32 %v8870_v45, %v8761_v3 }
0x180a   :  { %v8983_v40 = vadd.f32 %v8981_v29, %v8872_v27 }
0x1811   :  { %v9071_v62 = vpop.f32.mrf.mxu0  ;;  %v9182_v2 = vpop.f32.mrf.mxu1 }
0x1813   :  { %v9073_v13 = vpop.f32.mrf.mxu0  ;;  %v9184_v55 = vpop.f32.mrf.mxu1 }
0x1814   :  { %v9078_v6 = vcombine.low %v9071_v62, %v9073_v13  ;;  %v9189_v18 = vcombine.low %v9182_v2, %v9184_v55 }
0x1816   :  { %v9085_v21 = vrot.slane %v9078_v6, %v15879_v57  ;;  %v9196_v58 = vrot.slane %v9189_v18, %v15879_v57 }
0x1818   :  { %v9092_v22 = vrot.slane %v9085_v21, %v15879_v57  ;;  %v9203_v4 = vrot.slane %v9196_v58, %v15879_v57 }
0x181a   :  { %v9094_v5 = vadd.f32 %v9092_v22, %v8983_v40 }
0x181c   :  { %v9205_v50 = vadd.f32 %v9203_v4, %v9094_v5 }
0x1823   :  { %v9293_v42 = vpop.f32.mrf.mxu0  ;;  %v9404_v20 = vpop.f32.mrf.mxu1 }
0x1825   :  { %v9295_v24 = vpop.f32.mrf.mxu0  ;;  %v9406_v0 = vpop.f32.mrf.mxu1 }
0x1826   :  { %v9300_v19 = vcombine.low %v9293_v42, %v9295_v24  ;;  %v9411_v9 = vcombine.low %v9404_v20, %v9406_v0 }
0x1828   :  { %v9307_v32 = vrot.slane %v9300_v19, %v15879_v57  ;;  %v9418_v43 = vrot.slane %v9411_v9, %v15879_v57 }
0x182a   :  { %v9314_v11 = vrot.slane %v9307_v32, %v15879_v57  ;;  %v9425_v23 = vrot.slane %v9418_v43, %v15879_v57 }
0x182c   :  { %v9316_v60 = vadd.f32 %v9314_v11, %v9205_v50 }
0x182e   :  { %v9427_v25 = vadd.f32 %v9425_v23, %v9316_v60 }
0x1830   :  { %v9428_v39 = vmax.f32 %v9427_v25, 0.0 }
0x1832   :  { %v9466_v49 = vrot.slane %v9428_v39, %v9465_v1  ;;  %v9470_v56 = vrot.slane %v9428_v39, %v9469_v36 }
0x1834   :  { %9537 = vmatprep.mubr.f32.mxu0 %v9470_v56 }
0x1835   :  { %9538 = vmatmul.mubr.f32.vlgmr.msra.gmra.mxu0 %v9466_v49 }
0x18f5   :  { %v10789_v26 = vpop.f32.mrf.mxu0 }
0x18f7   :  { %v10790_v30 = vpop.f32.mrf.mxu0 }
0x18f8   :  { %v10791_v7 = vadd.f32 %v10790_v30, %v10789_v26 }
0x18fa   :  { %v9540_v57 = vadd.f32 %v10791_v7, %v9461_v51 }
0x18fc   :  { %9544 = vst.msk [vmem:[#allocation11] sm:$0x1] %vm9543_vm13, %v9540_v57 }
0x18fd   :  { %11882 = shalt.err (!%p11879_p5)
}
0x18fe   :  { %9554 = dma.vmem_to_hbm [thread:$0]  %s9552_s18, 16, %s15942_s16, [#allocation7]  }
0x18ff   :  { %11895 = dma.done.wait [#allocation7], 16  }
0x1900   :  { %11896 = vsyncadd [#allocation7], 4294967280 }
0x1901   :  { %9558 = vsyncpa [#allocation6], 1 }
0x1902   :  { %9559 = vsyncpa [#allocation9], 1 }
0x1903   :  { %9560 = vsyncpa [#allocation7], 1 }

</bundles_post_ra>
